<compile_context>
chip_gen: v6e
topology: v6e:2x2x1
jax: 0.10.0
libtpu: 0.0.40
codegen_flags: <defaults>
</compile_context>

<pallas_src>
import functools

import jax
import jax.numpy as jnp
from jax.experimental import pallas as pl
from jax.experimental.pallas import tpu as pltpu


# ----------------------------- helpers (glue) ------------------------------
def split_filters(filters, groups):
    """Same as MixNet splitFilters: even split, remainder to group 0."""
    splits = [filters // groups] * groups
    splits[0] += filters - sum(splits)
    return splits


def _same_pad(in_size, k, s):
    """TF 'SAME' padding: returns (pad_begin, pad_end, out_size)."""
    out = -(-in_size // s)  # ceil
    pad_total = max((out - 1) * s + k - in_size, 0)
    return pad_total // 2, pad_total - pad_total // 2, out


def _divisors(n):
    return [d for d in range(1, n + 1) if n % d == 0]


# ------------------------------ Pallas kernel ------------------------------
def _grouped_conv_kernel(*refs, meta, tile_h, wo_p, stride):
    """One (batch, row-strip) step of the fused grouped conv.

    refs  : per-group input strips, then per-group packed weights, then the
            output ref.
      strip[g] : (1, 1, s*s, tile_h + halo_g, Wd_g, cin_g)  space-to-depth,
                 exactly SAME-padded for this group (phase p = ph*stride+pw).
      weight[g]: (Kg*Kg*cin_g, cout_g)
      out      : (1, tile_h, wo_p, Cout_total)
    meta  : per-group static (K, cin, cout).
    """
    ngroups = len(meta)
    x_refs = refs[:ngroups]
    w_refs = refs[ngroups:2 * ngroups]
    o_ref = refs[2 * ngroups]

    group_outs = []
    for g, (K, cin, cout) in enumerate(meta):
        x_ref = x_refs[g]
        # Full im2col window for this strip: K*K contiguous, statically
        # addressed slices (channels already start at lane 0 for this group).
        parts = []
        for kh in range(K):
            ph, hq = kh % stride, kh // stride
            for kw in range(K):
                pw, wq = kw % stride, kw // stride
                parts.append(
                    x_ref[0, 0, ph * stride + pw,
                          hq:hq + tile_h, wq:wq + wo_p, :])
        win = parts[0] if len(parts) == 1 else jnp.concatenate(parts, axis=-1)
        # Single fattened MXU contraction per group:
        #   (tile_h*wo_p, K*K*cin) x (K*K*cin, cout), f32 accumulation.
        acc = jnp.dot(
            win.reshape(tile_h * wo_p, K * K * cin),
            w_refs[g][...],
            preferred_element_type=jnp.float32,
        )
        group_outs.append(acc.reshape(tile_h, wo_p, cout))

    # Single store of the concatenated (all groups) output strip.
    y = group_outs[0] if ngroups == 1 else jnp.concatenate(group_outs, axis=-1)
    o_ref[0] = y.astype(o_ref.dtype)


# ------------------------------- wrapper ------------------------------------
def grouped_conv2d_same(x_nhwc, weights, kernel_sizes, in_splits, out_splits,
                        stride=1, out_dtype=None):
    """Fused GroupedConv2D (TF-SAME, bias=False) on NHWC input, one pallas_call.

    weights[g] has layout (Kg, Kg, Cin_g, Cout_g); MXU operands use the dtype
    of x_nhwc, accumulation is always f32.
    """
    N, H, W, Cin = x_nhwc.shape
    G = len(kernel_sizes)
    assert len(weights) == len(in_splits) == len(out_splits) == G
    assert sum(in_splits) == Cin
    out_dtype = x_nhwc.dtype if out_dtype is None else out_dtype
    cdt = x_nhwc.dtype
    in_item = jnp.dtype(cdt).itemsize
    out_item = jnp.dtype(out_dtype).itemsize

    Ho = -(-H // stride)
    Wo = -(-W // stride)
    Cout = int(sum(out_splits))

    # Sublane-align the output width so the im2col flatten is relayout-free;
    # the extra columns compute don't-care values cropped after the call.
    sub = max(8, 32 // in_item)            # 8 for f32, 16 for bf16
    Wo_p = -(-Wo // sub) * sub

    # Per-group static geometry (exact per-group TF-SAME padding).
    geo = []
    for g, k in enumerate(kernel_sizes):
        ph0, ph1, ho_g = _same_pad(H, k, stride)
        pw0, pw1, wo_g = _same_pad(W, k, stride)
        assert (ho_g, wo_g) == (Ho, Wo)
        halo = (k - 1) // stride
        Hd = max(-(-(H + ph0 + ph1) // stride), Ho + halo)
        Wd = max(-(-(W + pw0 + pw1) // stride), halo + Wo_p)
        geo.append({"k": int(k), "ph0": ph0, "pw0": pw0,
                    "halo": halo, "Hd": Hd, "Wd": Wd})

    # --------- VMEM budgeting + tile_h selection (target ~512 pixels) -------
    try:
        info = pltpu.get_tpu_info()
        vmem_cap = int(getattr(info, "vmem_capacity_bytes", 64 * 2**20))
    except Exception:
        vmem_cap = 64 * 2**20              # v7x lower bound

    def est_bytes(th):
        tot = 0
        for g, gg in enumerate(geo):
            k, cin, cout = gg["k"], int(in_splits[g]), int(out_splits[g])
            tot += 2 * stride * stride * (th + gg["halo"]) * gg["Wd"] * cin * in_item
            tot += 2 * k * k * cin * cout * in_item      # weight blocks (dbl-buffered)
            tot += th * Wo_p * k * k * cin * in_item     # im2col operand (live value)
            tot += th * Wo_p * cout * 4                  # f32 matmul result
        tot += 2 * th * Wo_p * Cout * out_item           # output blocks
        tot += th * Wo_p * Cout * 4                      # concatenated f32 strip
        return tot

    budget = vmem_cap // 2
    target = max(1, 512 // Wo_p)           # ~512 output pixels per matmul
    cands = _divisors(Ho)
    if N == 1:
        # keep n_tiles >= 2 so both v7x TensorCores get work
        split_c = [d for d in cands if d <= Ho // 2]
        cands = split_c or cands
    within = sorted([d for d in cands if d <= target], reverse=True)
    tile_h = None
    for d in within:
        if est_bytes(d) <= budget:
            tile_h = d
            break
    if tile_h is None:
        tile_h = within[-1] if within else min(cands)
    n_tiles = Ho // tile_h
    assert n_tiles * tile_h == Ho

    vmem_limit = int(min(int(vmem_cap * 0.9),
                         max(32 * 1024 * 1024, 2 * est_bytes(tile_h))))

    # ------ host-side: per-group pad -> space-to-depth -> row strips ---------
    strips = []
    w_packed = []
    c_off = 0
    for g, gg in enumerate(geo):
        k, cin, cout = gg["k"], int(in_splits[g]), int(out_splits[g])
        halo, Hd, Wd = gg["halo"], gg["Hd"], gg["Wd"]
        rows = tile_h + halo
        # Static bound checks: VMEM ref reads have no runtime OOB check.
        assert (n_tiles - 1) * tile_h + rows <= Hd
        assert halo + Wo_p <= Wd
        xg = x_nhwc[..., c_off:c_off + cin]
        c_off += cin
        Hp, Wp = Hd * stride, Wd * stride
        xg = jnp.pad(xg, ((0, 0),
                          (gg["ph0"], Hp - H - gg["ph0"]),
                          (gg["pw0"], Wp - W - gg["pw0"]),
                          (0, 0)))
        # space-to-depth: xg[n, p=ph*s+pw, hi, wi, c] = padded[n, hi*s+ph, wi*s+pw, c]
        xg = xg.reshape(N, Hd, stride, Wd, stride, cin).transpose(0, 2, 4, 1, 3, 5)
        xg = xg.reshape(N, stride * stride, Hd, Wd, cin)
        st = jnp.stack(
            [xg[:, :, t * tile_h:t * tile_h + rows] for t in range(n_tiles)],
            axis=1)                        # (N, n_tiles, s*s, rows, Wd, cin)
        strips.append(st.astype(cdt))
        w_packed.append(weights[g].reshape(k * k * cin, cout).astype(cdt))

    meta = tuple((gg["k"], int(ci), int(co))
                 for gg, ci, co in zip(geo, in_splits, out_splits))
    kernel = functools.partial(_grouped_conv_kernel, meta=meta, tile_h=tile_h,
                               wo_p=Wo_p, stride=stride)

    in_specs = []
    for st in strips:
        in_specs.append(
            pl.BlockSpec((1, 1) + st.shape[2:],
                         lambda n, t: (n, t, 0, 0, 0, 0)))
    for wp in w_packed:
        in_specs.append(pl.BlockSpec(wp.shape, lambda n, t: (0, 0)))

    y = pl.pallas_call(
        kernel,
        out_shape=jax.ShapeDtypeStruct((N, Ho, Wo_p, Cout), out_dtype),
        grid=(N, n_tiles),
        in_specs=in_specs,
        out_specs=pl.BlockSpec((1, tile_h, Wo_p, Cout),
                               lambda n, t: (n, t, 0, 0)),
        compiler_params=pltpu.CompilerParams(
            dimension_semantics=("parallel", "parallel"),
            vmem_limit_bytes=vmem_limit,
        ),
    )(*strips, *w_packed)

    if Wo_p != Wo:
        y = y[:, :, :Wo, :]
    return y


# --------------------------- GroupedConv2D module --------------------------
class GroupedConv2DPallas:
    """JAX/Pallas port of MixNet GroupedConv2D (forward only).

    External layout is NCHW (PyTorch convention); the kernel works in NHWC so
    channels sit in the fast lane dimension.
    """

    def __init__(self, in_filters, out_filters, kernel_size, strides=1,
                 key=None, compute_dtype=jnp.float32):
        self.groups = len(kernel_size)
        self.kernel_sizes = list(kernel_size)
        self.strides = strides
        self.compute_dtype = compute_dtype
        self.out_splits = split_filters(out_filters, self.groups)
        self.in_splits = split_filters(in_filters, self.groups)
        key = jax.random.PRNGKey(42) if key is None else key
        self.weights = []
        for i, k in enumerate(self.kernel_sizes):
            key, sub = jax.random.split(key)
            fan_in = self.in_splits[i] * k * k
            w = jax.random.normal(
                sub, (k, k, self.in_splits[i], self.out_splits[i]), jnp.float32
            ) / jnp.sqrt(fan_in)
            self.weights.append(w)

    def __call__(self, x_nchw):
        # TODO(synk): in a full NHWC model these two transposes would be
        # dropped by keeping activations NHWC end-to-end.
        x = jnp.transpose(x_nchw, (0, 2, 3, 1)).astype(self.compute_dtype)
        y = grouped_conv2d_same(
            x, self.weights, self.kernel_sizes, self.in_splits,
            self.out_splits, stride=self.strides, out_dtype=x_nchw.dtype)
        return jnp.transpose(y, (0, 3, 1, 2))


# ------------------------------- reference ---------------------------------
def _reference(module, x_nchw):
    """Pure-JAX reference using lax.conv_general_dilated (NCHW, OIHW)."""
    offs = [0]
    for s_ in module.in_splits:
        offs.append(offs[-1] + s_)
    outs = []
    for i, k in enumerate(module.kernel_sizes):
        xi = x_nchw[:, offs[i]:offs[i + 1]]
        H, W = xi.shape[2], xi.shape[3]
        ph0, ph1, _ = _same_pad(H, k, module.strides)
        pw0, pw1, _ = _same_pad(W, k, module.strides)
        w_oihw = jnp.transpose(module.weights[i], (3, 2, 0, 1))
        outs.append(
            jax.lax.conv_general_dilated(
                xi, w_oihw,
                window_strides=(module.strides, module.strides),
                padding=((ph0, ph1), (pw0, pw1)),
                dimension_numbers=("NCHW", "OIHW", "NCHW"),
            )
        )
    return jnp.concatenate(outs, axis=1)


if __name__ == "__main__":
    # Small shapes consistent with the module's forward: NCHW input.
    N, C_IN, H, W = 2, 4, 16, 16
    C_OUT = 8
    KERNEL_SIZES = [3, 5]   # two groups with different kernel sizes

    key = jax.random.PRNGKey(0)
    x = jax.random.normal(key, (N, C_IN, H, W), jnp.float32)

    # 1) stride=1, two groups, f32 MXU operands.
    m1 = GroupedConv2DPallas(C_IN, C_OUT, KERNEL_SIZES, strides=1)
    y1 = jax.block_until_ready(m1(x))
    r1 = jax.block_until_ready(_reference(m1, x))
    assert y1.shape == (N, C_OUT, H, W), y1.shape
    assert jnp.allclose(y1, r1, rtol=1e-4, atol=1e-4), float(
        jnp.max(jnp.abs(y1 - r1)))

    # 2) stride=2 (downsampling conv): exercises the space-to-depth path.
    m2 = GroupedConv2DPallas(C_IN, C_OUT, KERNEL_SIZES, strides=2)
    y2 = jax.block_until_ready(m2(x))
    r2 = jax.block_until_ready(_reference(m2, x))
    assert y2.shape == (N, C_OUT, H // 2, W // 2), y2.shape
    assert jnp.allclose(y2, r2, rtol=1e-4, atol=1e-4), float(
        jnp.max(jnp.abs(y2 - r2)))

    # 3) bf16 MXU operands with f32 accumulation (v6e/v7x throughput path).
    m3 = GroupedConv2DPallas(C_IN, C_OUT, KERNEL_SIZES, strides=1,
                             compute_dtype=jnp.bfloat16)
    m3.weights = m1.weights   # same params -> compare against the f32 reference
    y3 = jax.block_until_ready(m3(x))
    assert y3.shape == (N, C_OUT, H, W), y3.shape
    assert jnp.allclose(y3, r1, rtol=5e-2, atol=5e-2), float(
        jnp.max(jnp.abs(y3 - r1)))

    print("KERNEL_OK")
</pallas_src>

<mosaic_0001>
module attributes {stable_mosaic.version = 11 : i64} {
  func.func @_grouped_conv_kernel(%arg0: i32, %arg1: i32, %arg2: memref<1x1x1x18x18x2xf32, #tpu.memory_space<vmem>>, %arg3: memref<1x1x1x20x20x2xf32, #tpu.memory_space<vmem>>, %arg4: memref<18x4xf32, #tpu.memory_space<vmem>>, %arg5: memref<50x4xf32, #tpu.memory_space<vmem>>, %arg6: memref<1x16x16x8xf32, #tpu.memory_space<vmem>>) attributes {dimension_semantics = [#tpu.dimension_semantics<parallel>, #tpu.dimension_semantics<parallel>], iteration_bounds = array<i64: 2, 1>, scalar_prefetch = 0 : i64, scratch_operands = 0 : i64, tpu.core_type = #tpu.core_type<tc>, window_params = [{transform_indices = @transform_0, window_bounds = array<i64: 1, 1, 1, 18, 18, 2>}, {transform_indices = @transform_1, window_bounds = array<i64: 1, 1, 1, 20, 20, 2>}, {pipeline_mode = #tpu.pipeline_mode<synchronous>, transform_indices = @transform_2, window_bounds = array<i64: 18, 4>}, {pipeline_mode = #tpu.pipeline_mode<synchronous>, transform_indices = @transform_3, window_bounds = array<i64: 50, 4>}, {transform_indices = @transform_4, window_bounds = array<i64: 1, 16, 16, 8>}]} {
    %c0 = arith.constant 0 : index
    %c0_0 = arith.constant 0 : index
    %c0_1 = arith.constant 0 : index
    %c0_2 = arith.constant 0 : index
    %c0_3 = arith.constant 0 : index
    %c0_4 = arith.constant 0 : index
    %0 = vector.load %arg2[%c0, %c0_0, %c0_1, %c0_2, %c0_3, %c0_4] : memref<1x1x1x18x18x2xf32, #tpu.memory_space<vmem>>, vector<1x1x1x16x16x2xf32>
    %1 = vector.shape_cast %0 : vector<1x1x1x16x16x2xf32> to vector<16x16x2xf32>
    %c0_5 = arith.constant 0 : index
    %c0_6 = arith.constant 0 : index
    %c0_7 = arith.constant 0 : index
    %c0_8 = arith.constant 0 : index
    %c1 = arith.constant 1 : index
    %c0_9 = arith.constant 0 : index
    %2 = vector.load %arg2[%c0_5, %c0_6, %c0_7, %c0_8, %c1, %c0_9] : memref<1x1x1x18x18x2xf32, #tpu.memory_space<vmem>>, vector<1x1x1x16x16x2xf32>
    %3 = vector.shape_cast %2 : vector<1x1x1x16x16x2xf32> to vector<16x16x2xf32>
    %c0_10 = arith.constant 0 : index
    %c0_11 = arith.constant 0 : index
    %c0_12 = arith.constant 0 : index
    %c0_13 = arith.constant 0 : index
    %c2 = arith.constant 2 : index
    %c0_14 = arith.constant 0 : index
    %4 = vector.load %arg2[%c0_10, %c0_11, %c0_12, %c0_13, %c2, %c0_14] : memref<1x1x1x18x18x2xf32, #tpu.memory_space<vmem>>, vector<1x1x1x16x16x2xf32>
    %5 = vector.shape_cast %4 : vector<1x1x1x16x16x2xf32> to vector<16x16x2xf32>
    %c0_15 = arith.constant 0 : index
    %c0_16 = arith.constant 0 : index
    %c0_17 = arith.constant 0 : index
    %c1_18 = arith.constant 1 : index
    %c0_19 = arith.constant 0 : index
    %c0_20 = arith.constant 0 : index
    %6 = vector.load %arg2[%c0_15, %c0_16, %c0_17, %c1_18, %c0_19, %c0_20] : memref<1x1x1x18x18x2xf32, #tpu.memory_space<vmem>>, vector<1x1x1x16x16x2xf32>
    %7 = vector.shape_cast %6 : vector<1x1x1x16x16x2xf32> to vector<16x16x2xf32>
    %c0_21 = arith.constant 0 : index
    %c0_22 = arith.constant 0 : index
    %c0_23 = arith.constant 0 : index
    %c1_24 = arith.constant 1 : index
    %c1_25 = arith.constant 1 : index
    %c0_26 = arith.constant 0 : index
    %8 = vector.load %arg2[%c0_21, %c0_22, %c0_23, %c1_24, %c1_25, %c0_26] : memref<1x1x1x18x18x2xf32, #tpu.memory_space<vmem>>, vector<1x1x1x16x16x2xf32>
    %9 = vector.shape_cast %8 : vector<1x1x1x16x16x2xf32> to vector<16x16x2xf32>
    %c0_27 = arith.constant 0 : index
    %c0_28 = arith.constant 0 : index
    %c0_29 = arith.constant 0 : index
    %c1_30 = arith.constant 1 : index
    %c2_31 = arith.constant 2 : index
    %c0_32 = arith.constant 0 : index
    %10 = vector.load %arg2[%c0_27, %c0_28, %c0_29, %c1_30, %c2_31, %c0_32] : memref<1x1x1x18x18x2xf32, #tpu.memory_space<vmem>>, vector<1x1x1x16x16x2xf32>
    %11 = vector.shape_cast %10 : vector<1x1x1x16x16x2xf32> to vector<16x16x2xf32>
    %c0_33 = arith.constant 0 : index
    %c0_34 = arith.constant 0 : index
    %c0_35 = arith.constant 0 : index
    %c2_36 = arith.constant 2 : index
    %c0_37 = arith.constant 0 : index
    %c0_38 = arith.constant 0 : index
    %12 = vector.load %arg2[%c0_33, %c0_34, %c0_35, %c2_36, %c0_37, %c0_38] : memref<1x1x1x18x18x2xf32, #tpu.memory_space<vmem>>, vector<1x1x1x16x16x2xf32>
    %13 = vector.shape_cast %12 : vector<1x1x1x16x16x2xf32> to vector<16x16x2xf32>
    %c0_39 = arith.constant 0 : index
    %c0_40 = arith.constant 0 : index
    %c0_41 = arith.constant 0 : index
    %c2_42 = arith.constant 2 : index
    %c1_43 = arith.constant 1 : index
    %c0_44 = arith.constant 0 : index
    %14 = vector.load %arg2[%c0_39, %c0_40, %c0_41, %c2_42, %c1_43, %c0_44] : memref<1x1x1x18x18x2xf32, #tpu.memory_space<vmem>>, vector<1x1x1x16x16x2xf32>
    %15 = vector.shape_cast %14 : vector<1x1x1x16x16x2xf32> to vector<16x16x2xf32>
    %c0_45 = arith.constant 0 : index
    %c0_46 = arith.constant 0 : index
    %c0_47 = arith.constant 0 : index
    %c2_48 = arith.constant 2 : index
    %c2_49 = arith.constant 2 : index
    %c0_50 = arith.constant 0 : index
    %16 = vector.load %arg2[%c0_45, %c0_46, %c0_47, %c2_48, %c2_49, %c0_50] : memref<1x1x1x18x18x2xf32, #tpu.memory_space<vmem>>, vector<1x1x1x16x16x2xf32>
    %17 = vector.shape_cast %16 : vector<1x1x1x16x16x2xf32> to vector<16x16x2xf32>
    %18 = tpu.concatenate %1, %3, %5, %7, %9, %11, %13, %15, %17 in 2 : vector<16x16x2xf32>, vector<16x16x2xf32>, vector<16x16x2xf32>, vector<16x16x2xf32>, vector<16x16x2xf32>, vector<16x16x2xf32>, vector<16x16x2xf32>, vector<16x16x2xf32>, vector<16x16x2xf32> -> vector<16x16x18xf32>
    %19 = vector.shape_cast %18 : vector<16x16x18xf32> to vector<256x18xf32>
    %c0_51 = arith.constant 0 : index
    %c0_52 = arith.constant 0 : index
    %20 = vector.load %arg4[%c0_51, %c0_52] : memref<18x4xf32, #tpu.memory_space<vmem>>, vector<18x4xf32>
    %cst = arith.constant dense<0.000000e+00> : vector<256x4xf32>
    %21 = tpu.matmul %19, %20, %cst {dimension_numbers = #tpu.dot_dimension_numbers<[1], [0], [0], [1], [0, 0, 1, 1], [], []>} : vector<256x18xf32>, vector<18x4xf32>, vector<256x4xf32> -> vector<256x4xf32>
    %22 = vector.shape_cast %21 : vector<256x4xf32> to vector<16x16x4xf32>
    %c0_53 = arith.constant 0 : index
    %c0_54 = arith.constant 0 : index
    %c0_55 = arith.constant 0 : index
    %c0_56 = arith.constant 0 : index
    %c0_57 = arith.constant 0 : index
    %c0_58 = arith.constant 0 : index
    %23 = vector.load %arg3[%c0_53, %c0_54, %c0_55, %c0_56, %c0_57, %c0_58] : memref<1x1x1x20x20x2xf32, #tpu.memory_space<vmem>>, vector<1x1x1x16x16x2xf32>
    %24 = vector.shape_cast %23 : vector<1x1x1x16x16x2xf32> to vector<16x16x2xf32>
    %c0_59 = arith.constant 0 : index
    %c0_60 = arith.constant 0 : index
    %c0_61 = arith.constant 0 : index
    %c0_62 = arith.constant 0 : index
    %c1_63 = arith.constant 1 : index
    %c0_64 = arith.constant 0 : index
    %25 = vector.load %arg3[%c0_59, %c0_60, %c0_61, %c0_62, %c1_63, %c0_64] : memref<1x1x1x20x20x2xf32, #tpu.memory_space<vmem>>, vector<1x1x1x16x16x2xf32>
    %26 = vector.shape_cast %25 : vector<1x1x1x16x16x2xf32> to vector<16x16x2xf32>
    %c0_65 = arith.constant 0 : index
    %c0_66 = arith.constant 0 : index
    %c0_67 = arith.constant 0 : index
    %c0_68 = arith.constant 0 : index
    %c2_69 = arith.constant 2 : index
    %c0_70 = arith.constant 0 : index
    %27 = vector.load %arg3[%c0_65, %c0_66, %c0_67, %c0_68, %c2_69, %c0_70] : memref<1x1x1x20x20x2xf32, #tpu.memory_space<vmem>>, vector<1x1x1x16x16x2xf32>
    %28 = vector.shape_cast %27 : vector<1x1x1x16x16x2xf32> to vector<16x16x2xf32>
    %c0_71 = arith.constant 0 : index
    %c0_72 = arith.constant 0 : index
    %c0_73 = arith.constant 0 : index
    %c0_74 = arith.constant 0 : index
    %c3 = arith.constant 3 : index
    %c0_75 = arith.constant 0 : index
    %29 = vector.load %arg3[%c0_71, %c0_72, %c0_73, %c0_74, %c3, %c0_75] : memref<1x1x1x20x20x2xf32, #tpu.memory_space<vmem>>, vector<1x1x1x16x16x2xf32>
    %30 = vector.shape_cast %29 : vector<1x1x1x16x16x2xf32> to vector<16x16x2xf32>
    %c0_76 = arith.constant 0 : index
    %c0_77 = arith.constant 0 : index
    %c0_78 = arith.constant 0 : index
    %c0_79 = arith.constant 0 : index
    %c4 = arith.constant 4 : index
    %c0_80 = arith.constant 0 : index
    %31 = vector.load %arg3[%c0_76, %c0_77, %c0_78, %c0_79, %c4, %c0_80] : memref<1x1x1x20x20x2xf32, #tpu.memory_space<vmem>>, vector<1x1x1x16x16x2xf32>
    %32 = vector.shape_cast %31 : vector<1x1x1x16x16x2xf32> to vector<16x16x2xf32>
    %c0_81 = arith.constant 0 : index
    %c0_82 = arith.constant 0 : index
    %c0_83 = arith.constant 0 : index
    %c1_84 = arith.constant 1 : index
    %c0_85 = arith.constant 0 : index
    %c0_86 = arith.constant 0 : index
    %33 = vector.load %arg3[%c0_81, %c0_82, %c0_83, %c1_84, %c0_85, %c0_86] : memref<1x1x1x20x20x2xf32, #tpu.memory_space<vmem>>, vector<1x1x1x16x16x2xf32>
    %34 = vector.shape_cast %33 : vector<1x1x1x16x16x2xf32> to vector<16x16x2xf32>
    %c0_87 = arith.constant 0 : index
    %c0_88 = arith.constant 0 : index
    %c0_89 = arith.constant 0 : index
    %c1_90 = arith.constant 1 : index
    %c1_91 = arith.constant 1 : index
    %c0_92 = arith.constant 0 : index
    %35 = vector.load %arg3[%c0_87, %c0_88, %c0_89, %c1_90, %c1_91, %c0_92] : memref<1x1x1x20x20x2xf32, #tpu.memory_space<vmem>>, vector<1x1x1x16x16x2xf32>
    %36 = vector.shape_cast %35 : vector<1x1x1x16x16x2xf32> to vector<16x16x2xf32>
    %c0_93 = arith.constant 0 : index
    %c0_94 = arith.constant 0 : index
    %c0_95 = arith.constant 0 : index
    %c1_96 = arith.constant 1 : index
    %c2_97 = arith.constant 2 : index
    %c0_98 = arith.constant 0 : index
    %37 = vector.load %arg3[%c0_93, %c0_94, %c0_95, %c1_96, %c2_97, %c0_98] : memref<1x1x1x20x20x2xf32, #tpu.memory_space<vmem>>, vector<1x1x1x16x16x2xf32>
    %38 = vector.shape_cast %37 : vector<1x1x1x16x16x2xf32> to vector<16x16x2xf32>
    %c0_99 = arith.constant 0 : index
    %c0_100 = arith.constant 0 : index
    %c0_101 = arith.constant 0 : index
    %c1_102 = arith.constant 1 : index
    %c3_103 = arith.constant 3 : index
    %c0_104 = arith.constant 0 : index
    %39 = vector.load %arg3[%c0_99, %c0_100, %c0_101, %c1_102, %c3_103, %c0_104] : memref<1x1x1x20x20x2xf32, #tpu.memory_space<vmem>>, vector<1x1x1x16x16x2xf32>
    %40 = vector.shape_cast %39 : vector<1x1x1x16x16x2xf32> to vector<16x16x2xf32>
    %c0_105 = arith.constant 0 : index
    %c0_106 = arith.constant 0 : index
    %c0_107 = arith.constant 0 : index
    %c1_108 = arith.constant 1 : index
    %c4_109 = arith.constant 4 : index
    %c0_110 = arith.constant 0 : index
    %41 = vector.load %arg3[%c0_105, %c0_106, %c0_107, %c1_108, %c4_109, %c0_110] : memref<1x1x1x20x20x2xf32, #tpu.memory_space<vmem>>, vector<1x1x1x16x16x2xf32>
    %42 = vector.shape_cast %41 : vector<1x1x1x16x16x2xf32> to vector<16x16x2xf32>
    %c0_111 = arith.constant 0 : index
    %c0_112 = arith.constant 0 : index
    %c0_113 = arith.constant 0 : index
    %c2_114 = arith.constant 2 : index
    %c0_115 = arith.constant 0 : index
    %c0_116 = arith.constant 0 : index
    %43 = vector.load %arg3[%c0_111, %c0_112, %c0_113, %c2_114, %c0_115, %c0_116] : memref<1x1x1x20x20x2xf32, #tpu.memory_space<vmem>>, vector<1x1x1x16x16x2xf32>
    %44 = vector.shape_cast %43 : vector<1x1x1x16x16x2xf32> to vector<16x16x2xf32>
    %c0_117 = arith.constant 0 : index
    %c0_118 = arith.constant 0 : index
    %c0_119 = arith.constant 0 : index
    %c2_120 = arith.constant 2 : index
    %c1_121 = arith.constant 1 : index
    %c0_122 = arith.constant 0 : index
    %45 = vector.load %arg3[%c0_117, %c0_118, %c0_119, %c2_120, %c1_121, %c0_122] : memref<1x1x1x20x20x2xf32, #tpu.memory_space<vmem>>, vector<1x1x1x16x16x2xf32>
    %46 = vector.shape_cast %45 : vector<1x1x1x16x16x2xf32> to vector<16x16x2xf32>
    %c0_123 = arith.constant 0 : index
    %c0_124 = arith.constant 0 : index
    %c0_125 = arith.constant 0 : index
    %c2_126 = arith.constant 2 : index
    %c2_127 = arith.constant 2 : index
    %c0_128 = arith.constant 0 : index
    %47 = vector.load %arg3[%c0_123, %c0_124, %c0_125, %c2_126, %c2_127, %c0_128] : memref<1x1x1x20x20x2xf32, #tpu.memory_space<vmem>>, vector<1x1x1x16x16x2xf32>
    %48 = vector.shape_cast %47 : vector<1x1x1x16x16x2xf32> to vector<16x16x2xf32>
    %c0_129 = arith.constant 0 : index
    %c0_130 = arith.constant 0 : index
    %c0_131 = arith.constant 0 : index
    %c2_132 = arith.constant 2 : index
    %c3_133 = arith.constant 3 : index
    %c0_134 = arith.constant 0 : index
    %49 = vector.load %arg3[%c0_129, %c0_130, %c0_131, %c2_132, %c3_133, %c0_134] : memref<1x1x1x20x20x2xf32, #tpu.memory_space<vmem>>, vector<1x1x1x16x16x2xf32>
    %50 = vector.shape_cast %49 : vector<1x1x1x16x16x2xf32> to vector<16x16x2xf32>
    %c0_135 = arith.constant 0 : index
    %c0_136 = arith.constant 0 : index
    %c0_137 = arith.constant 0 : index
    %c2_138 = arith.constant 2 : index
    %c4_139 = arith.constant 4 : index
    %c0_140 = arith.constant 0 : index
    %51 = vector.load %arg3[%c0_135, %c0_136, %c0_137, %c2_138, %c4_139, %c0_140] : memref<1x1x1x20x20x2xf32, #tpu.memory_space<vmem>>, vector<1x1x1x16x16x2xf32>
    %52 = vector.shape_cast %51 : vector<1x1x1x16x16x2xf32> to vector<16x16x2xf32>
    %c0_141 = arith.constant 0 : index
    %c0_142 = arith.constant 0 : index
    %c0_143 = arith.constant 0 : index
    %c3_144 = arith.constant 3 : index
    %c0_145 = arith.constant 0 : index
    %c0_146 = arith.constant 0 : index
    %53 = vector.load %arg3[%c0_141, %c0_142, %c0_143, %c3_144, %c0_145, %c0_146] : memref<1x1x1x20x20x2xf32, #tpu.memory_space<vmem>>, vector<1x1x1x16x16x2xf32>
    %54 = vector.shape_cast %53 : vector<1x1x1x16x16x2xf32> to vector<16x16x2xf32>
    %c0_147 = arith.constant 0 : index
    %c0_148 = arith.constant 0 : index
    %c0_149 = arith.constant 0 : index
    %c3_150 = arith.constant 3 : index
    %c1_151 = arith.constant 1 : index
    %c0_152 = arith.constant 0 : index
    %55 = vector.load %arg3[%c0_147, %c0_148, %c0_149, %c3_150, %c1_151, %c0_152] : memref<1x1x1x20x20x2xf32, #tpu.memory_space<vmem>>, vector<1x1x1x16x16x2xf32>
    %56 = vector.shape_cast %55 : vector<1x1x1x16x16x2xf32> to vector<16x16x2xf32>
    %c0_153 = arith.constant 0 : index
    %c0_154 = arith.constant 0 : index
    %c0_155 = arith.constant 0 : index
    %c3_156 = arith.constant 3 : index
    %c2_157 = arith.constant 2 : index
    %c0_158 = arith.constant 0 : index
    %57 = vector.load %arg3[%c0_153, %c0_154, %c0_155, %c3_156, %c2_157, %c0_158] : memref<1x1x1x20x20x2xf32, #tpu.memory_space<vmem>>, vector<1x1x1x16x16x2xf32>
    %58 = vector.shape_cast %57 : vector<1x1x1x16x16x2xf32> to vector<16x16x2xf32>
    %c0_159 = arith.constant 0 : index
    %c0_160 = arith.constant 0 : index
    %c0_161 = arith.constant 0 : index
    %c3_162 = arith.constant 3 : index
    %c3_163 = arith.constant 3 : index
    %c0_164 = arith.constant 0 : index
    %59 = vector.load %arg3[%c0_159, %c0_160, %c0_161, %c3_162, %c3_163, %c0_164] : memref<1x1x1x20x20x2xf32, #tpu.memory_space<vmem>>, vector<1x1x1x16x16x2xf32>
    %60 = vector.shape_cast %59 : vector<1x1x1x16x16x2xf32> to vector<16x16x2xf32>
    %c0_165 = arith.constant 0 : index
    %c0_166 = arith.constant 0 : index
    %c0_167 = arith.constant 0 : index
    %c3_168 = arith.constant 3 : index
    %c4_169 = arith.constant 4 : index
    %c0_170 = arith.constant 0 : index
    %61 = vector.load %arg3[%c0_165, %c0_166, %c0_167, %c3_168, %c4_169, %c0_170] : memref<1x1x1x20x20x2xf32, #tpu.memory_space<vmem>>, vector<1x1x1x16x16x2xf32>
    %62 = vector.shape_cast %61 : vector<1x1x1x16x16x2xf32> to vector<16x16x2xf32>
    %c0_171 = arith.constant 0 : index
    %c0_172 = arith.constant 0 : index
    %c0_173 = arith.constant 0 : index
    %c4_174 = arith.constant 4 : index
    %c0_175 = arith.constant 0 : index
    %c0_176 = arith.constant 0 : index
    %63 = vector.load %arg3[%c0_171, %c0_172, %c0_173, %c4_174, %c0_175, %c0_176] : memref<1x1x1x20x20x2xf32, #tpu.memory_space<vmem>>, vector<1x1x1x16x16x2xf32>
    %64 = vector.shape_cast %63 : vector<1x1x1x16x16x2xf32> to vector<16x16x2xf32>
    %c0_177 = arith.constant 0 : index
    %c0_178 = arith.constant 0 : index
    %c0_179 = arith.constant 0 : index
    %c4_180 = arith.constant 4 : index
    %c1_181 = arith.constant 1 : index
    %c0_182 = arith.constant 0 : index
    %65 = vector.load %arg3[%c0_177, %c0_178, %c0_179, %c4_180, %c1_181, %c0_182] : memref<1x1x1x20x20x2xf32, #tpu.memory_space<vmem>>, vector<1x1x1x16x16x2xf32>
    %66 = vector.shape_cast %65 : vector<1x1x1x16x16x2xf32> to vector<16x16x2xf32>
    %c0_183 = arith.constant 0 : index
    %c0_184 = arith.constant 0 : index
    %c0_185 = arith.constant 0 : index
    %c4_186 = arith.constant 4 : index
    %c2_187 = arith.constant 2 : index
    %c0_188 = arith.constant 0 : index
    %67 = vector.load %arg3[%c0_183, %c0_184, %c0_185, %c4_186, %c2_187, %c0_188] : memref<1x1x1x20x20x2xf32, #tpu.memory_space<vmem>>, vector<1x1x1x16x16x2xf32>
    %68 = vector.shape_cast %67 : vector<1x1x1x16x16x2xf32> to vector<16x16x2xf32>
    %c0_189 = arith.constant 0 : index
    %c0_190 = arith.constant 0 : index
    %c0_191 = arith.constant 0 : index
    %c4_192 = arith.constant 4 : index
    %c3_193 = arith.constant 3 : index
    %c0_194 = arith.constant 0 : index
    %69 = vector.load %arg3[%c0_189, %c0_190, %c0_191, %c4_192, %c3_193, %c0_194] : memref<1x1x1x20x20x2xf32, #tpu.memory_space<vmem>>, vector<1x1x1x16x16x2xf32>
    %70 = vector.shape_cast %69 : vector<1x1x1x16x16x2xf32> to vector<16x16x2xf32>
    %c0_195 = arith.constant 0 : index
    %c0_196 = arith.constant 0 : index
    %c0_197 = arith.constant 0 : index
    %c4_198 = arith.constant 4 : index
    %c4_199 = arith.constant 4 : index
    %c0_200 = arith.constant 0 : index
    %71 = vector.load %arg3[%c0_195, %c0_196, %c0_197, %c4_198, %c4_199, %c0_200] : memref<1x1x1x20x20x2xf32, #tpu.memory_space<vmem>>, vector<1x1x1x16x16x2xf32>
    %72 = vector.shape_cast %71 : vector<1x1x1x16x16x2xf32> to vector<16x16x2xf32>
    %73 = tpu.concatenate %24, %26, %28, %30, %32, %34, %36, %38, %40, %42, %44, %46, %48, %50, %52, %54 in 2 : vector<16x16x2xf32>, vector<16x16x2xf32>, vector<16x16x2xf32>, vector<16x16x2xf32>, vector<16x16x2xf32>, vector<16x16x2xf32>, vector<16x16x2xf32>, vector<16x16x2xf32>, vector<16x16x2xf32>, vector<16x16x2xf32>, vector<16x16x2xf32>, vector<16x16x2xf32>, vector<16x16x2xf32>, vector<16x16x2xf32>, vector<16x16x2xf32>, vector<16x16x2xf32> -> vector<16x16x32xf32>
    %74 = tpu.concatenate %56, %58, %60, %62, %64, %66, %68, %70, %72 in 2 : vector<16x16x2xf32>, vector<16x16x2xf32>, vector<16x16x2xf32>, vector<16x16x2xf32>, vector<16x16x2xf32>, vector<16x16x2xf32>, vector<16x16x2xf32>, vector<16x16x2xf32>, vector<16x16x2xf32> -> vector<16x16x18xf32>
    %75 = tpu.concatenate %73, %74 in 2 : vector<16x16x32xf32>, vector<16x16x18xf32> -> vector<16x16x50xf32>
    %76 = vector.shape_cast %75 : vector<16x16x50xf32> to vector<256x50xf32>
    %c0_201 = arith.constant 0 : index
    %c0_202 = arith.constant 0 : index
    %77 = vector.load %arg5[%c0_201, %c0_202] : memref<50x4xf32, #tpu.memory_space<vmem>>, vector<50x4xf32>
    %cst_203 = arith.constant dense<0.000000e+00> : vector<256x4xf32>
    %78 = tpu.matmul %76, %77, %cst_203 {dimension_numbers = #tpu.dot_dimension_numbers<[1], [0], [0], [1], [0, 0, 1, 1], [], []>} : vector<256x50xf32>, vector<50x4xf32>, vector<256x4xf32> -> vector<256x4xf32>
    %79 = vector.shape_cast %78 : vector<256x4xf32> to vector<16x16x4xf32>
    %80 = tpu.concatenate %22, %79 in 2 : vector<16x16x4xf32>, vector<16x16x4xf32> -> vector<16x16x8xf32>
    %c0_204 = arith.constant 0 : index
    %c0_205 = arith.constant 0 : index
    %c0_206 = arith.constant 0 : index
    %c0_207 = arith.constant 0 : index
    %81 = vector.load %arg6[%c0_204, %c0_205, %c0_206, %c0_207] : memref<1x16x16x8xf32, #tpu.memory_space<vmem>>, vector<1x16x16x8xf32>
    %82 = vector.shape_cast %81 : vector<1x16x16x8xf32> to vector<16x16x8xf32>
    %83 = vector.shape_cast %80 : vector<16x16x8xf32> to vector<1x16x16x8xf32>
    tpu.vector_store %arg6[%c0_204, %c0_205, %c0_206, %c0_207], %83 {strides = array<i32>} : memref<1x16x16x8xf32, #tpu.memory_space<vmem>>, vector<1x16x16x8xf32>,
    return
  }
  func.func @transform_0(%arg0: i32, %arg1: i32) -> (i32, i32, i32, i32, i32, i32) {
    %c0_i32 = arith.constant 0 : i32
    %c0_i32_0 = arith.constant 0 : i32
    %c0_i32_1 = arith.constant 0 : i32
    %c0_i32_2 = arith.constant 0 : i32
    %c0_i32_3 = arith.constant 0 : i32
    return %arg0, %arg1, %c0_i32, %c0_i32_0, %c0_i32_1, %c0_i32_2 : i32, i32, i32, i32, i32, i32
  }
  func.func @transform_1(%arg0: i32, %arg1: i32) -> (i32, i32, i32, i32, i32, i32) {
    %c0_i32 = arith.constant 0 : i32
    %c0_i32_0 = arith.constant 0 : i32
    %c0_i32_1 = arith.constant 0 : i32
    %c0_i32_2 = arith.constant 0 : i32
    %c0_i32_3 = arith.constant 0 : i32
    return %arg0, %arg1, %c0_i32, %c0_i32_0, %c0_i32_1, %c0_i32_2 : i32, i32, i32, i32, i32, i32
  }
  func.func @transform_2(%arg0: i32, %arg1: i32) -> (i32, i32) {
    %c0_i32 = arith.constant 0 : i32
    %c0_i32_0 = arith.constant 0 : i32
    %c0_i32_1 = arith.constant 0 : i32
    return %c0_i32, %c0_i32_0 : i32, i32
  }
  func.func @transform_3(%arg0: i32, %arg1: i32) -> (i32, i32) {
    %c0_i32 = arith.constant 0 : i32
    %c0_i32_0 = arith.constant 0 : i32
    %c0_i32_1 = arith.constant 0 : i32
    return %c0_i32, %c0_i32_0 : i32, i32
  }
  func.func @transform_4(%arg0: i32, %arg1: i32) -> (i32, i32, i32, i32) {
    %c0_i32 = arith.constant 0 : i32
    %c0_i32_0 = arith.constant 0 : i32
    %c0_i32_1 = arith.constant 0 : i32
    return %arg0, %arg1, %c0_i32, %c0_i32_0 : i32, i32, i32, i32
  }
}

</mosaic_0001>

<bundles_post_ra>
// kernel: tpu_custom_call.1
= control target key start
LH: loop header
LB: loop body
LE: loop exit
PB: predicated region body
PF: predicated region fallthrough
CT: control target
= control target key end

     0   :  { %s8751_s15 = smov 0   ;;  %s8753_s16 = smov 0   ;;  %s15828_s0 = inlined_call_operand.vmem [shape: f32[2,1,1,18,18,2], index: 0, kind: input, shape index: {}]   ;;  %s15829_s1 = inlined_call_operand.vmem [shape: f32[2,1,1,20,20,2], index: 1, kind: input, shape index: {}]   ;;  %s15830_s2 = inlined_call_operand.vmem [shape: f32[18,4], index: 2, kind: input, shape index: {}]   ;;  %s15831_s3 = inlined_call_operand.vmem [shape: f32[50,4], index: 3, kind: input, shape index: {}]   ;;  %s15832_s4 = inlined_call_operand.vmem [shape: f32[2,16,16,8], index: 4, kind: output, shape index: {}]  }
   0x1   :  { %s8755_s17 = smov 0  }
   0x2 LB: > { %s26_s18 = sadd.s32 1, %s8704_s16  ;;  %p7474_p0 = scmp.ge.s32.totalorder %s8708_s17, 1  ;;  %s8708_s17 = sphi %s8755_s17, %s14_s17   ;;  %s8704_s16 = sphi %s8753_s16, %s17516_s16   ;;  %s8700_s15 = sphi %s8751_s15, %s17515_s15  }
   0x3   : > { %p28_p1 = scmp.ge.s32.totalorder %s26_s18, 2  ;;  %p198_p2 = scmp.lt.s32.totalorder %s8708_s17, 3 }
   0x5   : > { %s17518_s18 = smov (%p28_p1, %s26_s18), 0  ;;  %p199_p3 = pnand %p7474_p0, %p198_p2 }
   0x7   : > { %202 = sbr.rel (%p199_p3) target bundleno = 2632 (0xa48), region = 36 }
   0xc   : > { %p242_p4 = scmp.lt.s32.totalorder %s8700_s15, 1  ;;  %s8710_s23 = smov 2   ;;  %vm1949_vm0 = vcmask 1041408   ;;  %vm1585_vm1 = vcmask 15360   ;;  %vm1618_vm2 = vcmask 31744   ;;  %vm1651_vm3 = vcmask 48128  }
   0xd   : > { %s8711_s24 = smov 4   ;;  %s8712_s25 = smov 6   ;;  %vm1684_vm4 = vcmask 64512   ;;  %vm1717_vm5 = vcmask 80896   ;;  %vm1750_vm6 = vcmask 97280   ;;  %vm15903_vm7 = vcmask 113664  }
   0xe   : > { %s17520_s15 = smov (!%p242_p4, %s8700_s15), 1  ;;  %s8713_s26 = smov 8   ;;  %vm1816_vm8 = vcmask 130048   ;;  %vm1852_vm9 = vcmask 146432   ;;  %vm5190_vm10 = vcmask 162816   ;;  %vm5223_vm11 = vcmask 179200  }
   0xf   : > { %s8584_s19 = smul.u32 432, %s17520_s15  ;;  %s8714_s27 = smov 10   ;;  %vm5256_vm12 = vcmask 195584   ;;  %vm5289_vm13 = vcmask 211968   ;;  %vm5322_vm14 = vcmask 228352   ;;  %vm5355_vm15 = vcmask 244736  }
  0x10   : > { %s8715_s28 = smov 12   ;;  %s8716_s29 = smov 14  }
  0x11   : > { %s8775_s22 = scalar_lea.vmem %s15828_s0, %s8584_s19  ;;  %s8717_s10 = smov 16  }
  0x12   : > { %v8778_v0 = vld [vmem:[%s8775_s22 + $0x19] sm:$0xff]  ;;  %v303_v1 = vld [vmem:[%s8775_s22 + $0x1] sm:$0xff]  ;;  %v304_v3 = vld [vmem:[%s8775_s22 + $0x9] sm:$0xff]  ;;  %s8585_s11 = smul.u32 480, %s17520_s15  ;;  %s8718_s19 = smov 18  }
  0x13   : > { %597 = vrot.lane.b32.xlu1 %v8778_v0, %s8710_s23  ;;  %593 = vrot.lane.b32.xlu0 %v303_v1, %s8710_s23  ;;  %v8785_v2 = vld [vmem:[%s8775_s22 + $0x21] sm:$0xff]  ;;  %v8792_v4 = vld [vmem:[%s8775_s22 + $0x39] sm:$0xff]  ;;  %s8719_s20 = smov 20   ;;  %s8720_s21 = smov 22  }
  0x14   : > { %v8795_v5 = vld [vmem:[%s8775_s22 + $0x31] sm:$0xff]  ;;  %v8805_v7 = vld [vmem:[%s8775_s22 + $0x49] sm:$0xff]  ;;  %v8815_v9 = vld [vmem:[%s8775_s22 + $0x61] sm:$0xff]  ;;  %s9976_s14 = scalar_lea.vmem %s15829_s1, %s8585_s11  ;;  %s8722_s30 = smov 26  }
  0x15   : > { %v8802_v6 = vld [vmem:[%s8775_s22 + $0x51] sm:$0xff]  ;;  %v8812_v8 = vld [vmem:[%s8775_s22 + $0x69] sm:$0xff]  ;;  %v8822_v10 = vld [vmem:[%s8775_s22 + $0x81] sm:$0xff]  ;;  %s8723_s5 = smov 28   ;;  %s8724_s6 = smov 30  }
  0x16   : > { %v8825_v11 = vld [vmem:[%s8775_s22 + $0x79] sm:$0xff]  ;;  %v8835_v13 = vld [vmem:[%s8775_s22 + $0x91] sm:$0xff]  ;;  %v8845_v15 = vld [vmem:[%s8775_s22 + $0xa9] sm:$0xff] }
  0x17   : > { %599 = vrot.lane.b32.xlu1 %v8785_v2, %s8710_s23  ;;  %595 = vrot.lane.b32.xlu0 %v304_v3, %s8710_s23  ;;  %v8832_v12 = vld [vmem:[%s8775_s22 + $0x99] sm:$0xff]  ;;  %v8842_v14 = vld [vmem:[%s8775_s22 + $0xb1] sm:$0xff] }
  0x18   : > { %v8852_v16 = vld [vmem:[%s8775_s22 + $0xc9] sm:$0xff]  ;;  %v8855_v17 = vld [vmem:[%s8775_s22 + $0xc1] sm:$0xff]  ;;  %v8865_v19 = vld [vmem:[%s8775_s22 + $0xd9] sm:$0xff] }
  0x19   : > { %v8862_v18 = vld [vmem:[%s8775_s22 + $0xe1] sm:$0xff]  ;;  %v8872_v20 = vld [vmem:[%s8775_s22 + $0xf9] sm:$0xff]  ;;  %v8875_v21 = vld [vmem:[%s8775_s22 + $0xf1] sm:$0xff] }
  0x1a   : > { %v8882_v22 = vld [vmem:[%s8775_s22 + $0x111] sm:$0xff]  ;;  %v8885_v23 = vld [vmem:[%s8775_s22 + $0x109] sm:$0xff]  ;;  %v8895_v25 = vld [vmem:[%s8775_s22 + $0x121] sm:$0xff] }
  0x1b   : > { %603 = vrot.lane.b32.xlu1 %v8792_v4, %s8710_s23  ;;  %601 = vrot.lane.b32.xlu0 %v8795_v5, %s8710_s23  ;;  %v8892_v24 = vld [vmem:[%s8775_s22 + $0x129] sm:$0xff]  ;;  %v8902_v26 = vld [vmem:[%s8775_s22 + $0x141] sm:$0xff] }
  0x1c   : > { %v8905_v27 = vld [vmem:[%s8775_s22 + $0x139] sm:$0xff]  ;;  %v8915_v29 = vld [vmem:[%s8775_s22 + $0x151] sm:$0xff]  ;;  %v8925_v31 = vld [vmem:[%s8775_s22 + $0x169] sm:$0xff] }
  0x1d   : > { %v8912_v28 = vld [vmem:[%s8775_s22 + $0x159] sm:$0xff]  ;;  %v8922_v30 = vld [vmem:[%s8775_s22 + $0x171] sm:$0xff]  ;;  %v335_v33 = vld [vmem:[%s8775_s22 + $0x2] sm:$0xff] }
  0x1e   : > { %v336_v32 = vld [vmem:[%s8775_s22 + $0xa] sm:$0xff]  ;;  %v8936_v34 = vld [vmem:[%s8775_s22 + $0x22] sm:$0xff]  ;;  %v8939_v35 = vld [vmem:[%s8775_s22 + $0x1a] sm:$0xff] }
  0x1f   : > { %607 = vrot.lane.b32.xlu1 %v8802_v6, %s8710_s23  ;;  %605 = vrot.lane.b32.xlu0 %v8805_v7, %s8710_s23  ;;  %v8946_v36 = vld [vmem:[%s8775_s22 + $0x3a] sm:$0xff]  ;;  %v8949_v37 = vld [vmem:[%s8775_s22 + $0x32] sm:$0xff] }
  0x20   : > { %v8956_v38 = vld [vmem:[%s8775_s22 + $0x52] sm:$0xff]  ;;  %v8959_v39 = vld [vmem:[%s8775_s22 + $0x4a] sm:$0xff]  ;;  %v8969_v41 = vld [vmem:[%s8775_s22 + $0x62] sm:$0xff] }
  0x21   : > { %v8966_v40 = vld [vmem:[%s8775_s22 + $0x6a] sm:$0xff]  ;;  %v8976_v42 = vld [vmem:[%s8775_s22 + $0x82] sm:$0xff]  ;;  %v8979_v43 = vld [vmem:[%s8775_s22 + $0x7a] sm:$0xff] }
  0x22   : > { %v8986_v44 = vld [vmem:[%s8775_s22 + $0x9a] sm:$0xff]  ;;  %v8989_v45 = vld [vmem:[%s8775_s22 + $0x92] sm:$0xff]  ;;  %v8999_v47 = vld [vmem:[%s8775_s22 + $0xaa] sm:$0xff] }
  0x23   : > { %611 = vrot.lane.b32.xlu1 %v8812_v8, %s8710_s23  ;;  %609 = vrot.lane.b32.xlu0 %v8815_v9, %s8710_s23  ;;  %v8996_v46 = vld [vmem:[%s8775_s22 + $0xb2] sm:$0xff]  ;;  %v9006_v48 = vld [vmem:[%s8775_s22 + $0xca] sm:$0xff] }
  0x24   : > { %v9009_v49 = vld [vmem:[%s8775_s22 + $0xc2] sm:$0xff]  ;;  %v9019_v51 = vld [vmem:[%s8775_s22 + $0xda] sm:$0xff]  ;;  %v9029_v53 = vld [vmem:[%s8775_s22 + $0xf2] sm:$0xff] }
  0x25   : > { %v9016_v50 = vld [vmem:[%s8775_s22 + $0xe2] sm:$0xff]  ;;  %v9026_v52 = vld [vmem:[%s8775_s22 + $0xfa] sm:$0xff]  ;;  %v9036_v54 = vld [vmem:[%s8775_s22 + $0x112] sm:$0xff] }
  0x26   : > { %v9039_v55 = vld [vmem:[%s8775_s22 + $0x10a] sm:$0xff]  ;;  %v9049_v57 = vld [vmem:[%s8775_s22 + $0x122] sm:$0xff]  ;;  %v9059_v59 = vld [vmem:[%s8775_s22 + $0x13a] sm:$0xff] }
  0x27   : > { %615 = vrot.lane.b32.xlu1 %v8822_v10, %s8710_s23  ;;  %613 = vrot.lane.b32.xlu0 %v8825_v11, %s8710_s23  ;;  %v9046_v56 = vld [vmem:[%s8775_s22 + $0x12a] sm:$0xff]  ;;  %v9056_v58 = vld [vmem:[%s8775_s22 + $0x142] sm:$0xff] }
  0x28   : > { %v9070_v62 = vld [vmem:[%s8775_s22 + $0x15a] sm:$0xff]  ;;  %v9073_v63 = vld [vmem:[%s8775_s22 + $0x152] sm:$0xff] }
  0x29   : > { %15906 = vst [vmem:[#allocation4_spill] sm:$0xff] %v9070_v62  ;;  %15907 = vst [vmem:[#allocation5_spill] sm:$0xff] %v9073_v63 }
  0x2b   : > { %619 = vrot.lane.b32.xlu1 %v8832_v12, %s8710_s23  ;;  %617 = vrot.lane.b32.xlu0 %v8835_v13, %s8710_s23 }
  0x2f   : > { %623 = vrot.lane.b32.xlu1 %v8842_v14, %s8710_s23  ;;  %621 = vrot.lane.b32.xlu0 %v8845_v15, %s8710_s23 }
  0x33   : > { %627 = vrot.lane.b32.xlu1 %v8852_v16, %s8710_s23  ;;  %625 = vrot.lane.b32.xlu0 %v8855_v17, %s8710_s23 }
  0x37   : > { %631 = vrot.lane.b32.xlu1 %v8862_v18, %s8710_s23  ;;  %629 = vrot.lane.b32.xlu0 %v8865_v19, %s8710_s23 }
  0x3b   : > { %635 = vrot.lane.b32.xlu1 %v8872_v20, %s8710_s23  ;;  %633 = vrot.lane.b32.xlu0 %v8875_v21, %s8710_s23 }
  0x3f   : > { %639 = vrot.lane.b32.xlu1 %v8882_v22, %s8710_s23  ;;  %637 = vrot.lane.b32.xlu0 %v8885_v23, %s8710_s23 }
  0x43   : > { %643 = vrot.lane.b32.xlu1 %v8892_v24, %s8710_s23  ;;  %641 = vrot.lane.b32.xlu0 %v8895_v25, %s8710_s23 }
  0x47   : > { %647 = vrot.lane.b32.xlu1 %v8902_v26, %s8710_s23  ;;  %645 = vrot.lane.b32.xlu0 %v8905_v27, %s8710_s23 }
  0x4b   : > { %651 = vrot.lane.b32.xlu1 %v8912_v28, %s8710_s23  ;;  %649 = vrot.lane.b32.xlu0 %v8915_v29, %s8710_s23 }
  0x4f   : > { %655 = vrot.lane.b32.xlu1 %v8922_v30, %s8710_s23  ;;  %653 = vrot.lane.b32.xlu0 %v8925_v31, %s8710_s23 }
  0x53   : > { %723 = vrot.lane.b32.xlu1 %v336_v32, %s8711_s24  ;;  %721 = vrot.lane.b32.xlu0 %v335_v33, %s8711_s24  ;;  %v9084_v32 = vld [vmem:[%s8775_s22 + $0x172] sm:$0xff]  ;;  %v9087_v33 = vld [vmem:[%s8775_s22 + $0x16a] sm:$0xff] }
  0x54   : > { %15910 = vst [vmem:[#allocation8_spill] sm:$0xff] %v9084_v32  ;;  %15911 = vst [vmem:[#allocation9_spill] sm:$0xff] %v9087_v33 }
  0x57   : > { %727 = vrot.lane.b32.xlu1 %v8936_v34, %s8711_s24  ;;  %725 = vrot.lane.b32.xlu0 %v8939_v35, %s8711_s24 }
  0x5b   : > { %731 = vrot.lane.b32.xlu1 %v8946_v36, %s8711_s24  ;;  %729 = vrot.lane.b32.xlu0 %v8949_v37, %s8711_s24 }
  0x5f   : > { %735 = vrot.lane.b32.xlu1 %v8956_v38, %s8711_s24  ;;  %733 = vrot.lane.b32.xlu0 %v8959_v39, %s8711_s24 }
  0x63   : > { %739 = vrot.lane.b32.xlu1 %v8966_v40, %s8711_s24  ;;  %737 = vrot.lane.b32.xlu0 %v8969_v41, %s8711_s24 }
  0x67   : > { %743 = vrot.lane.b32.xlu1 %v8976_v42, %s8711_s24  ;;  %741 = vrot.lane.b32.xlu0 %v8979_v43, %s8711_s24 }
  0x6b   : > { %747 = vrot.lane.b32.xlu1 %v8986_v44, %s8711_s24  ;;  %745 = vrot.lane.b32.xlu0 %v8989_v45, %s8711_s24 }
  0x6f   : > { %751 = vrot.lane.b32.xlu1 %v8996_v46, %s8711_s24  ;;  %749 = vrot.lane.b32.xlu0 %v8999_v47, %s8711_s24 }
  0x73   : > { %755 = vrot.lane.b32.xlu1 %v9006_v48, %s8711_s24  ;;  %753 = vrot.lane.b32.xlu0 %v9009_v49, %s8711_s24 }
  0x77   : > { %759 = vrot.lane.b32.xlu1 %v9016_v50, %s8711_s24  ;;  %757 = vrot.lane.b32.xlu0 %v9019_v51, %s8711_s24 }
  0x7b   : > { %763 = vrot.lane.b32.xlu1 %v9026_v52, %s8711_s24  ;;  %761 = vrot.lane.b32.xlu0 %v9029_v53, %s8711_s24 }
  0x7f   : > { %767 = vrot.lane.b32.xlu1 %v9036_v54, %s8711_s24  ;;  %765 = vrot.lane.b32.xlu0 %v9039_v55, %s8711_s24 }
  0x83   : > { %771 = vrot.lane.b32.xlu1 %v9046_v56, %s8711_s24  ;;  %769 = vrot.lane.b32.xlu0 %v9049_v57, %s8711_s24 }
  0x85   : > { %v9061_v60 = vpop.permute.xlu1 %597  ;;  %v9063_v61 = vpop.permute.xlu0 %593 }
  0x86   : > { %15904 = vst [vmem:[#allocation2_spill] sm:$0xff] %v9061_v60  ;;  %15905 = vst [vmem:[#allocation3_spill] sm:$0xff] %v9063_v61 }
  0x87   : > { %775 = vrot.lane.b32.xlu1 %v9056_v58, %s8711_s24  ;;  %773 = vrot.lane.b32.xlu0 %v9059_v59, %s8711_s24 }
  0x89   : > { %v9075_v1 = vpop.permute.xlu1 %599  ;;  %v9077_v3 = vpop.permute.xlu0 %595 }
  0x8a   : > { %15908 = vst [vmem:[#allocation6_spill] sm:$0xff] %v9075_v1  ;;  %15909 = vst [vmem:[#allocation7_spill] sm:$0xff] %v9077_v3  ;;  %v273_v3 = vld [vmem:[%s8775_s22 + $0x18] sm:$0xff]  ;;  %v274_v1 = vld [vmem:[%s8775_s22 + $0x20] sm:$0xff] }
  0x8b   : > { %779 = vrot.lane.b32.xlu1 %v9070_v62, %s8711_s24  ;;  %777 = vrot.lane.b32.xlu0 %v9073_v63, %s8711_s24 }
  0x8d   : > { %v9089_v61 = vpop.permute.xlu1 %603  ;;  %v9091_v60 = vpop.permute.xlu0 %601 }
  0x8e   : > { %15912 = vst [vmem:[#allocation10_spill] sm:$0xff] %v9089_v61  ;;  %15913 = vst [vmem:[#allocation11_spill] sm:$0xff] %v9091_v60  ;;  %v9106_v60 = vld [vmem:[%s8775_s22 + $0x38] sm:$0xff] }
  0x8f   : > { %783 = vrot.lane.b32.xlu1 %v9084_v32, %s8711_s24  ;;  %781 = vrot.lane.b32.xlu0 %v9087_v33, %s8711_s24  ;;  %15916 = vst [vmem:[#allocation14_spill] sm:$0xff] %v9106_v60  ;;  %v9113_v33 = vld [vmem:[%s8775_s22 + $0x30] sm:$0xff] }
  0x90   : > { %15919 = vst [vmem:[#allocation17_spill] sm:$0xff] %v9113_v33 }
  0x91   : > { %v9099_v63 = vpop.permute.xlu1 %607  ;;  %v9101_v62 = vpop.permute.xlu0 %605 }
  0x92   : > { %15914 = vst [vmem:[#allocation12_spill] sm:$0xff] %v9099_v63  ;;  %15915 = vst [vmem:[#allocation13_spill] sm:$0xff] %v9101_v62 }
  0x93   : > { %851 = vrot.lane.b32.xlu1 %v274_v1, %s8712_s25  ;;  %849 = vrot.lane.b32.xlu0 %v273_v3, %s8712_s25  ;;  %v9120_v1 = vld [vmem:[%s8775_s22 + $0x50] sm:$0xff] }
  0x94   : > { %15920 = vst [vmem:[#allocation18_spill] sm:$0xff] %v9120_v1 }
  0x95   : > { %v9108_v61 = vpop.permute.xlu1 %611  ;;  %v9110_v32 = vpop.permute.xlu0 %609 }
  0x96   : > { %15917 = vst [vmem:[#allocation15_spill] sm:$0xff] %v9108_v61  ;;  %15918 = vst [vmem:[#allocation16_spill] sm:$0xff] %v9110_v32  ;;  %v9127_v61 = vld [vmem:[%s8775_s22 + $0x48] sm:$0xff] }
  0x97   : > { %855 = vrot.lane.b32.xlu1 %v9106_v60, %s8712_s25  ;;  %853 = vrot.lane.b32.xlu0 %v9113_v33, %s8712_s25  ;;  %15923 = vst [vmem:[#allocation21_spill] sm:$0xff] %v9127_v61  ;;  %v9134_v32 = vld [vmem:[%s8775_s22 + $0x68] sm:$0xff]  ;;  %v9281_v60 = vld [vmem:[%s8775_s22 + $0x150] sm:$0xff] }
  0x98   : > { %15924 = vst [vmem:[#allocation22_spill] sm:$0xff] %v9134_v32  ;;  %15967 = vst [vmem:[#allocation65_spill] sm:$0xff] %v9281_v60 }
  0x99   : > { %v9122_v3 = vpop.permute.xlu1 %615  ;;  %v9124_v62 = vpop.permute.xlu0 %613 }
  0x9a   : > { %15921 = vst [vmem:[#allocation19_spill] sm:$0xff] %v9122_v3  ;;  %15922 = vst [vmem:[#allocation20_spill] sm:$0xff] %v9124_v62  ;;  %v9141_v3 = vld [vmem:[%s8775_s22 + $0x60] sm:$0xff] }
  0x9b   : > { %859 = vrot.lane.b32.xlu1 %v9120_v1, %s8712_s25  ;;  %857 = vrot.lane.b32.xlu0 %v9127_v61, %s8712_s25  ;;  %15927 = vst [vmem:[#allocation25_spill] sm:$0xff] %v9141_v3  ;;  %v9148_v62 = vld [vmem:[%s8775_s22 + $0x80] sm:$0xff] }
  0x9c   : > { %15928 = vst [vmem:[#allocation26_spill] sm:$0xff] %v9148_v62 }
  0x9d   : > { %v9136_v63 = vpop.permute.xlu1 %619  ;;  %v9138_v33 = vpop.permute.xlu0 %617 }
  0x9e   : > { %15925 = vst [vmem:[#allocation23_spill] sm:$0xff] %v9136_v63  ;;  %15926 = vst [vmem:[#allocation24_spill] sm:$0xff] %v9138_v33  ;;  %v9155_v63 = vld [vmem:[%s8775_s22 + $0x78] sm:$0xff] }
  0x9f   : > { %863 = vrot.lane.b32.xlu1 %v9134_v32, %s8712_s25  ;;  %861 = vrot.lane.b32.xlu0 %v9141_v3, %s8712_s25  ;;  %15931 = vst [vmem:[#allocation29_spill] sm:$0xff] %v9155_v63  ;;  %v9162_v33 = vld [vmem:[%s8775_s22 + $0x98] sm:$0xff] }
  0xa0   : > { %15932 = vst [vmem:[#allocation30_spill] sm:$0xff] %v9162_v33 }
  0xa1   : > { %v9150_v61 = vpop.permute.xlu1 %623  ;;  %v9152_v1 = vpop.permute.xlu0 %621 }
  0xa2   : > { %15929 = vst [vmem:[#allocation27_spill] sm:$0xff] %v9150_v61  ;;  %15930 = vst [vmem:[#allocation28_spill] sm:$0xff] %v9152_v1  ;;  %v9169_v61 = vld [vmem:[%s8775_s22 + $0x90] sm:$0xff] }
  0xa3   : > { %867 = vrot.lane.b32.xlu1 %v9148_v62, %s8712_s25  ;;  %865 = vrot.lane.b32.xlu0 %v9155_v63, %s8712_s25  ;;  %15935 = vst [vmem:[#allocation33_spill] sm:$0xff] %v9169_v61  ;;  %v9176_v1 = vld [vmem:[%s8775_s22 + $0xb0] sm:$0xff] }
  0xa4   : > { %15936 = vst [vmem:[#allocation34_spill] sm:$0xff] %v9176_v1 }
  0xa5   : > { %v9164_v3 = vpop.permute.xlu1 %627  ;;  %v9166_v32 = vpop.permute.xlu0 %625 }
  0xa6   : > { %15933 = vst [vmem:[#allocation31_spill] sm:$0xff] %v9164_v3  ;;  %15934 = vst [vmem:[#allocation32_spill] sm:$0xff] %v9166_v32  ;;  %v9183_v3 = vld [vmem:[%s8775_s22 + $0xa8] sm:$0xff] }
  0xa7   : > { %871 = vrot.lane.b32.xlu1 %v9162_v33, %s8712_s25  ;;  %869 = vrot.lane.b32.xlu0 %v9169_v61, %s8712_s25  ;;  %15939 = vst [vmem:[#allocation37_spill] sm:$0xff] %v9183_v3  ;;  %v9190_v32 = vld [vmem:[%s8775_s22 + $0xc8] sm:$0xff] }
  0xa8   : > { %15940 = vst [vmem:[#allocation38_spill] sm:$0xff] %v9190_v32 }
  0xa9   : > { %v9178_v63 = vpop.permute.xlu1 %631  ;;  %v9180_v62 = vpop.permute.xlu0 %629 }
  0xaa   : > { %15937 = vst [vmem:[#allocation35_spill] sm:$0xff] %v9178_v63  ;;  %15938 = vst [vmem:[#allocation36_spill] sm:$0xff] %v9180_v62  ;;  %v9197_v63 = vld [vmem:[%s8775_s22 + $0xc0] sm:$0xff] }
  0xab   : > { %875 = vrot.lane.b32.xlu1 %v9176_v1, %s8712_s25  ;;  %873 = vrot.lane.b32.xlu0 %v9183_v3, %s8712_s25  ;;  %15943 = vst [vmem:[#allocation41_spill] sm:$0xff] %v9197_v63  ;;  %v9204_v62 = vld [vmem:[%s8775_s22 + $0xe0] sm:$0xff] }
  0xac   : > { %15944 = vst [vmem:[#allocation42_spill] sm:$0xff] %v9204_v62 }
  0xad   : > { %v9192_v61 = vpop.permute.xlu1 %635  ;;  %v9194_v33 = vpop.permute.xlu0 %633 }
  0xae   : > { %15941 = vst [vmem:[#allocation39_spill] sm:$0xff] %v9192_v61  ;;  %15942 = vst [vmem:[#allocation40_spill] sm:$0xff] %v9194_v33  ;;  %v9211_v61 = vld [vmem:[%s8775_s22 + $0xd8] sm:$0xff] }
  0xaf   : > { %879 = vrot.lane.b32.xlu1 %v9190_v32, %s8712_s25  ;;  %877 = vrot.lane.b32.xlu0 %v9197_v63, %s8712_s25  ;;  %15947 = vst [vmem:[#allocation45_spill] sm:$0xff] %v9211_v61  ;;  %v9218_v33 = vld [vmem:[%s8775_s22 + $0xf8] sm:$0xff] }
  0xb0   : > { %15948 = vst [vmem:[#allocation46_spill] sm:$0xff] %v9218_v33 }
  0xb1   : > { %v9206_v3 = vpop.permute.xlu1 %639  ;;  %v9208_v1 = vpop.permute.xlu0 %637 }
  0xb2   : > { %15945 = vst [vmem:[#allocation43_spill] sm:$0xff] %v9206_v3  ;;  %15946 = vst [vmem:[#allocation44_spill] sm:$0xff] %v9208_v1  ;;  %v9225_v3 = vld [vmem:[%s8775_s22 + $0xf0] sm:$0xff] }
  0xb3   : > { %883 = vrot.lane.b32.xlu1 %v9204_v62, %s8712_s25  ;;  %881 = vrot.lane.b32.xlu0 %v9211_v61, %s8712_s25  ;;  %15951 = vst [vmem:[#allocation49_spill] sm:$0xff] %v9225_v3  ;;  %v9232_v1 = vld [vmem:[%s8775_s22 + $0x110] sm:$0xff] }
  0xb4   : > { %15952 = vst [vmem:[#allocation50_spill] sm:$0xff] %v9232_v1 }
  0xb5   : > { %v9220_v63 = vpop.permute.xlu1 %643  ;;  %v9222_v32 = vpop.permute.xlu0 %641 }
  0xb6   : > { %15949 = vst [vmem:[#allocation47_spill] sm:$0xff] %v9220_v63  ;;  %15950 = vst [vmem:[#allocation48_spill] sm:$0xff] %v9222_v32  ;;  %v9239_v63 = vld [vmem:[%s8775_s22 + $0x108] sm:$0xff] }
  0xb7   : > { %887 = vrot.lane.b32.xlu1 %v9218_v33, %s8712_s25  ;;  %885 = vrot.lane.b32.xlu0 %v9225_v3, %s8712_s25  ;;  %15955 = vst [vmem:[#allocation53_spill] sm:$0xff] %v9239_v63  ;;  %v9246_v32 = vld [vmem:[%s8775_s22 + $0x128] sm:$0xff] }
  0xb8   : > { %15956 = vst [vmem:[#allocation54_spill] sm:$0xff] %v9246_v32 }
  0xb9   : > { %v9234_v61 = vpop.permute.xlu1 %647  ;;  %v9236_v62 = vpop.permute.xlu0 %645 }
  0xba   : > { %15953 = vst [vmem:[#allocation51_spill] sm:$0xff] %v9234_v61  ;;  %15954 = vst [vmem:[#allocation52_spill] sm:$0xff] %v9236_v62  ;;  %v9253_v61 = vld [vmem:[%s8775_s22 + $0x120] sm:$0xff] }
  0xbb   : > { %891 = vrot.lane.b32.xlu1 %v9232_v1, %s8712_s25  ;;  %889 = vrot.lane.b32.xlu0 %v9239_v63, %s8712_s25  ;;  %15959 = vst [vmem:[#allocation57_spill] sm:$0xff] %v9253_v61  ;;  %v9260_v62 = vld [vmem:[%s8775_s22 + $0x140] sm:$0xff] }
  0xbc   : > { %15960 = vst [vmem:[#allocation58_spill] sm:$0xff] %v9260_v62 }
  0xbd   : > { %v9248_v3 = vpop.permute.xlu1 %651  ;;  %v9250_v33 = vpop.permute.xlu0 %649 }
  0xbe   : > { %15957 = vst [vmem:[#allocation55_spill] sm:$0xff] %v9248_v3  ;;  %15958 = vst [vmem:[#allocation56_spill] sm:$0xff] %v9250_v33  ;;  %v9267_v3 = vld [vmem:[%s8775_s22 + $0x138] sm:$0xff] }
  0xbf   : > { %895 = vrot.lane.b32.xlu1 %v9246_v32, %s8712_s25  ;;  %893 = vrot.lane.b32.xlu0 %v9253_v61, %s8712_s25  ;;  %15963 = vst [vmem:[#allocation61_spill] sm:$0xff] %v9267_v3  ;;  %v9274_v33 = vld [vmem:[%s8775_s22 + $0x158] sm:$0xff] }
  0xc0   : > { %15964 = vst [vmem:[#allocation62_spill] sm:$0xff] %v9274_v33 }
  0xc1   : > { %v9262_v63 = vpop.permute.xlu1 %655  ;;  %v9264_v1 = vpop.permute.xlu0 %653 }
  0xc2   : > { %15961 = vst [vmem:[#allocation59_spill] sm:$0xff] %v9262_v63  ;;  %15962 = vst [vmem:[#allocation60_spill] sm:$0xff] %v9264_v1  ;;  %v9288_v1 = vld [vmem:[%s8775_s22 + $0x170] sm:$0xff] }
  0xc3   : > { %899 = vrot.lane.b32.xlu1 %v9260_v62, %s8712_s25  ;;  %897 = vrot.lane.b32.xlu0 %v9267_v3, %s8712_s25  ;;  %v9295_v3 = vld [vmem:[%s8775_s22 + $0x168] sm:$0xff] }
  0xc5   : > { %v9276_v61 = vpop.permute.xlu1 %723  ;;  %v9278_v32 = vpop.permute.xlu0 %721 }
  0xc6   : > { %15965 = vst [vmem:[#allocation63_spill] sm:$0xff] %v9276_v61  ;;  %15966 = vst [vmem:[#allocation64_spill] sm:$0xff] %v9278_v32  ;;  %v9302_v32 = vld [vmem:[%s8775_s22 + $0x188] sm:$0xff]  ;;  %v9305_v61 = vld [vmem:[%s8775_s22 + $0x180] sm:$0xff] }
  0xc7   : > { %903 = vrot.lane.b32.xlu1 %v9274_v33, %s8712_s25  ;;  %901 = vrot.lane.b32.xlu0 %v9281_v60, %s8712_s25 }
  0xc9   : > { %v9290_v63 = vpop.permute.xlu1 %727  ;;  %v9292_v62 = vpop.permute.xlu0 %725 }
  0xca   : > { %15968 = vst [vmem:[#allocation66_spill] sm:$0xff] %v9290_v63  ;;  %15969 = vst [vmem:[#allocation67_spill] sm:$0xff] %v9292_v62 }
  0xcb   : > { %907 = vrot.lane.b32.xlu1 %v9288_v1, %s8712_s25  ;;  %905 = vrot.lane.b32.xlu0 %v9295_v3, %s8712_s25 }
  0xcd   : > { %v9307_v33 = vpop.permute.xlu1 %731  ;;  %v9309_v60 = vpop.permute.xlu0 %729 }
  0xce   : > { %15970 = vst [vmem:[#allocation68_spill] sm:$0xff] %v9307_v33  ;;  %15971 = vst [vmem:[#allocation69_spill] sm:$0xff] %v9309_v60 }
  0xcf   : > { %911 = vrot.lane.b32.xlu1 %v9302_v32, %s8712_s25  ;;  %909 = vrot.lane.b32.xlu0 %v9305_v61, %s8712_s25 }
  0xd1   : > { %v9315_v62 = vpop.permute.xlu1 %735  ;;  %v9317_v63 = vpop.permute.xlu0 %733 }
  0xd2   : > { %15972 = vst [vmem:[#allocation70_spill] sm:$0xff] %v9315_v62  ;;  %15973 = vst [vmem:[#allocation71_spill] sm:$0xff] %v9317_v63 }
  0xd3   : > { %979 = vrot.lane.b32.xlu1 %v8785_v2, %s8713_s26  ;;  %977 = vrot.lane.b32.xlu0 %v8778_v0, %s8713_s26 }
  0xd5   : > { %v9323_v33 = vpop.permute.xlu1 %739  ;;  %v9325_v60 = vpop.permute.xlu0 %737 }
  0xd7   : > { %983 = vrot.lane.b32.xlu1 %v8792_v4, %s8713_s26  ;;  %981 = vrot.lane.b32.xlu0 %v8795_v5, %s8713_s26 }
  0xd9   : > { %v9331_v62 = vpop.permute.xlu1 %743  ;;  %v9333_v63 = vpop.permute.xlu0 %741 }
  0xda   : > { %15974 = vst [vmem:[#allocation72_spill] sm:$0xff] %v9331_v62  ;;  %15975 = vst [vmem:[#allocation73_spill] sm:$0xff] %v9333_v63  ;;  %v2232_v63 = vld [vmem:[%s9976_s14 + $0x109] sm:$0xff]  ;;  %v16148_v62 = vld [vmem:[#allocation10_spill] sm:$0xff] }
  0xdb   : > { %987 = vrot.lane.b32.xlu1 %v8802_v6, %s8713_s26  ;;  %985 = vrot.lane.b32.xlu0 %v8805_v7, %s8713_s26 }
  0xdd   : > { %v9339_v0 = vpop.permute.xlu1 %747  ;;  %v9341_v2 = vpop.permute.xlu0 %745 }
  0xde   : > { %15976 = vst [vmem:[#allocation74_spill] sm:$0xff] %v9339_v0  ;;  %15977 = vst [vmem:[#allocation75_spill] sm:$0xff] %v9341_v2  ;;  %v2213_v2 = vld [vmem:[%s9976_s14 + $0x21] sm:$0xff]  ;;  %v2212_v0 = vld [vmem:[%s9976_s14 + $0x19] sm:$0xff] }
  0xdf   : > { %991 = vrot.lane.b32.xlu1 %v8812_v8, %s8713_s26  ;;  %989 = vrot.lane.b32.xlu0 %v8815_v9, %s8713_s26 }
  0xe1   : > { %v9347_v4 = vpop.permute.xlu1 %751  ;;  %v9349_v5 = vpop.permute.xlu0 %749 }
  0xe2   : > { %15978 = vst [vmem:[#allocation76_spill] sm:$0xff] %v9347_v4  ;;  %15979 = vst [vmem:[#allocation77_spill] sm:$0xff] %v9349_v5  ;;  %v7641_v4 = vld [vmem:[%s8775_s22 + $0x4a] sm:$0xff] }
  0xe3   : > { %995 = vrot.lane.b32.xlu1 %v8822_v10, %s8713_s26  ;;  %993 = vrot.lane.b32.xlu0 %v8825_v11, %s8713_s26 }
  0xe5   : > { %v9355_v6 = vpop.permute.xlu1 %755  ;;  %v9357_v7 = vpop.permute.xlu0 %753 }
  0xe6   : > { %15980 = vst [vmem:[#allocation78_spill] sm:$0xff] %v9355_v6  ;;  %15981 = vst [vmem:[#allocation79_spill] sm:$0xff] %v9357_v7  ;;  %v7615_v6 = vld [vmem:[%s8775_s22 + $0x91] sm:$0xff] }
  0xe7   : > { %999 = vrot.lane.b32.xlu1 %v8832_v12, %s8713_s26  ;;  %997 = vrot.lane.b32.xlu0 %v8835_v13, %s8713_s26 }
  0xe9   : > { %v9363_v8 = vpop.permute.xlu1 %759  ;;  %v9365_v9 = vpop.permute.xlu0 %757 }
  0xea   : > { %15982 = vst [vmem:[#allocation80_spill] sm:$0xff] %v9363_v8  ;;  %15983 = vst [vmem:[#allocation81_spill] sm:$0xff] %v9365_v9  ;;  %v16052_v9 = vld [vmem:[#allocation42_spill] sm:$0xff]  ;;  %v7609_v8 = vld [vmem:[%s8775_s22 + $0x49] sm:$0xff] }
  0xeb   : > { %1003 = vrot.lane.b32.xlu1 %v8842_v14, %s8713_s26  ;;  %1001 = vrot.lane.b32.xlu0 %v8845_v15, %s8713_s26 }
  0xed   : > { %v9371_v10 = vpop.permute.xlu1 %763  ;;  %v9373_v11 = vpop.permute.xlu0 %761 }
  0xee   : > { %15984 = vst [vmem:[#allocation82_spill] sm:$0xff] %v9371_v10  ;;  %15985 = vst [vmem:[#allocation83_spill] sm:$0xff] %v9373_v11  ;;  %v16044_v11 = vld [vmem:[#allocation34_spill] sm:$0xff] }
  0xef   : > { %1007 = vrot.lane.b32.xlu1 %v8852_v16, %s8713_s26  ;;  %1005 = vrot.lane.b32.xlu0 %v8855_v17, %s8713_s26 }
  0xf1   : > { %v9379_v12 = vpop.permute.xlu1 %767  ;;  %v9381_v13 = vpop.permute.xlu0 %765 }
  0xf2   : > { %15986 = vst [vmem:[#allocation84_spill] sm:$0xff] %v9379_v12  ;;  %15987 = vst [vmem:[#allocation85_spill] sm:$0xff] %v9381_v13  ;;  %v16036_v13 = vld [vmem:[#allocation26_spill] sm:$0xff] }
  0xf3   : > { %1011 = vrot.lane.b32.xlu1 %v8862_v18, %s8713_s26  ;;  %1009 = vrot.lane.b32.xlu0 %v8865_v19, %s8713_s26 }
  0xf5   : > { %v9387_v14 = vpop.permute.xlu1 %771  ;;  %v9389_v15 = vpop.permute.xlu0 %769 }
  0xf6   : > { %15988 = vst [vmem:[#allocation86_spill] sm:$0xff] %v9387_v14  ;;  %15989 = vst [vmem:[#allocation87_spill] sm:$0xff] %v9389_v15 }
  0xf7   : > { %1015 = vrot.lane.b32.xlu1 %v8872_v20, %s8713_s26  ;;  %1013 = vrot.lane.b32.xlu0 %v8875_v21, %s8713_s26 }
  0xf9   : > { %v9395_v16 = vpop.permute.xlu1 %775  ;;  %v9397_v17 = vpop.permute.xlu0 %773 }
  0xfa   : > { %15990 = vst [vmem:[#allocation88_spill] sm:$0xff] %v9395_v16  ;;  %15991 = vst [vmem:[#allocation89_spill] sm:$0xff] %v9397_v17 }
  0xfb   : > { %1019 = vrot.lane.b32.xlu1 %v8882_v22, %s8713_s26  ;;  %1017 = vrot.lane.b32.xlu0 %v8885_v23, %s8713_s26 }
  0xfd   : > { %v9403_v18 = vpop.permute.xlu1 %779  ;;  %v9405_v19 = vpop.permute.xlu0 %777 }
  0xfe   : > { %15992 = vst [vmem:[#allocation90_spill] sm:$0xff] %v9403_v18  ;;  %15993 = vst [vmem:[#allocation91_spill] sm:$0xff] %v9405_v19 }
  0xff   : > { %1023 = vrot.lane.b32.xlu1 %v8892_v24, %s8713_s26  ;;  %1021 = vrot.lane.b32.xlu0 %v8895_v25, %s8713_s26 }
 0x101   : > { %v9411_v20 = vpop.permute.xlu1 %783  ;;  %v9413_v21 = vpop.permute.xlu0 %781 }
 0x102   : > { %15994 = vst [vmem:[#allocation92_spill] sm:$0xff] %v9411_v20  ;;  %15995 = vst [vmem:[#allocation93_spill] sm:$0xff] %v9413_v21 }
 0x103   : > { %1027 = vrot.lane.b32.xlu1 %v8902_v26, %s8713_s26  ;;  %1025 = vrot.lane.b32.xlu0 %v8905_v27, %s8713_s26  ;;  %v9436_v26 = vld [vmem:[%s8775_s22 + $0x189] sm:$0xff]  ;;  %v9439_v27 = vld [vmem:[%s8775_s22 + $0x181] sm:$0xff] }
 0x105   : > { %v9419_v22 = vpop.permute.xlu1 %851  ;;  %v9421_v23 = vpop.permute.xlu0 %849 }
 0x107   : > { %1031 = vrot.lane.b32.xlu1 %v8912_v28, %s8713_s26  ;;  %1029 = vrot.lane.b32.xlu0 %v8915_v29, %s8713_s26 }
 0x109   : > { %v9427_v24 = vpop.permute.xlu1 %855  ;;  %v9429_v25 = vpop.permute.xlu0 %853 }
 0x10b   : > { %1035 = vrot.lane.b32.xlu1 %v8922_v30, %s8713_s26  ;;  %1033 = vrot.lane.b32.xlu0 %v8925_v31, %s8713_s26 }
 0x10d   : > { %v9441_v21 = vpop.permute.xlu1 %859  ;;  %v9443_v28 = vpop.permute.xlu0 %857 }
 0x10f   : > { %1039 = vrot.lane.b32.xlu1 %v9436_v26, %s8713_s26  ;;  %1037 = vrot.lane.b32.xlu0 %v9439_v27, %s8713_s26 }
 0x111   : > { %v9449_v29 = vpop.permute.xlu1 %863  ;;  %v9451_v30 = vpop.permute.xlu0 %861 }
 0x113   : > { %1107 = vrot.lane.b32.xlu1 %v8936_v34, %s8714_s27  ;;  %1105 = vrot.lane.b32.xlu0 %v8939_v35, %s8714_s27 }
 0x115   : > { %v9457_v31 = vpop.permute.xlu1 %867  ;;  %v9459_v20 = vpop.permute.xlu0 %865 }
 0x116   : > { %15996 = vst [vmem:[#allocation94_spill] sm:$0xff] %v9457_v31  ;;  %15997 = vst [vmem:[#allocation95_spill] sm:$0xff] %v9459_v20 }
 0x117   : > { %1111 = vrot.lane.b32.xlu1 %v8946_v36, %s8714_s27  ;;  %1109 = vrot.lane.b32.xlu0 %v8949_v37, %s8714_s27 }
 0x119   : > { %v9465_v19 = vpop.permute.xlu1 %871  ;;  %v9467_v18 = vpop.permute.xlu0 %869 }
 0x11a   : > { %15998 = vst [vmem:[#allocation96_spill] sm:$0xff] %v9465_v19  ;;  %15999 = vst [vmem:[#allocation97_spill] sm:$0xff] %v9467_v18  ;;  %v16146_v19 = vld [vmem:[#allocation6_spill] sm:$0xff] }
 0x11b   : > { %1115 = vrot.lane.b32.xlu1 %v8956_v38, %s8714_s27  ;;  %1113 = vrot.lane.b32.xlu0 %v8959_v39, %s8714_s27 }
 0x11d   : > { %v9473_v34 = vpop.permute.xlu1 %875  ;;  %v9475_v35 = vpop.permute.xlu0 %873 }
 0x11e   : > { %16000 = vst [vmem:[#allocation98_spill] sm:$0xff] %v9473_v34  ;;  %16001 = vst [vmem:[#allocation99_spill] sm:$0xff] %v9475_v35  ;;  %v7647_v34 = vld [vmem:[%s8775_s22 + $0x92] sm:$0xff] }
 0x11f   : > { %1119 = vrot.lane.b32.xlu1 %v8966_v40, %s8714_s27  ;;  %1117 = vrot.lane.b32.xlu0 %v8969_v41, %s8714_s27 }
 0x121   : > { %v9481_v36 = vpop.permute.xlu1 %879  ;;  %v9483_v37 = vpop.permute.xlu0 %877 }
 0x122   : > { %16002 = vst [vmem:[#allocation100_spill] sm:$0xff] %v9481_v36  ;;  %16003 = vst [vmem:[#allocation101_spill] sm:$0xff] %v9483_v37 }
 0x123   : > { %1123 = vrot.lane.b32.xlu1 %v8976_v42, %s8714_s27  ;;  %1121 = vrot.lane.b32.xlu0 %v8979_v43, %s8714_s27 }
 0x125   : > { %v9489_v38 = vpop.permute.xlu1 %883  ;;  %v9491_v39 = vpop.permute.xlu0 %881 }
 0x126   : > { %16004 = vst [vmem:[#allocation102_spill] sm:$0xff] %v9489_v38  ;;  %16005 = vst [vmem:[#allocation103_spill] sm:$0xff] %v9491_v39  ;;  %v7613_v38 = vld [vmem:[%s8775_s22 + $0x79] sm:$0xff] }
 0x127   : > { %1127 = vrot.lane.b32.xlu1 %v8986_v44, %s8714_s27  ;;  %1125 = vrot.lane.b32.xlu0 %v8989_v45, %s8714_s27 }
 0x129   : > { %v9497_v40 = vpop.permute.xlu1 %887  ;;  %v9499_v41 = vpop.permute.xlu0 %885 }
 0x12a   : > { %16006 = vst [vmem:[#allocation104_spill] sm:$0xff] %v9497_v40  ;;  %16007 = vst [vmem:[#allocation105_spill] sm:$0xff] %v9499_v41  ;;  %v16048_v41 = vld [vmem:[#allocation38_spill] sm:$0xff] }
 0x12b   : > { %1131 = vrot.lane.b32.xlu1 %v8996_v46, %s8714_s27  ;;  %1129 = vrot.lane.b32.xlu0 %v8999_v47, %s8714_s27 }
 0x12d   : > { %v9505_v42 = vpop.permute.xlu1 %891  ;;  %v9507_v43 = vpop.permute.xlu0 %889 }
 0x12e   : > { %16008 = vst [vmem:[#allocation106_spill] sm:$0xff] %v9505_v42  ;;  %16009 = vst [vmem:[#allocation107_spill] sm:$0xff] %v9507_v43  ;;  %v16040_v43 = vld [vmem:[#allocation30_spill] sm:$0xff] }
 0x12f   : > { %1135 = vrot.lane.b32.xlu1 %v9006_v48, %s8714_s27  ;;  %1133 = vrot.lane.b32.xlu0 %v9009_v49, %s8714_s27 }
 0x131   : > { %v9513_v44 = vpop.permute.xlu1 %895  ;;  %v9515_v45 = vpop.permute.xlu0 %893 }
 0x132   : > { %16010 = vst [vmem:[#allocation108_spill] sm:$0xff] %v9513_v44  ;;  %16011 = vst [vmem:[#allocation109_spill] sm:$0xff] %v9515_v45  ;;  %v16032_v45 = vld [vmem:[#allocation22_spill] sm:$0xff] }
 0x133   : > { %1139 = vrot.lane.b32.xlu1 %v9016_v50, %s8714_s27  ;;  %1137 = vrot.lane.b32.xlu0 %v9019_v51, %s8714_s27 }
 0x135   : > { %v9521_v46 = vpop.permute.xlu1 %899  ;;  %v9523_v47 = vpop.permute.xlu0 %897 }
 0x136   : > { %16012 = vst [vmem:[#allocation110_spill] sm:$0xff] %v9521_v46  ;;  %16013 = vst [vmem:[#allocation111_spill] sm:$0xff] %v9523_v47  ;;  %v16028_v47 = vld [vmem:[#allocation18_spill] sm:$0xff]  ;;  %v16029_v46 = vld [vmem:[#allocation21_spill] sm:$0xff] }
 0x137   : > { %1143 = vrot.lane.b32.xlu1 %v9026_v52, %s8714_s27  ;;  %1141 = vrot.lane.b32.xlu0 %v9029_v53, %s8714_s27 }
 0x139   : > { %v9529_v48 = vpop.permute.xlu1 %903  ;;  %v9531_v49 = vpop.permute.xlu0 %901 }
 0x13a   : > { %16014 = vst [vmem:[#allocation112_spill] sm:$0xff] %v9529_v48  ;;  %16015 = vst [vmem:[#allocation113_spill] sm:$0xff] %v9531_v49  ;;  %v16025_v48 = vld [vmem:[#allocation17_spill] sm:$0xff] }
 0x13b   : > { %1147 = vrot.lane.b32.xlu1 %v9036_v54, %s8714_s27  ;;  %1145 = vrot.lane.b32.xlu0 %v9039_v55, %s8714_s27 }
 0x13d   : > { %v9537_v50 = vpop.permute.xlu1 %907  ;;  %v9539_v51 = vpop.permute.xlu0 %905 }
 0x13e   : > { %16016 = vst [vmem:[#allocation114_spill] sm:$0xff] %v9537_v50  ;;  %16017 = vst [vmem:[#allocation115_spill] sm:$0xff] %v9539_v51  ;;  %v16020_v51 = vld [vmem:[#allocation4_spill] sm:$0xff]  ;;  %v9573_v50 = vld [vmem:[%s8775_s22 + $0x182] sm:$0xff] }
 0x13f   : > { %1151 = vrot.lane.b32.xlu1 %v9046_v56, %s8714_s27  ;;  %1149 = vrot.lane.b32.xlu0 %v9049_v57, %s8714_s27  ;;  %v16021_v56 = vld [vmem:[#allocation5_spill] sm:$0xff] }
 0x141   : > { %v9545_v52 = vpop.permute.xlu1 %911  ;;  %v9547_v53 = vpop.permute.xlu0 %909 }
 0x142   : > { %16018 = vst [vmem:[#allocation116_spill] sm:$0xff] %v9545_v52  ;;  %16019 = vst [vmem:[#allocation117_spill] sm:$0xff] %v9547_v53  ;;  %v16022_v53 = vld [vmem:[#allocation8_spill] sm:$0xff] }
 0x143   : > { %1155 = vrot.lane.b32.xlu1 %v9056_v58, %s8714_s27  ;;  %1153 = vrot.lane.b32.xlu0 %v9059_v59, %s8714_s27  ;;  %v16023_v58 = vld [vmem:[#allocation9_spill] sm:$0xff]  ;;  %v9570_v59 = vld [vmem:[%s8775_s22 + $0x18a] sm:$0xff] }
 0x145   : > { %v9553_v54 = vpop.permute.xlu1 %979  ;;  %v9555_v55 = vpop.permute.xlu0 %977 }
 0x147   : > { %1159 = vrot.lane.b32.xlu1 %v16020_v51, %s8714_s27  ;;  %1157 = vrot.lane.b32.xlu0 %v16021_v56, %s8714_s27 }
 0x149   : > { %v9561_v57 = vpop.permute.xlu1 %983  ;;  %v9563_v52 = vpop.permute.xlu0 %981 }
 0x14b   : > { %1163 = vrot.lane.b32.xlu1 %v16022_v53, %s8714_s27  ;;  %1161 = vrot.lane.b32.xlu0 %v16023_v58, %s8714_s27  ;;  %v16024_v58 = vld [vmem:[#allocation14_spill] sm:$0xff] }
 0x14d   : > { %v9575_v49 = vpop.permute.xlu1 %987  ;;  %v9577_v51 = vpop.permute.xlu0 %985 }
 0x14f   : > { %1167 = vrot.lane.b32.xlu1 %v9570_v59, %s8714_s27  ;;  %1165 = vrot.lane.b32.xlu0 %v9573_v50, %s8714_s27 }
 0x151   : > { %v9583_v56 = vpop.permute.xlu1 %991  ;;  %v9585_v53 = vpop.permute.xlu0 %989 }
 0x153   : > { %1235 = vrot.lane.b32.xlu1 %v16024_v58, %s8715_s28  ;;  %1233 = vrot.lane.b32.xlu0 %v16025_v48, %s8715_s28  ;;  %v16033_v58 = vld [vmem:[#allocation25_spill] sm:$0xff] }
 0x155   : > { %v9591_v17 = vpop.permute.xlu1 %995  ;;  %v9593_v16 = vpop.permute.xlu0 %993 }
 0x156   : > { %16026 = vst [vmem:[#allocation4_spill] sm:$0xff] %v9591_v17  ;;  %16027 = vst [vmem:[#allocation5_spill] sm:$0xff] %v9593_v16  ;;  %v8632_v16 = vld [vmem:[%s8775_s22 + $0x68] sm:$0xff] }
 0x157   : > { %1239 = vrot.lane.b32.xlu1 %v16028_v47, %s8715_s28  ;;  %1237 = vrot.lane.b32.xlu0 %v16029_v46, %s8715_s28  ;;  %v16037_v47 = vld [vmem:[#allocation29_spill] sm:$0xff]  ;;  %v16154_v17 = vld [vmem:[#allocation15_spill] sm:$0xff] }
 0x159   : > { %v9599_v15 = vpop.permute.xlu1 %999  ;;  %v9601_v14 = vpop.permute.xlu0 %997 }
 0x15a   : > { %16030 = vst [vmem:[#allocation8_spill] sm:$0xff] %v9599_v15  ;;  %16031 = vst [vmem:[#allocation9_spill] sm:$0xff] %v9601_v14  ;;  %v2216_v15 = vld [vmem:[%s9976_s14 + $0x49] sm:$0xff] }
 0x15b   : > { %1243 = vrot.lane.b32.xlu1 %v16032_v45, %s8715_s28  ;;  %1241 = vrot.lane.b32.xlu0 %v16033_v58, %s8715_s28  ;;  %v16041_v45 = vld [vmem:[#allocation33_spill] sm:$0xff] }
 0x15d   : > { %v9607_v48 = vpop.permute.xlu1 %1003  ;;  %v9609_v44 = vpop.permute.xlu0 %1001 }
 0x15e   : > { %16034 = vst [vmem:[#allocation14_spill] sm:$0xff] %v9607_v48  ;;  %16035 = vst [vmem:[#allocation17_spill] sm:$0xff] %v9609_v44  ;;  %v7645_v48 = vld [vmem:[%s8775_s22 + $0x7a] sm:$0xff] }
 0x15f   : > { %1247 = vrot.lane.b32.xlu1 %v16036_v13, %s8715_s28  ;;  %1245 = vrot.lane.b32.xlu0 %v16037_v47, %s8715_s28  ;;  %v16045_v13 = vld [vmem:[#allocation37_spill] sm:$0xff] }
 0x161   : > { %v9615_v46 = vpop.permute.xlu1 %1007  ;;  %v9617_v12 = vpop.permute.xlu0 %1005 }
 0x162   : > { %16038 = vst [vmem:[#allocation18_spill] sm:$0xff] %v9615_v46  ;;  %16039 = vst [vmem:[#allocation21_spill] sm:$0xff] %v9617_v12  ;;  %v7617_v46 = vld [vmem:[%s8775_s22 + $0xa9] sm:$0xff] }
 0x163   : > { %1251 = vrot.lane.b32.xlu1 %v16040_v43, %s8715_s28  ;;  %1249 = vrot.lane.b32.xlu0 %v16041_v45, %s8715_s28  ;;  %v16049_v43 = vld [vmem:[#allocation41_spill] sm:$0xff] }
 0x165   : > { %v9623_v58 = vpop.permute.xlu1 %1011  ;;  %v9625_v42 = vpop.permute.xlu0 %1009 }
 0x166   : > { %16042 = vst [vmem:[#allocation22_spill] sm:$0xff] %v9623_v58  ;;  %16043 = vst [vmem:[#allocation25_spill] sm:$0xff] %v9625_v42  ;;  %v7611_v58 = vld [vmem:[%s8775_s22 + $0x61] sm:$0xff] }
 0x167   : > { %1255 = vrot.lane.b32.xlu1 %v16044_v11, %s8715_s28  ;;  %1253 = vrot.lane.b32.xlu0 %v16045_v13, %s8715_s28  ;;  %v16053_v11 = vld [vmem:[#allocation45_spill] sm:$0xff] }
 0x169   : > { %v9631_v47 = vpop.permute.xlu1 %1015  ;;  %v9633_v10 = vpop.permute.xlu0 %1013 }
 0x16a   : > { %16046 = vst [vmem:[#allocation26_spill] sm:$0xff] %v9631_v47  ;;  %16047 = vst [vmem:[#allocation29_spill] sm:$0xff] %v9633_v10  ;;  %v16056_v10 = vld [vmem:[#allocation46_spill] sm:$0xff] }
 0x16b   : > { %1259 = vrot.lane.b32.xlu1 %v16048_v41, %s8715_s28  ;;  %1257 = vrot.lane.b32.xlu0 %v16049_v43, %s8715_s28  ;;  %v16057_v41 = vld [vmem:[#allocation49_spill] sm:$0xff] }
 0x16d   : > { %v9639_v45 = vpop.permute.xlu1 %1019  ;;  %v9641_v40 = vpop.permute.xlu0 %1017 }
 0x16e   : > { %16050 = vst [vmem:[#allocation30_spill] sm:$0xff] %v9639_v45  ;;  %16051 = vst [vmem:[#allocation33_spill] sm:$0xff] %v9641_v40  ;;  %v16060_v40 = vld [vmem:[#allocation50_spill] sm:$0xff] }
 0x16f   : > { %1263 = vrot.lane.b32.xlu1 %v16052_v9, %s8715_s28  ;;  %1261 = vrot.lane.b32.xlu0 %v16053_v11, %s8715_s28  ;;  %v16061_v9 = vld [vmem:[#allocation53_spill] sm:$0xff] }
 0x171   : > { %v9647_v13 = vpop.permute.xlu1 %1023  ;;  %v9649_v47 = vpop.permute.xlu0 %1021 }
 0x172   : > { %16054 = vst [vmem:[#allocation34_spill] sm:$0xff] %v9647_v13  ;;  %16055 = vst [vmem:[#allocation37_spill] sm:$0xff] %v9649_v47  ;;  %v16064_v47 = vld [vmem:[#allocation54_spill] sm:$0xff] }
 0x173   : > { %1267 = vrot.lane.b32.xlu1 %v16056_v10, %s8715_s28  ;;  %1265 = vrot.lane.b32.xlu0 %v16057_v41, %s8715_s28  ;;  %v16065_v10 = vld [vmem:[#allocation57_spill] sm:$0xff] }
 0x175   : > { %v9655_v43 = vpop.permute.xlu1 %1027  ;;  %v9657_v45 = vpop.permute.xlu0 %1025 }
 0x176   : > { %16058 = vst [vmem:[#allocation38_spill] sm:$0xff] %v9655_v43  ;;  %16059 = vst [vmem:[#allocation41_spill] sm:$0xff] %v9657_v45 }
 0x177   : > { %1271 = vrot.lane.b32.xlu1 %v16060_v40, %s8715_s28  ;;  %1269 = vrot.lane.b32.xlu0 %v16061_v9, %s8715_s28  ;;  %v16068_v40 = vld [vmem:[#allocation58_spill] sm:$0xff]  ;;  %v16069_v9 = vld [vmem:[#allocation61_spill] sm:$0xff] }
 0x179   : > { %v9663_v11 = vpop.permute.xlu1 %1031  ;;  %v9665_v13 = vpop.permute.xlu0 %1029 }
 0x17a   : > { %16062 = vst [vmem:[#allocation42_spill] sm:$0xff] %v9663_v11  ;;  %16063 = vst [vmem:[#allocation45_spill] sm:$0xff] %v9665_v13 }
 0x17b   : > { %1275 = vrot.lane.b32.xlu1 %v16064_v47, %s8715_s28  ;;  %1273 = vrot.lane.b32.xlu0 %v16065_v10, %s8715_s28  ;;  %v16072_v47 = vld [vmem:[#allocation62_spill] sm:$0xff]  ;;  %v16073_v10 = vld [vmem:[#allocation65_spill] sm:$0xff] }
 0x17d   : > { %v9671_v41 = vpop.permute.xlu1 %1035  ;;  %v9673_v45 = vpop.permute.xlu0 %1033 }
 0x17e   : > { %16066 = vst [vmem:[#allocation46_spill] sm:$0xff] %v9671_v41  ;;  %16067 = vst [vmem:[#allocation49_spill] sm:$0xff] %v9673_v45 }
 0x17f   : > { %1279 = vrot.lane.b32.xlu1 %v16068_v40, %s8715_s28  ;;  %1277 = vrot.lane.b32.xlu0 %v16069_v9, %s8715_s28 }
 0x181   : > { %v9679_v11 = vpop.permute.xlu1 %1039  ;;  %v9681_v13 = vpop.permute.xlu0 %1037 }
 0x182   : > { %16070 = vst [vmem:[#allocation50_spill] sm:$0xff] %v9679_v11  ;;  %16071 = vst [vmem:[#allocation53_spill] sm:$0xff] %v9681_v13  ;;  %v7607_v11 = vld [vmem:[%s8775_s22 + $0x31] sm:$0xff] }
 0x183   : > { %1283 = vrot.lane.b32.xlu1 %v16072_v47, %s8715_s28  ;;  %1281 = vrot.lane.b32.xlu0 %v16073_v10, %s8715_s28  ;;  %v7606_v47 = vld [vmem:[%s8775_s22 + $0x1a0] sm:$0xff]  ;;  %v7605_v10 = vld [vmem:[%s8775_s22 + $0x198] sm:$0xff] }
 0x185   : > { %v9687_v45 = vpop.permute.xlu1 %1107  ;;  %v9689_v41 = vpop.permute.xlu0 %1105 }
 0x187   : > { %1287 = vrot.lane.b32.xlu1 %v9288_v1, %s8715_s28  ;;  %1285 = vrot.lane.b32.xlu0 %v9295_v3, %s8715_s28  ;;  %v7608_v3 = vld [vmem:[%s8775_s22 + $0x39] sm:$0xff] }
 0x189   : > { %v9695_v40 = vpop.permute.xlu1 %1111  ;;  %v9697_v9 = vpop.permute.xlu0 %1109 }
 0x18b   : > { %1291 = vrot.lane.b32.xlu1 %v9302_v32, %s8715_s28  ;;  %1289 = vrot.lane.b32.xlu0 %v9305_v61, %s8715_s28  ;;  %v7610_v61 = vld [vmem:[%s8775_s22 + $0x51] sm:$0xff] }
 0x18d   : > { %v9705_v13 = vpop.permute.xlu1 %1115  ;;  %v9707_v1 = vpop.permute.xlu0 %1113 }
 0x18f   : > { %1295 = vrot.lane.b32.xlu1 %v7606_v47, %s8715_s28  ;;  %1293 = vrot.lane.b32.xlu0 %v7605_v10, %s8715_s28  ;;  %v7612_v10 = vld [vmem:[%s8775_s22 + $0x69] sm:$0xff] }
 0x191   : > { %v9713_v43 = vpop.permute.xlu1 %1119  ;;  %v9715_v32 = vpop.permute.xlu0 %1117 }
 0x193   : > { %1363 = vrot.lane.b32.xlu1 %v7608_v3, %s8716_s29  ;;  %1361 = vrot.lane.b32.xlu0 %v7607_v11, %s8716_s29  ;;  %v7614_v11 = vld [vmem:[%s8775_s22 + $0x81] sm:$0xff] }
 0x195   : > { %v9721_v42 = vpop.permute.xlu1 %1123  ;;  %v9723_v47 = vpop.permute.xlu0 %1121 }
 0x196   : > { %16074 = vst [vmem:[#allocation54_spill] sm:$0xff] %v9721_v42  ;;  %16075 = vst [vmem:[#allocation57_spill] sm:$0xff] %v9723_v47  ;;  %v16151_v47 = vld [vmem:[#allocation13_spill] sm:$0xff] }
 0x197   : > { %1367 = vrot.lane.b32.xlu1 %v7610_v61, %s8716_s29  ;;  %1365 = vrot.lane.b32.xlu0 %v7609_v8, %s8716_s29  ;;  %v7616_v8 = vld [vmem:[%s8775_s22 + $0x99] sm:$0xff] }
 0x199   : > { %v9729_v39 = vpop.permute.xlu1 %1127  ;;  %v9731_v3 = vpop.permute.xlu0 %1125 }
 0x19a   : > { %16076 = vst [vmem:[#allocation58_spill] sm:$0xff] %v9729_v39  ;;  %16077 = vst [vmem:[#allocation61_spill] sm:$0xff] %v9731_v3  ;;  %v2214_v39 = vld [vmem:[%s9976_s14 + $0x31] sm:$0xff] }
 0x19b   : > { %1371 = vrot.lane.b32.xlu1 %v7612_v10, %s8716_s29  ;;  %1369 = vrot.lane.b32.xlu0 %v7611_v58, %s8716_s29  ;;  %v7618_v58 = vld [vmem:[%s8775_s22 + $0xb1] sm:$0xff] }
 0x19d   : > { %v9737_v7 = vpop.permute.xlu1 %1131  ;;  %v9739_v61 = vpop.permute.xlu0 %1129 }
 0x19e   : > { %16078 = vst [vmem:[#allocation62_spill] sm:$0xff] %v9737_v7  ;;  %16079 = vst [vmem:[#allocation65_spill] sm:$0xff] %v9739_v61  ;;  %v7643_v7 = vld [vmem:[%s8775_s22 + $0x62] sm:$0xff] }
 0x19f   : > { %1375 = vrot.lane.b32.xlu1 %v7614_v11, %s8716_s29  ;;  %1373 = vrot.lane.b32.xlu0 %v7613_v38, %s8716_s29  ;;  %v7620_v38 = vld [vmem:[%s8775_s22 + $0xc9] sm:$0xff] }
 0x1a1   : > { %v9745_v12 = vpop.permute.xlu1 %1135  ;;  %v9747_v10 = vpop.permute.xlu0 %1133 }
 0x1a2   : > { %16080 = vst [vmem:[#allocation118_spill] sm:$0xff] %v9745_v12  ;;  %16081 = vst [vmem:[#allocation119_spill] sm:$0xff] %v9747_v10  ;;  %v7619_v12 = vld [vmem:[%s8775_s22 + $0xc1] sm:$0xff] }
 0x1a3   : > { %1379 = vrot.lane.b32.xlu1 %v7616_v8, %s8716_s29  ;;  %1377 = vrot.lane.b32.xlu0 %v7615_v6, %s8716_s29  ;;  %v7622_v6 = vld [vmem:[%s8775_s22 + $0xe1] sm:$0xff] }
 0x1a5   : > { %v9753_v37 = vpop.permute.xlu1 %1139  ;;  %v9755_v11 = vpop.permute.xlu0 %1137 }
 0x1a6   : > { %16082 = vst [vmem:[#allocation120_spill] sm:$0xff] %v9753_v37  ;;  %16083 = vst [vmem:[#allocation121_spill] sm:$0xff] %v9755_v11  ;;  %v7621_v37 = vld [vmem:[%s8775_s22 + $0xd9] sm:$0xff] }
 0x1a7   : > { %1383 = vrot.lane.b32.xlu1 %v7618_v58, %s8716_s29  ;;  %1381 = vrot.lane.b32.xlu0 %v7617_v46, %s8716_s29  ;;  %v7624_v46 = vld [vmem:[%s8775_s22 + $0xf9] sm:$0xff] }
 0x1a9   : > { %v9761_v10 = vpop.permute.xlu1 %1143  ;;  %v9763_v8 = vpop.permute.xlu0 %1141 }
 0x1aa   : > { %16084 = vst [vmem:[#allocation122_spill] sm:$0xff] %v9761_v10  ;;  %16085 = vst [vmem:[#allocation123_spill] sm:$0xff] %v9763_v8  ;;  %v7623_v10 = vld [vmem:[%s8775_s22 + $0xf1] sm:$0xff] }
 0x1ab   : > { %1387 = vrot.lane.b32.xlu1 %v7620_v38, %s8716_s29  ;;  %1385 = vrot.lane.b32.xlu0 %v7619_v12, %s8716_s29  ;;  %v7626_v12 = vld [vmem:[%s8775_s22 + $0x111] sm:$0xff] }
 0x1ad   : > { %v9769_v11 = vpop.permute.xlu1 %1147  ;;  %v9771_v58 = vpop.permute.xlu0 %1145 }
 0x1ae   : > { %16086 = vst [vmem:[#allocation124_spill] sm:$0xff] %v9769_v11  ;;  %16087 = vst [vmem:[#allocation125_spill] sm:$0xff] %v9771_v58  ;;  %v7625_v11 = vld [vmem:[%s8775_s22 + $0x109] sm:$0xff] }
 0x1af   : > { %1391 = vrot.lane.b32.xlu1 %v7622_v6, %s8716_s29  ;;  %1389 = vrot.lane.b32.xlu0 %v7621_v37, %s8716_s29  ;;  %v7628_v37 = vld [vmem:[%s8775_s22 + $0x129] sm:$0xff] }
 0x1b1   : > { %v9777_v8 = vpop.permute.xlu1 %1151  ;;  %v9779_v38 = vpop.permute.xlu0 %1149 }
 0x1b2   : > { %16088 = vst [vmem:[#allocation126_spill] sm:$0xff] %v9777_v8  ;;  %16089 = vst [vmem:[#allocation127_spill] sm:$0xff] %v9779_v38  ;;  %v7627_v8 = vld [vmem:[%s8775_s22 + $0x121] sm:$0xff] }
 0x1b3   : > { %1395 = vrot.lane.b32.xlu1 %v7624_v46, %s8716_s29  ;;  %1393 = vrot.lane.b32.xlu0 %v7623_v10, %s8716_s29  ;;  %v7630_v10 = vld [vmem:[%s8775_s22 + $0x141] sm:$0xff]  ;;  %v7629_v46 = vld [vmem:[%s8775_s22 + $0x139] sm:$0xff] }
 0x1b5   : > { %v9785_v58 = vpop.permute.xlu1 %1155  ;;  %v9787_v6 = vpop.permute.xlu0 %1153 }
 0x1b6   : > { %16090 = vst [vmem:[#allocation128_spill] sm:$0xff] %v9785_v58  ;;  %16091 = vst [vmem:[#allocation129_spill] sm:$0xff] %v9787_v6 }
 0x1b7   : > { %1399 = vrot.lane.b32.xlu1 %v7626_v12, %s8716_s29  ;;  %1397 = vrot.lane.b32.xlu0 %v7625_v11, %s8716_s29  ;;  %v7632_v11 = vld [vmem:[%s8775_s22 + $0x159] sm:$0xff]  ;;  %v7631_v12 = vld [vmem:[%s8775_s22 + $0x151] sm:$0xff] }
 0x1b9   : > { %v9793_v38 = vpop.permute.xlu1 %1159  ;;  %v9795_v36 = vpop.permute.xlu0 %1157 }
 0x1ba   : > { %16092 = vst [vmem:[#allocation130_spill] sm:$0xff] %v9793_v38  ;;  %16093 = vst [vmem:[#allocation131_spill] sm:$0xff] %v9795_v36 }
 0x1bb   : > { %1403 = vrot.lane.b32.xlu1 %v7628_v37, %s8716_s29  ;;  %1401 = vrot.lane.b32.xlu0 %v7627_v8, %s8716_s29  ;;  %v1851_v8 = vld [vmem:[%s15830_s2 + $0x10] sm:$0x3]  ;;  %v1850_v37 = vld [vmem:[%s15830_s2 + $0x8] sm:$0xff] }
 0x1bc   : > { %8454 = vmatprep.subr.msk.mxu0 %vm1949_vm0, %v1851_v8 }
 0x1bd   : > { %v9801_v6 = vpop.permute.xlu1 %1163  ;;  %v9803_v58 = vpop.permute.xlu0 %1161  ;;  %8455 = vmatpush3.msk.msra.mxu0 %vm1949_vm0, %v1851_v8 }
 0x1be   : > { %16094 = vst [vmem:[#allocation132_spill] sm:$0xff] %v9801_v6  ;;  %16095 = vst [vmem:[#allocation133_spill] sm:$0xff] %v9803_v58  ;;  %8456 = vmatprep.subr.mxu0 %v1850_v37  ;;  %v7637_v58 = vld [vmem:[%s8775_s22 + $0x199] sm:$0xff] }
 0x1bf   : > { %1407 = vrot.lane.b32.xlu1 %v7630_v10, %s8716_s29  ;;  %1405 = vrot.lane.b32.xlu0 %v7629_v46, %s8716_s29  ;;  %v7634_v10 = vld [vmem:[%s8775_s22 + $0x171] sm:$0xff]  ;;  %v7633_v46 = vld [vmem:[%s8775_s22 + $0x169] sm:$0xff] }
 0x1c0   : > { %8457 = vmatpush3.msra.mxu0 %v1850_v37  ;;  %v7638_v37 = vld [vmem:[%s8775_s22 + $0x1a1] sm:$0xff] }
 0x1c1   : > { %v9809_v38 = vpop.permute.xlu1 %1167  ;;  %v9811_v36 = vpop.permute.xlu0 %1165 }
 0x1c2   : > { %16096 = vst [vmem:[#allocation134_spill] sm:$0xff] %v9809_v38  ;;  %16097 = vst [vmem:[#allocation135_spill] sm:$0xff] %v9811_v36 }
 0x1c3   : > { %1411 = vrot.lane.b32.xlu1 %v7632_v11, %s8716_s29  ;;  %1409 = vrot.lane.b32.xlu0 %v7631_v12, %s8716_s29  ;;  %v1849_v11 = vld [vmem:[%s15830_s2] sm:$0xff] }
 0x1c4   : > { %8458 = vmatprep.subr.mxu0 %v1849_v11 }
 0x1c5   : > { %v9825_v36 = vpop.permute.xlu1 %1235  ;;  %v9827_v38 = vpop.permute.xlu0 %1233  ;;  %8459 = vmatpush3.msra.mxu0 %v1849_v11  ;;  %v7639_v11 = vld [vmem:[%s8775_s22 + $0x32] sm:$0xff] }
 0x1c7   : > { %1415 = vrot.lane.b32.xlu1 %v7634_v10, %s8716_s29  ;;  %1413 = vrot.lane.b32.xlu0 %v7633_v46, %s8716_s29  ;;  %v7640_v46 = vld [vmem:[%s8775_s22 + $0x3a] sm:$0xff] }
 0x1c9   : > { %v9834_v12 = vpop.permute.xlu1 %1239  ;;  %v9836_v8 = vpop.permute.xlu0 %1237 }
 0x1cb   : > { %1419 = vrot.lane.b32.xlu1 %v9436_v26, %s8716_s29  ;;  %1417 = vrot.lane.b32.xlu0 %v9439_v27, %s8716_s29  ;;  %v7642_v27 = vld [vmem:[%s8775_s22 + $0x52] sm:$0xff] }
 0x1cd   : > { %v9844_v6 = vpop.permute.xlu1 %1243  ;;  %v9846_v10 = vpop.permute.xlu0 %1241 }
 0x1cf   : > { %1423 = vrot.lane.b32.xlu1 %v7638_v37, %s8716_s29  ;;  %1421 = vrot.lane.b32.xlu0 %v7637_v58, %s8716_s29  ;;  %v7644_v58 = vld [vmem:[%s8775_s22 + $0x6a] sm:$0xff] }
 0x1d1   : > { %v9852_v5 = vpop.permute.xlu1 %1247  ;;  %v9854_v26 = vpop.permute.xlu0 %1245 }
 0x1d3   : > { %1491 = vrot.lane.b32.xlu1 %v7640_v46, %s8717_s10  ;;  %1489 = vrot.lane.b32.xlu0 %v7639_v11, %s8717_s10  ;;  %v7646_v11 = vld [vmem:[%s8775_s22 + $0x82] sm:$0xff] }
 0x1d5   : > { %v9860_v61 = vpop.permute.xlu1 %1251  ;;  %v9862_v37 = vpop.permute.xlu0 %1249 }
 0x1d6   : > { %16098 = vst [vmem:[#allocation136_spill] sm:$0xff] %v9860_v61  ;;  %16099 = vst [vmem:[#allocation137_spill] sm:$0xff] %v9862_v37  ;;  %v16147_v37 = vld [vmem:[#allocation7_spill] sm:$0xff] }
 0x1d7   : > { %1495 = vrot.lane.b32.xlu1 %v7642_v27, %s8717_s10  ;;  %1493 = vrot.lane.b32.xlu0 %v7641_v4, %s8717_s10  ;;  %v7648_v4 = vld [vmem:[%s8775_s22 + $0x9a] sm:$0xff] }
 0x1d9   : > { %v9868_v44 = vpop.permute.xlu1 %1255  ;;  %v9870_v46 = vpop.permute.xlu0 %1253 }
 0x1da   : > { %16100 = vst [vmem:[#allocation138_spill] sm:$0xff] %v9868_v44  ;;  %16101 = vst [vmem:[#allocation139_spill] sm:$0xff] %v9870_v46 }
 0x1db   : > { %1499 = vrot.lane.b32.xlu1 %v7644_v58, %s8717_s10  ;;  %1497 = vrot.lane.b32.xlu0 %v7643_v7, %s8717_s10  ;;  %v7650_v7 = vld [vmem:[%s8775_s22 + $0xb2] sm:$0xff] }
 0x1dd   : > { %v9876_v35 = vpop.permute.xlu1 %1259  ;;  %v9878_v27 = vpop.permute.xlu0 %1257 }
 0x1de   : > { %16102 = vst [vmem:[#allocation140_spill] sm:$0xff] %v9876_v35  ;;  %16103 = vst [vmem:[#allocation141_spill] sm:$0xff] %v9878_v27  ;;  %v7649_v35 = vld [vmem:[%s8775_s22 + $0xaa] sm:$0xff] }
 0x1df   : > { %1503 = vrot.lane.b32.xlu1 %v7646_v11, %s8717_s10  ;;  %1501 = vrot.lane.b32.xlu0 %v7645_v48, %s8717_s10  ;;  %v7652_v48 = vld [vmem:[%s8775_s22 + $0xca] sm:$0xff] }
 0x1e1   : > { %v9884_v46 = vpop.permute.xlu1 %1263  ;;  %v9886_v58 = vpop.permute.xlu0 %1261 }
 0x1e2   : > { %16104 = vst [vmem:[#allocation142_spill] sm:$0xff] %v9884_v46  ;;  %16105 = vst [vmem:[#allocation143_spill] sm:$0xff] %v9886_v58  ;;  %v7651_v46 = vld [vmem:[%s8775_s22 + $0xc2] sm:$0xff] }
 0x1e3   : > { %1507 = vrot.lane.b32.xlu1 %v7648_v4, %s8717_s10  ;;  %1505 = vrot.lane.b32.xlu0 %v7647_v34, %s8717_s10  ;;  %v7654_v34 = vld [vmem:[%s8775_s22 + $0xe2] sm:$0xff] }
 0x1e5   : > { %v9892_v27 = vpop.permute.xlu1 %1267  ;;  %v9894_v11 = vpop.permute.xlu0 %1265 }
 0x1e6   : > { %16106 = vst [vmem:[#allocation144_spill] sm:$0xff] %v9892_v27  ;;  %16107 = vst [vmem:[#allocation145_spill] sm:$0xff] %v9894_v11  ;;  %v7653_v27 = vld [vmem:[%s8775_s22 + $0xda] sm:$0xff] }
 0x1e7   : > { %1511 = vrot.lane.b32.xlu1 %v7650_v7, %s8717_s10  ;;  %1509 = vrot.lane.b32.xlu0 %v7649_v35, %s8717_s10  ;;  %v7656_v35 = vld [vmem:[%s8775_s22 + $0xfa] sm:$0xff] }
 0x1e9   : > { %v9900_v58 = vpop.permute.xlu1 %1271  ;;  %v9902_v4 = vpop.permute.xlu0 %1269 }
 0x1ea   : > { %16108 = vst [vmem:[#allocation146_spill] sm:$0xff] %v9900_v58  ;;  %16109 = vst [vmem:[#allocation147_spill] sm:$0xff] %v9902_v4  ;;  %v7655_v58 = vld [vmem:[%s8775_s22 + $0xf2] sm:$0xff] }
 0x1eb   : > { %1515 = vrot.lane.b32.xlu1 %v7652_v48, %s8717_s10  ;;  %1513 = vrot.lane.b32.xlu0 %v7651_v46, %s8717_s10  ;;  %v7658_v46 = vld [vmem:[%s8775_s22 + $0x112] sm:$0xff] }
 0x1ed   : > { %v9908_v11 = vpop.permute.xlu1 %1275  ;;  %v9910_v7 = vpop.permute.xlu0 %1273 }
 0x1ee   : > { %16110 = vst [vmem:[#allocation148_spill] sm:$0xff] %v9908_v11  ;;  %16111 = vst [vmem:[#allocation149_spill] sm:$0xff] %v9910_v7  ;;  %v7657_v11 = vld [vmem:[%s8775_s22 + $0x10a] sm:$0xff] }
 0x1ef   : > { %1519 = vrot.lane.b32.xlu1 %v7654_v34, %s8717_s10  ;;  %1517 = vrot.lane.b32.xlu0 %v7653_v27, %s8717_s10  ;;  %v7660_v27 = vld [vmem:[%s8775_s22 + $0x12a] sm:$0xff] }
 0x1f1   : > { %v9916_v4 = vpop.permute.xlu1 %1279  ;;  %v9918_v48 = vpop.permute.xlu0 %1277 }
 0x1f2   : > { %16112 = vst [vmem:[#allocation150_spill] sm:$0xff] %v9916_v4  ;;  %16113 = vst [vmem:[#allocation151_spill] sm:$0xff] %v9918_v48  ;;  %v7659_v4 = vld [vmem:[%s8775_s22 + $0x122] sm:$0xff] }
 0x1f3   : > { %1523 = vrot.lane.b32.xlu1 %v7656_v35, %s8717_s10  ;;  %1521 = vrot.lane.b32.xlu0 %v7655_v58, %s8717_s10  ;;  %v7662_v58 = vld [vmem:[%s8775_s22 + $0x142] sm:$0xff] }
 0x1f5   : > { %v9924_v7 = vpop.permute.xlu1 %1283  ;;  %v9926_v34 = vpop.permute.xlu0 %1281 }
 0x1f6   : > { %16114 = vst [vmem:[#allocation152_spill] sm:$0xff] %v9924_v7  ;;  %16115 = vst [vmem:[#allocation153_spill] sm:$0xff] %v9926_v34  ;;  %v7661_v7 = vld [vmem:[%s8775_s22 + $0x13a] sm:$0xff] }
 0x1f7   : > { %1527 = vrot.lane.b32.xlu1 %v7658_v46, %s8717_s10  ;;  %1525 = vrot.lane.b32.xlu0 %v7657_v11, %s8717_s10  ;;  %v7664_v11 = vld [vmem:[%s8775_s22 + $0x15a] sm:$0xff] }
 0x1f9   : > { %v9932_v48 = vpop.permute.xlu1 %1287  ;;  %v9934_v35 = vpop.permute.xlu0 %1285 }
 0x1fa   : > { %16116 = vst [vmem:[#allocation154_spill] sm:$0xff] %v9932_v48  ;;  %16117 = vst [vmem:[#allocation155_spill] sm:$0xff] %v9934_v35  ;;  %v7663_v48 = vld [vmem:[%s8775_s22 + $0x152] sm:$0xff] }
 0x1fb   : > { %1531 = vrot.lane.b32.xlu1 %v7660_v27, %s8717_s10  ;;  %1529 = vrot.lane.b32.xlu0 %v7659_v4, %s8717_s10  ;;  %v7666_v4 = vld [vmem:[%s8775_s22 + $0x172] sm:$0xff] }
 0x1fd   : > { %v9940_v34 = vpop.permute.xlu1 %1291  ;;  %v9942_v46 = vpop.permute.xlu0 %1289 }
 0x1fe   : > { %16118 = vst [vmem:[#allocation156_spill] sm:$0xff] %v9940_v34  ;;  %16119 = vst [vmem:[#allocation157_spill] sm:$0xff] %v9942_v46  ;;  %v7665_v34 = vld [vmem:[%s8775_s22 + $0x16a] sm:$0xff] }
 0x1ff   : > { %1535 = vrot.lane.b32.xlu1 %v7662_v58, %s8717_s10  ;;  %1533 = vrot.lane.b32.xlu0 %v7661_v7, %s8717_s10 }
 0x201   : > { %v9948_v35 = vpop.permute.xlu1 %1295  ;;  %v9950_v27 = vpop.permute.xlu0 %1293 }
 0x202   : > { %16120 = vst [vmem:[#allocation158_spill] sm:$0xff] %v9948_v35  ;;  %16121 = vst [vmem:[#allocation159_spill] sm:$0xff] %v9950_v27 }
 0x203   : > { %1539 = vrot.lane.b32.xlu1 %v7664_v11, %s8717_s10  ;;  %1537 = vrot.lane.b32.xlu0 %v7663_v48, %s8717_s10  ;;  %v7670_v48 = vld [vmem:[%s8775_s22 + $0x1a2] sm:$0xff]  ;;  %v7669_v11 = vld [vmem:[%s8775_s22 + $0x19a] sm:$0xff] }
 0x205   : > { %v9956_v44 = vpop.permute.xlu1 %1363  ;;  %v9958_v46 = vpop.permute.xlu0 %1361 }
 0x207   : > { %1543 = vrot.lane.b32.xlu1 %v7666_v4, %s8717_s10  ;;  %1541 = vrot.lane.b32.xlu0 %v7665_v34, %s8717_s10 }
 0x209   : > { %v9963_v7 = vpop.permute.xlu1 %1367  ;;  %v9965_v58 = vpop.permute.xlu0 %1365 }
 0x20b   : > { %1547 = vrot.lane.b32.xlu1 %v9570_v59, %s8717_s10  ;;  %1545 = vrot.lane.b32.xlu0 %v9573_v50, %s8717_s10  ;;  %v2211_v50 = vld [vmem:[%s9976_s14 + $0x9] sm:$0xff]  ;;  %v2210_v59 = vld [vmem:[%s9976_s14 + $0x1] sm:$0xff] }
 0x20d   : > { %v9978_v34 = vpop.permute.xlu1 %1371  ;;  %v9980_v4 = vpop.permute.xlu0 %1369 }
 0x20f   : > { %1551 = vrot.lane.b32.xlu1 %v7670_v48, %s8717_s10  ;;  %1549 = vrot.lane.b32.xlu0 %v7669_v11, %s8717_s10  ;;  %v2215_v11 = vld [vmem:[%s9976_s14 + $0x39] sm:$0xff] }
 0x211   : > { %v9986_v27 = vpop.permute.xlu1 %1375  ;;  %v9988_v35 = vpop.permute.xlu0 %1373 }
 0x212   : > { %16122 = vst [vmem:[#allocation160_spill] sm:$0xff] %v9986_v27  ;;  %16123 = vst [vmem:[#allocation161_spill] sm:$0xff] %v9988_v35  ;;  %v16155_v35 = vld [vmem:[#allocation16_spill] sm:$0xff]  ;;  %v16156_v27 = vld [vmem:[#allocation19_spill] sm:$0xff] }
 0x213   : > { %3016 = vrot.lane.b32.xlu1 %v2211_v50, %s8710_s23  ;;  %3014 = vrot.lane.b32.xlu0 %v2210_v59, %s8710_s23  ;;  %v2217_v59 = vld [vmem:[%s9976_s14 + $0x51] sm:$0xff] }
 0x215   : > { %v9994_v3 = vpop.permute.xlu1 %1379  ;;  %v9996_v48 = vpop.permute.xlu0 %1377 }
 0x216   : > { %16124 = vst [vmem:[#allocation162_spill] sm:$0xff] %v9994_v3  ;;  %16125 = vst [vmem:[#allocation163_spill] sm:$0xff] %v9996_v48 }
 0x217   : > { %3020 = vrot.lane.b32.xlu1 %v2213_v2, %s8710_s23  ;;  %3018 = vrot.lane.b32.xlu0 %v2212_v0, %s8710_s23  ;;  %v2219_v0 = vld [vmem:[%s9976_s14 + $0x69] sm:$0xff] }
 0x219   : > { %v10002_v14 = vpop.permute.xlu1 %1383  ;;  %v10004_v50 = vpop.permute.xlu0 %1381 }
 0x21a   : > { %16126 = vst [vmem:[#allocation164_spill] sm:$0xff] %v10002_v14  ;;  %16127 = vst [vmem:[#allocation165_spill] sm:$0xff] %v10004_v50  ;;  %v2218_v14 = vld [vmem:[%s9976_s14 + $0x61] sm:$0xff] }
 0x21b   : > { %3024 = vrot.lane.b32.xlu1 %v2215_v11, %s8710_s23  ;;  %3022 = vrot.lane.b32.xlu0 %v2214_v39, %s8710_s23  ;;  %v2221_v39 = vld [vmem:[%s9976_s14 + $0x81] sm:$0xff] }
 0x21d   : > { %v10010_v48 = vpop.permute.xlu1 %1387  ;;  %v10012_v2 = vpop.permute.xlu0 %1385 }
 0x21e   : > { %16128 = vst [vmem:[#allocation166_spill] sm:$0xff] %v10010_v48  ;;  %16129 = vst [vmem:[#allocation167_spill] sm:$0xff] %v10012_v2  ;;  %v2220_v48 = vld [vmem:[%s9976_s14 + $0x79] sm:$0xff] }
 0x21f   : > { %3028 = vrot.lane.b32.xlu1 %v2217_v59, %s8710_s23  ;;  %3026 = vrot.lane.b32.xlu0 %v2216_v15, %s8710_s23  ;;  %v2223_v15 = vld [vmem:[%s9976_s14 + $0x99] sm:$0xff] }
 0x221   : > { %v10018_v50 = vpop.permute.xlu1 %1391  ;;  %v10020_v11 = vpop.permute.xlu0 %1389 }
 0x222   : > { %16130 = vst [vmem:[#allocation168_spill] sm:$0xff] %v10018_v50  ;;  %16131 = vst [vmem:[#allocation169_spill] sm:$0xff] %v10020_v11  ;;  %v2222_v50 = vld [vmem:[%s9976_s14 + $0x91] sm:$0xff] }
 0x223   : > { %3032 = vrot.lane.b32.xlu1 %v2219_v0, %s8710_s23  ;;  %3030 = vrot.lane.b32.xlu0 %v2218_v14, %s8710_s23  ;;  %v2225_v14 = vld [vmem:[%s9976_s14 + $0xb1] sm:$0xff] }
 0x225   : > { %v10026_v2 = vpop.permute.xlu1 %1395  ;;  %v10028_v59 = vpop.permute.xlu0 %1393 }
 0x226   : > { %16132 = vst [vmem:[#allocation170_spill] sm:$0xff] %v10026_v2  ;;  %16133 = vst [vmem:[#allocation171_spill] sm:$0xff] %v10028_v59  ;;  %v2224_v2 = vld [vmem:[%s9976_s14 + $0xa9] sm:$0xff] }
 0x227   : > { %3036 = vrot.lane.b32.xlu1 %v2221_v39, %s8710_s23  ;;  %3034 = vrot.lane.b32.xlu0 %v2220_v48, %s8710_s23  ;;  %v2227_v48 = vld [vmem:[%s9976_s14 + $0xc9] sm:$0xff] }
 0x229   : > { %v10034_v11 = vpop.permute.xlu1 %1399  ;;  %v10036_v0 = vpop.permute.xlu0 %1397 }
 0x22a   : > { %16134 = vst [vmem:[#allocation172_spill] sm:$0xff] %v10034_v11  ;;  %16135 = vst [vmem:[#allocation173_spill] sm:$0xff] %v10036_v0  ;;  %v2226_v0 = vld [vmem:[%s9976_s14 + $0xc1] sm:$0xff] }
 0x22b   : > { %3040 = vrot.lane.b32.xlu1 %v2223_v15, %s8710_s23  ;;  %3038 = vrot.lane.b32.xlu0 %v2222_v50, %s8710_s23  ;;  %v2229_v50 = vld [vmem:[%s9976_s14 + $0xe1] sm:$0xff] }
 0x22d   : > { %v10042_v59 = vpop.permute.xlu1 %1403  ;;  %v10044_v39 = vpop.permute.xlu0 %1401 }
 0x22e   : > { %16136 = vst [vmem:[#allocation174_spill] sm:$0xff] %v10042_v59  ;;  %16137 = vst [vmem:[#allocation175_spill] sm:$0xff] %v10044_v39  ;;  %v2228_v59 = vld [vmem:[%s9976_s14 + $0xd9] sm:$0xff] }
 0x22f   : > { %3044 = vrot.lane.b32.xlu1 %v2225_v14, %s8710_s23  ;;  %3042 = vrot.lane.b32.xlu0 %v2224_v2, %s8710_s23  ;;  %v2231_v2 = vld [vmem:[%s9976_s14 + $0xf9] sm:$0xff] }
 0x231   : > { %v10050_v11 = vpop.permute.xlu1 %1407  ;;  %v10052_v15 = vpop.permute.xlu0 %1405 }
 0x232   : > { %16138 = vst [vmem:[#allocation176_spill] sm:$0xff] %v10050_v11  ;;  %16139 = vst [vmem:[#allocation177_spill] sm:$0xff] %v10052_v15  ;;  %v2230_v11 = vld [vmem:[%s9976_s14 + $0xf1] sm:$0xff] }
 0x233   : > { %3048 = vrot.lane.b32.xlu1 %v2227_v48, %s8710_s23  ;;  %3046 = vrot.lane.b32.xlu0 %v2226_v0, %s8710_s23  ;;  %v271_v48 = vld [vmem:[%s8775_s22] sm:$0xff]  ;;  %v272_v0 = vld [vmem:[%s8775_s22 + $0x8] sm:$0xff] }
 0x234   : > { %v1587_v61 = vsel %vm1585_vm1, %v272_v0, %v16147_v37  ;;  %v8631_v0 = vld [vmem:[%s8775_s22 + $0x48] sm:$0xff] }
 0x235   : > { %v10058_v39 = vpop.permute.xlu1 %1411  ;;  %v10060_v14 = vpop.permute.xlu0 %1409  ;;  %v10104_v42 = vsel %vm1585_vm1, %v8631_v0, %v16151_v47  ;;  %v8635_v0 = vld [vmem:[%s8775_s22 + $0x78] sm:$0xff] }
 0x236   : > { %16140 = vst [vmem:[#allocation178_spill] sm:$0xff] %v10058_v39  ;;  %16141 = vst [vmem:[#allocation179_spill] sm:$0xff] %v10060_v14  ;;  %v16145_v39 = vld [vmem:[#allocation3_spill] sm:$0xff] }
 0x237   : > { %3052 = vrot.lane.b32.xlu1 %v2229_v50, %s8710_s23  ;;  %3050 = vrot.lane.b32.xlu0 %v2228_v59, %s8710_s23  ;;  %v8626_v59 = vld [vmem:[%s8775_s22 + $0x18] sm:$0xff]  ;;  %v16144_v50 = vld [vmem:[#allocation2_spill] sm:$0xff]  ;;  %v1586_v18 = vsel %vm1585_vm1, %v271_v48, %v16145_v39  ;;  %v16149_v39 = vld [vmem:[#allocation11_spill] sm:$0xff] }
 0x238   : > { %v1588_v14 = vsel %vm1585_vm1, %v8626_v59, %v16144_v50  ;;  %v8629_v50 = vld [vmem:[%s8775_s22 + $0x30] sm:$0xff] }
 0x239   : > { %v10068_v15 = vpop.permute.xlu1 %1415  ;;  %v10070_v3 = vpop.permute.xlu0 %1413  ;;  %v10094_v48 = vsel %vm1585_vm1, %v8629_v50, %v16149_v39  ;;  %v10113_v50 = vsel %vm1585_vm1, %v8632_v16, %v16154_v17  ;;  %v8633_v39 = vld [vmem:[%s8775_s22 + $0x60] sm:$0xff]  ;;  %v8636_v16 = vld [vmem:[%s8775_s22 + $0x98] sm:$0xff]  ;;  %v16159_v17 = vld [vmem:[#allocation23_spill] sm:$0xff] }
 0x23a   : > { %16142 = vst [vmem:[#allocation180_spill] sm:$0xff] %v10068_v15  ;;  %16143 = vst [vmem:[#allocation181_spill] sm:$0xff] %v10070_v3  ;;  %v8627_v15 = vld [vmem:[%s8775_s22 + $0x20] sm:$0xff]  ;;  %v10133_v20 = vsel %vm1585_vm1, %v8636_v16, %v16159_v17  ;;  %v16166_v17 = vld [vmem:[#allocation63_spill] sm:$0xff] }
 0x23b   : > { %3056 = vrot.lane.b32.xlu1 %v2231_v2, %s8710_s23  ;;  %3054 = vrot.lane.b32.xlu0 %v2230_v11, %s8710_s23  ;;  %v1589_v3 = vsel %vm1585_vm1, %v8627_v15, %v16146_v19  ;;  %v2233_v2 = vld [vmem:[%s9976_s14 + $0x111] sm:$0xff]  ;;  %16160 = vst [vmem:[#allocation7_spill] sm:$0xff] %v10133_v20  ;;  %v16168_v20 = vld [vmem:[#allocation31_spill] sm:$0xff] }
 0x23c   : > { %v8628_v11 = vld [vmem:[%s8775_s22 + $0x38] sm:$0xff]  ;;  %v8630_v19 = vld [vmem:[%s8775_s22 + $0x50] sm:$0xff] }
 0x23d   : > { %v10089_v59 = vsel %vm1585_vm1, %v8628_v11, %v16148_v62  ;;  %v16150_v15 = vld [vmem:[#allocation12_spill] sm:$0xff]  ;;  %v10106_v62 = vpop.permute.xlu1 %1419  ;;  %v10108_v11 = vpop.permute.xlu0 %1417 }
 0x23e   : > { %v10099_v37 = vsel %vm1585_vm1, %v8630_v19, %v16150_v15  ;;  %16152 = vst [vmem:[#allocation2_spill] sm:$0xff] %v10106_v62  ;;  %16153 = vst [vmem:[#allocation3_spill] sm:$0xff] %v10108_v11  ;;  %v10118_v19 = vsel %vm1585_vm1, %v8633_v39, %v16155_v35  ;;  %v8634_v15 = vld [vmem:[%s8775_s22 + $0x80] sm:$0xff]  ;;  %v16158_v62 = vld [vmem:[#allocation20_spill] sm:$0xff] }
 0x23f   : > { %v10123_v47 = vsel %vm1585_vm1, %v8634_v15, %v16156_v27  ;;  %v10128_v11 = vsel %vm1585_vm1, %v8635_v0, %v16158_v62  ;;  %v8637_v35 = vld [vmem:[%s8775_s22 + $0x90] sm:$0xff]  ;;  %v16163_v15 = vld [vmem:[#allocation27_spill] sm:$0xff]  ;;  %3060 = vrot.lane.b32.xlu1 %v2233_v2, %s8710_s23  ;;  %3058 = vrot.lane.b32.xlu0 %v2232_v63, %s8710_s23 }
 0x240   : > { %16157 = vst [vmem:[#allocation6_spill] sm:$0xff] %v10123_v47  ;;  %v16161_v39 = vld [vmem:[#allocation24_spill] sm:$0xff]  ;;  %v8639_v62 = vld [vmem:[%s8775_s22 + $0xa8] sm:$0xff] }
 0x241   : > { %v10138_v31 = vsel %vm1585_vm1, %v8637_v35, %v16161_v39  ;;  %v8638_v27 = vld [vmem:[%s8775_s22 + $0xb0] sm:$0xff]  ;;  %v1620_v35 = vsel %vm1618_vm2, %v1587_v61, %v16166_v17  ;;  %v10169_v61 = vpop.permute.xlu0 %1421 }
 0x242   : > { %16162 = vst [vmem:[#allocation10_spill] sm:$0xff] %v10138_v31  ;;  %v10143_v47 = vsel %vm1585_vm1, %v8638_v27, %v16163_v15  ;;  %v16165_v0 = vld [vmem:[#allocation28_spill] sm:$0xff]  ;;  %v2234_v15 = vld [vmem:[%s9976_s14 + $0x121] sm:$0xff]  ;;  %v1653_v63 = vsel %vm1651_vm3, %v1620_v35, %v9419_v22 }
 0x243   : > { %16164 = vst [vmem:[#allocation11_spill] sm:$0xff] %v10143_v47  ;;  %v10150_v16 = vsel %vm1585_vm1, %v8639_v62, %v16165_v0  ;;  %v16167_v39 = vld [vmem:[#allocation64_spill] sm:$0xff]  ;;  %v8640_v47 = vld [vmem:[%s8775_s22 + $0xc8] sm:$0xff]  ;;  %v10167_v0 = vpop.permute.xlu1 %1423  ;;  %3062 = vrot.lane.b32.xlu0 %v2234_v15, %s8710_s23 }
 0x244   : > { %v1619_v31 = vsel %vm1618_vm2, %v1586_v18, %v16167_v39  ;;  %v2235_v27 = vld [vmem:[%s9976_s14 + $0x129] sm:$0xff]  ;;  %v10161_v2 = vsel %vm1585_vm1, %v8640_v47, %v16168_v20  ;;  %v8641_v18 = vld [vmem:[%s8775_s22 + $0xc0] sm:$0xff]  ;;  %v1686_v20 = vsel %vm1684_vm4, %v1653_v63, %v9553_v54 }
 0x245   : > { %v1652_v62 = vsel %vm1651_vm3, %v1619_v31, %v9421_v23  ;;  %v16169_v17 = vld [vmem:[#allocation32_spill] sm:$0xff]  ;;  %v16170_v23 = vld [vmem:[#allocation66_spill] sm:$0xff]  ;;  %v1719_v47 = vsel %vm1717_vm5, %v1686_v20, %v9687_v45  ;;  %3064 = vrot.lane.b32.xlu1 %v2235_v27, %s8710_s23 }
 0x246   : > { %v10174_v39 = vsel %vm1585_vm1, %v8641_v18, %v16169_v17  ;;  %v1685_v22 = vsel %vm1684_vm4, %v1652_v62, %v9555_v55  ;;  %v1622_v31 = vsel %vm1618_vm2, %v1589_v3, %v16170_v23  ;;  %v16171_v18 = vld [vmem:[#allocation67_spill] sm:$0xff]  ;;  %v1752_v3 = vsel %vm1750_vm6, %v1719_v47, %v9825_v36  ;;  %v1490_v17 = vpop.permute.xlu0 %1489  ;;  %v8642_v20 = vld [vmem:[%s8775_s22 + $0xe0] sm:$0xff] }
 0x247   : > { %v1718_v35 = vsel %vm1717_vm5, %v1685_v22, %v9689_v41  ;;  %v1621_v54 = vsel %vm1618_vm2, %v1588_v14, %v16171_v18  ;;  %v1655_v55 = vsel %vm1651_vm3, %v1622_v31, %v9427_v24  ;;  %v2237_v63 = vld [vmem:[%s9976_s14 + $0x141] sm:$0xff]  ;;  %v2236_v41 = vld [vmem:[%s9976_s14 + $0x139] sm:$0xff]  ;;  %v1785_v15 = vsel %vm15903_vm7, %v1752_v3, %v9956_v44  ;;  %v1492_v62 = vpop.permute.xlu1 %1491  ;;  %v2238_v18 = vld [vmem:[%s9976_s14 + $0x151] sm:$0xff] }
 0x248   : > { %v1751_v45 = vsel %vm1750_vm6, %v1718_v35, %v9827_v38  ;;  %v1654_v27 = vsel %vm1651_vm3, %v1621_v54, %v9429_v25  ;;  %v1688_v24 = vsel %vm1684_vm4, %v1655_v55, %v9561_v57  ;;  %v1818_v38 = vsel %vm1816_vm8, %v1785_v15, %v1492_v62  ;;  %v16172_v44 = vld [vmem:[#allocation35_spill] sm:$0xff]  ;;  %3066 = vrot.lane.b32.xlu0 %v2236_v41, %s8710_s23  ;;  %v16174_v31 = vld [vmem:[#allocation69_spill] sm:$0xff] }
 0x249   : > { %v1784_v14 = vsel %vm15903_vm7, %v1751_v45, %v9958_v46  ;;  %v1687_v36 = vsel %vm1684_vm4, %v1654_v27, %v9563_v52  ;;  %v10213_v22 = vsel %vm1585_vm1, %v8642_v20, %v16172_v44  ;;  %v1721_v46 = vsel %vm1717_vm5, %v1688_v24, %v9695_v40  ;;  %3068 = vrot.lane.b32.xlu1 %v2237_v63, %s8710_s23  ;;  %v16173_v52 = vld [vmem:[#allocation68_spill] sm:$0xff]  ;;  %v16177_v15 = vld [vmem:[#allocation71_spill] sm:$0xff] }
 0x24a   : > { %v1817_v25 = vsel %vm1816_vm8, %v1784_v14, %v1490_v17  ;;  %v1720_v23 = vsel %vm1717_vm5, %v1687_v36, %v9697_v9  ;;  %v1624_v57 = vsel %vm1618_vm2, %v10089_v59, %v16173_v52  ;;  %v1623_v47 = vsel %vm1618_vm2, %v10094_v48, %v16174_v31  ;;  %v2239_v9 = vld [vmem:[%s9976_s14 + $0x159] sm:$0xff]  ;;  %v16175_v63 = vld [vmem:[#allocation36_spill] sm:$0xff]  ;;  %v16178_v20 = vld [vmem:[#allocation39_spill] sm:$0xff] }
 0x24b   : > { %v1754_v35 = vsel %vm1750_vm6, %v1721_v46, %v9834_v12  ;;  %v1753_v40 = vsel %vm1750_vm6, %v1720_v23, %v9836_v8  ;;  %8460 = vmatprep.mubr.msk.f32.mxu0 %vm1852_vm9, %v1817_v25  ;;  %v1657_v54 = vsel %vm1651_vm3, %v1624_v57, %v9441_v21  ;;  %v1656_v59 = vsel %vm1651_vm3, %v1623_v47, %v9443_v28  ;;  %v1496_v55 = vpop.permute.xlu1 %1495  ;;  %v1494_v8 = vpop.permute.xlu0 %1493  ;;  %v2240_v17 = vld [vmem:[%s9976_s14 + $0x169] sm:$0xff]  ;;  %v16179_v57 = vld [vmem:[#allocation94_spill] sm:$0xff] }
 0x24c   : > { %v1787_v48 = vsel %vm15903_vm7, %v1754_v35, %v9963_v7  ;;  %v1786_v12 = vsel %vm15903_vm7, %v1753_v40, %v9965_v58  ;;  %8461 = vmatmul.mubr.msk.f32.vlgmr.msra.gmra.mxu0 %vm1852_vm9, %v1818_v38  ;;  %v1690_v3 = vsel %vm1684_vm4, %v1657_v54, %v9575_v49  ;;  %v1689_v21 = vsel %vm1684_vm4, %v1656_v59, %v9577_v51  ;;  %v8643_v7 = vld [vmem:[%s8775_s22 + $0xd8] sm:$0xff]  ;;  %v16176_v49 = vld [vmem:[#allocation70_spill] sm:$0xff]  ;;  %v16180_v47 = vld [vmem:[#allocation95_spill] sm:$0xff] }
 0x24d   : > { %v1820_v28 = vsel %vm1816_vm8, %v1787_v48, %v1496_v55  ;;  %v1819_v45 = vsel %vm1816_vm8, %v1786_v12, %v1494_v8  ;;  %v10252_v58 = vsel %vm1585_vm1, %v8643_v7, %v16175_v63  ;;  %v1723_v41 = vsel %vm1717_vm5, %v1690_v3, %v9705_v13  ;;  %3072 = vrot.lane.b32.xlu1 %v2239_v9, %s8710_s23  ;;  %v2242_v52 = vld [vmem:[%s9976_s14 + $0x2] sm:$0xff]  ;;  %v16183_v40 = vld [vmem:[#allocation4_spill] sm:$0xff] }
 0x24e   : > { %v1722_v27 = vsel %vm1717_vm5, %v1689_v21, %v9707_v1  ;;  %3070 = vrot.lane.b32.xlu0 %v2238_v18, %s8710_s23  ;;  %v1626_v51 = vsel %vm1618_vm2, %v10099_v37, %v16176_v49  ;;  %v1625_v14 = vsel %vm1618_vm2, %v10104_v42, %v16177_v15  ;;  %v1756_v62 = vsel %vm1750_vm6, %v1723_v41, %v9844_v6  ;;  %v2241_v1 = vld [vmem:[%s9976_s14 + $0x171] sm:$0xff]  ;;  %v16186_v3 = vld [vmem:[#allocation54_spill] sm:$0xff] }
 0x24f   : > { %v1755_v13 = vsel %vm1750_vm6, %v1722_v27, %v9846_v10  ;;  %8463 = vmatprep.mubr.msk.f32.mxu0 %vm1852_vm9, %v1819_v45  ;;  %v1659_v24 = vsel %vm1651_vm3, %v1626_v51, %v9449_v29  ;;  %v1658_v37 = vsel %vm1651_vm3, %v1625_v14, %v9451_v30  ;;  %v1789_v42 = vsel %vm15903_vm7, %v1756_v62, %v9978_v34  ;;  %v1500_v36 = vpop.permute.xlu1 %1499  ;;  %v1498_v10 = vpop.permute.xlu0 %1497  ;;  %v8644_v34 = vld [vmem:[%s8775_s22 + $0xf8] sm:$0xff]  ;;  %v8645_v12 = vld [vmem:[%s8775_s22 + $0xf0] sm:$0xff]  ;;  %v16189_v63 = vld [vmem:[#allocation6_spill] sm:$0xff] }
 0x250   : > { %v1788_v6 = vsel %vm15903_vm7, %v1755_v13, %v9980_v4  ;;  %8464 = vmatmul.mubr.msk.f32.gmra.mxu0 %vm1852_vm9, %v1820_v28  ;;  %v1692_v38 = vsel %vm1684_vm4, %v1659_v24, %v9583_v56  ;;  %v1691_v29 = vsel %vm1684_vm4, %v1658_v37, %v9585_v53  ;;  %v1822_v30 = vsel %vm1816_vm8, %v1789_v42, %v1500_v36  ;;  %v16184_v18 = vld [vmem:[#allocation5_spill] sm:$0xff]  ;;  %v16185_v55 = vld [vmem:[#allocation40_spill] sm:$0xff]  ;;  %v2245_v13 = vld [vmem:[%s9976_s14 + $0x22] sm:$0xff] }
 0x251   : > { %v1821_v25 = vsel %vm1816_vm8, %v1788_v6, %v1498_v10  ;;  %v10291_v4 = vsel %vm1585_vm1, %v8644_v34, %v16178_v20  ;;  %v1725_v44 = vsel %vm1717_vm5, %v1692_v38, %v9713_v43  ;;  %v1724_v46 = vsel %vm1717_vm5, %v1691_v29, %v9715_v32  ;;  %3076 = vrot.lane.b32.xlu1 %v2241_v1, %s8710_s23  ;;  %v2243_v32 = vld [vmem:[%s9976_s14 + $0xa] sm:$0xff]  ;;  %v16187_v28 = vld [vmem:[#allocation57_spill] sm:$0xff]  ;;  %v16195_v6 = vld [vmem:[#allocation162_spill] sm:$0xff] }
 0x252   : > { %3074 = vrot.lane.b32.xlu0 %v2240_v17, %s8710_s23  ;;  %v1628_v56 = vsel %vm1618_vm2, %v10113_v50, %v9323_v33  ;;  %v1627_v53 = vsel %vm1618_vm2, %v10118_v19, %v9325_v60  ;;  %v1758_v23 = vsel %vm1750_vm6, %v1725_v44, %v9852_v5  ;;  %v1757_v43 = vsel %vm1750_vm6, %v1724_v46, %v9854_v26  ;;  %v16181_v50 = vld [vmem:[#allocation160_spill] sm:$0xff]  ;;  %v16182_v19 = vld [vmem:[#allocation161_spill] sm:$0xff]  ;;  %v16196_v36 = vld [vmem:[#allocation163_spill] sm:$0xff] }
 0x253   : > { %8466 = vmatprep.mubr.msk.f32.mxu0 %vm1852_vm9, %v1821_v25  ;;  %v1661_v31 = vsel %vm1651_vm3, %v1628_v56, %v16179_v57  ;;  %v1660_v33 = vsel %vm1651_vm3, %v1627_v53, %v16180_v47  ;;  %v1791_v60 = vsel %vm15903_vm7, %v1758_v23, %v16181_v50  ;;  %v1790_v5 = vsel %vm15903_vm7, %v1757_v43, %v16182_v19  ;;  %v1504_v35 = vpop.permute.xlu1 %1503  ;;  %v1502_v26 = vpop.permute.xlu0 %1501  ;;  %v16188_v7 = vld [vmem:[#allocation72_spill] sm:$0xff]  ;;  %v16190_v27 = vld [vmem:[#allocation73_spill] sm:$0xff]  ;;  %v16199_v53 = vld [vmem:[#allocation43_spill] sm:$0xff] }
 0x254   : > { %8467 = vmatmul.mubr.msk.f32.gmra.mxu0 %vm1852_vm9, %v1822_v30  ;;  %v1694_v9 = vsel %vm1684_vm4, %v1661_v31, %v16183_v40  ;;  %v1693_v54 = vsel %vm1684_vm4, %v1660_v33, %v16184_v18  ;;  %v1824_v59 = vsel %vm1816_vm8, %v1791_v60, %v1504_v35  ;;  %v1823_v48 = vsel %vm1816_vm8, %v1790_v5, %v1502_v26  ;;  %v16191_v51 = vld [vmem:[#allocation136_spill] sm:$0xff]  ;;  %v16192_v14 = vld [vmem:[#allocation137_spill] sm:$0xff]  ;;  %v16200_v43 = vld [vmem:[#allocation58_spill] sm:$0xff] }
 0x255   : > { %v10330_v8 = vsel %vm1585_vm1, %v8645_v12, %v16185_v55  ;;  %v1727_v21 = vsel %vm1717_vm5, %v1694_v9, %v16186_v3  ;;  %v1726_v45 = vsel %vm1717_vm5, %v1693_v54, %v16187_v28  ;;  %3144 = vrot.lane.b32.xlu1 %v2243_v32, %s8711_s24  ;;  %v1630_v41 = vsel %vm1618_vm2, %v16189_v63, %v16188_v7  ;;  %v2244_v1 = vld [vmem:[%s9976_s14 + $0x1a] sm:$0xff]  ;;  %v16193_v17 = vld [vmem:[#allocation96_spill] sm:$0xff]  ;;  %v16203_v47 = vld [vmem:[#allocation7_spill] sm:$0xff] }
 0x256   : > { %3142 = vrot.lane.b32.xlu0 %v2242_v52, %s8711_s24  ;;  %v1629_v49 = vsel %vm1618_vm2, %v10128_v11, %v16190_v27  ;;  %v1760_v15 = vsel %vm1750_vm6, %v1727_v21, %v16191_v51  ;;  %v1759_v62 = vsel %vm1750_vm6, %v1726_v45, %v16192_v14  ;;  %8469 = vmatprep.mubr.msk.f32.mxu0 %vm1852_vm9, %v1823_v48  ;;  %v16194_v37 = vld [vmem:[#allocation97_spill] sm:$0xff]  ;;  %v16197_v30 = vld [vmem:[#allocation8_spill] sm:$0xff]  ;;  %v16202_v31 = vld [vmem:[#allocation74_spill] sm:$0xff] }
 0x257   : > { %v1663_v24 = vsel %vm1651_vm3, %v1630_v41, %v16193_v17  ;;  %v1662_v42 = vsel %vm1651_vm3, %v1629_v49, %v16194_v37  ;;  %v1793_v11 = vsel %vm15903_vm7, %v1760_v15, %v16195_v6  ;;  %v1792_v10 = vsel %vm15903_vm7, %v1759_v62, %v16196_v36  ;;  %v1508_v38 = vpop.permute.xlu1 %1507  ;;  %v1506_v29 = vpop.permute.xlu0 %1505  ;;  %v16198_v34 = vld [vmem:[#allocation9_spill] sm:$0xff]  ;;  %v8646_v56 = vld [vmem:[%s8775_s22 + $0x110] sm:$0xff]  ;;  %v16204_v50 = vld [vmem:[#allocation75_spill] sm:$0xff] }
 0x258   : > { %8470 = vmatmul.mubr.msk.f32.gmra.mxu0 %vm1852_vm9, %v1824_v59  ;;  %v1696_v25 = vsel %vm1684_vm4, %v1663_v24, %v16197_v30  ;;  %v1695_v20 = vsel %vm1684_vm4, %v1662_v42, %v16198_v34  ;;  %v1826_v44 = vsel %vm1816_vm8, %v1793_v11, %v1508_v38  ;;  %v1825_v46 = vsel %vm1816_vm8, %v1792_v10, %v1506_v29  ;;  %v16201_v52 = vld [vmem:[#allocation61_spill] sm:$0xff]  ;;  %v16205_v60 = vld [vmem:[#allocation10_spill] sm:$0xff]  ;;  %v16207_v26 = vld [vmem:[#allocation139_spill] sm:$0xff] }
 0x259   : > { %v10369_v23 = vsel %vm1585_vm1, %v8646_v56, %v16199_v53  ;;  %v1729_v32 = vsel %vm1717_vm5, %v1696_v25, %v16200_v43  ;;  %v1728_v57 = vsel %vm1717_vm5, %v1695_v20, %v16201_v52  ;;  %3148 = vrot.lane.b32.xlu1 %v2245_v13, %s8711_s24  ;;  %v1632_v33 = vsel %vm1618_vm2, %v16203_v47, %v16202_v31  ;;  %v16206_v5 = vld [vmem:[#allocation138_spill] sm:$0xff]  ;;  %v2246_v18 = vld [vmem:[%s9976_s14 + $0x32] sm:$0xff]  ;;  %v16209_v48 = vld [vmem:[#allocation99_spill] sm:$0xff] }
 0x25a   : > { %3146 = vrot.lane.b32.xlu0 %v2244_v1, %s8711_s24  ;;  %v1631_v19 = vsel %vm1618_vm2, %v16205_v60, %v16204_v50  ;;  %v1762_v35 = vsel %vm1750_vm6, %v1729_v32, %v16206_v5  ;;  %v1761_v40 = vsel %vm1750_vm6, %v1728_v57, %v16207_v26  ;;  %8472 = vmatprep.mubr.msk.f32.mxu0 %vm1852_vm9, %v1825_v46  ;;  %v2247_v9 = vld [vmem:[%s9976_s14 + $0x3a] sm:$0xff]  ;;  %v16210_v55 = vld [vmem:[#allocation164_spill] sm:$0xff]  ;;  %v8647_v14 = vld [vmem:[%s8775_s22 + $0x108] sm:$0xff] }
 0x25b   : > { %v16208_v54 = vld [vmem:[#allocation98_spill] sm:$0xff]  ;;  %v1664_v12 = vsel %vm1651_vm3, %v1631_v19, %v16209_v48  ;;  %v1795_v3 = vsel %vm15903_vm7, %v1762_v35, %v16210_v55  ;;  %v16211_v21 = vld [vmem:[#allocation165_spill] sm:$0xff]  ;;  %v1512_v45 = vpop.permute.xlu1 %1511  ;;  %v1510_v7 = vpop.permute.xlu0 %1509  ;;  %v16214_v62 = vld [vmem:[#allocation44_spill] sm:$0xff] }
 0x25c   : > { %v1665_v59 = vsel %vm1651_vm3, %v1632_v33, %v16208_v54  ;;  %v1794_v28 = vsel %vm15903_vm7, %v1761_v40, %v16211_v21  ;;  %8473 = vmatmul.mubr.msk.f32.gmra.mxu0 %vm1852_vm9, %v1826_v44  ;;  %v16212_v63 = vld [vmem:[#allocation14_spill] sm:$0xff]  ;;  %v16213_v27 = vld [vmem:[#allocation17_spill] sm:$0xff]  ;;  %v1828_v51 = vsel %vm1816_vm8, %v1795_v3, %v1512_v45  ;;  %v10408_v13 = vsel %vm1585_vm1, %v8647_v14, %v16214_v62  ;;  %v16217_v42 = vld [vmem:[#allocation76_spill] sm:$0xff] }
 0x25d   : > { %v1698_v41 = vsel %vm1684_vm4, %v1665_v59, %v16212_v63  ;;  %v1697_v49 = vsel %vm1684_vm4, %v1664_v12, %v16213_v27  ;;  %v1827_v15 = vsel %vm1816_vm8, %v1794_v28, %v1510_v7  ;;  %v16215_v1 = vld [vmem:[#allocation62_spill] sm:$0xff]  ;;  %v16216_v24 = vld [vmem:[#allocation65_spill] sm:$0xff]  ;;  %3152 = vrot.lane.b32.xlu1 %v2247_v9, %s8711_s24  ;;  %v16218_v6 = vld [vmem:[#allocation11_spill] sm:$0xff] }
 0x25e   : > { %v1731_v17 = vsel %vm1717_vm5, %v1698_v41, %v16215_v1  ;;  %v1730_v37 = vsel %vm1717_vm5, %v1697_v49, %v16216_v24  ;;  %3150 = vrot.lane.b32.xlu0 %v2246_v18, %s8711_s24  ;;  %v1634_v11 = vsel %vm1618_vm2, %v16218_v6, %v16217_v42  ;;  %v16219_v36 = vld [vmem:[#allocation77_spill] sm:$0xff]  ;;  %v16220_v38 = vld [vmem:[#allocation140_spill] sm:$0xff]  ;;  %8475 = vmatprep.mubr.msk.f32.mxu0 %vm1852_vm9, %v1827_v15  ;;  %v16224_v43 = vld [vmem:[#allocation166_spill] sm:$0xff] }
 0x25f   : > { %v1633_v10 = vsel %vm1618_vm2, %v10150_v16, %v16219_v36  ;;  %v1764_v29 = vsel %vm1750_vm6, %v1731_v17, %v16220_v38  ;;  %v16221_v30 = vld [vmem:[#allocation141_spill] sm:$0xff]  ;;  %v2248_v20 = vld [vmem:[%s9976_s14 + $0x4a] sm:$0xff]  ;;  %v1516_v57 = vpop.permute.xlu1 %1515  ;;  %v1514_v31 = vpop.permute.xlu0 %1513  ;;  %v16226_v47 = vld [vmem:[#allocation18_spill] sm:$0xff] }
 0x260   : > { %v1763_v25 = vsel %vm1750_vm6, %v1730_v37, %v16221_v30  ;;  %v2249_v34 = vld [vmem:[%s9976_s14 + $0x52] sm:$0xff]  ;;  %v1797_v16 = vsel %vm15903_vm7, %v1764_v29, %v16224_v43  ;;  %v16225_v32 = vld [vmem:[#allocation167_spill] sm:$0xff]  ;;  %8476 = vmatmul.mubr.msk.f32.gmra.mxu0 %vm1852_vm9, %v1828_v51  ;;  %v16229_v9 = vld [vmem:[#allocation118_spill] sm:$0xff] }
 0x261   : > { %v16222_v44 = vld [vmem:[#allocation100_spill] sm:$0xff]  ;;  %v16223_v56 = vld [vmem:[#allocation101_spill] sm:$0xff]  ;;  %v1796_v52 = vsel %vm15903_vm7, %v1763_v25, %v16225_v32  ;;  %v1830_v19 = vsel %vm1816_vm8, %v1797_v16, %v1516_v57  ;;  %v8648_v35 = vld [vmem:[%s8775_s22 + $0x128] sm:$0xff]  ;;  %3156 = vrot.lane.b32.xlu1 %v2249_v34, %s8711_s24 }
 0x262   : > { %v1667_v46 = vsel %vm1651_vm3, %v1634_v11, %v16222_v44  ;;  %v1666_v53 = vsel %vm1651_vm3, %v1633_v10, %v16223_v56  ;;  %v16227_v50 = vld [vmem:[#allocation21_spill] sm:$0xff]  ;;  %v1829_v5 = vsel %vm1816_vm8, %v1796_v52, %v1514_v31  ;;  %v16228_v26 = vld [vmem:[#allocation47_spill] sm:$0xff]  ;;  %3154 = vrot.lane.b32.xlu0 %v2248_v20, %s8711_s24  ;;  %v16231_v48 = vld [vmem:[#allocation78_spill] sm:$0xff] }
 0x263   : > { %v1700_v33 = vsel %vm1684_vm4, %v1667_v46, %v16226_v47  ;;  %v1699_v60 = vsel %vm1684_vm4, %v1666_v53, %v16227_v50  ;;  %v10447_v40 = vsel %vm1585_vm1, %v8648_v35, %v16228_v26  ;;  %v16230_v54 = vld [vmem:[#allocation119_spill] sm:$0xff]  ;;  %v1636_v12 = vsel %vm1618_vm2, %v10161_v2, %v16231_v48  ;;  %v16233_v21 = vld [vmem:[#allocation142_spill] sm:$0xff]  ;;  %8478 = vmatprep.mubr.msk.f32.mxu0 %vm1852_vm9, %v1829_v5  ;;  %v16237_v15 = vld [vmem:[#allocation168_spill] sm:$0xff]  ;;  %v1520_v1 = vpop.permute.xlu1 %1519  ;;  %v1518_v17 = vpop.permute.xlu0 %1517 }
 0x264   : > { %v1733_v18 = vsel %vm1717_vm5, %v1700_v33, %v16229_v9  ;;  %v1732_v59 = vsel %vm1717_vm5, %v1699_v60, %v16230_v54  ;;  %v16232_v55 = vld [vmem:[#allocation79_spill] sm:$0xff]  ;;  %v16235_v27 = vld [vmem:[#allocation102_spill] sm:$0xff]  ;;  %v16238_v14 = vld [vmem:[#allocation169_spill] sm:$0xff]  ;;  %8479 = vmatmul.mubr.msk.f32.gmra.mxu0 %vm1852_vm9, %v1830_v19 }
 0x265   : > { %v1635_v3 = vsel %vm1618_vm2, %v10174_v39, %v16232_v55  ;;  %v1766_v28 = vsel %vm1750_vm6, %v1733_v18, %v16233_v21  ;;  %v16234_v45 = vld [vmem:[#allocation143_spill] sm:$0xff]  ;;  %v1669_v49 = vsel %vm1651_vm3, %v1636_v12, %v16235_v27  ;;  %v16239_v24 = vld [vmem:[#allocation22_spill] sm:$0xff]  ;;  %v16240_v42 = vld [vmem:[#allocation25_spill] sm:$0xff] }
 0x266   : > { %v1765_v7 = vsel %vm1750_vm6, %v1732_v59, %v16234_v45  ;;  %v2251_v63 = vld [vmem:[%s9976_s14 + $0x6a] sm:$0xff]  ;;  %v2250_v41 = vld [vmem:[%s9976_s14 + $0x62] sm:$0xff]  ;;  %v1799_v39 = vsel %vm15903_vm7, %v1766_v28, %v16237_v15  ;;  %v1702_v37 = vsel %vm1684_vm4, %v1669_v49, %v16239_v24  ;;  %v16243_v34 = vld [vmem:[#allocation121_spill] sm:$0xff] }
 0x267   : > { %v16236_v51 = vld [vmem:[#allocation103_spill] sm:$0xff]  ;;  %v1798_v62 = vsel %vm15903_vm7, %v1765_v7, %v16238_v14  ;;  %v1832_v11 = vsel %vm1816_vm8, %v1799_v39, %v1520_v1  ;;  %v8649_v10 = vld [vmem:[%s8775_s22 + $0x120] sm:$0xff]  ;;  %v16241_v38 = vld [vmem:[#allocation48_spill] sm:$0xff]  ;;  %3160 = vrot.lane.b32.xlu1 %v2251_v63, %s8711_s24  ;;  %3158 = vrot.lane.b32.xlu0 %v2250_v41, %s8711_s24  ;;  %v1524_v35 = vpop.permute.xlu1 %1523  ;;  %v1522_v26 = vpop.permute.xlu0 %1521 }
 0x268   : > { %v1668_v2 = vsel %vm1651_vm3, %v1635_v3, %v16236_v51  ;;  %v1831_v36 = vsel %vm1816_vm8, %v1798_v62, %v1518_v17  ;;  %v10486_v29 = vsel %vm1585_vm1, %v8649_v10, %v16241_v38  ;;  %v16242_v30 = vld [vmem:[#allocation120_spill] sm:$0xff]  ;;  %v16245_v56 = vld [vmem:[#allocation81_spill] sm:$0xff]  ;;  %v2253_v57 = vld [vmem:[%s9976_s14 + $0x82] sm:$0xff] }
 0x269   : > { %v1701_v6 = vsel %vm1684_vm4, %v1668_v2, %v16240_v42  ;;  %v1735_v25 = vsel %vm1717_vm5, %v1702_v37, %v16242_v30  ;;  %v16244_v44 = vld [vmem:[#allocation80_spill] sm:$0xff]  ;;  %v1637_v53 = vsel %vm1618_vm2, %v10252_v58, %v16245_v56  ;;  %v16247_v32 = vld [vmem:[#allocation145_spill] sm:$0xff]  ;;  %8481 = vmatprep.mubr.msk.f32.mxu0 %vm1852_vm9, %v1831_v36  ;;  %v16250_v60 = vld [vmem:[#allocation170_spill] sm:$0xff] }
 0x26a   : > { %v1734_v20 = vsel %vm1717_vm5, %v1701_v6, %v16243_v34  ;;  %v1638_v46 = vsel %vm1618_vm2, %v10213_v22, %v16244_v44  ;;  %v16246_v43 = vld [vmem:[#allocation144_spill] sm:$0xff]  ;;  %v2252_v31 = vld [vmem:[%s9976_s14 + $0x7a] sm:$0xff]  ;;  %v16251_v19 = vld [vmem:[#allocation171_spill] sm:$0xff]  ;;  %8482 = vmatmul.mubr.msk.f32.gmra.mxu0 %vm1852_vm9, %v1832_v11 }
 0x26b   : > { %v1768_v16 = vsel %vm1750_vm6, %v1735_v25, %v16246_v43  ;;  %v1767_v52 = vsel %vm1750_vm6, %v1734_v20, %v16247_v32  ;;  %v16248_v47 = vld [vmem:[#allocation104_spill] sm:$0xff]  ;;  %v16249_v50 = vld [vmem:[#allocation105_spill] sm:$0xff]  ;;  %v16252_v9 = vld [vmem:[#allocation26_spill] sm:$0xff]  ;;  %3164 = vrot.lane.b32.xlu1 %v2253_v57, %s8711_s24  ;;  %3162 = vrot.lane.b32.xlu0 %v2252_v31, %s8711_s24  ;;  %v1528_v36 = vpop.permute.xlu1 %1527  ;;  %v1526_v10 = vpop.permute.xlu0 %1525 }
 0x26c   : > { %v1671_v33 = vsel %vm1651_vm3, %v1638_v46, %v16248_v47  ;;  %v1670_v22 = vsel %vm1651_vm3, %v1637_v53, %v16249_v50  ;;  %v1801_v58 = vsel %vm15903_vm7, %v1768_v16, %v16250_v60  ;;  %v1800_v5 = vsel %vm15903_vm7, %v1767_v52, %v16251_v19  ;;  %v16253_v54 = vld [vmem:[#allocation29_spill] sm:$0xff]  ;;  %v8650_v55 = vld [vmem:[%s8775_s22 + $0x140] sm:$0xff]  ;;  %v16254_v3 = vld [vmem:[#allocation51_spill] sm:$0xff] }
 0x26d   : > { %v1704_v18 = vsel %vm1684_vm4, %v1671_v33, %v16252_v9  ;;  %v1703_v59 = vsel %vm1684_vm4, %v1670_v22, %v16253_v54  ;;  %v1834_v48 = vsel %vm1816_vm8, %v1801_v58, %v1524_v35  ;;  %v1833_v12 = vsel %vm1816_vm8, %v1800_v5, %v1522_v26  ;;  %v16255_v28 = vld [vmem:[#allocation122_spill] sm:$0xff]  ;;  %v16256_v7 = vld [vmem:[#allocation123_spill] sm:$0xff]  ;;  %v2254_v1 = vld [vmem:[%s9976_s14 + $0x92] sm:$0xff] }
 0x26e   : > { %v10525_v21 = vsel %vm1585_vm1, %v8650_v55, %v16254_v3  ;;  %v1737_v45 = vsel %vm1717_vm5, %v1704_v18, %v16255_v28  ;;  %v1736_v63 = vsel %vm1717_vm5, %v1703_v59, %v16256_v7  ;;  %v16257_v41 = vld [vmem:[#allocation82_spill] sm:$0xff]  ;;  %v16258_v49 = vld [vmem:[#allocation83_spill] sm:$0xff]  ;;  %8484 = vmatprep.mubr.msk.f32.mxu0 %vm1852_vm9, %v1833_v12  ;;  %v16263_v42 = vld [vmem:[#allocation172_spill] sm:$0xff] }
 0x26f   : > { %v1640_v27 = vsel %vm1618_vm2, %v10291_v4, %v16257_v41  ;;  %v1639_v51 = vsel %vm1618_vm2, %v10330_v8, %v16258_v49  ;;  %v16259_v2 = vld [vmem:[#allocation146_spill] sm:$0xff]  ;;  %v16260_v39 = vld [vmem:[#allocation147_spill] sm:$0xff]  ;;  %v16264_v6 = vld [vmem:[#allocation173_spill] sm:$0xff]  ;;  %8485 = vmatmul.mubr.msk.f32.gmra.mxu0 %vm1852_vm9, %v1834_v48  ;;  %3166 = vrot.lane.b32.xlu0 %v2254_v1, %s8711_s24  ;;  %v1532_v48 = vpop.permute.xlu1 %1531  ;;  %v1530_v12 = vpop.permute.xlu0 %1529 }
 0x270   : > { %v1770_v15 = vsel %vm1750_vm6, %v1737_v45, %v16259_v2  ;;  %v1769_v14 = vsel %vm1750_vm6, %v1736_v63, %v16260_v39  ;;  %v2255_v62 = vld [vmem:[%s9976_s14 + $0x9a] sm:$0xff]  ;;  %v16262_v37 = vld [vmem:[#allocation107_spill] sm:$0xff]  ;;  %v16267_v56 = vld [vmem:[#allocation52_spill] sm:$0xff] }
 0x271   : > { %v16261_v17 = vld [vmem:[#allocation106_spill] sm:$0xff]  ;;  %v1672_v4 = vsel %vm1651_vm3, %v1639_v51, %v16262_v37  ;;  %v1803_v8 = vsel %vm15903_vm7, %v1770_v15, %v16263_v42  ;;  %v1802_v11 = vsel %vm15903_vm7, %v1769_v14, %v16264_v6  ;;  %v16266_v25 = vld [vmem:[#allocation33_spill] sm:$0xff]  ;;  %v16268_v43 = vld [vmem:[#allocation124_spill] sm:$0xff]  ;;  %3168 = vrot.lane.b32.xlu1 %v2255_v62, %s8711_s24 }
 0x272   : > { %v1673_v24 = vsel %vm1651_vm3, %v1640_v27, %v16261_v17  ;;  %v16265_v38 = vld [vmem:[#allocation30_spill] sm:$0xff]  ;;  %v1705_v34 = vsel %vm1684_vm4, %v1672_v4, %v16266_v25  ;;  %v1836_v20 = vsel %vm1816_vm8, %v1803_v8, %v1528_v36  ;;  %v1835_v44 = vsel %vm1816_vm8, %v1802_v11, %v1526_v10  ;;  %v8651_v46 = vld [vmem:[%s8775_s22 + $0x138] sm:$0xff]  ;;  %v16270_v57 = vld [vmem:[#allocation84_spill] sm:$0xff] }
 0x273   : > { %v1706_v30 = vsel %vm1684_vm4, %v1673_v24, %v16265_v38  ;;  %v1612_v53 = vsel %vm1585_vm1, %v8651_v46, %v16267_v56  ;;  %v16269_v32 = vld [vmem:[#allocation125_spill] sm:$0xff]  ;;  %v1642_v31 = vsel %vm1618_vm2, %v10369_v23, %v16270_v57  ;;  %v16272_v50 = vld [vmem:[#allocation148_spill] sm:$0xff]  ;;  %8487 = vmatprep.mubr.msk.f32.mxu0 %vm1852_vm9, %v1835_v44  ;;  %v16276_v18 = vld [vmem:[#allocation174_spill] sm:$0xff] }
 0x274   : > { %v1739_v16 = vsel %vm1717_vm5, %v1706_v30, %v16268_v43  ;;  %v1738_v52 = vsel %vm1717_vm5, %v1705_v34, %v16269_v32  ;;  %v16271_v47 = vld [vmem:[#allocation85_spill] sm:$0xff]  ;;  %v2256_v5 = vld [vmem:[%s9976_s14 + $0xaa] sm:$0xff]  ;;  %8488 = vmatmul.mubr.msk.f32.gmra.mxu0 %vm1852_vm9, %v1836_v20  ;;  %v16278_v55 = vld [vmem:[#allocation34_spill] sm:$0xff]  ;;  %v1536_v34 = vpop.permute.xlu1 %1535  ;;  %v1534_v20 = vpop.permute.xlu0 %1533 }
 0x275   : > { %v1641_v33 = vsel %vm1618_vm2, %v10408_v13, %v16271_v47  ;;  %v1772_v22 = vsel %vm1750_vm6, %v1739_v16, %v16272_v50  ;;  %v16273_v60 = vld [vmem:[#allocation149_spill] sm:$0xff]  ;;  %v16274_v35 = vld [vmem:[#allocation108_spill] sm:$0xff]  ;;  %v16277_v54 = vld [vmem:[#allocation175_spill] sm:$0xff]  ;;  %3170 = vrot.lane.b32.xlu0 %v2256_v5, %s8711_s24 }
 0x276   : > { %v1771_v58 = vsel %vm1750_vm6, %v1738_v52, %v16273_v60  ;;  %v2257_v19 = vld [vmem:[%s9976_s14 + $0xb2] sm:$0xff]  ;;  %v1675_v26 = vsel %vm1651_vm3, %v1642_v31, %v16274_v35  ;;  %v1805_v13 = vsel %vm15903_vm7, %v1772_v22, %v16276_v18  ;;  %v16280_v27 = vld [vmem:[#allocation55_spill] sm:$0xff]  ;;  %v16281_v51 = vld [vmem:[#allocation126_spill] sm:$0xff] }
 0x277   : > { %v16275_v9 = vld [vmem:[#allocation109_spill] sm:$0xff]  ;;  %v1804_v59 = vsel %vm15903_vm7, %v1771_v58, %v16277_v54  ;;  %v1708_v3 = vsel %vm1684_vm4, %v1675_v26, %v16278_v55  ;;  %v1838_v7 = vsel %vm1816_vm8, %v1805_v13, %v1532_v48  ;;  %v16282_v15 = vld [vmem:[#allocation127_spill] sm:$0xff]  ;;  %3172 = vrot.lane.b32.xlu1 %v2257_v19, %s8711_s24  ;;  %v16283_v14 = vld [vmem:[#allocation86_spill] sm:$0xff] }
 0x278   : > { %v1674_v23 = vsel %vm1651_vm3, %v1641_v33, %v16275_v9  ;;  %v16279_v28 = vld [vmem:[#allocation37_spill] sm:$0xff]  ;;  %v1837_v63 = vsel %vm1816_vm8, %v1804_v59, %v1530_v12  ;;  %v1741_v2 = vsel %vm1717_vm5, %v1708_v3, %v16281_v51  ;;  %v1644_v62 = vsel %vm1618_vm2, %v10447_v40, %v16283_v14  ;;  %v16284_v1 = vld [vmem:[#allocation87_spill] sm:$0xff]  ;;  %v16285_v24 = vld [vmem:[#allocation150_spill] sm:$0xff] }
 0x279   : > { %v1707_v45 = vsel %vm1684_vm4, %v1674_v23, %v16279_v28  ;;  %v8652_v41 = vld [vmem:[%s8775_s22 + $0x158] sm:$0xff]  ;;  %v1643_v17 = vsel %vm1618_vm2, %v10486_v29, %v16284_v1  ;;  %v1774_v37 = vsel %vm1750_vm6, %v1741_v2, %v16285_v24  ;;  %v16286_v4 = vld [vmem:[#allocation151_spill] sm:$0xff]  ;;  %8490 = vmatprep.mubr.msk.f32.mxu0 %vm1852_vm9, %v1837_v63  ;;  %v16287_v11 = vld [vmem:[#allocation110_spill] sm:$0xff]  ;;  %v1540_v28 = vpop.permute.xlu1 %1539 }
 0x27a   : > { %v1615_v49 = vsel %vm1585_vm1, %v8652_v41, %v16280_v27  ;;  %v1740_v39 = vsel %vm1717_vm5, %v1707_v45, %v16282_v15  ;;  %v2259_v8 = vld [vmem:[%s9976_s14 + $0xca] sm:$0xff]  ;;  %v2258_v6 = vld [vmem:[%s9976_s14 + $0xc2] sm:$0xff]  ;;  %v1677_v36 = vsel %vm1651_vm3, %v1644_v62, %v16287_v11  ;;  %v16290_v30 = vld [vmem:[#allocation177_spill] sm:$0xff]  ;;  %8491 = vmatmul.mubr.msk.f32.gmra.mxu0 %vm1852_vm9, %v1838_v7  ;;  %v1538_v45 = vpop.permute.xlu0 %1537 }
 0x27b   : > { %v1773_v42 = vsel %vm1750_vm6, %v1740_v39, %v16286_v4  ;;  %v16288_v10 = vld [vmem:[#allocation111_spill] sm:$0xff]  ;;  %v16289_v38 = vld [vmem:[#allocation176_spill] sm:$0xff]  ;;  %v16291_v44 = vld [vmem:[#allocation38_spill] sm:$0xff]  ;;  %3176 = vrot.lane.b32.xlu1 %v2259_v8, %s8711_s24  ;;  %3174 = vrot.lane.b32.xlu0 %v2258_v6, %s8711_s24 }
 0x27c   : > { %v1676_v40 = vsel %vm1651_vm3, %v1643_v17, %v16288_v10  ;;  %v1807_v29 = vsel %vm15903_vm7, %v1774_v37, %v16289_v38  ;;  %v1806_v25 = vsel %vm15903_vm7, %v1773_v42, %v16290_v30  ;;  %v1710_v46 = vsel %vm1684_vm4, %v1677_v36, %v16291_v44  ;;  %v16292_v56 = vld [vmem:[#allocation41_spill] sm:$0xff]  ;;  %v8653_v52 = vld [vmem:[%s8775_s22 + $0x150] sm:$0xff]  ;;  %v2261_v18 = vld [vmem:[%s9976_s14 + $0xe2] sm:$0xff] }
 0x27d   : > { %v1709_v43 = vsel %vm1684_vm4, %v1676_v40, %v16292_v56  ;;  %v1840_v16 = vsel %vm1816_vm8, %v1807_v29, %v1536_v34  ;;  %v1839_v32 = vsel %vm1816_vm8, %v1806_v25, %v1534_v20  ;;  %v16293_v57 = vld [vmem:[#allocation56_spill] sm:$0xff]  ;;  %v16295_v50 = vld [vmem:[#allocation129_spill] sm:$0xff]  ;;  %v16302_v12 = vld [vmem:[#allocation178_spill] sm:$0xff]  ;;  %v1544_v56 = vpop.permute.xlu1 %1543 }
 0x27e   : > { %v1614_v31 = vsel %vm1585_vm1, %v8653_v52, %v16293_v57  ;;  %v16294_v47 = vld [vmem:[#allocation128_spill] sm:$0xff]  ;;  %v1742_v22 = vsel %vm1717_vm5, %v1709_v43, %v16295_v50  ;;  %v16297_v19 = vld [vmem:[#allocation89_spill] sm:$0xff]  ;;  %8493 = vmatprep.mubr.msk.f32.mxu0 %vm1852_vm9, %v1839_v32  ;;  %v16303_v55 = vld [vmem:[#allocation179_spill] sm:$0xff]  ;;  %v1542_v43 = vpop.permute.xlu0 %1541 }
 0x27f   : > { %v1743_v33 = vsel %vm1717_vm5, %v1710_v46, %v16294_v47  ;;  %v16296_v60 = vld [vmem:[#allocation88_spill] sm:$0xff]  ;;  %v1645_v5 = vsel %vm1618_vm2, %v1612_v53, %v16297_v19  ;;  %v16299_v9 = vld [vmem:[#allocation153_spill] sm:$0xff]  ;;  %8494 = vmatmul.mubr.msk.f32.gmra.mxu0 %vm1852_vm9, %v1840_v16  ;;  %v16304_v7 = vld [vmem:[#allocation42_spill] sm:$0xff]  ;;  %3180 = vrot.lane.b32.xlu1 %v2261_v18, %s8711_s24 }
 0x280   : > { %v1646_v58 = vsel %vm1618_vm2, %v10525_v21, %v16296_v60  ;;  %v16298_v35 = vld [vmem:[#allocation152_spill] sm:$0xff]  ;;  %v1775_v23 = vsel %vm1750_vm6, %v1742_v22, %v16299_v9  ;;  %v2260_v13 = vld [vmem:[%s9976_s14 + $0xda] sm:$0xff]  ;;  %v16306_v39 = vld [vmem:[#allocation59_spill] sm:$0xff] }
 0x281   : > { %v1776_v26 = vsel %vm1750_vm6, %v1743_v33, %v16298_v35  ;;  %v16300_v54 = vld [vmem:[#allocation112_spill] sm:$0xff]  ;;  %v16301_v48 = vld [vmem:[#allocation113_spill] sm:$0xff]  ;;  %v1808_v3 = vsel %vm15903_vm7, %v1775_v23, %v16303_v55  ;;  %v16307_v62 = vld [vmem:[#allocation130_spill] sm:$0xff]  ;;  %3178 = vrot.lane.b32.xlu0 %v2260_v13, %s8711_s24 }
 0x282   : > { %v1679_v59 = vsel %vm1651_vm3, %v1646_v58, %v16300_v54  ;;  %v1678_v21 = vsel %vm1651_vm3, %v1645_v5, %v16301_v48  ;;  %v1809_v53 = vsel %vm15903_vm7, %v1776_v26, %v16302_v12  ;;  %v16305_v41 = vld [vmem:[#allocation45_spill] sm:$0xff]  ;;  %v1841_v2 = vsel %vm1816_vm8, %v1808_v3, %v1538_v45  ;;  %v8654_v15 = vld [vmem:[%s8775_s22 + $0x170] sm:$0xff]  ;;  %v16308_v17 = vld [vmem:[#allocation131_spill] sm:$0xff] }
 0x283   : > { %v1712_v63 = vsel %vm1684_vm4, %v1679_v59, %v16304_v7  ;;  %v1711_v27 = vsel %vm1684_vm4, %v1678_v21, %v16305_v41  ;;  %v1842_v51 = vsel %vm1816_vm8, %v1809_v53, %v1540_v28  ;;  %v1617_v14 = vsel %vm1585_vm1, %v8654_v15, %v16306_v39  ;;  %v16309_v37 = vld [vmem:[#allocation90_spill] sm:$0xff]  ;;  %v16310_v42 = vld [vmem:[#allocation91_spill] sm:$0xff]  ;;  %8496 = vmatprep.mubr.msk.f32.mxu0 %vm1852_vm9, %v1841_v2  ;;  %v2262_v38 = vld [vmem:[%s9976_s14 + $0xf2] sm:$0xff]  ;;  %v1548_v41 = vpop.permute.xlu1 %1547 }
 0x284   : > { %v1745_v1 = vsel %vm1717_vm5, %v1712_v63, %v16307_v62  ;;  %v1744_v24 = vsel %vm1717_vm5, %v1711_v27, %v16308_v17  ;;  %v1648_v4 = vsel %vm1618_vm2, %v1615_v49, %v16309_v37  ;;  %v1647_v8 = vsel %vm1618_vm2, %v1614_v31, %v16310_v42  ;;  %v16311_v6 = vld [vmem:[#allocation154_spill] sm:$0xff]  ;;  %v16312_v36 = vld [vmem:[#allocation155_spill] sm:$0xff]  ;;  %v16315_v34 = vld [vmem:[#allocation180_spill] sm:$0xff]  ;;  %8497 = vmatmul.mubr.msk.f32.gmra.mxu0 %vm1852_vm9, %v1842_v51  ;;  %v1546_v27 = vpop.permute.xlu0 %1545 }
 0x285   : > { %v1778_v11 = vsel %vm1750_vm6, %v1745_v1, %v16311_v6  ;;  %v1777_v10 = vsel %vm1750_vm6, %v1744_v24, %v16312_v36  ;;  %v2263_v40 = vld [vmem:[%s9976_s14 + $0xfa] sm:$0xff]  ;;  %v16314_v25 = vld [vmem:[#allocation115_spill] sm:$0xff]  ;;  %v16319_v50 = vld [vmem:[#allocation60_spill] sm:$0xff]  ;;  %3182 = vrot.lane.b32.xlu0 %v2262_v38, %s8711_s24 }
 0x286   : > { %v16313_v29 = vld [vmem:[#allocation114_spill] sm:$0xff]  ;;  %v1680_v49 = vsel %vm1651_vm3, %v1647_v8, %v16314_v25  ;;  %v1811_v20 = vsel %vm15903_vm7, %v1778_v11, %v16315_v34  ;;  %v16316_v44 = vld [vmem:[#allocation181_spill] sm:$0xff]  ;;  %v8655_v33 = vld [vmem:[%s8775_s22 + $0x168] sm:$0xff]  ;;  %3184 = vrot.lane.b32.xlu1 %v2263_v40, %s8711_s24  ;;  %s8721_s22 = smov 24  }
 0x287   : > { %v1681_v30 = vsel %vm1651_vm3, %v1648_v4, %v16313_v29  ;;  %v1810_v46 = vsel %vm15903_vm7, %v1777_v10, %v16316_v44  ;;  %v16317_v16 = vld [vmem:[#allocation46_spill] sm:$0xff]  ;;  %v16318_v52 = vld [vmem:[#allocation49_spill] sm:$0xff]  ;;  %v1844_v31 = vsel %vm1816_vm8, %v1811_v20, %v1544_v56  ;;  %v1616_v22 = vsel %vm1585_vm1, %v8655_v33, %v16319_v50  ;;  %v16320_v60 = vld [vmem:[#allocation132_spill] sm:$0xff]  ;;  %v1552_v38 = vpop.permute.xlu1 %1551 }
 0x288   : > { %v1714_v32 = vsel %vm1684_vm4, %v1681_v30, %v16317_v16  ;;  %v1713_v57 = vsel %vm1684_vm4, %v1680_v49, %v16318_v52  ;;  %v1843_v47 = vsel %vm1816_vm8, %v1810_v46, %v1542_v43  ;;  %v16321_v19 = vld [vmem:[#allocation133_spill] sm:$0xff]  ;;  %v16322_v35 = vld [vmem:[#allocation92_spill] sm:$0xff]  ;;  %v16328_v28 = vld [vmem:[#allocation2_spill] sm:$0xff]  ;;  %v1550_v29 = vpop.permute.xlu0 %1549 }
 0x289   : > { %v1747_v58 = vsel %vm1717_vm5, %v1714_v32, %v16320_v60  ;;  %v1746_v5 = vsel %vm1717_vm5, %v1713_v57, %v16321_v19  ;;  %v1650_v26 = vsel %vm1618_vm2, %v1617_v14, %v16322_v35  ;;  %v16323_v9 = vld [vmem:[#allocation93_spill] sm:$0xff]  ;;  %v16324_v18 = vld [vmem:[#allocation156_spill] sm:$0xff]  ;;  %8499 = vmatprep.mubr.msk.f32.mxu0 %vm1852_vm9, %v1843_v47  ;;  %v16329_v7 = vld [vmem:[#allocation3_spill] sm:$0xff] }
 0x28a   : > { %v1649_v23 = vsel %vm1618_vm2, %v1616_v22, %v16323_v9  ;;  %v1780_v13 = vsel %vm1750_vm6, %v1747_v58, %v16324_v18  ;;  %v16325_v54 = vld [vmem:[#allocation157_spill] sm:$0xff]  ;;  %v2264_v21 = vld [vmem:[%s9976_s14 + $0x10a] sm:$0xff]  ;;  %8500 = vmatmul.mubr.msk.f32.gmra.mxu0 %vm1852_vm9, %v1844_v31  ;;  %v16330_v51 = vld [vmem:[#allocation50_spill] sm:$0xff] }
 0x28b   : > { %v1779_v59 = vsel %vm1750_vm6, %v1746_v5, %v16325_v54  ;;  %v2265_v48 = vld [vmem:[%s9976_s14 + $0x112] sm:$0xff]  ;;  %v1813_v45 = vsel %vm15903_vm7, %v1780_v13, %v16328_v28  ;;  %v16332_v1 = vld [vmem:[#allocation134_spill] sm:$0xff]  ;;  %v16333_v24 = vld [vmem:[#allocation135_spill] sm:$0xff]  ;;  %3186 = vrot.lane.b32.xlu0 %v2264_v21, %s8711_s24  ;;  %v10767_v49 = vpop.permute.xlu1 %3016 }
 0x28c   : > { %v16326_v12 = vld [vmem:[#allocation116_spill] sm:$0xff]  ;;  %v16327_v55 = vld [vmem:[#allocation117_spill] sm:$0xff]  ;;  %v1812_v63 = vsel %vm15903_vm7, %v1779_v59, %v16329_v7  ;;  %v1846_v14 = vsel %vm1816_vm8, %v1813_v45, %v1548_v41  ;;  %3188 = vrot.lane.b32.xlu1 %v2265_v48, %s8711_s24  ;;  %v16334_v4 = vld [vmem:[#allocation158_spill] sm:$0xff]  ;;  %v10769_v34 = vpop.permute.xlu0 %3014 }
 0x28d   : > { %v1683_v53 = vsel %vm1651_vm3, %v1650_v26, %v16326_v12  ;;  %v1682_v3 = vsel %vm1651_vm3, %v1649_v23, %v16327_v55  ;;  %v16331_v15 = vld [vmem:[#allocation53_spill] sm:$0xff]  ;;  %v1845_v62 = vsel %vm1816_vm8, %v1812_v63, %v1546_v27  ;;  %v16335_v8 = vld [vmem:[#allocation159_spill] sm:$0xff] }
 0x28e   : > { %v1716_v2 = vsel %vm1684_vm4, %v1683_v53, %v16330_v51  ;;  %v1715_v39 = vsel %vm1684_vm4, %v1682_v3, %v16331_v15  ;;  %8502 = vmatprep.mubr.msk.f32.mxu0 %vm1852_vm9, %v1845_v62  ;;  %v2267_v11 = vld [vmem:[%s9976_s14 + $0x12a] sm:$0xff]  ;;  %v2266_v36 = vld [vmem:[%s9976_s14 + $0x122] sm:$0xff]  ;;  %v2271_v20 = vld [vmem:[%s9976_s14 + $0x15a] sm:$0xff] }
 0x28f   : > { %v1749_v17 = vsel %vm1717_vm5, %v1716_v2, %v16332_v1  ;;  %v1748_v37 = vsel %vm1717_vm5, %v1715_v39, %v16333_v24  ;;  %8503 = vmatmul.mubr.msk.f32.gmra.mxu0 %vm1852_vm9, %v1846_v14  ;;  %3190 = vrot.lane.b32.xlu0 %v2266_v36, %s8711_s24  ;;  %v2270_v44 = vld [vmem:[%s9976_s14 + $0x152] sm:$0xff]  ;;  %v10775_v46 = vpop.permute.xlu1 %3020  ;;  %v2272_v16 = vld [vmem:[%s9976_s14 + $0x16a] sm:$0xff]  ;;  %v2276_v22 = vld [vmem:[%s9976_s14 + $0x1b] sm:$0xff] }
 0x290   : > { %v1782_v42 = vsel %vm1750_vm6, %v1749_v17, %v16334_v4  ;;  %v1781_v6 = vsel %vm1750_vm6, %v1748_v37, %v16335_v8  ;;  %3192 = vrot.lane.b32.xlu1 %v2267_v11, %s8711_s24  ;;  %16336 = vst [vmem:[#allocation12_spill] sm:$0xff] %v10775_v46  ;;  %v10777_v56 = vpop.permute.xlu0 %3018  ;;  %v2273_v43 = vld [vmem:[%s9976_s14 + $0x172] sm:$0xff]  ;;  %v2274_v31 = vld [vmem:[%s9976_s14 + $0x3] sm:$0xff]  ;;  %v2279_v19 = vld [vmem:[%s9976_s14 + $0x3b] sm:$0xff] }
 0x291   : > { %v1815_v10 = vsel %vm15903_vm7, %v1782_v42, %v10167_v0  ;;  %v1814_v40 = vsel %vm15903_vm7, %v1781_v6, %v10169_v61  ;;  %v2269_v0 = vld [vmem:[%s9976_s14 + $0x142] sm:$0xff]  ;;  %v2268_v61 = vld [vmem:[%s9976_s14 + $0x13a] sm:$0xff]  ;;  %16337 = vst [vmem:[#allocation13_spill] sm:$0xff] %v10777_v56  ;;  %v2275_v57 = vld [vmem:[%s9976_s14 + $0xb] sm:$0xff] }
 0x292   : > { %v1848_v30 = vsel %vm1816_vm8, %v1815_v10, %v1552_v38  ;;  %v1847_v25 = vsel %vm1816_vm8, %v1814_v40, %v1550_v29  ;;  %v2277_v50 = vld [vmem:[%s9976_s14 + $0x23] sm:$0xff]  ;;  %v2278_v5 = vld [vmem:[%s9976_s14 + $0x33] sm:$0xff]  ;;  %v2280_v23 = vld [vmem:[%s9976_s14 + $0x4b] sm:$0xff] }
 0x293   : > { %8505 = vmatprep.mubr.msk.f32.mxu0 %vm1852_vm9, %v1847_v25  ;;  %3194 = vrot.lane.b32.xlu0 %v2268_v61, %s8711_s24  ;;  %v10783_v32 = vpop.permute.xlu1 %3024  ;;  %v2281_v9 = vld [vmem:[%s9976_s14 + $0x53] sm:$0xff]  ;;  %v2283_v54 = vld [vmem:[%s9976_s14 + $0x6b] sm:$0xff]  ;;  %v2282_v59 = vld [vmem:[%s9976_s14 + $0x63] sm:$0xff] }
 0x294   : > { %8506 = vmatmul.mubr.msk.f32.gmra.mxu0 %vm1852_vm9, %v1848_v30  ;;  %3196 = vrot.lane.b32.xlu1 %v2269_v0, %s8711_s24  ;;  %16338 = vst [vmem:[#allocation15_spill] sm:$0xff] %v10783_v32  ;;  %v10785_v52 = vpop.permute.xlu0 %3022  ;;  %v2285_v12 = vld [vmem:[%s9976_s14 + $0x83] sm:$0xff]  ;;  %v2284_v53 = vld [vmem:[%s9976_s14 + $0x7b] sm:$0xff]  ;;  %v2286_v45 = vld [vmem:[%s9976_s14 + $0x93] sm:$0xff] }
 0x295   : > { %16339 = vst [vmem:[#allocation16_spill] sm:$0xff] %v10785_v52  ;;  %v2287_v28 = vld [vmem:[%s9976_s14 + $0x9b] sm:$0xff]  ;;  %v2289_v41 = vld [vmem:[%s9976_s14 + $0xb3] sm:$0xff]  ;;  %v2288_v27 = vld [vmem:[%s9976_s14 + $0xab] sm:$0xff] }
 0x296   : > { %v2291_v15 = vld [vmem:[%s9976_s14 + $0xcb] sm:$0xff]  ;;  %v2290_v39 = vld [vmem:[%s9976_s14 + $0xc3] sm:$0xff]  ;;  %v2292_v17 = vld [vmem:[%s9976_s14 + $0xdb] sm:$0xff] }
 0x297   : > { %3198 = vrot.lane.b32.xlu0 %v2270_v44, %s8711_s24  ;;  %v10791_v47 = vpop.permute.xlu1 %3028  ;;  %v2293_v1 = vld [vmem:[%s9976_s14 + $0xe3] sm:$0xff]  ;;  %v2295_v4 = vld [vmem:[%s9976_s14 + $0xfb] sm:$0xff]  ;;  %v2294_v42 = vld [vmem:[%s9976_s14 + $0xf3] sm:$0xff] }
 0x298   : > { %3200 = vrot.lane.b32.xlu1 %v2271_v20, %s8711_s24  ;;  %16340 = vst [vmem:[#allocation19_spill] sm:$0xff] %v10791_v47  ;;  %v10793_v33 = vpop.permute.xlu0 %3026  ;;  %v2297_v11 = vld [vmem:[%s9976_s14 + $0x113] sm:$0xff]  ;;  %v2296_v36 = vld [vmem:[%s9976_s14 + $0x10b] sm:$0xff]  ;;  %v2298_v29 = vld [vmem:[%s9976_s14 + $0x123] sm:$0xff] }
 0x299   : > { %16341 = vst [vmem:[#allocation20_spill] sm:$0xff] %v10793_v33  ;;  %v2299_v38 = vld [vmem:[%s9976_s14 + $0x12b] sm:$0xff]  ;;  %v2301_v0 = vld [vmem:[%s9976_s14 + $0x143] sm:$0xff]  ;;  %v2300_v61 = vld [vmem:[%s9976_s14 + $0x13b] sm:$0xff] }
 0x29a   : > { %v7890_v32 = vld [vmem:[%s9976_s14 + $0x168] sm:$0xff]  ;;  %v7892_v46 = vld [vmem:[%s9976_s14 + $0x180] sm:$0xff] }
 0x29b   : > { %3202 = vrot.lane.b32.xlu0 %v2272_v16, %s8711_s24  ;;  %v10799_v60 = vpop.permute.xlu1 %3032  ;;  %v2302_v16 = vld [vmem:[%s9976_s14 + $0x153] sm:$0xff] }
 0x29c   : > { %3204 = vrot.lane.b32.xlu1 %v2273_v43, %s8711_s24  ;;  %16342 = vst [vmem:[#allocation23_spill] sm:$0xff] %v10799_v60  ;;  %v10801_v58 = vpop.permute.xlu0 %3030  ;;  %v2303_v43 = vld [vmem:[%s9976_s14 + $0x15b] sm:$0xff] }
 0x29d   : > { %16343 = vst [vmem:[#allocation24_spill] sm:$0xff] %v10801_v58  ;;  %v7860_v58 = vld [vmem:[%s9976_s14 + $0x16c] sm:$0xff] }
 0x29f   : > { %3270 = vrot.lane.b32.xlu0 %v2274_v31, %s8712_s25  ;;  %v10807_v35 = vpop.permute.xlu1 %3036 }
 0x2a0   : > { %3272 = vrot.lane.b32.xlu1 %v2275_v57, %s8712_s25  ;;  %16344 = vst [vmem:[#allocation27_spill] sm:$0xff] %v10807_v35  ;;  %v10809_v26 = vpop.permute.xlu0 %3034 }
 0x2a1   : > { %16345 = vst [vmem:[#allocation28_spill] sm:$0xff] %v10809_v26  ;;  %v7858_v26 = vld [vmem:[%s9976_s14 + $0x154] sm:$0xff] }
 0x2a3   : > { %3274 = vrot.lane.b32.xlu0 %v2276_v22, %s8712_s25  ;;  %v10815_v18 = vpop.permute.xlu1 %3040  ;;  %v2304_v22 = vld [vmem:[%s9976_s14 + $0x16b] sm:$0xff] }
 0x2a4   : > { %3276 = vrot.lane.b32.xlu1 %v2277_v50, %s8712_s25  ;;  %16346 = vst [vmem:[#allocation63_spill] sm:$0xff] %v10815_v18  ;;  %v10817_v13 = vpop.permute.xlu0 %3038  ;;  %v2305_v50 = vld [vmem:[%s9976_s14 + $0x173] sm:$0xff] }
 0x2a5   : > { %16347 = vst [vmem:[#allocation64_spill] sm:$0xff] %v10817_v13 }
 0x2a7   : > { %3278 = vrot.lane.b32.xlu0 %v2278_v5, %s8712_s25  ;;  %v10823_v48 = vpop.permute.xlu1 %3044 }
 0x2a8   : > { %3280 = vrot.lane.b32.xlu1 %v2279_v19, %s8712_s25  ;;  %16348 = vst [vmem:[#allocation31_spill] sm:$0xff] %v10823_v48  ;;  %v10825_v21 = vpop.permute.xlu0 %3042 }
 0x2a9   : > { %16349 = vst [vmem:[#allocation32_spill] sm:$0xff] %v10825_v21 }
 0x2ab   : > { %3282 = vrot.lane.b32.xlu0 %v2280_v23, %s8712_s25  ;;  %v10831_v55 = vpop.permute.xlu1 %3048  ;;  %v2306_v23 = vld [vmem:[%s9976_s14 + $0x4] sm:$0xff] }
 0x2ac   : > { %3284 = vrot.lane.b32.xlu1 %v2281_v9, %s8712_s25  ;;  %16350 = vst [vmem:[#allocation66_spill] sm:$0xff] %v10831_v55  ;;  %v10833_v3 = vpop.permute.xlu0 %3046  ;;  %v2307_v9 = vld [vmem:[%s9976_s14 + $0xc] sm:$0xff] }
 0x2ad   : > { %16351 = vst [vmem:[#allocation67_spill] sm:$0xff] %v10833_v3  ;;  %v7828_v55 = vld [vmem:[%s9976_s14 + $0x16b] sm:$0xff] }
 0x2af   : > { %3286 = vrot.lane.b32.xlu0 %v2282_v59, %s8712_s25  ;;  %v10839_v7 = vpop.permute.xlu1 %3052 }
 0x2b0   : > { %3288 = vrot.lane.b32.xlu1 %v2283_v54, %s8712_s25  ;;  %16352 = vst [vmem:[#allocation35_spill] sm:$0xff] %v10839_v7  ;;  %v10841_v63 = vpop.permute.xlu0 %3050  ;;  %v7826_v7 = vld [vmem:[%s9976_s14 + $0x153] sm:$0xff] }
 0x2b1   : > { %16353 = vst [vmem:[#allocation68_spill] sm:$0xff] %v10841_v63  ;;  %v7824_v63 = vld [vmem:[%s9976_s14 + $0x13b] sm:$0xff] }
 0x2b3   : > { %3290 = vrot.lane.b32.xlu0 %v2284_v53, %s8712_s25  ;;  %v10847_v51 = vpop.permute.xlu1 %3056  ;;  %v2308_v53 = vld [vmem:[%s9976_s14 + $0x1c] sm:$0xff] }
 0x2b4   : > { %3292 = vrot.lane.b32.xlu1 %v2285_v12, %s8712_s25  ;;  %16354 = vst [vmem:[#allocation69_spill] sm:$0xff] %v10847_v51  ;;  %v10849_v2 = vpop.permute.xlu0 %3054  ;;  %v2309_v12 = vld [vmem:[%s9976_s14 + $0x24] sm:$0xff] }
 0x2b5   : > { %16355 = vst [vmem:[#allocation36_spill] sm:$0xff] %v10849_v2  ;;  %v7798_v2 = vld [vmem:[%s9976_s14 + $0x182] sm:$0xff] }
 0x2b7   : > { %3294 = vrot.lane.b32.xlu0 %v2286_v45, %s8712_s25  ;;  %v10855_v14 = vpop.permute.xlu1 %3060 }
 0x2b8   : > { %3296 = vrot.lane.b32.xlu1 %v2287_v28, %s8712_s25  ;;  %16356 = vst [vmem:[#allocation70_spill] sm:$0xff] %v10855_v14  ;;  %v10857_v62 = vpop.permute.xlu0 %3058 }
 0x2b9   : > { %16357 = vst [vmem:[#allocation71_spill] sm:$0xff] %v10857_v62  ;;  %v7796_v62 = vld [vmem:[%s9976_s14 + $0x16a] sm:$0xff] }
 0x2bb   : > { %3298 = vrot.lane.b32.xlu0 %v2288_v27, %s8712_s25  ;;  %v10863_v24 = vpop.permute.xlu1 %3064  ;;  %v2310_v27 = vld [vmem:[%s9976_s14 + $0x34] sm:$0xff] }
 0x2bc   : > { %3300 = vrot.lane.b32.xlu1 %v2289_v41, %s8712_s25  ;;  %16358 = vst [vmem:[#allocation39_spill] sm:$0xff] %v10863_v24  ;;  %v10865_v37 = vpop.permute.xlu0 %3062  ;;  %v2311_v41 = vld [vmem:[%s9976_s14 + $0x3c] sm:$0xff] }
 0x2bd   : > { %16359 = vst [vmem:[#allocation94_spill] sm:$0xff] %v10865_v37  ;;  %v7794_v37 = vld [vmem:[%s9976_s14 + $0x152] sm:$0xff] }
 0x2bf   : > { %3302 = vrot.lane.b32.xlu0 %v2290_v39, %s8712_s25  ;;  %v10871_v8 = vpop.permute.xlu1 %3068 }
 0x2c0   : > { %3304 = vrot.lane.b32.xlu1 %v2291_v15, %s8712_s25  ;;  %v10873_v6 = vpop.permute.xlu0 %3066 }
 0x2c1   : > { %16360 = vst [vmem:[#allocation95_spill] sm:$0xff] %v10873_v6 }
 0x2c3   : > { %3306 = vrot.lane.b32.xlu0 %v2292_v17, %s8712_s25  ;;  %v10879_v10 = vpop.permute.xlu1 %3072  ;;  %v2312_v17 = vld [vmem:[%s9976_s14 + $0x4c] sm:$0xff] }
 0x2c4   : > { %3308 = vrot.lane.b32.xlu1 %v2293_v1, %s8712_s25  ;;  %v10881_v40 = vpop.permute.xlu0 %3070  ;;  %v2313_v1 = vld [vmem:[%s9976_s14 + $0x54] sm:$0xff] }
 0x2c7   : > { %3310 = vrot.lane.b32.xlu0 %v2294_v42, %s8712_s25  ;;  %v10887_v30 = vpop.permute.xlu1 %3076 }
 0x2c8   : > { %3312 = vrot.lane.b32.xlu1 %v2295_v4, %s8712_s25  ;;  %v10889_v25 = vpop.permute.xlu0 %3074 }
 0x2cb   : > { %3314 = vrot.lane.b32.xlu0 %v2296_v36, %s8712_s25  ;;  %v10895_v20 = vpop.permute.xlu1 %3144  ;;  %v2314_v36 = vld [vmem:[%s9976_s14 + $0x64] sm:$0xff] }
 0x2cc   : > { %3316 = vrot.lane.b32.xlu1 %v2297_v11, %s8712_s25  ;;  %v10897_v44 = vpop.permute.xlu0 %3142  ;;  %v2315_v11 = vld [vmem:[%s9976_s14 + $0x6c] sm:$0xff] }
 0x2cf   : > { %3318 = vrot.lane.b32.xlu0 %v2298_v29, %s8712_s25  ;;  %v10903_v57 = vpop.permute.xlu1 %3148 }
 0x2d0   : > { %3320 = vrot.lane.b32.xlu1 %v2299_v38, %s8712_s25  ;;  %16361 = vst [vmem:[#allocation160_spill] sm:$0xff] %v10903_v57  ;;  %v10905_v31 = vpop.permute.xlu0 %3146  ;;  %v7792_v57 = vld [vmem:[%s9976_s14 + $0x13a] sm:$0xff] }
 0x2d1   : > { %16362 = vst [vmem:[#allocation161_spill] sm:$0xff] %v10905_v31 }
 0x2d3   : > { %3322 = vrot.lane.b32.xlu0 %v2300_v61, %s8712_s25  ;;  %v10911_v19 = vpop.permute.xlu1 %3152  ;;  %v2316_v61 = vld [vmem:[%s9976_s14 + $0x7c] sm:$0xff] }
 0x2d4   : > { %3324 = vrot.lane.b32.xlu1 %v2301_v0, %s8712_s25  ;;  %16363 = vst [vmem:[#allocation4_spill] sm:$0xff] %v10911_v19  ;;  %v10913_v5 = vpop.permute.xlu0 %3150  ;;  %v2317_v0 = vld [vmem:[%s9976_s14 + $0x84] sm:$0xff] }
 0x2d5   : > { %16364 = vst [vmem:[#allocation5_spill] sm:$0xff] %v10913_v5  ;;  %v7766_v19 = vld [vmem:[%s9976_s14 + $0x181] sm:$0xff] }
 0x2d7   : > { %3326 = vrot.lane.b32.xlu0 %v2302_v16, %s8712_s25  ;;  %v10919_v54 = vpop.permute.xlu1 %3156 }
 0x2d8   : > { %3328 = vrot.lane.b32.xlu1 %v2303_v43, %s8712_s25  ;;  %16365 = vst [vmem:[#allocation40_spill] sm:$0xff] %v10919_v54  ;;  %v10921_v59 = vpop.permute.xlu0 %3154  ;;  %v7764_v54 = vld [vmem:[%s9976_s14 + $0x169] sm:$0xff] }
 0x2d9   : > { %16366 = vst [vmem:[#allocation54_spill] sm:$0xff] %v10921_v59 }
 0x2db   : > { %3330 = vrot.lane.b32.xlu0 %v2304_v22, %s8712_s25  ;;  %v10927_v28 = vpop.permute.xlu1 %3160  ;;  %v2318_v22 = vld [vmem:[%s9976_s14 + $0x94] sm:$0xff] }
 0x2dc   : > { %3332 = vrot.lane.b32.xlu1 %v2305_v50, %s8712_s25  ;;  %16367 = vst [vmem:[#allocation57_spill] sm:$0xff] %v10927_v28  ;;  %v10929_v45 = vpop.permute.xlu0 %3158  ;;  %v2319_v50 = vld [vmem:[%s9976_s14 + $0x9c] sm:$0xff]  ;;  %v7762_v28 = vld [vmem:[%s9976_s14 + $0x151] sm:$0xff] }
 0x2dd   : > { %16368 = vst [vmem:[#allocation72_spill] sm:$0xff] %v10929_v45  ;;  %v7760_v45 = vld [vmem:[%s9976_s14 + $0x139] sm:$0xff] }
 0x2df   : > { %3398 = vrot.lane.b32.xlu0 %v2306_v23, %s8713_s26  ;;  %v10935_v15 = vpop.permute.xlu1 %3164 }
 0x2e0   : > { %3400 = vrot.lane.b32.xlu1 %v2307_v9, %s8713_s26  ;;  %16369 = vst [vmem:[#allocation6_spill] sm:$0xff] %v10935_v15  ;;  %v10937_v39 = vpop.permute.xlu0 %3162 }
 0x2e1   : > { %16370 = vst [vmem:[#allocation73_spill] sm:$0xff] %v10937_v39  ;;  %v7734_v39 = vld [vmem:[%s9976_s14 + $0x180] sm:$0xff] }
 0x2e3   : > { %3402 = vrot.lane.b32.xlu0 %v2308_v53, %s8713_s26  ;;  %v10943_v4 = vpop.permute.xlu1 %3168  ;;  %v2320_v53 = vld [vmem:[%s9976_s14 + $0xac] sm:$0xff] }
 0x2e4   : > { %3404 = vrot.lane.b32.xlu1 %v2309_v12, %s8713_s26  ;;  %16371 = vst [vmem:[#allocation136_spill] sm:$0xff] %v10943_v4  ;;  %v10945_v42 = vpop.permute.xlu0 %3166  ;;  %v2321_v12 = vld [vmem:[%s9976_s14 + $0xb4] sm:$0xff]  ;;  %v2208_v4 = vld [vmem:[%s9976_s14 + $0x168] sm:$0xff] }
 0x2e5   : > { %16372 = vst [vmem:[#allocation137_spill] sm:$0xff] %v10945_v42  ;;  %v2209_v42 = vld [vmem:[%s9976_s14 + $0x170] sm:$0xff] }
 0x2e7   : > { %3406 = vrot.lane.b32.xlu0 %v2310_v27, %s8713_s26 }
 0x2e8   : > { %3408 = vrot.lane.b32.xlu1 %v2311_v41, %s8713_s26  ;;  %v10953_v29 = vpop.permute.xlu0 %3170 }
 0x2e9   : > { %v10951_v38 = vpop.permute.xlu1 %3172  ;;  %16374 = vst [vmem:[#allocation97_spill] sm:$0xff] %v10953_v29  ;;  %v2207_v29 = vld [vmem:[%s9976_s14 + $0x158] sm:$0xff] }
 0x2ea   : > { %16373 = vst [vmem:[#allocation96_spill] sm:$0xff] %v10951_v38  ;;  %v2206_v38 = vld [vmem:[%s9976_s14 + $0x150] sm:$0xff] }
 0x2eb   : > { %3410 = vrot.lane.b32.xlu0 %v2312_v17, %s8713_s26  ;;  %v2322_v17 = vld [vmem:[%s9976_s14 + $0xc4] sm:$0xff] }
 0x2ec   : > { %3412 = vrot.lane.b32.xlu1 %v2313_v1, %s8713_s26  ;;  %v2323_v1 = vld [vmem:[%s9976_s14 + $0xcc] sm:$0xff] }
 0x2ed   : > { %v10959_v43 = vpop.permute.xlu1 %3176  ;;  %v10961_v16 = vpop.permute.xlu0 %3174 }
 0x2ee   : > { %16375 = vst [vmem:[#allocation162_spill] sm:$0xff] %v10959_v43  ;;  %16376 = vst [vmem:[#allocation163_spill] sm:$0xff] %v10961_v16  ;;  %v2204_v43 = vld [vmem:[%s9976_s14 + $0x138] sm:$0xff] }
 0x2ef   : > { %3414 = vrot.lane.b32.xlu0 %v2314_v36, %s8713_s26 }
 0x2f0   : > { %3416 = vrot.lane.b32.xlu1 %v2315_v11, %s8713_s26 }
 0x2f1   : > { %v10967_v9 = vpop.permute.xlu1 %3180 }
 0x2f2   : > { %16377 = vst [vmem:[#allocation8_spill] sm:$0xff] %v10967_v9 }
 0x2f3   : > { %3418 = vrot.lane.b32.xlu0 %v2316_v61, %s8713_s26  ;;  %v10969_v23 = vpop.permute.xlu0 %3178  ;;  %v2324_v61 = vld [vmem:[%s9976_s14 + $0xdc] sm:$0xff] }
 0x2f4   : > { %3420 = vrot.lane.b32.xlu1 %v2317_v0, %s8713_s26  ;;  %16378 = vst [vmem:[#allocation9_spill] sm:$0xff] %v10969_v23  ;;  %v2325_v0 = vld [vmem:[%s9976_s14 + $0xe4] sm:$0xff] }
 0x2f7   : > { %3422 = vrot.lane.b32.xlu0 %v2318_v22, %s8713_s26  ;;  %v10977_v27 = vpop.permute.xlu0 %3182 }
 0x2f8   : > { %3424 = vrot.lane.b32.xlu1 %v2319_v50, %s8713_s26  ;;  %v10975_v41 = vpop.permute.xlu1 %3184  ;;  %16380 = vst [vmem:[#allocation58_spill] sm:$0xff] %v10977_v27 }
 0x2f9   : > { %16379 = vst [vmem:[#allocation43_spill] sm:$0xff] %v10975_v41 }
 0x2fb   : > { %3426 = vrot.lane.b32.xlu0 %v2320_v53, %s8713_s26  ;;  %v2326_v53 = vld [vmem:[%s9976_s14 + $0xf4] sm:$0xff] }
 0x2fc   : > { %3428 = vrot.lane.b32.xlu1 %v2321_v12, %s8713_s26  ;;  %v2327_v12 = vld [vmem:[%s9976_s14 + $0xfc] sm:$0xff] }
 0x2fd   : > { %v10985_v36 = vpop.permute.xlu0 %3186 }
 0x2fe   : > { %v10983_v11 = vpop.permute.xlu1 %3188  ;;  %16382 = vst [vmem:[#allocation74_spill] sm:$0xff] %v10985_v36  ;;  %v2330_v36 = vld [vmem:[%s9976_s14 + $0x124] sm:$0xff] }
 0x2ff   : > { %16381 = vst [vmem:[#allocation61_spill] sm:$0xff] %v10983_v11  ;;  %3430 = vrot.lane.b32.xlu0 %v2322_v17, %s8713_s26  ;;  %v2329_v17 = vld [vmem:[%s9976_s14 + $0x114] sm:$0xff]  ;;  %v2332_v11 = vld [vmem:[%s9976_s14 + $0x13c] sm:$0xff] }
 0x300   : > { %3432 = vrot.lane.b32.xlu1 %v2323_v1, %s8713_s26 }
 0x301   : > { %v10993_v22 = vpop.permute.xlu0 %3190 }
 0x302   : > { %v10991_v50 = vpop.permute.xlu1 %3192  ;;  %16384 = vst [vmem:[#allocation75_spill] sm:$0xff] %v10993_v22 }
 0x303   : > { %16383 = vst [vmem:[#allocation7_spill] sm:$0xff] %v10991_v50  ;;  %3434 = vrot.lane.b32.xlu0 %v2324_v61, %s8713_s26  ;;  %v2328_v50 = vld [vmem:[%s9976_s14 + $0x10c] sm:$0xff] }
 0x304   : > { %3436 = vrot.lane.b32.xlu1 %v2325_v0, %s8713_s26  ;;  %v2331_v61 = vld [vmem:[%s9976_s14 + $0x12c] sm:$0xff] }
 0x305   : > { %v11001_v1 = vpop.permute.xlu0 %3194 }
 0x306   : > { %v10999_v6 = vpop.permute.xlu1 %3196  ;;  %16385 = vst [vmem:[#allocation10_spill] sm:$0xff] %v11001_v1 }
 0x307   : > { %3438 = vrot.lane.b32.xlu0 %v2326_v53, %s8713_s26  ;;  %v2333_v53 = vld [vmem:[%s9976_s14 + $0x144] sm:$0xff] }
 0x308   : > { %3440 = vrot.lane.b32.xlu1 %v2327_v12, %s8713_s26 }
 0x309   : > { %v11009_v0 = vpop.permute.xlu0 %3198 }
 0x30a   : > { %v11007_v22 = vpop.permute.xlu1 %3200 }
 0x30b   : > { %3442 = vrot.lane.b32.xlu0 %v2328_v50, %s8713_s26  ;;  %v2335_v50 = vld [vmem:[%s9976_s14 + $0x15c] sm:$0xff] }
 0x30c   : > { %3444 = vrot.lane.b32.xlu1 %v2329_v17, %s8713_s26  ;;  %v2334_v17 = vld [vmem:[%s9976_s14 + $0x154] sm:$0xff] }
 0x30d   : > { %v11017_v12 = vpop.permute.xlu0 %3202 }
 0x30e   : > { %v11015_v1 = vpop.permute.xlu1 %3204 }
 0x30f   : > { %3446 = vrot.lane.b32.xlu0 %v2330_v36, %s8713_s26  ;;  %v2337_v36 = vld [vmem:[%s9976_s14 + $0x174] sm:$0xff] }
 0x310   : > { %3448 = vrot.lane.b32.xlu1 %v2331_v61, %s8713_s26  ;;  %v2336_v61 = vld [vmem:[%s9976_s14 + $0x16c] sm:$0xff] }
 0x311   : > { %v11025_v41 = vpop.permute.xlu0 %3270 }
 0x312   : > { %v11023_v27 = vpop.permute.xlu1 %3272 }
 0x313   : > { %3450 = vrot.lane.b32.xlu0 %v2332_v11, %s8713_s26 }
 0x314   : > { %3452 = vrot.lane.b32.xlu1 %v2333_v53, %s8713_s26 }
 0x315   : > { %v11033_v9 = vpop.permute.xlu0 %3274 }
 0x316   : > { %v11031_v23 = vpop.permute.xlu1 %3276  ;;  %16387 = vst [vmem:[#allocation139_spill] sm:$0xff] %v11033_v9  ;;  %v2181_v9 = vld [vmem:[%s9976_s14 + $0x20] sm:$0xff] }
 0x317   : > { %16386 = vst [vmem:[#allocation138_spill] sm:$0xff] %v11031_v23  ;;  %3454 = vrot.lane.b32.xlu0 %v2334_v17, %s8713_s26  ;;  %v2180_v23 = vld [vmem:[%s9976_s14 + $0x18] sm:$0xff] }
 0x318   : > { %3456 = vrot.lane.b32.xlu1 %v2335_v50, %s8713_s26 }
 0x319   : > { %v11041_v53 = vpop.permute.xlu0 %3278 }
 0x31a   : > { %v11039_v16 = vpop.permute.xlu1 %3280  ;;  %16389 = vst [vmem:[#allocation99_spill] sm:$0xff] %v11041_v53  ;;  %v2183_v53 = vld [vmem:[%s9976_s14 + $0x38] sm:$0xff] }
 0x31b   : > { %16388 = vst [vmem:[#allocation98_spill] sm:$0xff] %v11039_v16  ;;  %3458 = vrot.lane.b32.xlu0 %v2336_v61, %s8713_s26  ;;  %v2182_v16 = vld [vmem:[%s9976_s14 + $0x30] sm:$0xff] }
 0x31c   : > { %3460 = vrot.lane.b32.xlu1 %v2337_v36, %s8713_s26 }
 0x31d   : > { %v11049_v50 = vpop.permute.xlu0 %3282 }
 0x31e   : > { %v11045_v11 = vpop.permute.xlu1 %3284  ;;  %16391 = vst [vmem:[#allocation165_spill] sm:$0xff] %v11049_v50  ;;  %v2185_v50 = vld [vmem:[%s9976_s14 + $0x50] sm:$0xff] }
 0x31f   : > { %16390 = vst [vmem:[#allocation164_spill] sm:$0xff] %v11045_v11  ;;  %3526 = vrot.lane.b32.xlu0 %v2180_v23, %s8714_s27  ;;  %v2184_v11 = vld [vmem:[%s9976_s14 + $0x48] sm:$0xff] }
 0x320   : > { %3528 = vrot.lane.b32.xlu1 %v2181_v9, %s8714_s27 }
 0x321   : > { %v11057_v36 = vpop.permute.xlu0 %3286 }
 0x322   : > { %v11053_v17 = vpop.permute.xlu1 %3288  ;;  %16393 = vst [vmem:[#allocation17_spill] sm:$0xff] %v11057_v36  ;;  %v2187_v36 = vld [vmem:[%s9976_s14 + $0x68] sm:$0xff] }
 0x323   : > { %16392 = vst [vmem:[#allocation14_spill] sm:$0xff] %v11053_v17  ;;  %3530 = vrot.lane.b32.xlu0 %v2182_v16, %s8714_s27  ;;  %v2186_v17 = vld [vmem:[%s9976_s14 + $0x60] sm:$0xff] }
 0x324   : > { %3532 = vrot.lane.b32.xlu1 %v2183_v53, %s8714_s27 }
 0x325   : > { %v11065_v9 = vpop.permute.xlu0 %3290 }
 0x326   : > { %v11061_v61 = vpop.permute.xlu1 %3292  ;;  %16395 = vst [vmem:[#allocation62_spill] sm:$0xff] %v11065_v9  ;;  %v2189_v9 = vld [vmem:[%s9976_s14 + $0x80] sm:$0xff] }
 0x327   : > { %16394 = vst [vmem:[#allocation44_spill] sm:$0xff] %v11061_v61  ;;  %3534 = vrot.lane.b32.xlu0 %v2184_v11, %s8714_s27  ;;  %v2188_v61 = vld [vmem:[%s9976_s14 + $0x78] sm:$0xff] }
 0x328   : > { %3536 = vrot.lane.b32.xlu1 %v2185_v50, %s8714_s27 }
 0x329   : > { %v11073_v53 = vpop.permute.xlu0 %3294 }
 0x32a   : > { %v11069_v23 = vpop.permute.xlu1 %3296  ;;  %16397 = vst [vmem:[#allocation76_spill] sm:$0xff] %v11073_v53  ;;  %v2191_v53 = vld [vmem:[%s9976_s14 + $0x98] sm:$0xff] }
 0x32b   : > { %16396 = vst [vmem:[#allocation65_spill] sm:$0xff] %v11069_v23  ;;  %3538 = vrot.lane.b32.xlu0 %v2186_v17, %s8714_s27  ;;  %v2190_v23 = vld [vmem:[%s9976_s14 + $0x90] sm:$0xff] }
 0x32c   : > { %3540 = vrot.lane.b32.xlu1 %v2187_v36, %s8714_s27 }
 0x32d   : > { %v11081_v50 = vpop.permute.xlu0 %3298 }
 0x32e   : > { %v11077_v16 = vpop.permute.xlu1 %3300  ;;  %16399 = vst [vmem:[#allocation77_spill] sm:$0xff] %v11081_v50  ;;  %v2193_v50 = vld [vmem:[%s9976_s14 + $0xb0] sm:$0xff] }
 0x32f   : > { %16398 = vst [vmem:[#allocation11_spill] sm:$0xff] %v11077_v16  ;;  %3542 = vrot.lane.b32.xlu0 %v2188_v61, %s8714_s27  ;;  %v2192_v16 = vld [vmem:[%s9976_s14 + $0xa8] sm:$0xff] }
 0x330   : > { %3544 = vrot.lane.b32.xlu1 %v2189_v9, %s8714_s27 }
 0x331   : > { %v11089_v36 = vpop.permute.xlu0 %3302 }
 0x332   : > { %v11085_v11 = vpop.permute.xlu1 %3304  ;;  %16401 = vst [vmem:[#allocation141_spill] sm:$0xff] %v11089_v36  ;;  %v2195_v36 = vld [vmem:[%s9976_s14 + $0xc8] sm:$0xff] }
 0x333   : > { %16400 = vst [vmem:[#allocation140_spill] sm:$0xff] %v11085_v11  ;;  %3546 = vrot.lane.b32.xlu0 %v2190_v23, %s8714_s27  ;;  %v2194_v11 = vld [vmem:[%s9976_s14 + $0xc0] sm:$0xff] }
 0x334   : > { %3548 = vrot.lane.b32.xlu1 %v2191_v53, %s8714_s27 }
 0x335   : > { %v11097_v9 = vpop.permute.xlu0 %3306 }
 0x336   : > { %v11093_v17 = vpop.permute.xlu1 %3308  ;;  %16403 = vst [vmem:[#allocation101_spill] sm:$0xff] %v11097_v9  ;;  %v2197_v9 = vld [vmem:[%s9976_s14 + $0xe0] sm:$0xff] }
 0x337   : > { %16402 = vst [vmem:[#allocation100_spill] sm:$0xff] %v11093_v17  ;;  %3550 = vrot.lane.b32.xlu0 %v2192_v16, %s8714_s27  ;;  %v2196_v17 = vld [vmem:[%s9976_s14 + $0xd8] sm:$0xff] }
 0x338   : > { %3552 = vrot.lane.b32.xlu1 %v2193_v50, %s8714_s27 }
 0x339   : > { %v11105_v53 = vpop.permute.xlu0 %3310 }
 0x33a   : > { %v11101_v61 = vpop.permute.xlu1 %3312  ;;  %16405 = vst [vmem:[#allocation167_spill] sm:$0xff] %v11105_v53  ;;  %v2199_v53 = vld [vmem:[%s9976_s14 + $0xf8] sm:$0xff] }
 0x33b   : > { %16404 = vst [vmem:[#allocation166_spill] sm:$0xff] %v11101_v61  ;;  %3554 = vrot.lane.b32.xlu0 %v2194_v11, %s8714_s27  ;;  %v2198_v61 = vld [vmem:[%s9976_s14 + $0xf0] sm:$0xff] }
 0x33c   : > { %3556 = vrot.lane.b32.xlu1 %v2195_v36, %s8714_s27 }
 0x33d   : > { %v11113_v50 = vpop.permute.xlu0 %3314 }
 0x33e   : > { %v11109_v23 = vpop.permute.xlu1 %3316  ;;  %16407 = vst [vmem:[#allocation21_spill] sm:$0xff] %v11113_v50  ;;  %v2201_v50 = vld [vmem:[%s9976_s14 + $0x110] sm:$0xff] }
 0x33f   : > { %16406 = vst [vmem:[#allocation18_spill] sm:$0xff] %v11109_v23  ;;  %3558 = vrot.lane.b32.xlu0 %v2196_v17, %s8714_s27  ;;  %v2200_v23 = vld [vmem:[%s9976_s14 + $0x108] sm:$0xff] }
 0x340   : > { %3560 = vrot.lane.b32.xlu1 %v2197_v9, %s8714_s27 }
 0x341   : > { %v11121_v36 = vpop.permute.xlu0 %3318 }
 0x342   : > { %v11117_v16 = vpop.permute.xlu1 %3320  ;;  %16409 = vst [vmem:[#allocation118_spill] sm:$0xff] %v11121_v36  ;;  %v2203_v36 = vld [vmem:[%s9976_s14 + $0x128] sm:$0xff] }
 0x343   : > { %16408 = vst [vmem:[#allocation47_spill] sm:$0xff] %v11117_v16  ;;  %3562 = vrot.lane.b32.xlu0 %v2198_v61, %s8714_s27  ;;  %v2202_v16 = vld [vmem:[%s9976_s14 + $0x120] sm:$0xff] }
 0x344   : > { %3564 = vrot.lane.b32.xlu1 %v2199_v53, %s8714_s27 }
 0x345   : > { %v11129_v9 = vpop.permute.xlu0 %3322 }
 0x346   : > { %v11125_v11 = vpop.permute.xlu1 %3324  ;;  %16410 = vst [vmem:[#allocation119_spill] sm:$0xff] %v11129_v9  ;;  %v2205_v9 = vld [vmem:[%s9976_s14 + $0x140] sm:$0xff] }
 0x347   : > { %3566 = vrot.lane.b32.xlu0 %v2200_v23, %s8714_s27 }
 0x348   : > { %3568 = vrot.lane.b32.xlu1 %v2201_v50, %s8714_s27 }
 0x349   : > { %v11137_v53 = vpop.permute.xlu0 %3326 }
 0x34a   : > { %v11133_v17 = vpop.permute.xlu1 %3328 }
 0x34b   : > { %3570 = vrot.lane.b32.xlu0 %v2202_v16, %s8714_s27 }
 0x34c   : > { %3572 = vrot.lane.b32.xlu1 %v2203_v36, %s8714_s27 }
 0x34d   : > { %v11145_v50 = vpop.permute.xlu0 %3330 }
 0x34e   : > { %v11141_v61 = vpop.permute.xlu1 %3332 }
 0x34f   : > { %3574 = vrot.lane.b32.xlu0 %v2204_v43, %s8714_s27  ;;  %v7735_v43 = vld [vmem:[%s9976_s14 + $0x188] sm:$0xff] }
 0x350   : > { %3576 = vrot.lane.b32.xlu1 %v2205_v9, %s8714_s27 }
 0x351   : > { %v11153_v36 = vpop.permute.xlu0 %3398 }
 0x352   : > { %v11149_v23 = vpop.permute.xlu1 %3400 }
 0x353   : > { %3578 = vrot.lane.b32.xlu0 %v2206_v38, %s8714_s27  ;;  %v7737_v38 = vld [vmem:[%s9976_s14 + $0x21] sm:$0xff] }
 0x354   : > { %3580 = vrot.lane.b32.xlu1 %v2207_v29, %s8714_s27 }
 0x355   : > { %v11161_v9 = vpop.permute.xlu0 %3402 }
 0x356   : > { %v11157_v16 = vpop.permute.xlu1 %3404  ;;  %16412 = vst [vmem:[#allocation79_spill] sm:$0xff] %v11161_v9 }
 0x357   : > { %16411 = vst [vmem:[#allocation78_spill] sm:$0xff] %v11157_v16  ;;  %3582 = vrot.lane.b32.xlu0 %v2208_v4, %s8714_s27  ;;  %v7736_v16 = vld [vmem:[%s9976_s14 + $0x19] sm:$0xff] }
 0x358   : > { %3584 = vrot.lane.b32.xlu1 %v2209_v42, %s8714_s27  ;;  %v7739_v4 = vld [vmem:[%s9976_s14 + $0x39] sm:$0xff] }
 0x359   : > { %v11169_v29 = vpop.permute.xlu0 %3406 }
 0x35a   : > { %v11167_v15 = vpop.permute.xlu1 %3408  ;;  %16414 = vst [vmem:[#allocation143_spill] sm:$0xff] %v11169_v29 }
 0x35b   : > { %16413 = vst [vmem:[#allocation142_spill] sm:$0xff] %v11167_v15  ;;  %3586 = vrot.lane.b32.xlu0 %v7734_v39, %s8714_s27  ;;  %v7738_v15 = vld [vmem:[%s9976_s14 + $0x31] sm:$0xff] }
 0x35c   : > { %3588 = vrot.lane.b32.xlu1 %v7735_v43, %s8714_s27  ;;  %v7741_v39 = vld [vmem:[%s9976_s14 + $0x51] sm:$0xff] }
 0x35d   : > { %v11177_v42 = vpop.permute.xlu0 %3410 }
 0x35e   : > { %v11175_v9 = vpop.permute.xlu1 %3412  ;;  %16416 = vst [vmem:[#allocation103_spill] sm:$0xff] %v11177_v42 }
 0x35f   : > { %16415 = vst [vmem:[#allocation102_spill] sm:$0xff] %v11175_v9  ;;  %3654 = vrot.lane.b32.xlu0 %v7736_v16, %s8715_s28  ;;  %v7740_v9 = vld [vmem:[%s9976_s14 + $0x49] sm:$0xff] }
 0x360   : > { %3656 = vrot.lane.b32.xlu1 %v7737_v38, %s8715_s28  ;;  %v7743_v16 = vld [vmem:[%s9976_s14 + $0x69] sm:$0xff] }
 0x361   : > { %v11185_v43 = vpop.permute.xlu0 %3414 }
 0x362   : > { %v11183_v29 = vpop.permute.xlu1 %3416  ;;  %16418 = vst [vmem:[#allocation169_spill] sm:$0xff] %v11185_v43 }
 0x363   : > { %16417 = vst [vmem:[#allocation168_spill] sm:$0xff] %v11183_v29  ;;  %3658 = vrot.lane.b32.xlu0 %v7738_v15, %s8715_s28  ;;  %v7742_v29 = vld [vmem:[%s9976_s14 + $0x61] sm:$0xff] }
 0x364   : > { %3660 = vrot.lane.b32.xlu1 %v7739_v4, %s8715_s28  ;;  %v7745_v15 = vld [vmem:[%s9976_s14 + $0x81] sm:$0xff] }
 0x365   : > { %v11193_v38 = vpop.permute.xlu0 %3418 }
 0x366   : > { %v11191_v42 = vpop.permute.xlu1 %3420  ;;  %16420 = vst [vmem:[#allocation25_spill] sm:$0xff] %v11193_v38 }
 0x367   : > { %16419 = vst [vmem:[#allocation22_spill] sm:$0xff] %v11191_v42  ;;  %3662 = vrot.lane.b32.xlu0 %v7740_v9, %s8715_s28  ;;  %v7744_v42 = vld [vmem:[%s9976_s14 + $0x79] sm:$0xff] }
 0x368   : > { %3664 = vrot.lane.b32.xlu1 %v7741_v39, %s8715_s28  ;;  %v7747_v9 = vld [vmem:[%s9976_s14 + $0x99] sm:$0xff] }
 0x369   : > { %v11201_v4 = vpop.permute.xlu0 %3422 }
 0x36a   : > { %v11199_v43 = vpop.permute.xlu1 %3424  ;;  %16422 = vst [vmem:[#allocation120_spill] sm:$0xff] %v11201_v4 }
 0x36b   : > { %16421 = vst [vmem:[#allocation48_spill] sm:$0xff] %v11199_v43  ;;  %3666 = vrot.lane.b32.xlu0 %v7742_v29, %s8715_s28  ;;  %v7746_v43 = vld [vmem:[%s9976_s14 + $0x91] sm:$0xff] }
 0x36c   : > { %3668 = vrot.lane.b32.xlu1 %v7743_v16, %s8715_s28  ;;  %v7749_v29 = vld [vmem:[%s9976_s14 + $0xb1] sm:$0xff] }
 0x36d   : > { %v11209_v39 = vpop.permute.xlu0 %3426 }
 0x36e   : > { %v11207_v38 = vpop.permute.xlu1 %3428  ;;  %16424 = vst [vmem:[#allocation80_spill] sm:$0xff] %v11209_v39 }
 0x36f   : > { %16423 = vst [vmem:[#allocation121_spill] sm:$0xff] %v11207_v38  ;;  %3670 = vrot.lane.b32.xlu0 %v7744_v42, %s8715_s28  ;;  %v7748_v38 = vld [vmem:[%s9976_s14 + $0xa9] sm:$0xff] }
 0x370   : > { %3672 = vrot.lane.b32.xlu1 %v7745_v15, %s8715_s28  ;;  %v7751_v42 = vld [vmem:[%s9976_s14 + $0xc9] sm:$0xff] }
 0x371   : > { %v11217_v16 = vpop.permute.xlu0 %3430 }
 0x372   : > { %v11215_v4 = vpop.permute.xlu1 %3432  ;;  %16426 = vst [vmem:[#allocation144_spill] sm:$0xff] %v11217_v16 }
 0x373   : > { %16425 = vst [vmem:[#allocation81_spill] sm:$0xff] %v11215_v4  ;;  %3674 = vrot.lane.b32.xlu0 %v7746_v43, %s8715_s28  ;;  %v7750_v4 = vld [vmem:[%s9976_s14 + $0xc1] sm:$0xff] }
 0x374   : > { %3676 = vrot.lane.b32.xlu1 %v7747_v9, %s8715_s28  ;;  %v7753_v43 = vld [vmem:[%s9976_s14 + $0xe1] sm:$0xff] }
 0x375   : > { %v11225_v15 = vpop.permute.xlu0 %3434 }
 0x376   : > { %v11223_v39 = vpop.permute.xlu1 %3436  ;;  %16428 = vst [vmem:[#allocation104_spill] sm:$0xff] %v11225_v15 }
 0x377   : > { %16427 = vst [vmem:[#allocation145_spill] sm:$0xff] %v11223_v39  ;;  %3678 = vrot.lane.b32.xlu0 %v7748_v38, %s8715_s28  ;;  %v7752_v39 = vld [vmem:[%s9976_s14 + $0xd9] sm:$0xff] }
 0x378   : > { %3680 = vrot.lane.b32.xlu1 %v7749_v29, %s8715_s28  ;;  %v7755_v38 = vld [vmem:[%s9976_s14 + $0xf9] sm:$0xff] }
 0x379   : > { %v11233_v9 = vpop.permute.xlu0 %3438 }
 0x37a   : > { %v11231_v16 = vpop.permute.xlu1 %3440  ;;  %16430 = vst [vmem:[#allocation170_spill] sm:$0xff] %v11233_v9 }
 0x37b   : > { %16429 = vst [vmem:[#allocation105_spill] sm:$0xff] %v11231_v16  ;;  %3682 = vrot.lane.b32.xlu0 %v7750_v4, %s8715_s28  ;;  %v7754_v16 = vld [vmem:[%s9976_s14 + $0xf1] sm:$0xff] }
 0x37c   : > { %3684 = vrot.lane.b32.xlu1 %v7751_v42, %s8715_s28  ;;  %v7757_v4 = vld [vmem:[%s9976_s14 + $0x111] sm:$0xff] }
 0x37d   : > { %v11241_v29 = vpop.permute.xlu0 %3442 }
 0x37e   : > { %v11239_v15 = vpop.permute.xlu1 %3444  ;;  %16432 = vst [vmem:[#allocation26_spill] sm:$0xff] %v11241_v29 }
 0x37f   : > { %16431 = vst [vmem:[#allocation171_spill] sm:$0xff] %v11239_v15  ;;  %3686 = vrot.lane.b32.xlu0 %v7752_v39, %s8715_s28  ;;  %v7756_v15 = vld [vmem:[%s9976_s14 + $0x109] sm:$0xff] }
 0x380   : > { %3688 = vrot.lane.b32.xlu1 %v7753_v43, %s8715_s28  ;;  %v7759_v39 = vld [vmem:[%s9976_s14 + $0x129] sm:$0xff] }
 0x381   : > { %v11249_v42 = vpop.permute.xlu0 %3446 }
 0x382   : > { %v11247_v9 = vpop.permute.xlu1 %3448  ;;  %16434 = vst [vmem:[#allocation51_spill] sm:$0xff] %v11249_v42 }
 0x383   : > { %16433 = vst [vmem:[#allocation29_spill] sm:$0xff] %v11247_v9  ;;  %3690 = vrot.lane.b32.xlu0 %v7754_v16, %s8715_s28  ;;  %v7758_v9 = vld [vmem:[%s9976_s14 + $0x121] sm:$0xff] }
 0x384   : > { %3692 = vrot.lane.b32.xlu1 %v7755_v38, %s8715_s28  ;;  %v7761_v16 = vld [vmem:[%s9976_s14 + $0x141] sm:$0xff] }
 0x385   : > { %v11257_v43 = vpop.permute.xlu0 %3450 }
 0x386   : > { %v11255_v29 = vpop.permute.xlu1 %3452  ;;  %16435 = vst [vmem:[#allocation122_spill] sm:$0xff] %v11257_v43 }
 0x387   : > { %3694 = vrot.lane.b32.xlu0 %v7756_v15, %s8715_s28  ;;  %v7763_v15 = vld [vmem:[%s9976_s14 + $0x159] sm:$0xff] }
 0x388   : > { %3696 = vrot.lane.b32.xlu1 %v7757_v4, %s8715_s28 }
 0x389   : > { %v11265_v38 = vpop.permute.xlu0 %3454 }
 0x38a   : > { %v11263_v42 = vpop.permute.xlu1 %3456 }
 0x38b   : > { %3698 = vrot.lane.b32.xlu0 %v7758_v9, %s8715_s28  ;;  %v7765_v9 = vld [vmem:[%s9976_s14 + $0x171] sm:$0xff] }
 0x38c   : > { %3700 = vrot.lane.b32.xlu1 %v7759_v39, %s8715_s28 }
 0x38d   : > { %v11273_v4 = vpop.permute.xlu0 %3458 }
 0x38e   : > { %v11271_v43 = vpop.permute.xlu1 %3460 }
 0x38f   : > { %3702 = vrot.lane.b32.xlu0 %v7760_v45, %s8715_s28  ;;  %v7767_v45 = vld [vmem:[%s9976_s14 + $0x189] sm:$0xff] }
 0x390   : > { %3704 = vrot.lane.b32.xlu1 %v7761_v16, %s8715_s28 }
 0x391   : > { %v11281_v39 = vpop.permute.xlu0 %3526 }
 0x392   : > { %v11279_v59 = vpop.permute.xlu1 %3528 }
 0x393   : > { %3706 = vrot.lane.b32.xlu0 %v7762_v28, %s8715_s28  ;;  %v7769_v28 = vld [vmem:[%s9976_s14 + $0x22] sm:$0xff] }
 0x394   : > { %3708 = vrot.lane.b32.xlu1 %v7763_v15, %s8715_s28 }
 0x395   : > { %v11289_v16 = vpop.permute.xlu0 %3530 }
 0x396   : > { %v11287_v5 = vpop.permute.xlu1 %3532  ;;  %16437 = vst [vmem:[#allocation82_spill] sm:$0xff] %v11289_v16 }
 0x397   : > { %16436 = vst [vmem:[#allocation123_spill] sm:$0xff] %v11287_v5  ;;  %3710 = vrot.lane.b32.xlu0 %v7764_v54, %s8715_s28  ;;  %v7768_v5 = vld [vmem:[%s9976_s14 + $0x1a] sm:$0xff] }
 0x398   : > { %3712 = vrot.lane.b32.xlu1 %v7765_v9, %s8715_s28  ;;  %v7771_v54 = vld [vmem:[%s9976_s14 + $0x3a] sm:$0xff] }
 0x399   : > { %v11297_v15 = vpop.permute.xlu0 %3534 }
 0x39a   : > { %v11295_v31 = vpop.permute.xlu1 %3536  ;;  %16439 = vst [vmem:[#allocation146_spill] sm:$0xff] %v11297_v15 }
 0x39b   : > { %16438 = vst [vmem:[#allocation83_spill] sm:$0xff] %v11295_v31  ;;  %3714 = vrot.lane.b32.xlu0 %v7766_v19, %s8715_s28  ;;  %v7770_v31 = vld [vmem:[%s9976_s14 + $0x32] sm:$0xff] }
 0x39c   : > { %3716 = vrot.lane.b32.xlu1 %v7767_v45, %s8715_s28  ;;  %v7773_v19 = vld [vmem:[%s9976_s14 + $0x52] sm:$0xff] }
 0x39d   : > { %v11305_v9 = vpop.permute.xlu0 %3538 }
 0x39e   : > { %v11303_v16 = vpop.permute.xlu1 %3540  ;;  %16441 = vst [vmem:[#allocation106_spill] sm:$0xff] %v11305_v9 }
 0x39f   : > { %16440 = vst [vmem:[#allocation147_spill] sm:$0xff] %v11303_v16  ;;  %3782 = vrot.lane.b32.xlu0 %v7768_v5, %s8716_s29  ;;  %v7772_v16 = vld [vmem:[%s9976_s14 + $0x4a] sm:$0xff] }
 0x3a0   : > { %3784 = vrot.lane.b32.xlu1 %v7769_v28, %s8716_s29  ;;  %v7775_v5 = vld [vmem:[%s9976_s14 + $0x6a] sm:$0xff] }
 0x3a1   : > { %v11313_v45 = vpop.permute.xlu0 %3542 }
 0x3a2   : > { %v11311_v15 = vpop.permute.xlu1 %3544  ;;  %16443 = vst [vmem:[#allocation172_spill] sm:$0xff] %v11313_v45 }
 0x3a3   : > { %16442 = vst [vmem:[#allocation107_spill] sm:$0xff] %v11311_v15  ;;  %3786 = vrot.lane.b32.xlu0 %v7770_v31, %s8716_s29  ;;  %v7774_v15 = vld [vmem:[%s9976_s14 + $0x62] sm:$0xff] }
 0x3a4   : > { %3788 = vrot.lane.b32.xlu1 %v7771_v54, %s8716_s29  ;;  %v7777_v31 = vld [vmem:[%s9976_s14 + $0x82] sm:$0xff] }
 0x3a5   : > { %v11321_v28 = vpop.permute.xlu0 %3546 }
 0x3a6   : > { %v11319_v9 = vpop.permute.xlu1 %3548  ;;  %16445 = vst [vmem:[#allocation30_spill] sm:$0xff] %v11321_v28 }
 0x3a7   : > { %16444 = vst [vmem:[#allocation173_spill] sm:$0xff] %v11319_v9  ;;  %3790 = vrot.lane.b32.xlu0 %v7772_v16, %s8716_s29  ;;  %v7776_v9 = vld [vmem:[%s9976_s14 + $0x7a] sm:$0xff] }
 0x3a8   : > { %3792 = vrot.lane.b32.xlu1 %v7773_v19, %s8716_s29  ;;  %v7779_v16 = vld [vmem:[%s9976_s14 + $0x9a] sm:$0xff] }
 0x3a9   : > { %v11329_v54 = vpop.permute.xlu0 %3550 }
 0x3aa   : > { %v11327_v45 = vpop.permute.xlu1 %3552  ;;  %16447 = vst [vmem:[#allocation52_spill] sm:$0xff] %v11329_v54 }
 0x3ab   : > { %16446 = vst [vmem:[#allocation33_spill] sm:$0xff] %v11327_v45  ;;  %3794 = vrot.lane.b32.xlu0 %v7774_v15, %s8716_s29  ;;  %v7778_v45 = vld [vmem:[%s9976_s14 + $0x92] sm:$0xff] }
 0x3ac   : > { %3796 = vrot.lane.b32.xlu1 %v7775_v5, %s8716_s29  ;;  %v7781_v15 = vld [vmem:[%s9976_s14 + $0xb2] sm:$0xff] }
 0x3ad   : > { %v11337_v19 = vpop.permute.xlu0 %3554 }
 0x3ae   : > { %v11335_v28 = vpop.permute.xlu1 %3556  ;;  %16449 = vst [vmem:[#allocation125_spill] sm:$0xff] %v11337_v19 }
 0x3af   : > { %16448 = vst [vmem:[#allocation124_spill] sm:$0xff] %v11335_v28  ;;  %3798 = vrot.lane.b32.xlu0 %v7776_v9, %s8716_s29  ;;  %v7780_v28 = vld [vmem:[%s9976_s14 + $0xaa] sm:$0xff] }
 0x3b0   : > { %3800 = vrot.lane.b32.xlu1 %v7777_v31, %s8716_s29  ;;  %v7783_v9 = vld [vmem:[%s9976_s14 + $0xca] sm:$0xff] }
 0x3b1   : > { %v11345_v5 = vpop.permute.xlu0 %3558 }
 0x3b2   : > { %v11343_v54 = vpop.permute.xlu1 %3560  ;;  %16451 = vst [vmem:[#allocation85_spill] sm:$0xff] %v11345_v5 }
 0x3b3   : > { %16450 = vst [vmem:[#allocation84_spill] sm:$0xff] %v11343_v54  ;;  %3802 = vrot.lane.b32.xlu0 %v7778_v45, %s8716_s29  ;;  %v7782_v54 = vld [vmem:[%s9976_s14 + $0xc2] sm:$0xff] }
 0x3b4   : > { %3804 = vrot.lane.b32.xlu1 %v7779_v16, %s8716_s29  ;;  %v7785_v45 = vld [vmem:[%s9976_s14 + $0xe2] sm:$0xff] }
 0x3b5   : > { %v11353_v31 = vpop.permute.xlu0 %3562 }
 0x3b6   : > { %v11351_v19 = vpop.permute.xlu1 %3564  ;;  %16453 = vst [vmem:[#allocation149_spill] sm:$0xff] %v11353_v31 }
 0x3b7   : > { %16452 = vst [vmem:[#allocation148_spill] sm:$0xff] %v11351_v19  ;;  %3806 = vrot.lane.b32.xlu0 %v7780_v28, %s8716_s29  ;;  %v7784_v19 = vld [vmem:[%s9976_s14 + $0xda] sm:$0xff] }
 0x3b8   : > { %3808 = vrot.lane.b32.xlu1 %v7781_v15, %s8716_s29  ;;  %v7787_v28 = vld [vmem:[%s9976_s14 + $0xfa] sm:$0xff] }
 0x3b9   : > { %v11361_v16 = vpop.permute.xlu0 %3566 }
 0x3ba   : > { %v11359_v5 = vpop.permute.xlu1 %3568  ;;  %16455 = vst [vmem:[#allocation109_spill] sm:$0xff] %v11361_v16 }
 0x3bb   : > { %16454 = vst [vmem:[#allocation108_spill] sm:$0xff] %v11359_v5  ;;  %3810 = vrot.lane.b32.xlu0 %v7782_v54, %s8716_s29  ;;  %v7786_v5 = vld [vmem:[%s9976_s14 + $0xf2] sm:$0xff] }
 0x3bc   : > { %3812 = vrot.lane.b32.xlu1 %v7783_v9, %s8716_s29  ;;  %v7789_v54 = vld [vmem:[%s9976_s14 + $0x112] sm:$0xff] }
 0x3bd   : > { %v11369_v15 = vpop.permute.xlu0 %3570 }
 0x3be   : > { %v11367_v31 = vpop.permute.xlu1 %3572  ;;  %16457 = vst [vmem:[#allocation175_spill] sm:$0xff] %v11369_v15 }
 0x3bf   : > { %16456 = vst [vmem:[#allocation174_spill] sm:$0xff] %v11367_v31  ;;  %3814 = vrot.lane.b32.xlu0 %v7784_v19, %s8716_s29  ;;  %v7788_v31 = vld [vmem:[%s9976_s14 + $0x10a] sm:$0xff] }
 0x3c0   : > { %3816 = vrot.lane.b32.xlu1 %v7785_v45, %s8716_s29  ;;  %v7791_v19 = vld [vmem:[%s9976_s14 + $0x12a] sm:$0xff] }
 0x3c1   : > { %v11377_v9 = vpop.permute.xlu0 %3574 }
 0x3c2   : > { %v11375_v16 = vpop.permute.xlu1 %3576  ;;  %16459 = vst [vmem:[#allocation37_spill] sm:$0xff] %v11377_v9 }
 0x3c3   : > { %16458 = vst [vmem:[#allocation34_spill] sm:$0xff] %v11375_v16  ;;  %3818 = vrot.lane.b32.xlu0 %v7786_v5, %s8716_s29  ;;  %v7790_v16 = vld [vmem:[%s9976_s14 + $0x122] sm:$0xff] }
 0x3c4   : > { %3820 = vrot.lane.b32.xlu1 %v7787_v28, %s8716_s29  ;;  %v7793_v5 = vld [vmem:[%s9976_s14 + $0x142] sm:$0xff] }
 0x3c5   : > { %v11385_v45 = vpop.permute.xlu0 %3578 }
 0x3c6   : > { %v11383_v15 = vpop.permute.xlu1 %3580  ;;  %16460 = vst [vmem:[#allocation55_spill] sm:$0xff] %v11385_v45 }
 0x3c7   : > { %3822 = vrot.lane.b32.xlu0 %v7788_v31, %s8716_s29  ;;  %v7795_v31 = vld [vmem:[%s9976_s14 + $0x15a] sm:$0xff] }
 0x3c8   : > { %3824 = vrot.lane.b32.xlu1 %v7789_v54, %s8716_s29 }
 0x3c9   : > { %v11393_v28 = vpop.permute.xlu0 %3582 }
 0x3ca   : > { %v11391_v9 = vpop.permute.xlu1 %3584 }
 0x3cb   : > { %3826 = vrot.lane.b32.xlu0 %v7790_v16, %s8716_s29  ;;  %v7797_v16 = vld [vmem:[%s9976_s14 + $0x172] sm:$0xff] }
 0x3cc   : > { %3828 = vrot.lane.b32.xlu1 %v7791_v19, %s8716_s29 }
 0x3cd   : > { %v11401_v54 = vpop.permute.xlu0 %3586 }
 0x3ce   : > { %v11399_v45 = vpop.permute.xlu1 %3588  ;;  %16462 = vst [vmem:[#allocation127_spill] sm:$0xff] %v11401_v54 }
 0x3cf   : > { %16461 = vst [vmem:[#allocation126_spill] sm:$0xff] %v11399_v45  ;;  %3830 = vrot.lane.b32.xlu0 %v7792_v57, %s8716_s29  ;;  %v7799_v57 = vld [vmem:[%s9976_s14 + $0x18a] sm:$0xff] }
 0x3d0   : > { %3832 = vrot.lane.b32.xlu1 %v7793_v5, %s8716_s29 }
 0x3d1   : > { %v11409_v19 = vpop.permute.xlu0 %3654 }
 0x3d2   : > { %v11407_v24 = vpop.permute.xlu1 %3656 }
 0x3d3   : > { %3834 = vrot.lane.b32.xlu0 %v7794_v37, %s8716_s29  ;;  %v7801_v37 = vld [vmem:[%s9976_s14 + $0x23] sm:$0xff] }
 0x3d4   : > { %3836 = vrot.lane.b32.xlu1 %v7795_v31, %s8716_s29 }
 0x3d5   : > { %v11417_v5 = vpop.permute.xlu0 %3658 }
 0x3d6   : > { %v11415_v14 = vpop.permute.xlu1 %3660  ;;  %16464 = vst [vmem:[#allocation87_spill] sm:$0xff] %v11417_v5 }
 0x3d7   : > { %16463 = vst [vmem:[#allocation86_spill] sm:$0xff] %v11415_v14  ;;  %3838 = vrot.lane.b32.xlu0 %v7796_v62, %s8716_s29  ;;  %v7800_v14 = vld [vmem:[%s9976_s14 + $0x1b] sm:$0xff] }
 0x3d8   : > { %3840 = vrot.lane.b32.xlu1 %v7797_v16, %s8716_s29  ;;  %v7803_v62 = vld [vmem:[%s9976_s14 + $0x3b] sm:$0xff] }
 0x3d9   : > { %v11425_v31 = vpop.permute.xlu0 %3662 }
 0x3da   : > { %v11423_v51 = vpop.permute.xlu1 %3664  ;;  %16466 = vst [vmem:[#allocation151_spill] sm:$0xff] %v11425_v31 }
 0x3db   : > { %16465 = vst [vmem:[#allocation150_spill] sm:$0xff] %v11423_v51  ;;  %3842 = vrot.lane.b32.xlu0 %v7798_v2, %s8716_s29  ;;  %v7802_v51 = vld [vmem:[%s9976_s14 + $0x33] sm:$0xff] }
 0x3dc   : > { %3844 = vrot.lane.b32.xlu1 %v7799_v57, %s8716_s29  ;;  %v7805_v2 = vld [vmem:[%s9976_s14 + $0x53] sm:$0xff] }
 0x3dd   : > { %v11433_v16 = vpop.permute.xlu0 %3666 }
 0x3de   : > { %v11431_v5 = vpop.permute.xlu1 %3668  ;;  %16468 = vst [vmem:[#allocation111_spill] sm:$0xff] %v11433_v16 }
 0x3df   : > { %16467 = vst [vmem:[#allocation110_spill] sm:$0xff] %v11431_v5  ;;  %3910 = vrot.lane.b32.xlu0 %v7800_v14, %s8717_s10  ;;  %v7804_v5 = vld [vmem:[%s9976_s14 + $0x4b] sm:$0xff] }
 0x3e0   : > { %3912 = vrot.lane.b32.xlu1 %v7801_v37, %s8717_s10  ;;  %v7807_v14 = vld [vmem:[%s9976_s14 + $0x6b] sm:$0xff] }
 0x3e1   : > { %v11441_v57 = vpop.permute.xlu0 %3670 }
 0x3e2   : > { %v11439_v31 = vpop.permute.xlu1 %3672  ;;  %16470 = vst [vmem:[#allocation177_spill] sm:$0xff] %v11441_v57 }
 0x3e3   : > { %16469 = vst [vmem:[#allocation176_spill] sm:$0xff] %v11439_v31  ;;  %3914 = vrot.lane.b32.xlu0 %v7802_v51, %s8717_s10  ;;  %v7806_v31 = vld [vmem:[%s9976_s14 + $0x63] sm:$0xff] }
 0x3e4   : > { %3916 = vrot.lane.b32.xlu1 %v7803_v62, %s8717_s10  ;;  %v7809_v51 = vld [vmem:[%s9976_s14 + $0x83] sm:$0xff] }
 0x3e5   : > { %v11449_v37 = vpop.permute.xlu0 %3674 }
 0x3e6   : > { %v11447_v16 = vpop.permute.xlu1 %3676  ;;  %16472 = vst [vmem:[#allocation41_spill] sm:$0xff] %v11449_v37 }
 0x3e7   : > { %16471 = vst [vmem:[#allocation38_spill] sm:$0xff] %v11447_v16  ;;  %3918 = vrot.lane.b32.xlu0 %v7804_v5, %s8717_s10  ;;  %v7808_v16 = vld [vmem:[%s9976_s14 + $0x7b] sm:$0xff] }
 0x3e8   : > { %3920 = vrot.lane.b32.xlu1 %v7805_v2, %s8717_s10  ;;  %v7811_v5 = vld [vmem:[%s9976_s14 + $0x9b] sm:$0xff] }
 0x3e9   : > { %v11457_v62 = vpop.permute.xlu0 %3678 }
 0x3ea   : > { %v11455_v57 = vpop.permute.xlu1 %3680  ;;  %16474 = vst [vmem:[#allocation128_spill] sm:$0xff] %v11457_v62 }
 0x3eb   : > { %16473 = vst [vmem:[#allocation56_spill] sm:$0xff] %v11455_v57  ;;  %3922 = vrot.lane.b32.xlu0 %v7806_v31, %s8717_s10  ;;  %v7810_v57 = vld [vmem:[%s9976_s14 + $0x93] sm:$0xff] }
 0x3ec   : > { %3924 = vrot.lane.b32.xlu1 %v7807_v14, %s8717_s10  ;;  %v7813_v31 = vld [vmem:[%s9976_s14 + $0xb3] sm:$0xff] }
 0x3ed   : > { %v11465_v2 = vpop.permute.xlu0 %3682 }
 0x3ee   : > { %v11463_v37 = vpop.permute.xlu1 %3684  ;;  %16476 = vst [vmem:[#allocation88_spill] sm:$0xff] %v11465_v2 }
 0x3ef   : > { %16475 = vst [vmem:[#allocation129_spill] sm:$0xff] %v11463_v37  ;;  %3926 = vrot.lane.b32.xlu0 %v7808_v16, %s8717_s10  ;;  %v7812_v37 = vld [vmem:[%s9976_s14 + $0xab] sm:$0xff] }
 0x3f0   : > { %3928 = vrot.lane.b32.xlu1 %v7809_v51, %s8717_s10  ;;  %v7815_v16 = vld [vmem:[%s9976_s14 + $0xcb] sm:$0xff] }
 0x3f1   : > { %v11473_v14 = vpop.permute.xlu0 %3686 }
 0x3f2   : > { %v11471_v62 = vpop.permute.xlu1 %3688  ;;  %16478 = vst [vmem:[#allocation152_spill] sm:$0xff] %v11473_v14 }
 0x3f3   : > { %16477 = vst [vmem:[#allocation89_spill] sm:$0xff] %v11471_v62  ;;  %3930 = vrot.lane.b32.xlu0 %v7810_v57, %s8717_s10  ;;  %v7814_v62 = vld [vmem:[%s9976_s14 + $0xc3] sm:$0xff] }
 0x3f4   : > { %3932 = vrot.lane.b32.xlu1 %v7811_v5, %s8717_s10  ;;  %v7817_v57 = vld [vmem:[%s9976_s14 + $0xe3] sm:$0xff] }
 0x3f5   : > { %v11481_v51 = vpop.permute.xlu0 %3690 }
 0x3f6   : > { %v11479_v2 = vpop.permute.xlu1 %3692  ;;  %16480 = vst [vmem:[#allocation112_spill] sm:$0xff] %v11481_v51 }
 0x3f7   : > { %16479 = vst [vmem:[#allocation153_spill] sm:$0xff] %v11479_v2  ;;  %3934 = vrot.lane.b32.xlu0 %v7812_v37, %s8717_s10  ;;  %v7816_v2 = vld [vmem:[%s9976_s14 + $0xdb] sm:$0xff] }
 0x3f8   : > { %3936 = vrot.lane.b32.xlu1 %v7813_v31, %s8717_s10  ;;  %v7819_v37 = vld [vmem:[%s9976_s14 + $0xfb] sm:$0xff] }
 0x3f9   : > { %v11489_v5 = vpop.permute.xlu0 %3694 }
 0x3fa   : > { %v11487_v14 = vpop.permute.xlu1 %3696  ;;  %16482 = vst [vmem:[#allocation178_spill] sm:$0xff] %v11489_v5 }
 0x3fb   : > { %16481 = vst [vmem:[#allocation113_spill] sm:$0xff] %v11487_v14  ;;  %3938 = vrot.lane.b32.xlu0 %v7814_v62, %s8717_s10  ;;  %v7818_v14 = vld [vmem:[%s9976_s14 + $0xf3] sm:$0xff] }
 0x3fc   : > { %3940 = vrot.lane.b32.xlu1 %v7815_v16, %s8717_s10  ;;  %v7821_v62 = vld [vmem:[%s9976_s14 + $0x113] sm:$0xff] }
 0x3fd   : > { %v11497_v31 = vpop.permute.xlu0 %3698 }
 0x3fe   : > { %v11495_v51 = vpop.permute.xlu1 %3700  ;;  %16484 = vst [vmem:[#allocation42_spill] sm:$0xff] %v11497_v31 }
 0x3ff   : > { %16483 = vst [vmem:[#allocation179_spill] sm:$0xff] %v11495_v51  ;;  %3942 = vrot.lane.b32.xlu0 %v7816_v2, %s8717_s10  ;;  %v7820_v51 = vld [vmem:[%s9976_s14 + $0x10b] sm:$0xff] }
 0x400   : > { %3944 = vrot.lane.b32.xlu1 %v7817_v57, %s8717_s10  ;;  %v7823_v2 = vld [vmem:[%s9976_s14 + $0x12b] sm:$0xff] }
 0x401   : > { %v11505_v16 = vpop.permute.xlu0 %3702 }
 0x402   : > { %v11503_v5 = vpop.permute.xlu1 %3704  ;;  %16486 = vst [vmem:[#allocation59_spill] sm:$0xff] %v11505_v16 }
 0x403   : > { %16485 = vst [vmem:[#allocation45_spill] sm:$0xff] %v11503_v5  ;;  %3946 = vrot.lane.b32.xlu0 %v7818_v14, %s8717_s10  ;;  %v7822_v5 = vld [vmem:[%s9976_s14 + $0x123] sm:$0xff] }
 0x404   : > { %3948 = vrot.lane.b32.xlu1 %v7819_v37, %s8717_s10  ;;  %v7825_v14 = vld [vmem:[%s9976_s14 + $0x143] sm:$0xff] }
 0x405   : > { %v11513_v57 = vpop.permute.xlu0 %3706 }
 0x406   : > { %v11511_v31 = vpop.permute.xlu1 %3708  ;;  %16487 = vst [vmem:[#allocation130_spill] sm:$0xff] %v11513_v57 }
 0x407   : > { %3950 = vrot.lane.b32.xlu0 %v7820_v51, %s8717_s10  ;;  %v7827_v51 = vld [vmem:[%s9976_s14 + $0x15b] sm:$0xff] }
 0x408   : > { %3952 = vrot.lane.b32.xlu1 %v7821_v62, %s8717_s10 }
 0x409   : > { %v11521_v37 = vpop.permute.xlu0 %3710 }
 0x40a   : > { %v11519_v16 = vpop.permute.xlu1 %3712 }
 0x40b   : > { %3954 = vrot.lane.b32.xlu0 %v7822_v5, %s8717_s10  ;;  %v7829_v5 = vld [vmem:[%s9976_s14 + $0x173] sm:$0xff] }
 0x40c   : > { %3956 = vrot.lane.b32.xlu1 %v7823_v2, %s8717_s10 }
 0x40d   : > { %v11529_v62 = vpop.permute.xlu0 %3714 }
 0x40e   : > { %v11527_v57 = vpop.permute.xlu1 %3716  ;;  %16489 = vst [vmem:[#allocation90_spill] sm:$0xff] %v11529_v62  ;;  %v7922_v62 = vld [vmem:[%s9976_s14 + $0x169] sm:$0xff] }
 0x40f   : > { %16488 = vst [vmem:[#allocation131_spill] sm:$0xff] %v11527_v57  ;;  %3958 = vrot.lane.b32.xlu0 %v7824_v63, %s8717_s10  ;;  %v7831_v63 = vld [vmem:[%s9976_s14 + $0x18b] sm:$0xff] }
 0x410   : > { %3960 = vrot.lane.b32.xlu1 %v7825_v14, %s8717_s10  ;;  %v7830_v14 = vld [vmem:[%s9976_s14 + $0x183] sm:$0xff] }
 0x411   : > { %v11537_v2 = vpop.permute.xlu0 %3782 }
 0x412   : > { %v11535_v3 = vpop.permute.xlu1 %3784 }
 0x413   : > { %3962 = vrot.lane.b32.xlu0 %v7826_v7, %s8717_s10  ;;  %v7833_v7 = vld [vmem:[%s9976_s14 + $0x24] sm:$0xff] }
 0x414   : > { %3964 = vrot.lane.b32.xlu1 %v7827_v51, %s8717_s10  ;;  %v7832_v51 = vld [vmem:[%s9976_s14 + $0x1c] sm:$0xff] }
 0x415   : > { %v11545_v48 = vpop.permute.xlu0 %3786 }
 0x416   : > { %v11543_v21 = vpop.permute.xlu1 %3788  ;;  %16491 = vst [vmem:[#allocation154_spill] sm:$0xff] %v11545_v48 }
 0x417   : > { %16490 = vst [vmem:[#allocation91_spill] sm:$0xff] %v11543_v21  ;;  %3966 = vrot.lane.b32.xlu0 %v7828_v55, %s8717_s10  ;;  %v7835_v55 = vld [vmem:[%s9976_s14 + $0x3c] sm:$0xff] }
 0x418   : > { %3968 = vrot.lane.b32.xlu1 %v7829_v5, %s8717_s10  ;;  %v7856_v21 = vld [vmem:[%s9976_s14 + $0x13c] sm:$0xff] }
 0x419   : > { %v11553_v18 = vpop.permute.xlu0 %3790 }
 0x41a   : > { %v11551_v13 = vpop.permute.xlu1 %3792  ;;  %16493 = vst [vmem:[#allocation114_spill] sm:$0xff] %v11553_v18  ;;  %v7834_v18 = vld [vmem:[%s9976_s14 + $0x34] sm:$0xff] }
 0x41b   : > { %16492 = vst [vmem:[#allocation155_spill] sm:$0xff] %v11551_v13  ;;  %3970 = vrot.lane.b32.xlu0 %v7830_v14, %s8717_s10  ;;  %v7837_v14 = vld [vmem:[%s9976_s14 + $0x54] sm:$0xff] }
 0x41c   : > { %3972 = vrot.lane.b32.xlu1 %v7831_v63, %s8717_s10 }
 0x41d   : > { %v11561_v5 = vpop.permute.xlu0 %3794 }
 0x41e   : > { %v11559_v48 = vpop.permute.xlu1 %3796  ;;  %16495 = vst [vmem:[#allocation180_spill] sm:$0xff] %v11561_v5  ;;  %v7836_v5 = vld [vmem:[%s9976_s14 + $0x4c] sm:$0xff] }
 0x41f   : > { %16494 = vst [vmem:[#allocation115_spill] sm:$0xff] %v11559_v48  ;;  %4038 = vrot.lane.b32.xlu0 %v7832_v51, %s8718_s19  ;;  %v7839_v51 = vld [vmem:[%s9976_s14 + $0x6c] sm:$0xff] }
 0x420   : > { %4040 = vrot.lane.b32.xlu1 %v7833_v7, %s8718_s19 }
 0x421   : > { %v11569_v63 = vpop.permute.xlu0 %3798 }
 0x422   : > { %v11567_v13 = vpop.permute.xlu1 %3800  ;;  %16497 = vst [vmem:[#allocation46_spill] sm:$0xff] %v11569_v63 }
 0x423   : > { %16496 = vst [vmem:[#allocation181_spill] sm:$0xff] %v11567_v13  ;;  %4042 = vrot.lane.b32.xlu0 %v7834_v18, %s8718_s19  ;;  %v7838_v13 = vld [vmem:[%s9976_s14 + $0x64] sm:$0xff] }
 0x424   : > { %4044 = vrot.lane.b32.xlu1 %v7835_v55, %s8718_s19  ;;  %v7841_v18 = vld [vmem:[%s9976_s14 + $0x84] sm:$0xff] }
 0x425   : > { %v11577_v7 = vpop.permute.xlu0 %3802 }
 0x426   : > { %v11575_v48 = vpop.permute.xlu1 %3804  ;;  %16499 = vst [vmem:[#allocation60_spill] sm:$0xff] %v11577_v7 }
 0x427   : > { %16498 = vst [vmem:[#allocation49_spill] sm:$0xff] %v11575_v48  ;;  %4046 = vrot.lane.b32.xlu0 %v7836_v5, %s8718_s19  ;;  %v7840_v48 = vld [vmem:[%s9976_s14 + $0x7c] sm:$0xff] }
 0x428   : > { %4048 = vrot.lane.b32.xlu1 %v7837_v14, %s8718_s19  ;;  %v7843_v5 = vld [vmem:[%s9976_s14 + $0x9c] sm:$0xff] }
 0x429   : > { %v11585_v55 = vpop.permute.xlu0 %3806 }
 0x42a   : > { %v11583_v63 = vpop.permute.xlu1 %3808  ;;  %16501 = vst [vmem:[#allocation133_spill] sm:$0xff] %v11585_v55 }
 0x42b   : > { %16500 = vst [vmem:[#allocation132_spill] sm:$0xff] %v11583_v63  ;;  %4050 = vrot.lane.b32.xlu0 %v7838_v13, %s8718_s19  ;;  %v7842_v63 = vld [vmem:[%s9976_s14 + $0x94] sm:$0xff] }
 0x42c   : > { %4052 = vrot.lane.b32.xlu1 %v7839_v51, %s8718_s19  ;;  %v7845_v13 = vld [vmem:[%s9976_s14 + $0xb4] sm:$0xff] }
 0x42d   : > { %v11593_v14 = vpop.permute.xlu0 %3810 }
 0x42e   : > { %v11591_v7 = vpop.permute.xlu1 %3812  ;;  %16503 = vst [vmem:[#allocation93_spill] sm:$0xff] %v11593_v14 }
 0x42f   : > { %16502 = vst [vmem:[#allocation92_spill] sm:$0xff] %v11591_v7  ;;  %4054 = vrot.lane.b32.xlu0 %v7840_v48, %s8718_s19  ;;  %v7844_v7 = vld [vmem:[%s9976_s14 + $0xac] sm:$0xff] }
 0x430   : > { %4056 = vrot.lane.b32.xlu1 %v7841_v18, %s8718_s19  ;;  %v7847_v48 = vld [vmem:[%s9976_s14 + $0xcc] sm:$0xff] }
 0x431   : > { %v11601_v51 = vpop.permute.xlu0 %3814 }
 0x432   : > { %v11599_v55 = vpop.permute.xlu1 %3816  ;;  %16505 = vst [vmem:[#allocation157_spill] sm:$0xff] %v11601_v51 }
 0x433   : > { %16504 = vst [vmem:[#allocation156_spill] sm:$0xff] %v11599_v55  ;;  %4058 = vrot.lane.b32.xlu0 %v7842_v63, %s8718_s19  ;;  %v7846_v55 = vld [vmem:[%s9976_s14 + $0xc4] sm:$0xff] }
 0x434   : > { %4060 = vrot.lane.b32.xlu1 %v7843_v5, %s8718_s19  ;;  %v7849_v63 = vld [vmem:[%s9976_s14 + $0xe4] sm:$0xff] }
 0x435   : > { %v11609_v18 = vpop.permute.xlu0 %3818 }
 0x436   : > { %v11607_v14 = vpop.permute.xlu1 %3820  ;;  %16507 = vst [vmem:[#allocation117_spill] sm:$0xff] %v11609_v18 }
 0x437   : > { %16506 = vst [vmem:[#allocation116_spill] sm:$0xff] %v11607_v14  ;;  %4062 = vrot.lane.b32.xlu0 %v7844_v7, %s8718_s19  ;;  %v7848_v14 = vld [vmem:[%s9976_s14 + $0xdc] sm:$0xff] }
 0x438   : > { %4064 = vrot.lane.b32.xlu1 %v7845_v13, %s8718_s19  ;;  %v7851_v7 = vld [vmem:[%s9976_s14 + $0xfc] sm:$0xff] }
 0x439   : > { %v11617_v5 = vpop.permute.xlu0 %3822 }
 0x43a   : > { %v11615_v51 = vpop.permute.xlu1 %3824  ;;  %16509 = vst [vmem:[#allocation3_spill] sm:$0xff] %v11617_v5 }
 0x43b   : > { %16508 = vst [vmem:[#allocation2_spill] sm:$0xff] %v11615_v51  ;;  %4066 = vrot.lane.b32.xlu0 %v7846_v55, %s8718_s19  ;;  %v7850_v51 = vld [vmem:[%s9976_s14 + $0xf4] sm:$0xff] }
 0x43c   : > { %4068 = vrot.lane.b32.xlu1 %v7847_v48, %s8718_s19  ;;  %v7853_v55 = vld [vmem:[%s9976_s14 + $0x114] sm:$0xff] }
 0x43d   : > { %v11625_v13 = vpop.permute.xlu0 %3826 }
 0x43e   : > { %v11623_v18 = vpop.permute.xlu1 %3828  ;;  %16511 = vst [vmem:[#allocation53_spill] sm:$0xff] %v11625_v13 }
 0x43f   : > { %16510 = vst [vmem:[#allocation50_spill] sm:$0xff] %v11623_v18  ;;  %4070 = vrot.lane.b32.xlu0 %v7848_v14, %s8718_s19  ;;  %v7852_v18 = vld [vmem:[%s9976_s14 + $0x10c] sm:$0xff] }
 0x440   : > { %4072 = vrot.lane.b32.xlu1 %v7849_v63, %s8718_s19  ;;  %v7855_v14 = vld [vmem:[%s9976_s14 + $0x12c] sm:$0xff] }
 0x441   : > { %v11633_v48 = vpop.permute.xlu0 %3830 }
 0x442   : > { %v11631_v5 = vpop.permute.xlu1 %3832  ;;  %16513 = vst [vmem:[#allocation135_spill] sm:$0xff] %v11633_v48 }
 0x443   : > { %16512 = vst [vmem:[#allocation134_spill] sm:$0xff] %v11631_v5  ;;  %4074 = vrot.lane.b32.xlu0 %v7850_v51, %s8718_s19  ;;  %v7854_v5 = vld [vmem:[%s9976_s14 + $0x124] sm:$0xff] }
 0x444   : > { %4076 = vrot.lane.b32.xlu1 %v7851_v7, %s8718_s19  ;;  %v7857_v51 = vld [vmem:[%s9976_s14 + $0x144] sm:$0xff] }
 0x445   : > { %v11641_v63 = vpop.permute.xlu0 %3834 }
 0x446   : > { %v11639_v13 = vpop.permute.xlu1 %3836  ;;  %16514 = vst [vmem:[#allocation158_spill] sm:$0xff] %v11641_v63 }
 0x447   : > { %4078 = vrot.lane.b32.xlu0 %v7852_v18, %s8718_s19  ;;  %v7859_v18 = vld [vmem:[%s9976_s14 + $0x15c] sm:$0xff] }
 0x448   : > { %4080 = vrot.lane.b32.xlu1 %v7853_v55, %s8718_s19 }
 0x449   : > { %v11649_v7 = vpop.permute.xlu0 %3838 }
 0x44a   : > { %v11647_v48 = vpop.permute.xlu1 %3840 }
 0x44b   : > { %4082 = vrot.lane.b32.xlu0 %v7854_v5, %s8718_s19  ;;  %v7861_v5 = vld [vmem:[%s9976_s14 + $0x174] sm:$0xff] }
 0x44c   : > { %4084 = vrot.lane.b32.xlu1 %v7855_v14, %s8718_s19 }
 0x44d   : > { %v11657_v55 = vpop.permute.xlu0 %3842 }
 0x44e   : > { %v11655_v63 = vpop.permute.xlu1 %3844  ;;  %16516 = vst [vmem:[#allocation182_spill] sm:$0xff] %v11657_v55 }
 0x44f   : > { %16515 = vst [vmem:[#allocation159_spill] sm:$0xff] %v11655_v63  ;;  %4086 = vrot.lane.b32.xlu0 %v7856_v21, %s8718_s19  ;;  %v7863_v21 = vld [vmem:[%s9976_s14 + $0x18c] sm:$0xff] }
 0x450   : > { %4088 = vrot.lane.b32.xlu1 %v7857_v51, %s8718_s19  ;;  %v7862_v51 = vld [vmem:[%s9976_s14 + $0x184] sm:$0xff] }
 0x451   : > { %v11665_v14 = vpop.permute.xlu0 %3910 }
 0x452   : > { %v11663_v35 = vpop.permute.xlu1 %3912 }
 0x453   : > { %4090 = vrot.lane.b32.xlu0 %v7858_v26, %s8718_s19  ;;  %v7865_v26 = vld [vmem:[%s9976_s14 + $0x38] sm:$0xff] }
 0x454   : > { %4092 = vrot.lane.b32.xlu1 %v7859_v18, %s8718_s19  ;;  %v7864_v18 = vld [vmem:[%s9976_s14 + $0x30] sm:$0xff] }
 0x455   : > { %v11673_v33 = vpop.permute.xlu0 %3914 }
 0x456   : > { %v11671_v60 = vpop.permute.xlu1 %3916  ;;  %16518 = vst [vmem:[#allocation184_spill] sm:$0xff] %v11673_v33 }
 0x457   : > { %16517 = vst [vmem:[#allocation183_spill] sm:$0xff] %v11671_v60  ;;  %4094 = vrot.lane.b32.xlu0 %v7860_v58, %s8718_s19  ;;  %v7867_v58 = vld [vmem:[%s9976_s14 + $0x50] sm:$0xff] }
 0x458   : > { %4096 = vrot.lane.b32.xlu1 %v7861_v5, %s8718_s19  ;;  %v7888_v60 = vld [vmem:[%s9976_s14 + $0x150] sm:$0xff] }
 0x459   : > { %v11681_v52 = vpop.permute.xlu0 %3918 }
 0x45a   : > { %v11679_v47 = vpop.permute.xlu1 %3920  ;;  %16520 = vst [vmem:[#allocation186_spill] sm:$0xff] %v11681_v52  ;;  %v7866_v52 = vld [vmem:[%s9976_s14 + $0x48] sm:$0xff] }
 0x45b   : > { %16519 = vst [vmem:[#allocation185_spill] sm:$0xff] %v11679_v47  ;;  %4098 = vrot.lane.b32.xlu0 %v7862_v51, %s8718_s19  ;;  %v7869_v51 = vld [vmem:[%s9976_s14 + $0x68] sm:$0xff] }
 0x45c   : > { %4100 = vrot.lane.b32.xlu1 %v7863_v21, %s8718_s19 }
 0x45d   : > { %v11689_v5 = vpop.permute.xlu0 %3922 }
 0x45e   : > { %v11687_v33 = vpop.permute.xlu1 %3924  ;;  %16522 = vst [vmem:[#allocation188_spill] sm:$0xff] %v11689_v5  ;;  %v7868_v5 = vld [vmem:[%s9976_s14 + $0x60] sm:$0xff] }
 0x45f   : > { %16521 = vst [vmem:[#allocation187_spill] sm:$0xff] %v11687_v33  ;;  %4166 = vrot.lane.b32.xlu0 %v7864_v18, %s8719_s20  ;;  %v7871_v18 = vld [vmem:[%s9976_s14 + $0x80] sm:$0xff] }
 0x460   : > { %4168 = vrot.lane.b32.xlu1 %v7865_v26, %s8719_s20 }
 0x461   : > { %v11697_v21 = vpop.permute.xlu0 %3926 }
 0x462   : > { %v11695_v47 = vpop.permute.xlu1 %3928  ;;  %16524 = vst [vmem:[#allocation190_spill] sm:$0xff] %v11697_v21 }
 0x463   : > { %16523 = vst [vmem:[#allocation189_spill] sm:$0xff] %v11695_v47  ;;  %4170 = vrot.lane.b32.xlu0 %v7866_v52, %s8719_s20  ;;  %v7870_v47 = vld [vmem:[%s9976_s14 + $0x78] sm:$0xff] }
 0x464   : > { %4172 = vrot.lane.b32.xlu1 %v7867_v58, %s8719_s20  ;;  %v7873_v52 = vld [vmem:[%s9976_s14 + $0x98] sm:$0xff] }
 0x465   : > { %v11705_v26 = vpop.permute.xlu0 %3930 }
 0x466   : > { %v11703_v33 = vpop.permute.xlu1 %3932  ;;  %16526 = vst [vmem:[#allocation192_spill] sm:$0xff] %v11705_v26 }
 0x467   : > { %16525 = vst [vmem:[#allocation191_spill] sm:$0xff] %v11703_v33  ;;  %4174 = vrot.lane.b32.xlu0 %v7868_v5, %s8719_s20  ;;  %v7872_v33 = vld [vmem:[%s9976_s14 + $0x90] sm:$0xff] }
 0x468   : > { %4176 = vrot.lane.b32.xlu1 %v7869_v51, %s8719_s20  ;;  %v7875_v5 = vld [vmem:[%s9976_s14 + $0xb0] sm:$0xff] }
 0x469   : > { %v11713_v58 = vpop.permute.xlu0 %3934 }
 0x46a   : > { %v11711_v21 = vpop.permute.xlu1 %3936  ;;  %16528 = vst [vmem:[#allocation194_spill] sm:$0xff] %v11713_v58 }
 0x46b   : > { %16527 = vst [vmem:[#allocation193_spill] sm:$0xff] %v11711_v21  ;;  %4178 = vrot.lane.b32.xlu0 %v7870_v47, %s8719_s20  ;;  %v7874_v21 = vld [vmem:[%s9976_s14 + $0xa8] sm:$0xff] }
 0x46c   : > { %4180 = vrot.lane.b32.xlu1 %v7871_v18, %s8719_s20  ;;  %v7877_v47 = vld [vmem:[%s9976_s14 + $0xc8] sm:$0xff] }
 0x46d   : > { %v11721_v51 = vpop.permute.xlu0 %3938 }
 0x46e   : > { %v11719_v26 = vpop.permute.xlu1 %3940  ;;  %16530 = vst [vmem:[#allocation196_spill] sm:$0xff] %v11721_v51 }
 0x46f   : > { %16529 = vst [vmem:[#allocation195_spill] sm:$0xff] %v11719_v26  ;;  %4182 = vrot.lane.b32.xlu0 %v7872_v33, %s8719_s20  ;;  %v7876_v26 = vld [vmem:[%s9976_s14 + $0xc0] sm:$0xff] }
 0x470   : > { %4184 = vrot.lane.b32.xlu1 %v7873_v52, %s8719_s20  ;;  %v7879_v33 = vld [vmem:[%s9976_s14 + $0xe0] sm:$0xff] }
 0x471   : > { %v11729_v18 = vpop.permute.xlu0 %3942 }
 0x472   : > { %v11727_v58 = vpop.permute.xlu1 %3944  ;;  %16532 = vst [vmem:[#allocation198_spill] sm:$0xff] %v11729_v18 }
 0x473   : > { %16531 = vst [vmem:[#allocation197_spill] sm:$0xff] %v11727_v58  ;;  %4186 = vrot.lane.b32.xlu0 %v7874_v21, %s8719_s20  ;;  %v7878_v58 = vld [vmem:[%s9976_s14 + $0xd8] sm:$0xff] }
 0x474   : > { %4188 = vrot.lane.b32.xlu1 %v7875_v5, %s8719_s20  ;;  %v7881_v21 = vld [vmem:[%s9976_s14 + $0xf8] sm:$0xff] }
 0x475   : > { %v11737_v52 = vpop.permute.xlu0 %3946 }
 0x476   : > { %v11735_v51 = vpop.permute.xlu1 %3948  ;;  %16534 = vst [vmem:[#allocation200_spill] sm:$0xff] %v11737_v52 }
 0x477   : > { %16533 = vst [vmem:[#allocation199_spill] sm:$0xff] %v11735_v51  ;;  %4190 = vrot.lane.b32.xlu0 %v7876_v26, %s8719_s20  ;;  %v7880_v51 = vld [vmem:[%s9976_s14 + $0xf0] sm:$0xff] }
 0x478   : > { %4192 = vrot.lane.b32.xlu1 %v7877_v47, %s8719_s20  ;;  %v7883_v26 = vld [vmem:[%s9976_s14 + $0x110] sm:$0xff] }
 0x479   : > { %v11745_v5 = vpop.permute.xlu0 %3950 }
 0x47a   : > { %v11743_v18 = vpop.permute.xlu1 %3952  ;;  %16536 = vst [vmem:[#allocation202_spill] sm:$0xff] %v11745_v5 }
 0x47b   : > { %16535 = vst [vmem:[#allocation201_spill] sm:$0xff] %v11743_v18  ;;  %4194 = vrot.lane.b32.xlu0 %v7878_v58, %s8719_s20  ;;  %v7882_v18 = vld [vmem:[%s9976_s14 + $0x108] sm:$0xff] }
 0x47c   : > { %4196 = vrot.lane.b32.xlu1 %v7879_v33, %s8719_s20  ;;  %v7885_v58 = vld [vmem:[%s9976_s14 + $0x128] sm:$0xff] }
 0x47d   : > { %v11753_v47 = vpop.permute.xlu0 %3954 }
 0x47e   : > { %v11751_v52 = vpop.permute.xlu1 %3956  ;;  %16538 = vst [vmem:[#allocation204_spill] sm:$0xff] %v11753_v47 }
 0x47f   : > { %16537 = vst [vmem:[#allocation203_spill] sm:$0xff] %v11751_v52  ;;  %4198 = vrot.lane.b32.xlu0 %v7880_v51, %s8719_s20  ;;  %v7884_v52 = vld [vmem:[%s9976_s14 + $0x120] sm:$0xff] }
 0x480   : > { %4200 = vrot.lane.b32.xlu1 %v7881_v21, %s8719_s20  ;;  %v7887_v51 = vld [vmem:[%s9976_s14 + $0x140] sm:$0xff] }
 0x481   : > { %v11761_v33 = vpop.permute.xlu0 %3958 }
 0x482   : > { %v11759_v5 = vpop.permute.xlu1 %3960  ;;  %16540 = vst [vmem:[#allocation206_spill] sm:$0xff] %v11761_v33 }
 0x483   : > { %16539 = vst [vmem:[#allocation205_spill] sm:$0xff] %v11759_v5  ;;  %4202 = vrot.lane.b32.xlu0 %v7882_v18, %s8719_s20  ;;  %v7886_v5 = vld [vmem:[%s9976_s14 + $0x138] sm:$0xff] }
 0x484   : > { %4204 = vrot.lane.b32.xlu1 %v7883_v26, %s8719_s20  ;;  %v7889_v18 = vld [vmem:[%s9976_s14 + $0x158] sm:$0xff] }
 0x485   : > { %v11769_v21 = vpop.permute.xlu0 %3962 }
 0x486   : > { %v11767_v47 = vpop.permute.xlu1 %3964  ;;  %16541 = vst [vmem:[#allocation207_spill] sm:$0xff] %v11769_v21 }
 0x487   : > { %4206 = vrot.lane.b32.xlu0 %v7884_v52, %s8719_s20  ;;  %v7891_v52 = vld [vmem:[%s9976_s14 + $0x170] sm:$0xff] }
 0x488   : > { %4208 = vrot.lane.b32.xlu1 %v7885_v58, %s8719_s20 }
 0x489   : > { %v11777_v26 = vpop.permute.xlu0 %3966 }
 0x48a   : > { %v11775_v33 = vpop.permute.xlu1 %3968  ;;  %16542 = vst [vmem:[#allocation208_spill] sm:$0xff] %v11777_v26 }
 0x48b   : > { %4210 = vrot.lane.b32.xlu0 %v7886_v5, %s8719_s20  ;;  %v7893_v5 = vld [vmem:[%s9976_s14 + $0x188] sm:$0xff] }
 0x48c   : > { %4212 = vrot.lane.b32.xlu1 %v7887_v51, %s8719_s20 }
 0x48d   : > { %v11785_v58 = vpop.permute.xlu0 %3970 }
 0x48e   : > { %v11783_v21 = vpop.permute.xlu1 %3972  ;;  %16544 = vst [vmem:[#allocation210_spill] sm:$0xff] %v11785_v58 }
 0x48f   : > { %16543 = vst [vmem:[#allocation209_spill] sm:$0xff] %v11783_v21  ;;  %4214 = vrot.lane.b32.xlu0 %v7888_v60, %s8719_s20  ;;  %v7895_v60 = vld [vmem:[%s9976_s14 + $0x1a0] sm:$0xff] }
 0x490   : > { %4216 = vrot.lane.b32.xlu1 %v7889_v18, %s8719_s20  ;;  %v7894_v18 = vld [vmem:[%s9976_s14 + $0x198] sm:$0xff] }
 0x491   : > { %v11793_v51 = vpop.permute.xlu0 %4038 }
 0x492   : > { %v11791_v56 = vpop.permute.xlu1 %4040 }
 0x493   : > { %4218 = vrot.lane.b32.xlu0 %v7890_v32, %s8719_s20  ;;  %v7897_v32 = vld [vmem:[%s9976_s14 + $0x39] sm:$0xff] }
 0x494   : > { %4220 = vrot.lane.b32.xlu1 %v7891_v52, %s8719_s20  ;;  %v7896_v52 = vld [vmem:[%s9976_s14 + $0x31] sm:$0xff] }
 0x495   : > { %v11801_v21 = vpop.permute.xlu0 %4042 }
 0x496   : > { %v11799_v58 = vpop.permute.xlu1 %4044  ;;  %16546 = vst [vmem:[#allocation212_spill] sm:$0xff] %v11801_v21 }
 0x497   : > { %16545 = vst [vmem:[#allocation211_spill] sm:$0xff] %v11799_v58  ;;  %4222 = vrot.lane.b32.xlu0 %v7892_v46, %s8719_s20  ;;  %v7899_v46 = vld [vmem:[%s9976_s14 + $0x51] sm:$0xff] }
 0x498   : > { %4224 = vrot.lane.b32.xlu1 %v7893_v5, %s8719_s20  ;;  %v7920_v58 = vld [vmem:[%s9976_s14 + $0x151] sm:$0xff] }
 0x499   : > { %v11809_v63 = vpop.permute.xlu0 %4046 }
 0x49a   : > { %v11807_v55 = vpop.permute.xlu1 %4048  ;;  %16548 = vst [vmem:[#allocation214_spill] sm:$0xff] %v11809_v63  ;;  %v7898_v63 = vld [vmem:[%s9976_s14 + $0x49] sm:$0xff] }
 0x49b   : > { %16547 = vst [vmem:[#allocation213_spill] sm:$0xff] %v11807_v55  ;;  %4226 = vrot.lane.b32.xlu0 %v7894_v18, %s8719_s20  ;;  %v7901_v18 = vld [vmem:[%s9976_s14 + $0x69] sm:$0xff] }
 0x49c   : > { %4228 = vrot.lane.b32.xlu1 %v7895_v60, %s8719_s20 }
 0x49d   : > { %v11817_v5 = vpop.permute.xlu0 %4050 }
 0x49e   : > { %v11815_v21 = vpop.permute.xlu1 %4052  ;;  %16550 = vst [vmem:[#allocation216_spill] sm:$0xff] %v11817_v5  ;;  %v7900_v5 = vld [vmem:[%s9976_s14 + $0x61] sm:$0xff] }
 0x49f   : > { %16549 = vst [vmem:[#allocation215_spill] sm:$0xff] %v11815_v21  ;;  %4294 = vrot.lane.b32.xlu0 %v7896_v52, %s8720_s21  ;;  %v7903_v52 = vld [vmem:[%s9976_s14 + $0x81] sm:$0xff] }
 0x4a0   : > { %4296 = vrot.lane.b32.xlu1 %v7897_v32, %s8720_s21 }
 0x4a1   : > { %v11825_v60 = vpop.permute.xlu0 %4054 }
 0x4a2   : > { %v11823_v55 = vpop.permute.xlu1 %4056  ;;  %16552 = vst [vmem:[#allocation218_spill] sm:$0xff] %v11825_v60 }
 0x4a3   : > { %16551 = vst [vmem:[#allocation217_spill] sm:$0xff] %v11823_v55  ;;  %4298 = vrot.lane.b32.xlu0 %v7898_v63, %s8720_s21  ;;  %v7902_v55 = vld [vmem:[%s9976_s14 + $0x79] sm:$0xff] }
 0x4a4   : > { %4300 = vrot.lane.b32.xlu1 %v7899_v46, %s8720_s21  ;;  %v7905_v63 = vld [vmem:[%s9976_s14 + $0x99] sm:$0xff] }
 0x4a5   : > { %v11833_v32 = vpop.permute.xlu0 %4058 }
 0x4a6   : > { %v11831_v21 = vpop.permute.xlu1 %4060  ;;  %16554 = vst [vmem:[#allocation220_spill] sm:$0xff] %v11833_v32 }
 0x4a7   : > { %16553 = vst [vmem:[#allocation219_spill] sm:$0xff] %v11831_v21  ;;  %4302 = vrot.lane.b32.xlu0 %v7900_v5, %s8720_s21  ;;  %v7904_v21 = vld [vmem:[%s9976_s14 + $0x91] sm:$0xff] }
 0x4a8   : > { %4304 = vrot.lane.b32.xlu1 %v7901_v18, %s8720_s21  ;;  %v7907_v5 = vld [vmem:[%s9976_s14 + $0xb1] sm:$0xff] }
 0x4a9   : > { %v11841_v46 = vpop.permute.xlu0 %4062 }
 0x4aa   : > { %v11839_v60 = vpop.permute.xlu1 %4064  ;;  %16556 = vst [vmem:[#allocation222_spill] sm:$0xff] %v11841_v46 }
 0x4ab   : > { %16555 = vst [vmem:[#allocation221_spill] sm:$0xff] %v11839_v60  ;;  %4306 = vrot.lane.b32.xlu0 %v7902_v55, %s8720_s21  ;;  %v7906_v60 = vld [vmem:[%s9976_s14 + $0xa9] sm:$0xff] }
 0x4ac   : > { %4308 = vrot.lane.b32.xlu1 %v7903_v52, %s8720_s21  ;;  %v7909_v55 = vld [vmem:[%s9976_s14 + $0xc9] sm:$0xff] }
 0x4ad   : > { %v11849_v18 = vpop.permute.xlu0 %4066 }
 0x4ae   : > { %v11847_v32 = vpop.permute.xlu1 %4068  ;;  %16558 = vst [vmem:[#allocation224_spill] sm:$0xff] %v11849_v18 }
 0x4af   : > { %16557 = vst [vmem:[#allocation223_spill] sm:$0xff] %v11847_v32  ;;  %4310 = vrot.lane.b32.xlu0 %v7904_v21, %s8720_s21  ;;  %v7908_v32 = vld [vmem:[%s9976_s14 + $0xc1] sm:$0xff] }
 0x4b0   : > { %4312 = vrot.lane.b32.xlu1 %v7905_v63, %s8720_s21  ;;  %v7911_v21 = vld [vmem:[%s9976_s14 + $0xe1] sm:$0xff] }
 0x4b1   : > { %v11857_v52 = vpop.permute.xlu0 %4070 }
 0x4b2   : > { %v11855_v46 = vpop.permute.xlu1 %4072  ;;  %16560 = vst [vmem:[#allocation226_spill] sm:$0xff] %v11857_v52 }
 0x4b3   : > { %16559 = vst [vmem:[#allocation225_spill] sm:$0xff] %v11855_v46  ;;  %4314 = vrot.lane.b32.xlu0 %v7906_v60, %s8720_s21  ;;  %v7910_v46 = vld [vmem:[%s9976_s14 + $0xd9] sm:$0xff] }
 0x4b4   : > { %4316 = vrot.lane.b32.xlu1 %v7907_v5, %s8720_s21  ;;  %v7913_v60 = vld [vmem:[%s9976_s14 + $0xf9] sm:$0xff] }
 0x4b5   : > { %v11865_v63 = vpop.permute.xlu0 %4074 }
 0x4b6   : > { %v11863_v18 = vpop.permute.xlu1 %4076  ;;  %16562 = vst [vmem:[#allocation228_spill] sm:$0xff] %v11865_v63 }
 0x4b7   : > { %16561 = vst [vmem:[#allocation227_spill] sm:$0xff] %v11863_v18  ;;  %4318 = vrot.lane.b32.xlu0 %v7908_v32, %s8720_s21  ;;  %v7912_v18 = vld [vmem:[%s9976_s14 + $0xf1] sm:$0xff] }
 0x4b8   : > { %4320 = vrot.lane.b32.xlu1 %v7909_v55, %s8720_s21  ;;  %v7915_v32 = vld [vmem:[%s9976_s14 + $0x111] sm:$0xff] }
 0x4b9   : > { %v11873_v5 = vpop.permute.xlu0 %4078 }
 0x4ba   : > { %v11871_v52 = vpop.permute.xlu1 %4080  ;;  %16564 = vst [vmem:[#allocation230_spill] sm:$0xff] %v11873_v5 }
 0x4bb   : > { %16563 = vst [vmem:[#allocation229_spill] sm:$0xff] %v11871_v52  ;;  %4322 = vrot.lane.b32.xlu0 %v7910_v46, %s8720_s21  ;;  %v7914_v52 = vld [vmem:[%s9976_s14 + $0x109] sm:$0xff] }
 0x4bc   : > { %4324 = vrot.lane.b32.xlu1 %v7911_v21, %s8720_s21  ;;  %v7917_v46 = vld [vmem:[%s9976_s14 + $0x129] sm:$0xff] }
 0x4bd   : > { %v11881_v55 = vpop.permute.xlu0 %4082 }
 0x4be   : > { %v11879_v63 = vpop.permute.xlu1 %4084  ;;  %16566 = vst [vmem:[#allocation232_spill] sm:$0xff] %v11881_v55 }
 0x4bf   : > { %16565 = vst [vmem:[#allocation231_spill] sm:$0xff] %v11879_v63  ;;  %4326 = vrot.lane.b32.xlu0 %v7912_v18, %s8720_s21  ;;  %v7916_v63 = vld [vmem:[%s9976_s14 + $0x121] sm:$0xff] }
 0x4c0   : > { %4328 = vrot.lane.b32.xlu1 %v7913_v60, %s8720_s21  ;;  %v7919_v18 = vld [vmem:[%s9976_s14 + $0x141] sm:$0xff] }
 0x4c1   : > { %v11889_v21 = vpop.permute.xlu0 %4086 }
 0x4c2   : > { %v11887_v5 = vpop.permute.xlu1 %4088  ;;  %16568 = vst [vmem:[#allocation234_spill] sm:$0xff] %v11889_v21 }
 0x4c3   : > { %16567 = vst [vmem:[#allocation233_spill] sm:$0xff] %v11887_v5  ;;  %4330 = vrot.lane.b32.xlu0 %v7914_v52, %s8720_s21  ;;  %v7918_v5 = vld [vmem:[%s9976_s14 + $0x139] sm:$0xff] }
 0x4c4   : > { %4332 = vrot.lane.b32.xlu1 %v7915_v32, %s8720_s21  ;;  %v7921_v52 = vld [vmem:[%s9976_s14 + $0x159] sm:$0xff] }
 0x4c5   : > { %v11897_v60 = vpop.permute.xlu0 %4090 }
 0x4c6   : > { %v11895_v55 = vpop.permute.xlu1 %4092  ;;  %16569 = vst [vmem:[#allocation235_spill] sm:$0xff] %v11897_v60 }
 0x4c7   : > { %4334 = vrot.lane.b32.xlu0 %v7916_v63, %s8720_s21  ;;  %v7923_v63 = vld [vmem:[%s9976_s14 + $0x171] sm:$0xff] }
 0x4c8   : > { %4336 = vrot.lane.b32.xlu1 %v7917_v46, %s8720_s21 }
 0x4c9   : > { %v11905_v32 = vpop.permute.xlu0 %4094 }
 0x4ca   : > { %v11903_v21 = vpop.permute.xlu1 %4096  ;;  %16571 = vst [vmem:[#allocation237_spill] sm:$0xff] %v11905_v32 }
 0x4cb   : > { %16570 = vst [vmem:[#allocation236_spill] sm:$0xff] %v11903_v21  ;;  %4338 = vrot.lane.b32.xlu0 %v7918_v5, %s8720_s21  ;;  %v7925_v5 = vld [vmem:[%s9976_s14 + $0x189] sm:$0xff] }
 0x4cc   : > { %4340 = vrot.lane.b32.xlu1 %v7919_v18, %s8720_s21 }
 0x4cd   : > { %v11913_v46 = vpop.permute.xlu0 %4098 }
 0x4ce   : > { %v11911_v60 = vpop.permute.xlu1 %4100  ;;  %16573 = vst [vmem:[#allocation239_spill] sm:$0xff] %v11913_v46 }
 0x4cf   : > { %16572 = vst [vmem:[#allocation238_spill] sm:$0xff] %v11911_v60  ;;  %4342 = vrot.lane.b32.xlu0 %v7920_v58, %s8720_s21  ;;  %v7924_v60 = vld [vmem:[%s9976_s14 + $0x181] sm:$0xff] }
 0x4d0   : > { %4344 = vrot.lane.b32.xlu1 %v7921_v52, %s8720_s21  ;;  %v7927_v58 = vld [vmem:[%s9976_s14 + $0x1a1] sm:$0xff]  ;;  %v7926_v52 = vld [vmem:[%s9976_s14 + $0x199] sm:$0xff] }
 0x4d1   : > { %v11921_v18 = vpop.permute.xlu0 %4166 }
 0x4d2   : > { %v11919_v32 = vpop.permute.xlu1 %4168 }
 0x4d3   : > { %4346 = vrot.lane.b32.xlu0 %v7922_v62, %s8720_s21  ;;  %v7929_v62 = vld [vmem:[%s9976_s14 + $0x3a] sm:$0xff] }
 0x4d4   : > { %4348 = vrot.lane.b32.xlu1 %v7923_v63, %s8720_s21  ;;  %v7928_v63 = vld [vmem:[%s9976_s14 + $0x32] sm:$0xff] }
 0x4d5   : > { %v11929_v57 = vpop.permute.xlu0 %4170 }
 0x4d6   : > { %v11927_v46 = vpop.permute.xlu1 %4172  ;;  %16575 = vst [vmem:[#allocation241_spill] sm:$0xff] %v11929_v57 }
 0x4d7   : > { %16574 = vst [vmem:[#allocation240_spill] sm:$0xff] %v11927_v46  ;;  %4350 = vrot.lane.b32.xlu0 %v7924_v60, %s8720_s21  ;;  %v11950_v60 = vld [vmem:[%s9976_s14 + $0x52] sm:$0xff] }
 0x4d8   : > { %4352 = vrot.lane.b32.xlu1 %v7925_v5, %s8720_s21  ;;  %16580 = vst [vmem:[#allocation246_spill] sm:$0xff] %v11950_v60 }
 0x4d9   : > { %v11937_v21 = vpop.permute.xlu0 %4174 }
 0x4da   : > { %v11935_v54 = vpop.permute.xlu1 %4176  ;;  %16577 = vst [vmem:[#allocation243_spill] sm:$0xff] %v11937_v21  ;;  %v11953_v21 = vld [vmem:[%s9976_s14 + $0x4a] sm:$0xff] }
 0x4db   : > { %16576 = vst [vmem:[#allocation242_spill] sm:$0xff] %v11935_v54  ;;  %4354 = vrot.lane.b32.xlu0 %v7926_v52, %s8720_s21  ;;  %16581 = vst [vmem:[#allocation247_spill] sm:$0xff] %v11953_v21 }
 0x4dc   : > { %4356 = vrot.lane.b32.xlu1 %v7927_v58, %s8720_s21 }
 0x4dd   : > { %v11945_v5 = vpop.permute.xlu0 %4178 }
 0x4de   : > { %v11943_v57 = vpop.permute.xlu1 %4180  ;;  %16579 = vst [vmem:[#allocation245_spill] sm:$0xff] %v11945_v5  ;;  %v11964_v5 = vld [vmem:[%s9976_s14 + $0x6a] sm:$0xff] }
 0x4df   : > { %16578 = vst [vmem:[#allocation244_spill] sm:$0xff] %v11943_v57  ;;  %4422 = vrot.lane.b32.xlu0 %v7928_v63, %s8721_s22  ;;  %16584 = vst [vmem:[#allocation250_spill] sm:$0xff] %v11964_v5 }
 0x4e0   : > { %4424 = vrot.lane.b32.xlu1 %v7929_v62, %s8721_s22  ;;  %v11967_v62 = vld [vmem:[%s9976_s14 + $0x62] sm:$0xff] }
 0x4e1   : > { %v11957_v52 = vpop.permute.xlu0 %4182  ;;  %16585 = vst [vmem:[#allocation251_spill] sm:$0xff] %v11967_v62 }
 0x4e2   : > { %v11955_v58 = vpop.permute.xlu1 %4184  ;;  %16583 = vst [vmem:[#allocation249_spill] sm:$0xff] %v11957_v52  ;;  %v11978_v52 = vld [vmem:[%s9976_s14 + $0x82] sm:$0xff] }
 0x4e3   : > { %16582 = vst [vmem:[#allocation248_spill] sm:$0xff] %v11955_v58  ;;  %4426 = vrot.lane.b32.xlu0 %v11953_v21, %s8721_s22  ;;  %16588 = vst [vmem:[#allocation254_spill] sm:$0xff] %v11978_v52  ;;  %v11981_v58 = vld [vmem:[%s9976_s14 + $0x7a] sm:$0xff] }
 0x4e4   : > { %4428 = vrot.lane.b32.xlu1 %v11950_v60, %s8721_s22  ;;  %16589 = vst [vmem:[#allocation255_spill] sm:$0xff] %v11981_v58  ;;  %v2178_v21 = vld [vmem:[%s9976_s14] sm:$0xff] }
 0x4e5   : > { %v11971_v57 = vpop.permute.xlu0 %4186 }
 0x4e6   : > { %v11969_v63 = vpop.permute.xlu1 %4188  ;;  %16587 = vst [vmem:[#allocation253_spill] sm:$0xff] %v11971_v57  ;;  %v11992_v57 = vld [vmem:[%s9976_s14 + $0x9a] sm:$0xff] }
 0x4e7   : > { %16586 = vst [vmem:[#allocation252_spill] sm:$0xff] %v11969_v63  ;;  %4430 = vrot.lane.b32.xlu0 %v11967_v62, %s8721_s22  ;;  %16592 = vst [vmem:[#allocation258_spill] sm:$0xff] %v11992_v57  ;;  %v11995_v63 = vld [vmem:[%s9976_s14 + $0x92] sm:$0xff] }
 0x4e8   : > { %4432 = vrot.lane.b32.xlu1 %v11964_v5, %s8721_s22  ;;  %16593 = vst [vmem:[#allocation259_spill] sm:$0xff] %v11995_v63 }
 0x4e9   : > { %v11985_v46 = vpop.permute.xlu0 %4190 }
 0x4ea   : > { %v11983_v54 = vpop.permute.xlu1 %4192  ;;  %16591 = vst [vmem:[#allocation257_spill] sm:$0xff] %v11985_v46  ;;  %v12006_v46 = vld [vmem:[%s9976_s14 + $0xb2] sm:$0xff] }
 0x4eb   : > { %16590 = vst [vmem:[#allocation256_spill] sm:$0xff] %v11983_v54  ;;  %4434 = vrot.lane.b32.xlu0 %v11981_v58, %s8721_s22  ;;  %16596 = vst [vmem:[#allocation262_spill] sm:$0xff] %v12006_v46  ;;  %v12009_v54 = vld [vmem:[%s9976_s14 + $0xaa] sm:$0xff] }
 0x4ec   : > { %4436 = vrot.lane.b32.xlu1 %v11978_v52, %s8721_s22  ;;  %16597 = vst [vmem:[#allocation263_spill] sm:$0xff] %v12009_v54 }
 0x4ed   : > { %v11999_v5 = vpop.permute.xlu0 %4194 }
 0x4ee   : > { %v11997_v62 = vpop.permute.xlu1 %4196  ;;  %16595 = vst [vmem:[#allocation261_spill] sm:$0xff] %v11999_v5  ;;  %v12020_v5 = vld [vmem:[%s9976_s14 + $0xca] sm:$0xff] }
 0x4ef   : > { %16594 = vst [vmem:[#allocation260_spill] sm:$0xff] %v11997_v62  ;;  %4438 = vrot.lane.b32.xlu0 %v11995_v63, %s8721_s22  ;;  %16600 = vst [vmem:[#allocation266_spill] sm:$0xff] %v12020_v5  ;;  %v12023_v62 = vld [vmem:[%s9976_s14 + $0xc2] sm:$0xff] }
 0x4f0   : > { %4440 = vrot.lane.b32.xlu1 %v11992_v57, %s8721_s22  ;;  %16601 = vst [vmem:[#allocation267_spill] sm:$0xff] %v12023_v62 }
 0x4f1   : > { %v12013_v52 = vpop.permute.xlu0 %4198 }
 0x4f2   : > { %v12011_v58 = vpop.permute.xlu1 %4200  ;;  %16599 = vst [vmem:[#allocation265_spill] sm:$0xff] %v12013_v52  ;;  %v12034_v52 = vld [vmem:[%s9976_s14 + $0xe2] sm:$0xff] }
 0x4f3   : > { %16598 = vst [vmem:[#allocation264_spill] sm:$0xff] %v12011_v58  ;;  %4442 = vrot.lane.b32.xlu0 %v12009_v54, %s8721_s22  ;;  %16604 = vst [vmem:[#allocation270_spill] sm:$0xff] %v12034_v52  ;;  %v12037_v58 = vld [vmem:[%s9976_s14 + $0xda] sm:$0xff] }
 0x4f4   : > { %4444 = vrot.lane.b32.xlu1 %v12006_v46, %s8721_s22  ;;  %16605 = vst [vmem:[#allocation271_spill] sm:$0xff] %v12037_v58 }
 0x4f5   : > { %v12027_v57 = vpop.permute.xlu0 %4202 }
 0x4f6   : > { %v12025_v63 = vpop.permute.xlu1 %4204  ;;  %16603 = vst [vmem:[#allocation269_spill] sm:$0xff] %v12027_v57  ;;  %v12048_v57 = vld [vmem:[%s9976_s14 + $0xfa] sm:$0xff] }
 0x4f7   : > { %16602 = vst [vmem:[#allocation268_spill] sm:$0xff] %v12025_v63  ;;  %4446 = vrot.lane.b32.xlu0 %v12023_v62, %s8721_s22  ;;  %16608 = vst [vmem:[#allocation274_spill] sm:$0xff] %v12048_v57  ;;  %v12051_v63 = vld [vmem:[%s9976_s14 + $0xf2] sm:$0xff] }
 0x4f8   : > { %4448 = vrot.lane.b32.xlu1 %v12020_v5, %s8721_s22  ;;  %16609 = vst [vmem:[#allocation275_spill] sm:$0xff] %v12051_v63 }
 0x4f9   : > { %v12041_v46 = vpop.permute.xlu0 %4206 }
 0x4fa   : > { %v12039_v54 = vpop.permute.xlu1 %4208  ;;  %16607 = vst [vmem:[#allocation273_spill] sm:$0xff] %v12041_v46  ;;  %v12062_v46 = vld [vmem:[%s9976_s14 + $0x112] sm:$0xff] }
 0x4fb   : > { %16606 = vst [vmem:[#allocation272_spill] sm:$0xff] %v12039_v54  ;;  %4450 = vrot.lane.b32.xlu0 %v12037_v58, %s8721_s22  ;;  %16612 = vst [vmem:[#allocation278_spill] sm:$0xff] %v12062_v46  ;;  %v12065_v54 = vld [vmem:[%s9976_s14 + $0x10a] sm:$0xff] }
 0x4fc   : > { %4452 = vrot.lane.b32.xlu1 %v12034_v52, %s8721_s22  ;;  %16613 = vst [vmem:[#allocation279_spill] sm:$0xff] %v12065_v54 }
 0x4fd   : > { %v12055_v5 = vpop.permute.xlu0 %4210 }
 0x4fe   : > { %v12053_v62 = vpop.permute.xlu1 %4212  ;;  %16611 = vst [vmem:[#allocation277_spill] sm:$0xff] %v12055_v5  ;;  %v12076_v5 = vld [vmem:[%s9976_s14 + $0x12a] sm:$0xff] }
 0x4ff   : > { %16610 = vst [vmem:[#allocation276_spill] sm:$0xff] %v12053_v62  ;;  %4454 = vrot.lane.b32.xlu0 %v12051_v63, %s8721_s22  ;;  %16616 = vst [vmem:[#allocation282_spill] sm:$0xff] %v12076_v5  ;;  %v12079_v62 = vld [vmem:[%s9976_s14 + $0x122] sm:$0xff] }
 0x500   : > { %4456 = vrot.lane.b32.xlu1 %v12048_v57, %s8721_s22  ;;  %16617 = vst [vmem:[#allocation283_spill] sm:$0xff] %v12079_v62  ;;  %v2179_v63 = vld [vmem:[%s9976_s14 + $0x8] sm:$0xff] }
 0x501   : > { %v12069_v52 = vpop.permute.xlu0 %4214 }
 0x502   : > { %v12067_v58 = vpop.permute.xlu1 %4216  ;;  %16615 = vst [vmem:[#allocation281_spill] sm:$0xff] %v12069_v52  ;;  %v4903_v52 = vsel %vm1585_vm1, %v2179_v63, %v10767_v49 }
 0x503   : > { %16614 = vst [vmem:[#allocation280_spill] sm:$0xff] %v12067_v58  ;;  %4458 = vrot.lane.b32.xlu0 %v12065_v54, %s8721_s22  ;;  %v12094_v58 = vld [vmem:[%s9976_s14 + $0x142] sm:$0xff]  ;;  %v12097_v54 = vld [vmem:[%s9976_s14 + $0x13a] sm:$0xff] }
 0x504   : > { %4460 = vrot.lane.b32.xlu1 %v12062_v46, %s8721_s22  ;;  %v4902_v46 = vsel %vm1585_vm1, %v2178_v21, %v10769_v34 }
 0x505   : > { %v12085_v60 = vpop.permute.xlu0 %4218 }
 0x506   : > { %v12082_v57 = vpop.permute.xlu1 %4220  ;;  %16618 = vst [vmem:[#allocation284_spill] sm:$0xff] %v12085_v60  ;;  %v4935_v60 = vsel %vm1618_vm2, %v4903_v52, %v10895_v20 }
 0x507   : > { %4462 = vrot.lane.b32.xlu0 %v12079_v62, %s8721_s22  ;;  %v4934_v62 = vsel %vm1618_vm2, %v4902_v46, %v10897_v44  ;;  %v12124_v44 = vld [vmem:[%s9976_s14 + $0x15a] sm:$0xff] }
 0x508   : > { %4464 = vrot.lane.b32.xlu1 %v12076_v5, %s8721_s22  ;;  %v4967_v5 = vsel %vm1651_vm3, %v4935_v60, %v11023_v27  ;;  %v4966_v63 = vsel %vm1651_vm3, %v4934_v62, %v11025_v41  ;;  %v12127_v27 = vld [vmem:[%s9976_s14 + $0x152] sm:$0xff] }
 0x509   : > { %v12109_v49 = vpop.permute.xlu0 %4222  ;;  %v4999_v45 = vsel %vm1684_vm4, %v4967_v5, %v11149_v23  ;;  %v4998_v34 = vsel %vm1684_vm4, %v4966_v63, %v11153_v36 }
 0x50a   : > { %v12103_v26 = vpop.permute.xlu1 %4224  ;;  %v5031_v20 = vsel %vm1717_vm5, %v4999_v45, %v11279_v59  ;;  %v5030_v41 = vsel %vm1717_vm5, %v4998_v34, %v11281_v39  ;;  %v12190_v34 = vld [vmem:[%s9976_s14 + $0x1a2] sm:$0xff] }
 0x50b   : > { %4466 = vrot.lane.b32.xlu0 %v12097_v54, %s8721_s22  ;;  %v5063_v23 = vsel %vm1750_vm6, %v5031_v20, %v11407_v24  ;;  %v5062_v36 = vsel %vm1750_vm6, %v5030_v41, %v11409_v19  ;;  %v12154_v19 = vld [vmem:[%s9976_s14 + $0x172] sm:$0xff]  ;;  %v12193_v20 = vld [vmem:[%s9976_s14 + $0x19a] sm:$0xff] }
 0x50c   : > { %4468 = vrot.lane.b32.xlu1 %v12094_v58, %s8721_s22  ;;  %v5095_v59 = vsel %vm15903_vm7, %v5063_v23, %v11535_v3  ;;  %v5094_v46 = vsel %vm15903_vm7, %v5062_v36, %v11537_v2  ;;  %v12157_v2 = vld [vmem:[%s9976_s14 + $0x16a] sm:$0xff]  ;;  %v7961_v36 = vld [vmem:[%s9976_s14 + $0x3b] sm:$0xff] }
 0x50d   : > { %v12139_v45 = vpop.permute.xlu0 %4226  ;;  %v5127_v39 = vsel %vm1816_vm8, %v5095_v59, %v11663_v35  ;;  %v5126_v3 = vsel %vm1816_vm8, %v5094_v46, %v11665_v14  ;;  %v7960_v59 = vld [vmem:[%s9976_s14 + $0x33] sm:$0xff] }
 0x50e   : > { %v12133_v21 = vpop.permute.xlu1 %4228  ;;  %v5159_v24 = vsel %vm1852_vm9, %v5127_v39, %v11791_v56  ;;  %v5158_v35 = vsel %vm1852_vm9, %v5126_v3, %v11793_v51  ;;  %v12176_v51 = vld [vmem:[%s9976_s14 + $0x18a] sm:$0xff]  ;;  %v12212_v3 = vld [vmem:[%s9976_s14 + $0x53] sm:$0xff] }
 0x50f   : > { %4470 = vrot.lane.b32.xlu0 %v12127_v27, %s8721_s22  ;;  %v5192_v5 = vsel %vm5190_vm10, %v5159_v24, %v11919_v32  ;;  %v5191_v52 = vsel %vm5190_vm10, %v5158_v35, %v11921_v18  ;;  %v12179_v32 = vld [vmem:[%s9976_s14 + $0x182] sm:$0xff]  ;;  %v12215_v24 = vld [vmem:[%s9976_s14 + $0x4b] sm:$0xff] }
 0x510   : > { %4472 = vrot.lane.b32.xlu1 %v12124_v44, %s8721_s22 }
 0x511   : > { %v4295_v56 = vpop.permute.xlu0 %4294 }
 0x512   : > { %v4297_v60 = vpop.permute.xlu1 %4296  ;;  %v12169_v62 = vsel %vm5223_vm11, %v5191_v52, %v4295_v56  ;;  %v12229_v52 = vld [vmem:[%s9976_s14 + $0x63] sm:$0xff] }
 0x513   : > { %v12166_v14 = vsel %vm5223_vm11, %v5192_v5, %v4297_v60  ;;  %4474 = vrot.lane.b32.xlu0 %v12157_v2, %s8721_s22  ;;  %v12226_v60 = vld [vmem:[%s9976_s14 + $0x6b] sm:$0xff] }
 0x514   : > { %4476 = vrot.lane.b32.xlu1 %v12154_v19, %s8721_s22 }
 0x515   : > { %v12183_v63 = vpop.permute.xlu0 %4298 }
 0x516   : > { %v12181_v18 = vpop.permute.xlu1 %4300  ;;  %16620 = vst [vmem:[#allocation286_spill] sm:$0xff] %v12183_v63 }
 0x517   : > { %16619 = vst [vmem:[#allocation285_spill] sm:$0xff] %v12181_v18  ;;  %4478 = vrot.lane.b32.xlu0 %v12179_v32, %s8721_s22 }
 0x518   : > { %4480 = vrot.lane.b32.xlu1 %v12176_v51, %s8721_s22 }
 0x519   : > { %v12197_v23 = vpop.permute.xlu0 %4302 }
 0x51a   : > { %v12195_v41 = vpop.permute.xlu1 %4304  ;;  %16622 = vst [vmem:[#allocation288_spill] sm:$0xff] %v12197_v23 }
 0x51b   : > { %16621 = vst [vmem:[#allocation287_spill] sm:$0xff] %v12195_v41  ;;  %4482 = vrot.lane.b32.xlu0 %v12193_v20, %s8721_s22 }
 0x51c   : > { %4484 = vrot.lane.b32.xlu1 %v12190_v34, %s8721_s22 }
 0x51d   : > { %v12207_v39 = vpop.permute.xlu0 %4306 }
 0x51e   : > { %v12205_v46 = vpop.permute.xlu1 %4308  ;;  %16624 = vst [vmem:[#allocation290_spill] sm:$0xff] %v12207_v39 }
 0x51f   : > { %16623 = vst [vmem:[#allocation289_spill] sm:$0xff] %v12205_v46  ;;  %4550 = vrot.lane.b32.xlu0 %v7960_v59, %s8722_s30  ;;  %v12240_v59 = vld [vmem:[%s9976_s14 + $0x83] sm:$0xff] }
 0x520   : > { %4552 = vrot.lane.b32.xlu1 %v7961_v36, %s8722_s30 }
 0x521   : > { %v12219_v5 = vpop.permute.xlu0 %4310 }
 0x522   : > { %v12217_v35 = vpop.permute.xlu1 %4312  ;;  %16626 = vst [vmem:[#allocation292_spill] sm:$0xff] %v12219_v5  ;;  %v12243_v5 = vld [vmem:[%s9976_s14 + $0x7b] sm:$0xff] }
 0x523   : > { %16625 = vst [vmem:[#allocation291_spill] sm:$0xff] %v12217_v35  ;;  %4554 = vrot.lane.b32.xlu0 %v12215_v24, %s8722_s30 }
 0x524   : > { %4556 = vrot.lane.b32.xlu1 %v12212_v3, %s8722_s30 }
 0x525   : > { %v12233_v36 = vpop.permute.xlu0 %4314 }
 0x526   : > { %v12231_v56 = vpop.permute.xlu1 %4316  ;;  %16628 = vst [vmem:[#allocation294_spill] sm:$0xff] %v12233_v36  ;;  %v12254_v36 = vld [vmem:[%s9976_s14 + $0x9b] sm:$0xff] }
 0x527   : > { %16627 = vst [vmem:[#allocation293_spill] sm:$0xff] %v12231_v56  ;;  %4558 = vrot.lane.b32.xlu0 %v12229_v52, %s8722_s30  ;;  %v12257_v56 = vld [vmem:[%s9976_s14 + $0x93] sm:$0xff] }
 0x528   : > { %4560 = vrot.lane.b32.xlu1 %v12226_v60, %s8722_s30  ;;  %16631 = vst [vmem:[#allocation297_spill] sm:$0xff] %v12257_v56 }
 0x529   : > { %v12247_v39 = vpop.permute.xlu0 %4318 }
 0x52a   : > { %v12245_v35 = vpop.permute.xlu1 %4320  ;;  %16630 = vst [vmem:[#allocation296_spill] sm:$0xff] %v12247_v39  ;;  %v12268_v39 = vld [vmem:[%s9976_s14 + $0xb3] sm:$0xff] }
 0x52b   : > { %16629 = vst [vmem:[#allocation295_spill] sm:$0xff] %v12245_v35  ;;  %4562 = vrot.lane.b32.xlu0 %v12243_v5, %s8722_s30  ;;  %16634 = vst [vmem:[#allocation300_spill] sm:$0xff] %v12268_v39  ;;  %v12271_v35 = vld [vmem:[%s9976_s14 + $0xab] sm:$0xff] }
 0x52c   : > { %4564 = vrot.lane.b32.xlu1 %v12240_v59, %s8722_s30  ;;  %16635 = vst [vmem:[#allocation301_spill] sm:$0xff] %v12271_v35 }
 0x52d   : > { %v12261_v23 = vpop.permute.xlu0 %4322 }
 0x52e   : > { %v12259_v46 = vpop.permute.xlu1 %4324  ;;  %16633 = vst [vmem:[#allocation299_spill] sm:$0xff] %v12261_v23  ;;  %v12282_v23 = vld [vmem:[%s9976_s14 + $0xcb] sm:$0xff] }
 0x52f   : > { %16632 = vst [vmem:[#allocation298_spill] sm:$0xff] %v12259_v46  ;;  %4566 = vrot.lane.b32.xlu0 %v12257_v56, %s8722_s30  ;;  %16638 = vst [vmem:[#allocation304_spill] sm:$0xff] %v12282_v23  ;;  %v12285_v46 = vld [vmem:[%s9976_s14 + $0xc3] sm:$0xff] }
 0x530   : > { %4568 = vrot.lane.b32.xlu1 %v12254_v36, %s8722_s30  ;;  %16639 = vst [vmem:[#allocation305_spill] sm:$0xff] %v12285_v46 }
 0x531   : > { %v12275_v63 = vpop.permute.xlu0 %4326 }
 0x532   : > { %v12273_v41 = vpop.permute.xlu1 %4328  ;;  %16637 = vst [vmem:[#allocation303_spill] sm:$0xff] %v12275_v63  ;;  %v12296_v63 = vld [vmem:[%s9976_s14 + $0xe3] sm:$0xff] }
 0x533   : > { %16636 = vst [vmem:[#allocation302_spill] sm:$0xff] %v12273_v41  ;;  %4570 = vrot.lane.b32.xlu0 %v12271_v35, %s8722_s30  ;;  %16642 = vst [vmem:[#allocation308_spill] sm:$0xff] %v12296_v63  ;;  %v12299_v41 = vld [vmem:[%s9976_s14 + $0xdb] sm:$0xff] }
 0x534   : > { %4572 = vrot.lane.b32.xlu1 %v12268_v39, %s8722_s30  ;;  %16643 = vst [vmem:[#allocation309_spill] sm:$0xff] %v12299_v41 }
 0x535   : > { %v12289_v56 = vpop.permute.xlu0 %4330 }
 0x536   : > { %v12287_v18 = vpop.permute.xlu1 %4332  ;;  %16641 = vst [vmem:[#allocation307_spill] sm:$0xff] %v12289_v56  ;;  %v8656_v56 = vld [vmem:[%s9976_s14 + $0x140] sm:$0xff] }
 0x537   : > { %16640 = vst [vmem:[#allocation306_spill] sm:$0xff] %v12287_v18  ;;  %4574 = vrot.lane.b32.xlu0 %v12285_v46, %s8722_s30  ;;  %v4929_v18 = vsel %vm1585_vm1, %v8656_v56, %v10871_v8  ;;  %v12313_v46 = vld [vmem:[%s9976_s14 + $0xfb] sm:$0xff] }
 0x538   : > { %4576 = vrot.lane.b32.xlu1 %v12282_v23, %s8722_s30  ;;  %16646 = vst [vmem:[#allocation312_spill] sm:$0xff] %v12313_v46  ;;  %v12316_v23 = vld [vmem:[%s9976_s14 + $0xf3] sm:$0xff] }
 0x539   : > { %v12303_v39 = vpop.permute.xlu0 %4334  ;;  %16647 = vst [vmem:[#allocation313_spill] sm:$0xff] %v12316_v23  ;;  %v8657_v56 = vld [vmem:[%s9976_s14 + $0x158] sm:$0xff] }
 0x53a   : > { %v12301_v35 = vpop.permute.xlu1 %4336  ;;  %16645 = vst [vmem:[#allocation311_spill] sm:$0xff] %v12303_v39  ;;  %v4961_v39 = vsel %vm1618_vm2, %v4929_v18, %v10999_v6  ;;  %v4931_v6 = vsel %vm1585_vm1, %v8657_v56, %v10879_v10  ;;  %v8658_v18 = vld [vmem:[%s9976_s14 + $0x150] sm:$0xff] }
 0x53b   : > { %16644 = vst [vmem:[#allocation310_spill] sm:$0xff] %v12301_v35  ;;  %4578 = vrot.lane.b32.xlu0 %v12299_v41, %s8722_s30  ;;  %v4993_v41 = vsel %vm1651_vm3, %v4961_v39, %v11125_v11  ;;  %v12341_v39 = vld [vmem:[%s9976_s14 + $0x113] sm:$0xff]  ;;  %v4963_v10 = vsel %vm1618_vm2, %v4931_v6, %v11007_v22 }
 0x53c   : > { %4580 = vrot.lane.b32.xlu1 %v12296_v63, %s8722_s30  ;;  %v5025_v8 = vsel %vm1684_vm4, %v4993_v41, %v11255_v29  ;;  %v12344_v29 = vld [vmem:[%s9976_s14 + $0x10b] sm:$0xff]  ;;  %v4995_v56 = vsel %vm1651_vm3, %v4963_v10, %v11133_v17  ;;  %v12430_v10 = vld [vmem:[%s9976_s14 + $0x143] sm:$0xff] }
 0x53d   : > { %v12324_v63 = vpop.permute.xlu0 %4338  ;;  %v5057_v11 = vsel %vm1717_vm5, %v5025_v8, %v11383_v15  ;;  %v8659_v41 = vld [vmem:[%s9976_s14 + $0x170] sm:$0xff] }
 0x53e   : > { %v12320_v35 = vpop.permute.xlu1 %4340  ;;  %16649 = vst [vmem:[#allocation315_spill] sm:$0xff] %v12324_v63  ;;  %v4933_v63 = vsel %vm1585_vm1, %v8659_v41, %v10887_v30  ;;  %v16655_v41 = vld [vmem:[#allocation236_spill] sm:$0xff] }
 0x53f   : > { %16648 = vst [vmem:[#allocation314_spill] sm:$0xff] %v12320_v35  ;;  %4582 = vrot.lane.b32.xlu0 %v12316_v23, %s8722_s30  ;;  %v4930_v35 = vsel %vm1585_vm1, %v8658_v18, %v10881_v40  ;;  %v8660_v23 = vld [vmem:[%s9976_s14 + $0x168] sm:$0xff]  ;;  %v5089_v40 = vsel %vm1750_vm6, %v5057_v11, %v11511_v31  ;;  %v4965_v30 = vsel %vm1618_vm2, %v4933_v63, %v11015_v1  ;;  %v16654_v11 = vld [vmem:[#allocation208_spill] sm:$0xff] }
 0x540   : > { %4584 = vrot.lane.b32.xlu1 %v12313_v46, %s8722_s30  ;;  %v4932_v46 = vsel %vm1585_vm1, %v8660_v23, %v10889_v25  ;;  %v4962_v8 = vsel %vm1618_vm2, %v4930_v35, %v11009_v0  ;;  %v5121_v25 = vsel %vm15903_vm7, %v5089_v40, %v11639_v13  ;;  %v5027_v23 = vsel %vm1684_vm4, %v4995_v56, %v11263_v42  ;;  %v12387_v13 = vld [vmem:[%s9976_s14 + $0x12b] sm:$0xff] }
 0x541   : > { %v12366_v22 = vpop.permute.xlu0 %4342  ;;  %v4994_v31 = vsel %vm1651_vm3, %v4962_v8, %v11137_v53  ;;  %v5153_v0 = vsel %vm1816_vm8, %v5121_v25, %v11767_v47  ;;  %v4964_v1 = vsel %vm1618_vm2, %v4932_v46, %v11017_v12  ;;  %v5059_v53 = vsel %vm1717_vm5, %v5027_v23, %v11391_v9  ;;  %v12390_v47 = vld [vmem:[%s9976_s14 + $0x123] sm:$0xff] }
 0x542   : > { %v12356_v15 = vpop.permute.xlu1 %4344  ;;  %16651 = vst [vmem:[#allocation317_spill] sm:$0xff] %v12366_v22  ;;  %v5026_v17 = vsel %vm1684_vm4, %v4994_v31, %v11265_v38  ;;  %v5185_v42 = vsel %vm1852_vm9, %v5153_v0, %v11895_v55  ;;  %v4997_v63 = vsel %vm1651_vm3, %v4965_v30, %v11141_v61  ;;  %v5091_v12 = vsel %vm1750_vm6, %v5059_v53, %v11519_v16  ;;  %v16656_v40 = vld [vmem:[#allocation127_spill] sm:$0xff]  ;;  %v16659_v0 = vld [vmem:[#allocation90_spill] sm:$0xff] }
 0x543   : > { %16650 = vst [vmem:[#allocation316_spill] sm:$0xff] %v12356_v15  ;;  %4586 = vrot.lane.b32.xlu0 %v12344_v29, %s8722_s30  ;;  %v5058_v35 = vsel %vm1717_vm5, %v5026_v17, %v11393_v28  ;;  %v5218_v38 = vsel %vm5190_vm10, %v5185_v42, %v12082_v57  ;;  %v4996_v55 = vsel %vm1651_vm3, %v4964_v1, %v11145_v50  ;;  %v16657_v30 = vld [vmem:[#allocation131_spill] sm:$0xff] }
 0x544   : > { %4588 = vrot.lane.b32.xlu1 %v12341_v39, %s8722_s30  ;;  %v5090_v46 = vsel %vm1750_vm6, %v5058_v35, %v11521_v37  ;;  %v5123_v61 = vsel %vm15903_vm7, %v5091_v12, %v11647_v48  ;;  %v5029_v16 = vsel %vm1684_vm4, %v4997_v63, %v11271_v43  ;;  %v5028_v37 = vsel %vm1684_vm4, %v4996_v55, %v11273_v4  ;;  %v16653_v48 = vld [vmem:[#allocation126_spill] sm:$0xff]  ;;  %v16658_v4 = vld [vmem:[#allocation237_spill] sm:$0xff]  ;;  %v16660_v17 = vld [vmem:[#allocation159_spill] sm:$0xff] }
 0x545   : > { %v12409_v6 = vpop.permute.xlu0 %4346  ;;  %v5122_v57 = vsel %vm15903_vm7, %v5090_v46, %v11649_v7  ;;  %v5155_v50 = vsel %vm1816_vm8, %v5123_v61, %v11775_v33  ;;  %v5061_v18 = vsel %vm1717_vm5, %v5029_v16, %v16653_v48  ;;  %v12433_v33 = vld [vmem:[%s9976_s14 + $0x13b] sm:$0xff]  ;;  %v5060_v8 = vsel %vm1717_vm5, %v5028_v37, %v16656_v40  ;;  %v16665_v37 = vld [vmem:[#allocation239_spill] sm:$0xff] }
 0x546   : > { %v4349_v9 = vpop.permute.xlu1 %4348  ;;  %16652 = vst [vmem:[#allocation318_spill] sm:$0xff] %v12409_v6  ;;  %v5154_v43 = vsel %vm1816_vm8, %v5122_v57, %v16654_v11  ;;  %v5187_v7 = vsel %vm1852_vm9, %v5155_v50, %v16655_v41  ;;  %v5093_v56 = vsel %vm1750_vm6, %v5061_v18, %v16657_v30  ;;  %v5092_v1 = vsel %vm1750_vm6, %v5060_v8, %v16659_v0  ;;  %v16661_v12 = vld [vmem:[#allocation182_spill] sm:$0xff]  ;;  %v12471_v50 = vld [vmem:[%s9976_s14 + $0x153] sm:$0xff] }
 0x547   : > { %v12407_v28 = vsel %vm5223_vm11, %v5218_v38, %v4349_v9  ;;  %4590 = vrot.lane.b32.xlu0 %v12390_v47, %s8722_s30  ;;  %v5186_v25 = vsel %vm1852_vm9, %v5154_v43, %v16658_v4  ;;  %v5220_v31 = vsel %vm5190_vm10, %v5187_v7, %v12103_v26  ;;  %v5125_v53 = vsel %vm15903_vm7, %v5093_v56, %v16660_v17  ;;  %v16662_v9 = vld [vmem:[#allocation209_spill] sm:$0xff]  ;;  %v16664_v61 = vld [vmem:[#allocation238_spill] sm:$0xff] }
 0x548   : > { %4592 = vrot.lane.b32.xlu1 %v12387_v13, %s8722_s30  ;;  %v5219_v42 = vsel %vm5190_vm10, %v5186_v25, %v12109_v49  ;;  %v5124_v38 = vsel %vm15903_vm7, %v5092_v1, %v16661_v12  ;;  %v5157_v26 = vsel %vm1816_vm8, %v5125_v53, %v16662_v9  ;;  %v16663_v49 = vld [vmem:[#allocation210_spill] sm:$0xff]  ;;  %v12508_v25 = vld [vmem:[%s9976_s14 + $0x18b] sm:$0xff]  ;;  %v8008_v6 = vld [vmem:[%s9976_s14 + $0xf4] sm:$0xff] }
 0x549   : > { %v4351_v35 = vpop.permute.xlu0 %4350  ;;  %v5156_v46 = vsel %vm1816_vm8, %v5124_v38, %v16663_v49  ;;  %v5189_v16 = vsel %vm1852_vm9, %v5157_v26, %v16664_v61  ;;  %v12468_v57 = vld [vmem:[%s9976_s14 + $0x15b] sm:$0xff]  ;;  %v7994_v9 = vld [vmem:[%s9976_s14 + $0x4c] sm:$0xff]  ;;  %v7996_v61 = vld [vmem:[%s9976_s14 + $0x64] sm:$0xff] }
 0x54a   : > { %v4353_v23 = vpop.permute.xlu1 %4352  ;;  %v12457_v55 = vsel %vm5223_vm11, %v5219_v42, %v4351_v35  ;;  %v5188_v48 = vsel %vm1852_vm9, %v5156_v46, %v16665_v37  ;;  %v5222_v18 = vsel %vm5190_vm10, %v5189_v16, %v12133_v21  ;;  %v12490_v21 = vld [vmem:[%s9976_s14 + $0x173] sm:$0xff]  ;;  %v7990_v0 = vld [vmem:[%s9976_s14 + $0x19b] sm:$0xff] }
 0x54b   : > { %v12450_v63 = vsel %vm5223_vm11, %v5220_v31, %v4353_v23  ;;  %4594 = vrot.lane.b32.xlu0 %v12433_v33, %s8722_s30  ;;  %v5221_v43 = vsel %vm5190_vm10, %v5188_v48, %v12139_v45  ;;  %v12493_v45 = vld [vmem:[%s9976_s14 + $0x16b] sm:$0xff]  ;;  %v12511_v31 = vld [vmem:[%s9976_s14 + $0x183] sm:$0xff]  ;;  %v7992_v42 = vld [vmem:[%s9976_s14 + $0x34] sm:$0xff] }
 0x54c   : > { %4596 = vrot.lane.b32.xlu1 %v12430_v10, %s8722_s30  ;;  %v7993_v53 = vld [vmem:[%s9976_s14 + $0x3c] sm:$0xff]  ;;  %v7995_v38 = vld [vmem:[%s9976_s14 + $0x54] sm:$0xff]  ;;  %v7997_v46 = vld [vmem:[%s9976_s14 + $0x6c] sm:$0xff] }
 0x54d   : > { %v4355_v7 = vpop.permute.xlu0 %4354  ;;  %v7999_v48 = vld [vmem:[%s9976_s14 + $0x84] sm:$0xff] }
 0x54e   : > { %v4357_v11 = vpop.permute.xlu1 %4356  ;;  %v12483_v40 = vsel %vm5223_vm11, %v5221_v43, %v4355_v7  ;;  %v8001_v7 = vld [vmem:[%s9976_s14 + $0x9c] sm:$0xff] }
 0x54f   : > { %v12480_v41 = vsel %vm5223_vm11, %v5222_v18, %v4357_v11  ;;  %4598 = vrot.lane.b32.xlu0 %v12471_v50, %s8722_s30  ;;  %v7998_v18 = vld [vmem:[%s9976_s14 + $0x7c] sm:$0xff] }
 0x550   : > { %4600 = vrot.lane.b32.xlu1 %v12468_v57, %s8722_s30 }
 0x551   : > { %v4423_v56 = vpop.permute.xlu0 %4422 }
 0x552   : > { %v4425_v8 = vpop.permute.xlu1 %4424  ;;  %v12501_v4 = vsel %vm5256_vm12, %v12169_v62, %v4423_v56  ;;  %v7991_v62 = vld [vmem:[%s9976_s14 + $0x1a3] sm:$0xff] }
 0x553   : > { %v12497_v30 = vsel %vm5256_vm12, %v12166_v14, %v4425_v8  ;;  %4602 = vrot.lane.b32.xlu0 %v12493_v45, %s8722_s30  ;;  %v8000_v8 = vld [vmem:[%s9976_s14 + $0x94] sm:$0xff] }
 0x554   : > { %4604 = vrot.lane.b32.xlu1 %v12490_v21, %s8722_s30 }
 0x555   : > { %v12515_v14 = vpop.permute.xlu0 %4426 }
 0x556   : > { %v12513_v23 = vpop.permute.xlu1 %4428  ;;  %16667 = vst [vmem:[#allocation208_spill] sm:$0xff] %v12515_v14  ;;  %v8183_v14 = vld [vmem:[%s9976_s14 + $0x1bc] sm:$0xff] }
 0x557   : > { %16666 = vst [vmem:[#allocation126_spill] sm:$0xff] %v12513_v23  ;;  %4606 = vrot.lane.b32.xlu0 %v12511_v31, %s8722_s30  ;;  %v8182_v23 = vld [vmem:[%s9976_s14 + $0x1b4] sm:$0xff] }
 0x558   : > { %4608 = vrot.lane.b32.xlu1 %v12508_v25, %s8722_s30 }
 0x559   : > { %v12525_v17 = vpop.permute.xlu0 %4430 }
 0x55a   : > { %v12523_v1 = vpop.permute.xlu1 %4432  ;;  %16669 = vst [vmem:[#allocation127_spill] sm:$0xff] %v12525_v17  ;;  %v8179_v17 = vld [vmem:[%s9976_s14 + $0x18c] sm:$0xff] }
 0x55b   : > { %16668 = vst [vmem:[#allocation236_spill] sm:$0xff] %v12523_v1  ;;  %4610 = vrot.lane.b32.xlu0 %v7990_v0, %s8722_s30  ;;  %v8003_v0 = vld [vmem:[%s9976_s14 + $0xb4] sm:$0xff] }
 0x55c   : > { %4612 = vrot.lane.b32.xlu1 %v7991_v62, %s8722_s30 }
 0x55d   : > { %v12533_v12 = vpop.permute.xlu0 %4434 }
 0x55e   : > { %v12531_v35 = vpop.permute.xlu1 %4436  ;;  %16671 = vst [vmem:[#allocation237_spill] sm:$0xff] %v12533_v12  ;;  %v13236_v12 = vld [vmem:[%s9976_s14 + $0x15c] sm:$0xff] }
 0x55f   : > { %16670 = vst [vmem:[#allocation131_spill] sm:$0xff] %v12531_v35  ;;  %4678 = vrot.lane.b32.xlu0 %v7992_v42, %s8723_s5 }
 0x560   : > { %4680 = vrot.lane.b32.xlu1 %v7993_v53, %s8723_s5  ;;  %v8002_v53 = vld [vmem:[%s9976_s14 + $0xac] sm:$0xff] }
 0x561   : > { %v12541_v49 = vpop.permute.xlu0 %4438 }
 0x562   : > { %v12539_v26 = vpop.permute.xlu1 %4440  ;;  %16673 = vst [vmem:[#allocation159_spill] sm:$0xff] %v12541_v49  ;;  %v16730_v49 = vld [vmem:[#allocation254_spill] sm:$0xff] }
 0x563   : > { %16672 = vst [vmem:[#allocation90_spill] sm:$0xff] %v12539_v26  ;;  %4682 = vrot.lane.b32.xlu0 %v7994_v9, %s8723_s5  ;;  %v8005_v9 = vld [vmem:[%s9976_s14 + $0xcc] sm:$0xff] }
 0x564   : > { %4684 = vrot.lane.b32.xlu1 %v7995_v38, %s8723_s5 }
 0x565   : > { %v12549_v37 = vpop.permute.xlu0 %4442 }
 0x566   : > { %v12547_v16 = vpop.permute.xlu1 %4444  ;;  %16675 = vst [vmem:[#allocation209_spill] sm:$0xff] %v12549_v37 }
 0x567   : > { %16674 = vst [vmem:[#allocation182_spill] sm:$0xff] %v12547_v16  ;;  %4686 = vrot.lane.b32.xlu0 %v7996_v61, %s8723_s5 }
 0x568   : > { %4688 = vrot.lane.b32.xlu1 %v7997_v46, %s8723_s5  ;;  %v8004_v46 = vld [vmem:[%s9976_s14 + $0xc4] sm:$0xff] }
 0x569   : > { %v12557_v43 = vpop.permute.xlu0 %4446 }
 0x56a   : > { %v12555_v11 = vpop.permute.xlu1 %4448  ;;  %16677 = vst [vmem:[#allocation238_spill] sm:$0xff] %v12557_v43 }
 0x56b   : > { %16676 = vst [vmem:[#allocation210_spill] sm:$0xff] %v12555_v11  ;;  %4690 = vrot.lane.b32.xlu0 %v7998_v18, %s8723_s5  ;;  %v8007_v18 = vld [vmem:[%s9976_s14 + $0xe4] sm:$0xff] }
 0x56c   : > { %4692 = vrot.lane.b32.xlu1 %v7999_v48, %s8723_s5  ;;  %v8032_v11 = vld [vmem:[%s9976_s14 + $0xa8] sm:$0xff] }
 0x56d   : > { %v12565_v62 = vpop.permute.xlu0 %4450 }
 0x56e   : > { %v12563_v56 = vpop.permute.xlu1 %4452  ;;  %16679 = vst [vmem:[#allocation319_spill] sm:$0xff] %v12565_v62 }
 0x56f   : > { %16678 = vst [vmem:[#allocation239_spill] sm:$0xff] %v12563_v56  ;;  %4694 = vrot.lane.b32.xlu0 %v8000_v8, %s8723_s5  ;;  %v8030_v56 = vld [vmem:[%s9976_s14 + $0x90] sm:$0xff] }
 0x570   : > { %4696 = vrot.lane.b32.xlu1 %v8001_v7, %s8723_s5  ;;  %v8006_v7 = vld [vmem:[%s9976_s14 + $0xdc] sm:$0xff] }
 0x571   : > { %v12573_v38 = vpop.permute.xlu0 %4454 }
 0x572   : > { %v12571_v42 = vpop.permute.xlu1 %4456  ;;  %16681 = vst [vmem:[#allocation321_spill] sm:$0xff] %v12573_v38 }
 0x573   : > { %16680 = vst [vmem:[#allocation320_spill] sm:$0xff] %v12571_v42  ;;  %4698 = vrot.lane.b32.xlu0 %v8002_v53, %s8723_s5  ;;  %v8009_v53 = vld [vmem:[%s9976_s14 + $0xfc] sm:$0xff] }
 0x574   : > { %4700 = vrot.lane.b32.xlu1 %v8003_v0, %s8723_s5  ;;  %v8028_v42 = vld [vmem:[%s9976_s14 + $0x78] sm:$0xff] }
 0x575   : > { %v12581_v48 = vpop.permute.xlu0 %4458 }
 0x576   : > { %v12579_v61 = vpop.permute.xlu1 %4460  ;;  %16683 = vst [vmem:[#allocation323_spill] sm:$0xff] %v12581_v48 }
 0x577   : > { %16682 = vst [vmem:[#allocation322_spill] sm:$0xff] %v12579_v61  ;;  %4702 = vrot.lane.b32.xlu0 %v8004_v46, %s8723_s5  ;;  %v8010_v46 = vld [vmem:[%s9976_s14 + $0x10c] sm:$0xff]  ;;  %v8026_v61 = vld [vmem:[%s9976_s14 + $0x60] sm:$0xff] }
 0x578   : > { %4704 = vrot.lane.b32.xlu1 %v8005_v9, %s8723_s5  ;;  %v8011_v9 = vld [vmem:[%s9976_s14 + $0x114] sm:$0xff] }
 0x579   : > { %v12589_v0 = vpop.permute.xlu0 %4462 }
 0x57a   : > { %v12587_v8 = vpop.permute.xlu1 %4464  ;;  %16685 = vst [vmem:[#allocation325_spill] sm:$0xff] %v12589_v0 }
 0x57b   : > { %16684 = vst [vmem:[#allocation324_spill] sm:$0xff] %v12587_v8  ;;  %4706 = vrot.lane.b32.xlu0 %v8006_v7, %s8723_s5  ;;  %v8012_v7 = vld [vmem:[%s9976_s14 + $0x124] sm:$0xff] }
 0x57c   : > { %4708 = vrot.lane.b32.xlu1 %v8007_v18, %s8723_s5  ;;  %v8013_v18 = vld [vmem:[%s9976_s14 + $0x12c] sm:$0xff] }
 0x57d   : > { %v12597_v15 = vpop.permute.xlu0 %4466 }
 0x57e   : > { %v12595_v22 = vpop.permute.xlu1 %4468  ;;  %16687 = vst [vmem:[#allocation327_spill] sm:$0xff] %v12597_v15 }
 0x57f   : > { %16686 = vst [vmem:[#allocation326_spill] sm:$0xff] %v12595_v22  ;;  %4710 = vrot.lane.b32.xlu0 %v8008_v6, %s8723_s5 }
 0x580   : > { %4712 = vrot.lane.b32.xlu1 %v8009_v53, %s8723_s5 }
 0x581   : > { %v12605_v8 = vpop.permute.xlu0 %4470 }
 0x582   : > { %v12603_v0 = vpop.permute.xlu1 %4472  ;;  %16689 = vst [vmem:[#allocation329_spill] sm:$0xff] %v12605_v8  ;;  %v8015_v8 = vld [vmem:[%s9976_s14 + $0x144] sm:$0xff] }
 0x583   : > { %16688 = vst [vmem:[#allocation328_spill] sm:$0xff] %v12603_v0  ;;  %4714 = vrot.lane.b32.xlu0 %v8010_v46, %s8723_s5  ;;  %v8014_v0 = vld [vmem:[%s9976_s14 + $0x13c] sm:$0xff] }
 0x584   : > { %4716 = vrot.lane.b32.xlu1 %v8011_v9, %s8723_s5 }
 0x585   : > { %v12615_v6 = vpop.permute.xlu0 %4474 }
 0x586   : > { %v4477_v15 = vpop.permute.xlu1 %4476  ;;  %16690 = vst [vmem:[#allocation330_spill] sm:$0xff] %v12615_v6 }
 0x587   : > { %v12613_v53 = vsel %vm5256_vm12, %v12407_v28, %v4477_v15  ;;  %4718 = vrot.lane.b32.xlu0 %v8012_v7, %s8723_s5  ;;  %v8017_v28 = vld [vmem:[%s9976_s14 + $0x15c] sm:$0xff] }
 0x588   : > { %4720 = vrot.lane.b32.xlu1 %v8013_v18, %s8723_s5  ;;  %v8016_v18 = vld [vmem:[%s9976_s14 + $0x154] sm:$0xff] }
 0x589   : > { %v4479_v22 = vpop.permute.xlu0 %4478 }
 0x58a   : > { %v4481_v9 = vpop.permute.xlu1 %4480  ;;  %v12627_v15 = vsel %vm5256_vm12, %v12457_v55, %v4479_v22  ;;  %v8019_v22 = vld [vmem:[%s9976_s14 + $0x174] sm:$0xff]  ;;  %v8018_v55 = vld [vmem:[%s9976_s14 + $0x16c] sm:$0xff] }
 0x58b   : > { %v12623_v46 = vsel %vm5256_vm12, %v12450_v63, %v4481_v9  ;;  %4722 = vrot.lane.b32.xlu0 %v8014_v0, %s8723_s5 }
 0x58c   : > { %4724 = vrot.lane.b32.xlu1 %v8015_v8, %s8723_s5 }
 0x58d   : > { %v4483_v63 = vpop.permute.xlu0 %4482 }
 0x58e   : > { %v4485_v7 = vpop.permute.xlu1 %4484  ;;  %v12639_v9 = vsel %vm5256_vm12, %v12483_v40, %v4483_v63 }
 0x58f   : > { %v12635_v6 = vsel %vm5256_vm12, %v12480_v41, %v4485_v7  ;;  %4726 = vrot.lane.b32.xlu0 %v8016_v18, %s8723_s5  ;;  %v8020_v18 = vld [vmem:[%s9976_s14 + $0x184] sm:$0xff] }
 0x590   : > { %4728 = vrot.lane.b32.xlu1 %v8017_v28, %s8723_s5  ;;  %v8021_v28 = vld [vmem:[%s9976_s14 + $0x18c] sm:$0xff] }
 0x591   : > { %v4551_v41 = vpop.permute.xlu0 %4550 }
 0x592   : > { %v4553_v8 = vpop.permute.xlu1 %4552  ;;  %v12651_v40 = vsel %vm5289_vm13, %v12501_v4, %v4551_v41  ;;  %v8022_v4 = vld [vmem:[%s9976_s14 + $0x19c] sm:$0xff] }
 0x593   : > { %v12647_v0 = vsel %vm5289_vm13, %v12497_v30, %v4553_v8  ;;  %4730 = vrot.lane.b32.xlu0 %v8018_v55, %s8723_s5  ;;  %v8023_v30 = vld [vmem:[%s9976_s14 + $0x1a4] sm:$0xff] }
 0x594   : > { %4732 = vrot.lane.b32.xlu1 %v8019_v22, %s8723_s5  ;;  %v8025_v22 = vld [vmem:[%s9976_s14 + $0x50] sm:$0xff]  ;;  %v8024_v55 = vld [vmem:[%s9976_s14 + $0x48] sm:$0xff] }
 0x595   : > { %v12659_v63 = vpop.permute.xlu0 %4554 }
 0x596   : > { %v12657_v7 = vpop.permute.xlu1 %4556  ;;  %16692 = vst [vmem:[#allocation332_spill] sm:$0xff] %v12659_v63 }
 0x597   : > { %16691 = vst [vmem:[#allocation331_spill] sm:$0xff] %v12657_v7  ;;  %4734 = vrot.lane.b32.xlu0 %v8020_v18, %s8723_s5  ;;  %v8027_v18 = vld [vmem:[%s9976_s14 + $0x68] sm:$0xff] }
 0x598   : > { %4736 = vrot.lane.b32.xlu1 %v8021_v28, %s8723_s5 }
 0x599   : > { %v12667_v41 = vpop.permute.xlu0 %4558 }
 0x59a   : > { %v12665_v8 = vpop.permute.xlu1 %4560  ;;  %16694 = vst [vmem:[#allocation334_spill] sm:$0xff] %v12667_v41 }
 0x59b   : > { %16693 = vst [vmem:[#allocation333_spill] sm:$0xff] %v12665_v8  ;;  %4738 = vrot.lane.b32.xlu0 %v8022_v4, %s8723_s5  ;;  %v8029_v4 = vld [vmem:[%s9976_s14 + $0x80] sm:$0xff] }
 0x59c   : > { %4740 = vrot.lane.b32.xlu1 %v8023_v30, %s8723_s5 }
 0x59d   : > { %v12675_v28 = vpop.permute.xlu0 %4562 }
 0x59e   : > { %v12673_v48 = vpop.permute.xlu1 %4564  ;;  %16696 = vst [vmem:[#allocation336_spill] sm:$0xff] %v12675_v28 }
 0x59f   : > { %16695 = vst [vmem:[#allocation335_spill] sm:$0xff] %v12673_v48  ;;  %4806 = vrot.lane.b32.xlu0 %v8024_v55, %s8724_s6  ;;  %v8031_v55 = vld [vmem:[%s9976_s14 + $0x98] sm:$0xff] }
 0x5a0   : > { %4808 = vrot.lane.b32.xlu1 %v8025_v22, %s8724_s6 }
 0x5a1   : > { %v12683_v30 = vpop.permute.xlu0 %4566 }
 0x5a2   : > { %v12681_v38 = vpop.permute.xlu1 %4568  ;;  %16698 = vst [vmem:[#allocation338_spill] sm:$0xff] %v12683_v30  ;;  %v16726_v30 = vld [vmem:[#allocation250_spill] sm:$0xff] }
 0x5a3   : > { %16697 = vst [vmem:[#allocation337_spill] sm:$0xff] %v12681_v38  ;;  %4810 = vrot.lane.b32.xlu0 %v8026_v61, %s8724_s6  ;;  %v8033_v61 = vld [vmem:[%s9976_s14 + $0xb0] sm:$0xff] }
 0x5a4   : > { %4812 = vrot.lane.b32.xlu1 %v8027_v18, %s8724_s6 }
 0x5a5   : > { %v12691_v22 = vpop.permute.xlu0 %4570 }
 0x5a6   : > { %v12689_v62 = vpop.permute.xlu1 %4572  ;;  %16700 = vst [vmem:[#allocation340_spill] sm:$0xff] %v12691_v22 }
 0x5a7   : > { %16699 = vst [vmem:[#allocation339_spill] sm:$0xff] %v12689_v62  ;;  %4814 = vrot.lane.b32.xlu0 %v8028_v42, %s8724_s6  ;;  %v8035_v42 = vld [vmem:[%s9976_s14 + $0xc8] sm:$0xff] }
 0x5a8   : > { %4816 = vrot.lane.b32.xlu1 %v8029_v4, %s8724_s6 }
 0x5a9   : > { %v12699_v18 = vpop.permute.xlu0 %4574 }
 0x5aa   : > { %v12697_v43 = vpop.permute.xlu1 %4576  ;;  %16702 = vst [vmem:[#allocation342_spill] sm:$0xff] %v12699_v18 }
 0x5ab   : > { %16701 = vst [vmem:[#allocation341_spill] sm:$0xff] %v12697_v43  ;;  %4818 = vrot.lane.b32.xlu0 %v8030_v56, %s8724_s6  ;;  %v8034_v43 = vld [vmem:[%s9976_s14 + $0xc0] sm:$0xff] }
 0x5ac   : > { %4820 = vrot.lane.b32.xlu1 %v8031_v55, %s8724_s6  ;;  %v8037_v56 = vld [vmem:[%s9976_s14 + $0xe0] sm:$0xff] }
 0x5ad   : > { %v12707_v4 = vpop.permute.xlu0 %4578 }
 0x5ae   : > { %v12705_v22 = vpop.permute.xlu1 %4580  ;;  %16704 = vst [vmem:[#allocation344_spill] sm:$0xff] %v12707_v4 }
 0x5af   : > { %16703 = vst [vmem:[#allocation343_spill] sm:$0xff] %v12705_v22  ;;  %4822 = vrot.lane.b32.xlu0 %v8032_v11, %s8724_s6  ;;  %v8036_v22 = vld [vmem:[%s9976_s14 + $0xd8] sm:$0xff] }
 0x5b0   : > { %4824 = vrot.lane.b32.xlu1 %v8033_v61, %s8724_s6  ;;  %v8039_v11 = vld [vmem:[%s9976_s14 + $0xf8] sm:$0xff] }
 0x5b1   : > { %v12715_v55 = vpop.permute.xlu0 %4582 }
 0x5b2   : > { %v12713_v18 = vpop.permute.xlu1 %4584  ;;  %16706 = vst [vmem:[#allocation346_spill] sm:$0xff] %v12715_v55 }
 0x5b3   : > { %16705 = vst [vmem:[#allocation345_spill] sm:$0xff] %v12713_v18  ;;  %4826 = vrot.lane.b32.xlu0 %v8034_v43, %s8724_s6  ;;  %v8038_v18 = vld [vmem:[%s9976_s14 + $0xf0] sm:$0xff] }
 0x5b4   : > { %4828 = vrot.lane.b32.xlu1 %v8035_v42, %s8724_s6  ;;  %v8041_v43 = vld [vmem:[%s9976_s14 + $0x110] sm:$0xff] }
 0x5b5   : > { %v12723_v61 = vpop.permute.xlu0 %4586 }
 0x5b6   : > { %v12721_v4 = vpop.permute.xlu1 %4588  ;;  %16708 = vst [vmem:[#allocation348_spill] sm:$0xff] %v12723_v61 }
 0x5b7   : > { %16707 = vst [vmem:[#allocation347_spill] sm:$0xff] %v12721_v4  ;;  %4830 = vrot.lane.b32.xlu0 %v8036_v22, %s8724_s6  ;;  %v8040_v4 = vld [vmem:[%s9976_s14 + $0x108] sm:$0xff] }
 0x5b8   : > { %4832 = vrot.lane.b32.xlu1 %v8037_v56, %s8724_s6  ;;  %v8043_v22 = vld [vmem:[%s9976_s14 + $0x128] sm:$0xff]  ;;  %v8042_v56 = vld [vmem:[%s9976_s14 + $0x120] sm:$0xff] }
 0x5b9   : > { %v12731_v42 = vpop.permute.xlu0 %4590 }
 0x5ba   : > { %v12729_v55 = vpop.permute.xlu1 %4592  ;;  %16710 = vst [vmem:[#allocation350_spill] sm:$0xff] %v12731_v42 }
 0x5bb   : > { %16709 = vst [vmem:[#allocation349_spill] sm:$0xff] %v12729_v55  ;;  %4834 = vrot.lane.b32.xlu0 %v8038_v18, %s8724_s6  ;;  %v8045_v18 = vld [vmem:[%s9976_s14 + $0x140] sm:$0xff] }
 0x5bc   : > { %4836 = vrot.lane.b32.xlu1 %v8039_v11, %s8724_s6  ;;  %v8044_v11 = vld [vmem:[%s9976_s14 + $0x138] sm:$0xff] }
 0x5bd   : > { %v12739_v62 = vpop.permute.xlu0 %4594 }
 0x5be   : > { %v12737_v61 = vpop.permute.xlu1 %4596  ;;  %16712 = vst [vmem:[#allocation352_spill] sm:$0xff] %v12739_v62 }
 0x5bf   : > { %16711 = vst [vmem:[#allocation351_spill] sm:$0xff] %v12737_v61  ;;  %4838 = vrot.lane.b32.xlu0 %v8040_v4, %s8724_s6 }
 0x5c0   : > { %4840 = vrot.lane.b32.xlu1 %v8041_v43, %s8724_s6 }
 0x5c1   : > { %v12747_v55 = vpop.permute.xlu0 %4598 }
 0x5c2   : > { %v12745_v42 = vpop.permute.xlu1 %4600  ;;  %16714 = vst [vmem:[#allocation354_spill] sm:$0xff] %v12747_v55  ;;  %v8047_v55 = vld [vmem:[%s9976_s14 + $0x158] sm:$0xff] }
 0x5c3   : > { %16713 = vst [vmem:[#allocation353_spill] sm:$0xff] %v12745_v42  ;;  %4842 = vrot.lane.b32.xlu0 %v8042_v56, %s8724_s6  ;;  %v8046_v42 = vld [vmem:[%s9976_s14 + $0x150] sm:$0xff] }
 0x5c4   : > { %4844 = vrot.lane.b32.xlu1 %v8043_v22, %s8724_s6 }
 0x5c5   : > { %v12757_v4 = vpop.permute.xlu0 %4602 }
 0x5c6   : > { %v4605_v62 = vpop.permute.xlu1 %4604  ;;  %16715 = vst [vmem:[#allocation355_spill] sm:$0xff] %v12757_v4 }
 0x5c7   : > { %v12755_v43 = vsel %vm5289_vm13, %v12613_v53, %v4605_v62  ;;  %4846 = vrot.lane.b32.xlu0 %v8044_v11, %s8724_s6  ;;  %v8049_v53 = vld [vmem:[%s9976_s14 + $0x170] sm:$0xff] }
 0x5c8   : > { %4848 = vrot.lane.b32.xlu1 %v8045_v18, %s8724_s6  ;;  %v8048_v18 = vld [vmem:[%s9976_s14 + $0x168] sm:$0xff] }
 0x5c9   : > { %v4607_v61 = vpop.permute.xlu0 %4606 }
 0x5ca   : > { %v4609_v22 = vpop.permute.xlu1 %4608  ;;  %v12769_v62 = vsel %vm5289_vm13, %v12627_v15, %v4607_v61  ;;  %v8051_v15 = vld [vmem:[%s9976_s14 + $0x188] sm:$0xff] }
 0x5cb   : > { %v12765_v56 = vsel %vm5289_vm13, %v12623_v46, %v4609_v22  ;;  %4850 = vrot.lane.b32.xlu0 %v8046_v42, %s8724_s6 }
 0x5cc   : > { %4852 = vrot.lane.b32.xlu1 %v8047_v55, %s8724_s6  ;;  %v8050_v55 = vld [vmem:[%s9976_s14 + $0x180] sm:$0xff] }
 0x5cd   : > { %v4611_v46 = vpop.permute.xlu0 %4610 }
 0x5ce   : > { %v4613_v11 = vpop.permute.xlu1 %4612  ;;  %v12781_v22 = vsel %vm5289_vm13, %v12639_v9, %v4611_v46  ;;  %v8053_v9 = vld [vmem:[%s9976_s14 + $0x1a0] sm:$0xff] }
 0x5cf   : > { %v12777_v4 = vsel %vm5289_vm13, %v12635_v6, %v4613_v11  ;;  %4854 = vrot.lane.b32.xlu0 %v8048_v18, %s8724_s6 }
 0x5d0   : > { %4856 = vrot.lane.b32.xlu1 %v8049_v53, %s8724_s6  ;;  %v8052_v53 = vld [vmem:[%s9976_s14 + $0x198] sm:$0xff] }
 0x5d1   : > { %v4679_v6 = vpop.permute.xlu0 %4678 }
 0x5d2   : > { %v4681_v61 = vpop.permute.xlu1 %4680  ;;  %v12793_v11 = vsel %vm5322_vm14, %v12651_v40, %v4679_v6  ;;  %v16722_v6 = vld [vmem:[#allocation246_spill] sm:$0xff] }
 0x5d3   : > { %v12789_v42 = vsel %vm5322_vm14, %v12647_v0, %v4681_v61  ;;  %4858 = vrot.lane.b32.xlu0 %v8050_v55, %s8724_s6  ;;  %v8055_v0 = vld [vmem:[%s9976_s14 + $0x1b8] sm:$0xff]  ;;  %v8054_v61 = vld [vmem:[%s9976_s14 + $0x1b0] sm:$0xff] }
 0x5d4   : > { %4860 = vrot.lane.b32.xlu1 %v8051_v15, %s8724_s6 }
 0x5d5   : > { %v12801_v46 = vpop.permute.xlu0 %4682 }
 0x5d6   : > { %v12799_v18 = vpop.permute.xlu1 %4684  ;;  %16717 = vst [vmem:[#allocation357_spill] sm:$0xff] %v12801_v46  ;;  %v8181_v46 = vld [vmem:[%s9976_s14 + $0x1a4] sm:$0xff] }
 0x5d7   : > { %16716 = vst [vmem:[#allocation356_spill] sm:$0xff] %v12799_v18  ;;  %4862 = vrot.lane.b32.xlu0 %v8052_v53, %s8724_s6  ;;  %v8180_v18 = vld [vmem:[%s9976_s14 + $0x19c] sm:$0xff] }
 0x5d8   : > { %4864 = vrot.lane.b32.xlu1 %v8053_v9, %s8724_s6  ;;  %v16723_v9 = vld [vmem:[#allocation247_spill] sm:$0xff] }
 0x5d9   : > { %v12809_v40 = vpop.permute.xlu0 %4686 }
 0x5da   : > { %v12807_v37 = vpop.permute.xlu1 %4688  ;;  %16719 = vst [vmem:[#allocation359_spill] sm:$0xff] %v12809_v40  ;;  %v13250_v40 = vld [vmem:[%s9976_s14 + $0x174] sm:$0xff] }
 0x5db   : > { %16718 = vst [vmem:[#allocation358_spill] sm:$0xff] %v12807_v37  ;;  %4866 = vrot.lane.b32.xlu0 %v8054_v61, %s8724_s6  ;;  %v13253_v37 = vld [vmem:[%s9976_s14 + $0x16c] sm:$0xff] }
 0x5dc   : > { %4868 = vrot.lane.b32.xlu1 %v8055_v0, %s8724_s6  ;;  %v16727_v0 = vld [vmem:[#allocation251_spill] sm:$0xff] }
 0x5dd   : > { %v12815_v55 = vpop.permute.xlu0 %4690 }
 0x5de   : > { %v12813_v15 = vpop.permute.xlu1 %4692  ;;  %16721 = vst [vmem:[#allocation361_spill] sm:$0xff] %v12815_v55  ;;  %v13222_v55 = vld [vmem:[%s9976_s14 + $0x144] sm:$0xff] }
 0x5df   : > { %16720 = vst [vmem:[#allocation360_spill] sm:$0xff] %v12813_v15  ;;  %5420 = vrot.lane.b32.xlu0 %v16723_v9, %s8710_s23  ;;  %v13225_v15 = vld [vmem:[%s9976_s14 + $0x13c] sm:$0xff] }
 0x5e0   : > { %5422 = vrot.lane.b32.xlu1 %v16722_v6, %s8710_s23  ;;  %v16731_v6 = vld [vmem:[#allocation255_spill] sm:$0xff] }
 0x5e1   : > { %v12823_v16 = vpop.permute.xlu0 %4694 }
 0x5e2   : > { %v12821_v53 = vpop.permute.xlu1 %4696  ;;  %16725 = vst [vmem:[#allocation247_spill] sm:$0xff] %v12823_v16  ;;  %v16734_v16 = vld [vmem:[#allocation258_spill] sm:$0xff] }
 0x5e3   : > { %16724 = vst [vmem:[#allocation246_spill] sm:$0xff] %v12821_v53  ;;  %5424 = vrot.lane.b32.xlu0 %v16727_v0, %s8710_s23 }
 0x5e4   : > { %5426 = vrot.lane.b32.xlu1 %v16726_v30, %s8710_s23  ;;  %v16735_v30 = vld [vmem:[#allocation259_spill] sm:$0xff] }
 0x5e5   : > { %v12831_v38 = vpop.permute.xlu0 %4698 }
 0x5e6   : > { %v12829_v61 = vpop.permute.xlu1 %4700  ;;  %16729 = vst [vmem:[#allocation251_spill] sm:$0xff] %v12831_v38  ;;  %v16738_v38 = vld [vmem:[#allocation262_spill] sm:$0xff] }
 0x5e7   : > { %16728 = vst [vmem:[#allocation250_spill] sm:$0xff] %v12829_v61  ;;  %5428 = vrot.lane.b32.xlu0 %v16731_v6, %s8710_s23 }
 0x5e8   : > { %5430 = vrot.lane.b32.xlu1 %v16730_v49, %s8710_s23  ;;  %v16739_v49 = vld [vmem:[#allocation263_spill] sm:$0xff] }
 0x5e9   : > { %v12839_v53 = vpop.permute.xlu0 %4702 }
 0x5ea   : > { %v12837_v9 = vpop.permute.xlu1 %4704  ;;  %16733 = vst [vmem:[#allocation255_spill] sm:$0xff] %v12839_v53  ;;  %v16742_v53 = vld [vmem:[#allocation266_spill] sm:$0xff] }
 0x5eb   : > { %16732 = vst [vmem:[#allocation254_spill] sm:$0xff] %v12837_v9  ;;  %5432 = vrot.lane.b32.xlu0 %v16735_v30, %s8710_s23 }
 0x5ec   : > { %5434 = vrot.lane.b32.xlu1 %v16734_v16, %s8710_s23  ;;  %v16743_v16 = vld [vmem:[#allocation267_spill] sm:$0xff] }
 0x5ed   : > { %v12847_v61 = vpop.permute.xlu0 %4706 }
 0x5ee   : > { %v12845_v0 = vpop.permute.xlu1 %4708  ;;  %16737 = vst [vmem:[#allocation259_spill] sm:$0xff] %v12847_v61  ;;  %v16746_v61 = vld [vmem:[#allocation270_spill] sm:$0xff] }
 0x5ef   : > { %16736 = vst [vmem:[#allocation258_spill] sm:$0xff] %v12845_v0  ;;  %5436 = vrot.lane.b32.xlu0 %v16739_v49, %s8710_s23 }
 0x5f0   : > { %5438 = vrot.lane.b32.xlu1 %v16738_v38, %s8710_s23  ;;  %v16747_v38 = vld [vmem:[#allocation271_spill] sm:$0xff] }
 0x5f1   : > { %v12855_v9 = vpop.permute.xlu0 %4710 }
 0x5f2   : > { %v12853_v6 = vpop.permute.xlu1 %4712  ;;  %16741 = vst [vmem:[#allocation263_spill] sm:$0xff] %v12855_v9  ;;  %v16750_v9 = vld [vmem:[#allocation274_spill] sm:$0xff] }
 0x5f3   : > { %16740 = vst [vmem:[#allocation262_spill] sm:$0xff] %v12853_v6  ;;  %5440 = vrot.lane.b32.xlu0 %v16743_v16, %s8710_s23 }
 0x5f4   : > { %5442 = vrot.lane.b32.xlu1 %v16742_v53, %s8710_s23  ;;  %v16751_v53 = vld [vmem:[#allocation275_spill] sm:$0xff] }
 0x5f5   : > { %v12863_v0 = vpop.permute.xlu0 %4714 }
 0x5f6   : > { %v12861_v30 = vpop.permute.xlu1 %4716  ;;  %16745 = vst [vmem:[#allocation267_spill] sm:$0xff] %v12863_v0  ;;  %v16754_v0 = vld [vmem:[#allocation278_spill] sm:$0xff] }
 0x5f7   : > { %16744 = vst [vmem:[#allocation266_spill] sm:$0xff] %v12861_v30  ;;  %5444 = vrot.lane.b32.xlu0 %v16747_v38, %s8710_s23 }
 0x5f8   : > { %5446 = vrot.lane.b32.xlu1 %v16746_v61, %s8710_s23  ;;  %v16755_v61 = vld [vmem:[#allocation279_spill] sm:$0xff] }
 0x5f9   : > { %v12871_v6 = vpop.permute.xlu0 %4718 }
 0x5fa   : > { %v12869_v49 = vpop.permute.xlu1 %4720  ;;  %16749 = vst [vmem:[#allocation271_spill] sm:$0xff] %v12871_v6  ;;  %v16758_v6 = vld [vmem:[#allocation282_spill] sm:$0xff] }
 0x5fb   : > { %16748 = vst [vmem:[#allocation270_spill] sm:$0xff] %v12869_v49  ;;  %5448 = vrot.lane.b32.xlu0 %v16751_v53, %s8710_s23 }
 0x5fc   : > { %5450 = vrot.lane.b32.xlu1 %v16750_v9, %s8710_s23  ;;  %v16759_v9 = vld [vmem:[#allocation283_spill] sm:$0xff] }
 0x5fd   : > { %v12879_v30 = vpop.permute.xlu0 %4722 }
 0x5fe   : > { %v12877_v16 = vpop.permute.xlu1 %4724  ;;  %16753 = vst [vmem:[#allocation275_spill] sm:$0xff] %v12879_v30 }
 0x5ff   : > { %16752 = vst [vmem:[#allocation274_spill] sm:$0xff] %v12877_v16  ;;  %5452 = vrot.lane.b32.xlu0 %v16755_v61, %s8710_s23 }
 0x600   : > { %5454 = vrot.lane.b32.xlu1 %v16754_v0, %s8710_s23 }
 0x601   : > { %v12887_v49 = vpop.permute.xlu0 %4726 }
 0x602   : > { %v12885_v38 = vpop.permute.xlu1 %4728  ;;  %16757 = vst [vmem:[#allocation279_spill] sm:$0xff] %v12887_v49 }
 0x603   : > { %16756 = vst [vmem:[#allocation278_spill] sm:$0xff] %v12885_v38  ;;  %5456 = vrot.lane.b32.xlu0 %v16759_v9, %s8710_s23  ;;  %v13152_v38 = vld [vmem:[%s9976_s14 + $0xcc] sm:$0xff] }
 0x604   : > { %5458 = vrot.lane.b32.xlu1 %v16758_v6, %s8710_s23 }
 0x605   : > { %v12897_v16 = vpop.permute.xlu0 %4730 }
 0x606   : > { %v4733_v53 = vpop.permute.xlu1 %4732  ;;  %16760 = vst [vmem:[#allocation282_spill] sm:$0xff] %v12897_v16 }
 0x607   : > { %v12895_v30 = vsel %vm5322_vm14, %v12755_v43, %v4733_v53  ;;  %5460 = vrot.lane.b32.xlu0 %v12097_v54, %s8710_s23 }
 0x608   : > { %5462 = vrot.lane.b32.xlu1 %v12094_v58, %s8710_s23 }
 0x609   : > { %v4735_v61 = vpop.permute.xlu0 %4734 }
 0x60a   : > { %v4737_v0 = vpop.permute.xlu1 %4736  ;;  %v12909_v9 = vsel %vm5322_vm14, %v12769_v62, %v4735_v61 }
 0x60b   : > { %v12905_v6 = vsel %vm5322_vm14, %v12765_v56, %v4737_v0  ;;  %5464 = vrot.lane.b32.xlu0 %v12127_v27, %s8710_s23 }
 0x60c   : > { %5466 = vrot.lane.b32.xlu1 %v12124_v44, %s8710_s23 }
 0x60d   : > { %v4739_v43 = vpop.permute.xlu0 %4738 }
 0x60e   : > { %v4741_v58 = vpop.permute.xlu1 %4740  ;;  %v12921_v56 = vsel %vm5322_vm14, %v12781_v22, %v4739_v43  ;;  %v8119_v22 = vld [vmem:[%s9976_s14 + $0x1ba] sm:$0xff]  ;;  %v16778_v43 = vld [vmem:[#allocation300_spill] sm:$0xff] }
 0x60f   : > { %v12917_v54 = vsel %vm5322_vm14, %v12777_v4, %v4741_v58  ;;  %5468 = vrot.lane.b32.xlu0 %v12157_v2, %s8710_s23 }
 0x610   : > { %5470 = vrot.lane.b32.xlu1 %v12154_v19, %s8710_s23 }
 0x611   : > { %v4807_v4 = vpop.permute.xlu0 %4806 }
 0x612   : > { %v4809_v44 = vpop.permute.xlu1 %4808  ;;  %v12933_v62 = vsel %vm5355_vm15, %v12793_v11, %v4807_v4  ;;  %v16782_v4 = vld [vmem:[#allocation304_spill] sm:$0xff] }
 0x613   : > { %v12929_v27 = vsel %vm5355_vm15, %v12789_v42, %v4809_v44  ;;  %16762 = vst [vmem:[#allocation362_spill] sm:$0xff] %v12933_v62  ;;  %5472 = vrot.lane.b32.xlu0 %v12179_v32, %s8710_s23  ;;  %v8118_v42 = vld [vmem:[%s9976_s14 + $0x1b2] sm:$0xff] }
 0x614   : > { %16761 = vst [vmem:[#allocation283_spill] sm:$0xff] %v12929_v27  ;;  %5474 = vrot.lane.b32.xlu1 %v12176_v51, %s8710_s23  ;;  %v16790_v62 = vld [vmem:[#allocation312_spill] sm:$0xff] }
 0x615   : > { %v12941_v2 = vpop.permute.xlu0 %4810 }
 0x616   : > { %v12939_v19 = vpop.permute.xlu1 %4812  ;;  %16764 = vst [vmem:[#allocation364_spill] sm:$0xff] %v12941_v2  ;;  %v13265_v2 = vld [vmem:[%s9976_s14 + $0x184] sm:$0xff] }
 0x617   : > { %16763 = vst [vmem:[#allocation363_spill] sm:$0xff] %v12939_v19  ;;  %5476 = vrot.lane.b32.xlu0 %v12193_v20, %s8710_s23 }
 0x618   : > { %5478 = vrot.lane.b32.xlu1 %v12190_v34, %s8710_s23 }
 0x619   : > { %v12951_v53 = vpop.permute.xlu0 %4814 }
 0x61a   : > { %v12949_v11 = vpop.permute.xlu1 %4816  ;;  %16766 = vst [vmem:[#allocation366_spill] sm:$0xff] %v12951_v53  ;;  %v13239_v53 = vld [vmem:[%s9976_s14 + $0x154] sm:$0xff] }
 0x61b   : > { %16765 = vst [vmem:[#allocation365_spill] sm:$0xff] %v12949_v11  ;;  %5480 = vrot.lane.b32.xlu0 %v8118_v42, %s8710_s23 }
 0x61c   : > { %5482 = vrot.lane.b32.xlu1 %v8119_v22, %s8710_s23 }
 0x61d   : > { %v12957_v32 = vpop.permute.xlu0 %4818 }
 0x61e   : > { %v12955_v51 = vpop.permute.xlu1 %4820  ;;  %16768 = vst [vmem:[#allocation368_spill] sm:$0xff] %v12957_v32  ;;  %v13211_v32 = vld [vmem:[%s9976_s14 + $0x124] sm:$0xff] }
 0x61f   : > { %16767 = vst [vmem:[#allocation367_spill] sm:$0xff] %v12955_v51  ;;  %5548 = vrot.lane.b32.xlu0 %v12215_v24, %s8711_s24 }
 0x620   : > { %5550 = vrot.lane.b32.xlu1 %v12212_v3, %s8711_s24 }
 0x621   : > { %v12965_v20 = vpop.permute.xlu0 %4822 }
 0x622   : > { %v12963_v34 = vpop.permute.xlu1 %4824  ;;  %16770 = vst [vmem:[#allocation370_spill] sm:$0xff] %v12965_v20 }
 0x623   : > { %16769 = vst [vmem:[#allocation369_spill] sm:$0xff] %v12963_v34  ;;  %5552 = vrot.lane.b32.xlu0 %v12229_v52, %s8711_s24  ;;  %v13208_v34 = vld [vmem:[%s9976_s14 + $0x12c] sm:$0xff] }
 0x624   : > { %5554 = vrot.lane.b32.xlu1 %v12226_v60, %s8711_s24  ;;  %v16775_v60 = vld [vmem:[#allocation297_spill] sm:$0xff] }
 0x625   : > { %v12973_v61 = vpop.permute.xlu0 %4826 }
 0x626   : > { %v12971_v0 = vpop.permute.xlu1 %4828  ;;  %16772 = vst [vmem:[#allocation372_spill] sm:$0xff] %v12973_v61  ;;  %v13197_v61 = vld [vmem:[%s9976_s14 + $0x10c] sm:$0xff] }
 0x627   : > { %16771 = vst [vmem:[#allocation371_spill] sm:$0xff] %v12971_v0  ;;  %5556 = vrot.lane.b32.xlu0 %v12243_v5, %s8711_s24 }
 0x628   : > { %5558 = vrot.lane.b32.xlu1 %v12240_v59, %s8711_s24  ;;  %v16779_v59 = vld [vmem:[#allocation301_spill] sm:$0xff] }
 0x629   : > { %v12981_v24 = vpop.permute.xlu0 %4830 }
 0x62a   : > { %v12979_v3 = vpop.permute.xlu1 %4832  ;;  %16774 = vst [vmem:[#allocation374_spill] sm:$0xff] %v12981_v24 }
 0x62b   : > { %16773 = vst [vmem:[#allocation373_spill] sm:$0xff] %v12979_v3  ;;  %5560 = vrot.lane.b32.xlu0 %v16775_v60, %s8711_s24  ;;  %v16786_v60 = vld [vmem:[#allocation308_spill] sm:$0xff] }
 0x62c   : > { %5562 = vrot.lane.b32.xlu1 %v12254_v36, %s8711_s24  ;;  %v16783_v36 = vld [vmem:[#allocation305_spill] sm:$0xff] }
 0x62d   : > { %v12989_v58 = vpop.permute.xlu0 %4834  ;;  %v13194_v3 = vld [vmem:[%s9976_s14 + $0x114] sm:$0xff] }
 0x62e   : > { %v12987_v52 = vpop.permute.xlu1 %4836  ;;  %16777 = vst [vmem:[#allocation375_spill] sm:$0xff] %v12989_v58  ;;  %v13183_v58 = vld [vmem:[%s9976_s14 + $0xf4] sm:$0xff] }
 0x62f   : > { %16776 = vst [vmem:[#allocation297_spill] sm:$0xff] %v12987_v52  ;;  %5564 = vrot.lane.b32.xlu0 %v16779_v59, %s8711_s24 }
 0x630   : > { %5566 = vrot.lane.b32.xlu1 %v16778_v43, %s8711_s24  ;;  %v16787_v43 = vld [vmem:[#allocation309_spill] sm:$0xff] }
 0x631   : > { %v12997_v44 = vpop.permute.xlu0 %4838 }
 0x632   : > { %v12995_v5 = vpop.permute.xlu1 %4840  ;;  %16781 = vst [vmem:[#allocation301_spill] sm:$0xff] %v12997_v44 }
 0x633   : > { %16780 = vst [vmem:[#allocation300_spill] sm:$0xff] %v12995_v5  ;;  %5568 = vrot.lane.b32.xlu0 %v16783_v36, %s8711_s24  ;;  %v13180_v5 = vld [vmem:[%s9976_s14 + $0xfc] sm:$0xff] }
 0x634   : > { %5570 = vrot.lane.b32.xlu1 %v16782_v4, %s8711_s24  ;;  %v16791_v4 = vld [vmem:[#allocation313_spill] sm:$0xff] }
 0x635   : > { %v13005_v42 = vpop.permute.xlu0 %4842 }
 0x636   : > { %v13003_v22 = vpop.permute.xlu1 %4844  ;;  %16785 = vst [vmem:[#allocation305_spill] sm:$0xff] %v13005_v42  ;;  %v13169_v42 = vld [vmem:[%s9976_s14 + $0xdc] sm:$0xff] }
 0x637   : > { %16784 = vst [vmem:[#allocation304_spill] sm:$0xff] %v13003_v22  ;;  %5572 = vrot.lane.b32.xlu0 %v16787_v43, %s8711_s24 }
 0x638   : > { %5574 = vrot.lane.b32.xlu1 %v16786_v60, %s8711_s24 }
 0x639   : > { %v13013_v27 = vpop.permute.xlu0 %4846 }
 0x63a   : > { %v13011_v59 = vpop.permute.xlu1 %4848  ;;  %16789 = vst [vmem:[#allocation309_spill] sm:$0xff] %v13013_v27 }
 0x63b   : > { %16788 = vst [vmem:[#allocation308_spill] sm:$0xff] %v13011_v59  ;;  %5576 = vrot.lane.b32.xlu0 %v16791_v4, %s8711_s24  ;;  %v13166_v59 = vld [vmem:[%s9976_s14 + $0xe4] sm:$0xff] }
 0x63c   : > { %5578 = vrot.lane.b32.xlu1 %v16790_v62, %s8711_s24 }
 0x63d   : > { %v13021_v16 = vpop.permute.xlu0 %4850 }
 0x63e   : > { %v13019_v36 = vpop.permute.xlu1 %4852  ;;  %16793 = vst [vmem:[#allocation313_spill] sm:$0xff] %v13021_v16  ;;  %v13155_v16 = vld [vmem:[%s9976_s14 + $0xc4] sm:$0xff] }
 0x63f   : > { %16792 = vst [vmem:[#allocation312_spill] sm:$0xff] %v13019_v36  ;;  %5580 = vrot.lane.b32.xlu0 %v12344_v29, %s8711_s24 }
 0x640   : > { %5582 = vrot.lane.b32.xlu1 %v12341_v39, %s8711_s24 }
 0x641   : > { %v13029_v43 = vpop.permute.xlu0 %4854 }
 0x642   : > { %v13027_v60 = vpop.permute.xlu1 %4856  ;;  %16795 = vst [vmem:[#allocation377_spill] sm:$0xff] %v13029_v43 }
 0x643   : > { %16794 = vst [vmem:[#allocation376_spill] sm:$0xff] %v13027_v60  ;;  %5584 = vrot.lane.b32.xlu0 %v12390_v47, %s8711_s24 }
 0x644   : > { %5586 = vrot.lane.b32.xlu1 %v12387_v13, %s8711_s24 }
 0x645   : > { %v13039_v49 = vpop.permute.xlu0 %4858 }
 0x646   : > { %v4861_v62 = vpop.permute.xlu1 %4860  ;;  %16797 = vst [vmem:[#allocation379_spill] sm:$0xff] %v13039_v49  ;;  %v13141_v49 = vld [vmem:[%s9976_s14 + $0xac] sm:$0xff] }
 0x647   : > { %v13037_v4 = vsel %vm5355_vm15, %v12895_v30, %v4861_v62  ;;  %5588 = vrot.lane.b32.xlu0 %v12433_v33, %s8711_s24  ;;  %v8150_v62 = vld [vmem:[%s9976_s14 + $0x1b3] sm:$0xff] }
 0x648   : > { %16796 = vst [vmem:[#allocation378_spill] sm:$0xff] %v13037_v4  ;;  %5590 = vrot.lane.b32.xlu1 %v12430_v10, %s8711_s24  ;;  %v13138_v4 = vld [vmem:[%s9976_s14 + $0xb4] sm:$0xff] }
 0x649   : > { %v4863_v13 = vpop.permute.xlu0 %4862 }
 0x64a   : > { %v4865_v39 = vpop.permute.xlu1 %4864  ;;  %v13051_v47 = vsel %vm5355_vm15, %v12909_v9, %v4863_v13  ;;  %v8149_v9 = vld [vmem:[%s9976_s14 + $0x1a3] sm:$0xff]  ;;  %v8152_v13 = vld [vmem:[%s9976_s14 + $0x4c] sm:$0xff] }
 0x64b   : > { %v13047_v29 = vsel %vm5355_vm15, %v12905_v6, %v4865_v39  ;;  %16799 = vst [vmem:[#allocation381_spill] sm:$0xff] %v13051_v47  ;;  %5592 = vrot.lane.b32.xlu0 %v12471_v50, %s8711_s24 }
 0x64c   : > { %16798 = vst [vmem:[#allocation380_spill] sm:$0xff] %v13047_v29  ;;  %5594 = vrot.lane.b32.xlu1 %v12468_v57, %s8711_s24 }
 0x64d   : > { %v4867_v30 = vpop.permute.xlu0 %4866 }
 0x64e   : > { %v4869_v10 = vpop.permute.xlu1 %4868  ;;  %v13063_v6 = vsel %vm5355_vm15, %v12921_v56, %v4867_v30 }
 0x64f   : > { %v13059_v33 = vsel %vm5355_vm15, %v12917_v54, %v4869_v10  ;;  %16801 = vst [vmem:[#allocation383_spill] sm:$0xff] %v13063_v6  ;;  %5596 = vrot.lane.b32.xlu0 %v12493_v45, %s8711_s24  ;;  %v8148_v54 = vld [vmem:[%s9976_s14 + $0x19b] sm:$0xff] }
 0x650   : > { %16800 = vst [vmem:[#allocation382_spill] sm:$0xff] %v13059_v33  ;;  %5598 = vrot.lane.b32.xlu1 %v12490_v21, %s8711_s24  ;;  %v8151_v45 = vld [vmem:[%s9976_s14 + $0x1bb] sm:$0xff] }
 0x651   : > { %v13071_v50 = vpop.permute.xlu0 %5420  ;;  %v13113_v6 = vld [vmem:[%s9976_s14 + $0x7c] sm:$0xff] }
 0x652   : > { %v13069_v57 = vpop.permute.xlu1 %5422  ;;  %16803 = vst [vmem:[#allocation385_spill] sm:$0xff] %v13071_v50  ;;  %v8186_v50 = vld [vmem:[%s9976_s14 + $0x78] sm:$0xff] }
 0x653   : > { %16802 = vst [vmem:[#allocation384_spill] sm:$0xff] %v13069_v57  ;;  %5600 = vrot.lane.b32.xlu0 %v12511_v31, %s8711_s24  ;;  %v8153_v31 = vld [vmem:[%s9976_s14 + $0x54] sm:$0xff]  ;;  %v8185_v57 = vld [vmem:[%s9976_s14 + $0x68] sm:$0xff] }
 0x654   : > { %5602 = vrot.lane.b32.xlu1 %v12508_v25, %s8711_s24 }
 0x655   : > { %v13081_v21 = vpop.permute.xlu0 %5424 }
 0x656   : > { %v13079_v56 = vpop.permute.xlu1 %5426 }
 0x657   : > { %5604 = vrot.lane.b32.xlu0 %v8148_v54, %s8711_s24  ;;  %v8154_v54 = vld [vmem:[%s9976_s14 + $0x64] sm:$0xff] }
 0x658   : > { %5606 = vrot.lane.b32.xlu1 %v8149_v9, %s8711_s24  ;;  %v8155_v9 = vld [vmem:[%s9976_s14 + $0x6c] sm:$0xff] }
 0x659   : > { %v13089_v25 = vpop.permute.xlu0 %5428 }
 0x65a   : > { %v13087_v39 = vpop.permute.xlu1 %5430 }
 0x65b   : > { %5608 = vrot.lane.b32.xlu0 %v8150_v62, %s8711_s24  ;;  %v13110_v62 = vld [vmem:[%s9976_s14 + $0x84] sm:$0xff] }
 0x65c   : > { %5610 = vrot.lane.b32.xlu1 %v8151_v45, %s8711_s24 }
 0x65d   : > { %v13097_v30 = vpop.permute.xlu0 %5432 }
 0x65e   : > { %v13095_v10 = vpop.permute.xlu1 %5434 }
 0x65f   : > { %5676 = vrot.lane.b32.xlu0 %v8152_v13, %s8712_s25  ;;  %v13124_v13 = vld [vmem:[%s9976_s14 + $0x9c] sm:$0xff] }
 0x660   : > { %5678 = vrot.lane.b32.xlu1 %v8153_v31, %s8712_s25 }
 0x661   : > { %v13105_v45 = vpop.permute.xlu0 %5436 }
 0x662   : > { %v13103_v33 = vpop.permute.xlu1 %5438 }
 0x663   : > { %5680 = vrot.lane.b32.xlu0 %v8154_v54, %s8712_s25 }
 0x664   : > { %5682 = vrot.lane.b32.xlu1 %v8155_v9, %s8712_s25  ;;  %v13127_v9 = vld [vmem:[%s9976_s14 + $0x94] sm:$0xff] }
 0x665   : > { %v13117_v31 = vpop.permute.xlu0 %5440 }
 0x666   : > { %v13115_v29 = vpop.permute.xlu1 %5442 }
 0x667   : > { %5684 = vrot.lane.b32.xlu0 %v13113_v6, %s8712_s25 }
 0x668   : > { %5686 = vrot.lane.b32.xlu1 %v13110_v62, %s8712_s25 }
 0x669   : > { %v13131_v47 = vpop.permute.xlu0 %5444 }
 0x66a   : > { %v13129_v54 = vpop.permute.xlu1 %5446 }
 0x66b   : > { %5688 = vrot.lane.b32.xlu0 %v13127_v9, %s8712_s25 }
 0x66c   : > { %5690 = vrot.lane.b32.xlu1 %v13124_v13, %s8712_s25 }
 0x66d   : > { %v13145_v60 = vpop.permute.xlu0 %5448 }
 0x66e   : > { %v13143_v43 = vpop.permute.xlu1 %5450 }
 0x66f   : > { %5692 = vrot.lane.b32.xlu0 %v13141_v49, %s8712_s25 }
 0x670   : > { %5694 = vrot.lane.b32.xlu1 %v13138_v4, %s8712_s25 }
 0x671   : > { %v13159_v27 = vpop.permute.xlu0 %5452 }
 0x672   : > { %v13157_v36 = vpop.permute.xlu1 %5454  ;;  %16805 = vst [vmem:[#allocation387_spill] sm:$0xff] %v13159_v27 }
 0x673   : > { %16804 = vst [vmem:[#allocation386_spill] sm:$0xff] %v13157_v36  ;;  %5696 = vrot.lane.b32.xlu0 %v13155_v16, %s8712_s25 }
 0x674   : > { %5698 = vrot.lane.b32.xlu1 %v13152_v38, %s8712_s25 }
 0x675   : > { %v13173_v44 = vpop.permute.xlu0 %5456 }
 0x676   : > { %v13171_v22 = vpop.permute.xlu1 %5458  ;;  %16807 = vst [vmem:[#allocation389_spill] sm:$0xff] %v13173_v44  ;;  %v13440_v44 = vld [vmem:[%s9976_s14 + $0xc1] sm:$0xff] }
 0x677   : > { %16806 = vst [vmem:[#allocation388_spill] sm:$0xff] %v13171_v22  ;;  %5700 = vrot.lane.b32.xlu0 %v13169_v42, %s8712_s25 }
 0x678   : > { %5702 = vrot.lane.b32.xlu1 %v13166_v59, %s8712_s25 }
 0x679   : > { %v13187_v24 = vpop.permute.xlu0 %5460 }
 0x67a   : > { %v13185_v52 = vpop.permute.xlu1 %5462  ;;  %16809 = vst [vmem:[#allocation391_spill] sm:$0xff] %v13187_v24  ;;  %v8282_v24 = vld [vmem:[%s9976_s14 + $0x7b] sm:$0xff] }
 0x67b   : > { %16808 = vst [vmem:[#allocation390_spill] sm:$0xff] %v13185_v52  ;;  %5704 = vrot.lane.b32.xlu0 %v13183_v58, %s8712_s25 }
 0x67c   : > { %5706 = vrot.lane.b32.xlu1 %v13180_v5, %s8712_s25 }
 0x67d   : > { %v13201_v20 = vpop.permute.xlu0 %5464 }
 0x67e   : > { %v13199_v0 = vpop.permute.xlu1 %5466  ;;  %16811 = vst [vmem:[#allocation393_spill] sm:$0xff] %v13201_v20  ;;  %v8250_v20 = vld [vmem:[%s9976_s14 + $0x7a] sm:$0xff] }
 0x67f   : > { %16810 = vst [vmem:[#allocation392_spill] sm:$0xff] %v13199_v0  ;;  %5708 = vrot.lane.b32.xlu0 %v13197_v61, %s8712_s25  ;;  %v8283_v0 = vld [vmem:[%s9976_s14 + $0x83] sm:$0xff] }
 0x680   : > { %5710 = vrot.lane.b32.xlu1 %v13194_v3, %s8712_s25 }
 0x681   : > { %v13215_v51 = vpop.permute.xlu0 %5468 }
 0x682   : > { %v13213_v26 = vpop.permute.xlu1 %5470  ;;  %16813 = vst [vmem:[#allocation395_spill] sm:$0xff] %v13215_v51  ;;  %v13328_v51 = vld [vmem:[%s9976_s14 + $0x79] sm:$0xff] }
 0x683   : > { %16812 = vst [vmem:[#allocation394_spill] sm:$0xff] %v13213_v26  ;;  %5712 = vrot.lane.b32.xlu0 %v13211_v32, %s8712_s25  ;;  %v13325_v26 = vld [vmem:[%s9976_s14 + $0x81] sm:$0xff] }
 0x684   : > { %5714 = vrot.lane.b32.xlu1 %v13208_v34, %s8712_s25 }
 0x685   : > { %v13229_v48 = vpop.permute.xlu0 %5472 }
 0x686   : > { %v13227_v28 = vpop.permute.xlu1 %5474  ;;  %16815 = vst [vmem:[#allocation397_spill] sm:$0xff] %v13229_v48 }
 0x687   : > { %16814 = vst [vmem:[#allocation396_spill] sm:$0xff] %v13227_v28  ;;  %5716 = vrot.lane.b32.xlu0 %v13225_v15, %s8712_s25  ;;  %v8190_v28 = vld [vmem:[%s9976_s14 + $0xa8] sm:$0xff] }
 0x688   : > { %5718 = vrot.lane.b32.xlu1 %v13222_v55, %s8712_s25 }
 0x689   : > { %v13243_v11 = vpop.permute.xlu0 %5476 }
 0x68a   : > { %v13241_v35 = vpop.permute.xlu1 %5478  ;;  %16817 = vst [vmem:[#allocation399_spill] sm:$0xff] %v13243_v11 }
 0x68b   : > { %16816 = vst [vmem:[#allocation398_spill] sm:$0xff] %v13241_v35  ;;  %5720 = vrot.lane.b32.xlu0 %v13239_v53, %s8712_s25 }
 0x68c   : > { %5722 = vrot.lane.b32.xlu1 %v13236_v12, %s8712_s25 }
 0x68d   : > { %v13257_v8 = vpop.permute.xlu0 %5480 }
 0x68e   : > { %v13255_v41 = vpop.permute.xlu1 %5482  ;;  %16819 = vst [vmem:[#allocation401_spill] sm:$0xff] %v13257_v8 }
 0x68f   : > { %16818 = vst [vmem:[#allocation400_spill] sm:$0xff] %v13255_v41  ;;  %5724 = vrot.lane.b32.xlu0 %v13253_v37, %s8712_s25  ;;  %v8184_v41 = vld [vmem:[%s9976_s14 + $0x60] sm:$0xff] }
 0x690   : > { %5726 = vrot.lane.b32.xlu1 %v13250_v40, %s8712_s25 }
 0x691   : > { %v13269_v19 = vpop.permute.xlu0 %5548 }
 0x692   : > { %v13267_v1 = vpop.permute.xlu1 %5550  ;;  %16821 = vst [vmem:[#allocation403_spill] sm:$0xff] %v13269_v19 }
 0x693   : > { %16820 = vst [vmem:[#allocation402_spill] sm:$0xff] %v13267_v1  ;;  %5728 = vrot.lane.b32.xlu0 %v13265_v2, %s8712_s25 }
 0x694   : > { %5730 = vrot.lane.b32.xlu1 %v8179_v17, %s8712_s25 }
 0x695   : > { %v13278_v7 = vpop.permute.xlu0 %5552 }
 0x696   : > { %v13276_v63 = vpop.permute.xlu1 %5554 }
 0x697   : > { %5732 = vrot.lane.b32.xlu0 %v8180_v18, %s8712_s25  ;;  %v8187_v18 = vld [vmem:[%s9976_s14 + $0x80] sm:$0xff] }
 0x698   : > { %5734 = vrot.lane.b32.xlu1 %v8181_v46, %s8712_s25 }
 0x699   : > { %v13286_v17 = vpop.permute.xlu0 %5556 }
 0x69a   : > { %v13284_v1 = vpop.permute.xlu1 %5558 }
 0x69b   : > { %5736 = vrot.lane.b32.xlu0 %v8182_v23, %s8712_s25  ;;  %v8189_v23 = vld [vmem:[%s9976_s14 + $0x98] sm:$0xff] }
 0x69c   : > { %5738 = vrot.lane.b32.xlu1 %v8183_v14, %s8712_s25  ;;  %v8188_v14 = vld [vmem:[%s9976_s14 + $0x90] sm:$0xff] }
 0x69d   : > { %v13294_v46 = vpop.permute.xlu0 %5560 }
 0x69e   : > { %v13292_v19 = vpop.permute.xlu1 %5562  ;;  %16823 = vst [vmem:[#allocation405_spill] sm:$0xff] %v13294_v46  ;;  %v8264_v46 = vld [vmem:[%s9976_s14 + $0x122] sm:$0xff] }
 0x69f   : > { %16822 = vst [vmem:[#allocation404_spill] sm:$0xff] %v13292_v19  ;;  %5804 = vrot.lane.b32.xlu0 %v8184_v41, %s8713_s26  ;;  %v8191_v41 = vld [vmem:[%s9976_s14 + $0xb0] sm:$0xff] }
 0x6a0   : > { %5806 = vrot.lane.b32.xlu1 %v8185_v57, %s8713_s26 }
 0x6a1   : > { %v13302_v35 = vpop.permute.xlu0 %5564 }
 0x6a2   : > { %v13300_v8 = vpop.permute.xlu1 %5566  ;;  %16825 = vst [vmem:[#allocation407_spill] sm:$0xff] %v13302_v35 }
 0x6a3   : > { %16824 = vst [vmem:[#allocation406_spill] sm:$0xff] %v13300_v8  ;;  %5808 = vrot.lane.b32.xlu0 %v8186_v50, %s8713_s26  ;;  %v8294_v8 = vld [vmem:[%s9976_s14 + $0x10b] sm:$0xff] }
 0x6a4   : > { %5810 = vrot.lane.b32.xlu1 %v8187_v18, %s8713_s26 }
 0x6a5   : > { %v13310_v57 = vpop.permute.xlu0 %5568 }
 0x6a6   : > { %v13308_v11 = vpop.permute.xlu1 %5570  ;;  %16827 = vst [vmem:[#allocation409_spill] sm:$0xff] %v13310_v57 }
 0x6a7   : > { %16826 = vst [vmem:[#allocation408_spill] sm:$0xff] %v13308_v11  ;;  %5812 = vrot.lane.b32.xlu0 %v8188_v14, %s8713_s26  ;;  %v8251_v14 = vld [vmem:[%s9976_s14 + $0x82] sm:$0xff] }
 0x6a8   : > { %5814 = vrot.lane.b32.xlu1 %v8189_v23, %s8713_s26  ;;  %v8288_v11 = vld [vmem:[%s9976_s14 + $0xc3] sm:$0xff] }
 0x6a9   : > { %v13318_v18 = vpop.permute.xlu0 %5572 }
 0x6aa   : > { %v13316_v48 = vpop.permute.xlu1 %5574  ;;  %16829 = vst [vmem:[#allocation411_spill] sm:$0xff] %v13318_v18  ;;  %v13450_v18 = vld [vmem:[%s9976_s14 + $0xc9] sm:$0xff] }
 0x6ab   : > { %16828 = vst [vmem:[#allocation410_spill] sm:$0xff] %v13316_v48  ;;  %5816 = vrot.lane.b32.xlu0 %v8190_v28, %s8713_s26  ;;  %v8256_v48 = vld [vmem:[%s9976_s14 + $0xc2] sm:$0xff] }
 0x6ac   : > { %5818 = vrot.lane.b32.xlu1 %v8191_v41, %s8713_s26 }
 0x6ad   : > { %v13330_v23 = vpop.permute.xlu0 %5576 }
 0x6ae   : > { %v13322_v50 = vpop.permute.xlu1 %5578  ;;  %16831 = vst [vmem:[#allocation413_spill] sm:$0xff] %v13330_v23 }
 0x6af   : > { %16830 = vst [vmem:[#allocation412_spill] sm:$0xff] %v13322_v50  ;;  %5936 = vrot.lane.b32.xlu0 %v13328_v51, %s8714_s27 }
 0x6b0   : > { %5938 = vrot.lane.b32.xlu1 %v13325_v26, %s8714_s27 }
 0x6b1   : > { %v13340_v28 = vpop.permute.xlu0 %5580 }
 0x6b2   : > { %v13338_v41 = vpop.permute.xlu1 %5582  ;;  %16833 = vst [vmem:[#allocation415_spill] sm:$0xff] %v13340_v28  ;;  %v13355_v28 = vld [vmem:[%s9976_s14 + $0x91] sm:$0xff] }
 0x6b3   : > { %16832 = vst [vmem:[#allocation414_spill] sm:$0xff] %v13338_v41  ;;  %6064 = vrot.lane.b32.xlu0 %v8250_v20, %s8715_s28 }
 0x6b4   : > { %6066 = vrot.lane.b32.xlu1 %v8251_v14, %s8715_s28 }
 0x6b5   : > { %v13348_v23 = vpop.permute.xlu0 %5584 }
 0x6b6   : > { %v13346_v52 = vpop.permute.xlu1 %5586  ;;  %16835 = vst [vmem:[#allocation417_spill] sm:$0xff] %v13348_v23  ;;  %v13366_v23 = vld [vmem:[%s9976_s14 + $0x99] sm:$0xff] }
 0x6b7   : > { %16834 = vst [vmem:[#allocation416_spill] sm:$0xff] %v13346_v52  ;;  %6192 = vrot.lane.b32.xlu0 %v8282_v24, %s8716_s29  ;;  %v8253_v24 = vld [vmem:[%s9976_s14 + $0x9a] sm:$0xff] }
 0x6b8   : > { %6194 = vrot.lane.b32.xlu1 %v8283_v0, %s8716_s29 }
 0x6b9   : > { %v13357_v14 = vpop.permute.xlu0 %5588 }
 0x6ba   : > { %v13352_v41 = vpop.permute.xlu1 %5590  ;;  %16837 = vst [vmem:[#allocation419_spill] sm:$0xff] %v13357_v14  ;;  %v8252_v14 = vld [vmem:[%s9976_s14 + $0x92] sm:$0xff] }
 0x6bb   : > { %16836 = vst [vmem:[#allocation418_spill] sm:$0xff] %v13352_v41  ;;  %6320 = vrot.lane.b32.xlu0 %v13113_v6, %s8717_s10  ;;  %v8285_v6 = vld [vmem:[%s9976_s14 + $0x9b] sm:$0xff] }
 0x6bc   : > { %5940 = vrot.lane.b32.xlu1 %v13355_v28, %s8714_s27 }
 0x6bd   : > { %v13368_v0 = vpop.permute.xlu0 %5592 }
 0x6be   : > { %v13363_v20 = vpop.permute.xlu1 %5594  ;;  %16839 = vst [vmem:[#allocation421_spill] sm:$0xff] %v13368_v0  ;;  %v8284_v0 = vld [vmem:[%s9976_s14 + $0x93] sm:$0xff] }
 0x6bf   : > { %16838 = vst [vmem:[#allocation420_spill] sm:$0xff] %v13363_v20  ;;  %6322 = vrot.lane.b32.xlu0 %v13110_v62, %s8717_s10 }
 0x6c0   : > { %5942 = vrot.lane.b32.xlu1 %v13366_v23, %s8714_s27 }
 0x6c1   : > { %v13378_v52 = vpop.permute.xlu0 %5596 }
 0x6c2   : > { %v13376_v41 = vpop.permute.xlu1 %5598  ;;  %16841 = vst [vmem:[#allocation423_spill] sm:$0xff] %v13378_v52 }
 0x6c3   : > { %16840 = vst [vmem:[#allocation422_spill] sm:$0xff] %v13376_v41  ;;  %6068 = vrot.lane.b32.xlu0 %v8252_v14, %s8715_s28  ;;  %v13393_v41 = vld [vmem:[%s9976_s14 + $0xa9] sm:$0xff] }
 0x6c4   : > { %6070 = vrot.lane.b32.xlu1 %v8253_v24, %s8715_s28 }
 0x6c5   : > { %v13386_v50 = vpop.permute.xlu0 %5600 }
 0x6c6   : > { %v13384_v20 = vpop.permute.xlu1 %5602  ;;  %16843 = vst [vmem:[#allocation425_spill] sm:$0xff] %v13386_v50 }
 0x6c7   : > { %16842 = vst [vmem:[#allocation424_spill] sm:$0xff] %v13384_v20  ;;  %6196 = vrot.lane.b32.xlu0 %v8284_v0, %s8716_s29  ;;  %v13404_v20 = vld [vmem:[%s9976_s14 + $0xb1] sm:$0xff] }
 0x6c8   : > { %6198 = vrot.lane.b32.xlu1 %v8285_v6, %s8716_s29  ;;  %v8255_v6 = vld [vmem:[%s9976_s14 + $0xb2] sm:$0xff] }
 0x6c9   : > { %v13395_v24 = vpop.permute.xlu0 %5604 }
 0x6ca   : > { %v13390_v62 = vpop.permute.xlu1 %5606  ;;  %16845 = vst [vmem:[#allocation427_spill] sm:$0xff] %v13395_v24 }
 0x6cb   : > { %16844 = vst [vmem:[#allocation426_spill] sm:$0xff] %v13390_v62  ;;  %6324 = vrot.lane.b32.xlu0 %v13127_v9, %s8717_s10  ;;  %v8254_v62 = vld [vmem:[%s9976_s14 + $0xaa] sm:$0xff]  ;;  %v8192_v9 = vld [vmem:[%s9976_s14 + $0xc0] sm:$0xff] }
 0x6cc   : > { %5944 = vrot.lane.b32.xlu1 %v13393_v41, %s8714_s27 }
 0x6cd   : > { %v13406_v0 = vpop.permute.xlu0 %5608 }
 0x6ce   : > { %v13401_v14 = vpop.permute.xlu1 %5610  ;;  %16847 = vst [vmem:[#allocation429_spill] sm:$0xff] %v13406_v0 }
 0x6cf   : > { %16846 = vst [vmem:[#allocation428_spill] sm:$0xff] %v13401_v14  ;;  %6326 = vrot.lane.b32.xlu0 %v13124_v13, %s8717_s10  ;;  %v8286_v14 = vld [vmem:[%s9976_s14 + $0xab] sm:$0xff]  ;;  %v8287_v13 = vld [vmem:[%s9976_s14 + $0xb3] sm:$0xff] }
 0x6d0   : > { %5946 = vrot.lane.b32.xlu1 %v13404_v20, %s8714_s27 }
 0x6d1   : > { %v13416_v50 = vpop.permute.xlu0 %5676 }
 0x6d2   : > { %v13414_v24 = vpop.permute.xlu1 %5678  ;;  %16849 = vst [vmem:[#allocation431_spill] sm:$0xff] %v13416_v50 }
 0x6d3   : > { %16848 = vst [vmem:[#allocation430_spill] sm:$0xff] %v13414_v24  ;;  %6072 = vrot.lane.b32.xlu0 %v8254_v62, %s8715_s28  ;;  %v8193_v62 = vld [vmem:[%s9976_s14 + $0xc8] sm:$0xff] }
 0x6d4   : > { %6074 = vrot.lane.b32.xlu1 %v8255_v6, %s8715_s28 }
 0x6d5   : > { %v13424_v52 = vpop.permute.xlu0 %5680 }
 0x6d6   : > { %v13422_v0 = vpop.permute.xlu1 %5682 }
 0x6d7   : > { %6200 = vrot.lane.b32.xlu0 %v8286_v14, %s8716_s29 }
 0x6d8   : > { %5820 = vrot.lane.b32.xlu1 %v8192_v9, %s8713_s26 }
 0x6d9   : > { %v13431_v50 = vpop.permute.xlu0 %5684 }
 0x6da   : > { %v13429_v24 = vpop.permute.xlu1 %5686 }
 0x6db   : > { %6202 = vrot.lane.b32.xlu0 %v8287_v13, %s8716_s29  ;;  %v8257_v13 = vld [vmem:[%s9976_s14 + $0xca] sm:$0xff] }
 0x6dc   : > { %6328 = vrot.lane.b32.xlu1 %v13141_v49, %s8717_s10 }
 0x6dd   : > { %v13442_v14 = vpop.permute.xlu0 %5688 }
 0x6de   : > { %v13437_v6 = vpop.permute.xlu1 %5690  ;;  %16851 = vst [vmem:[#allocation433_spill] sm:$0xff] %v13442_v14  ;;  %v13624_v14 = vld [vmem:[%s9976_s14 + $0x121] sm:$0xff] }
 0x6df   : > { %16850 = vst [vmem:[#allocation432_spill] sm:$0xff] %v13437_v6  ;;  %5822 = vrot.lane.b32.xlu0 %v8193_v62, %s8713_s26  ;;  %v8194_v62 = vld [vmem:[%s9976_s14 + $0xd8] sm:$0xff]  ;;  %16883 = vst [vmem:[#allocation465_spill] sm:$0xff] %v13624_v14  ;;  %v13634_v6 = vld [vmem:[%s9976_s14 + $0x129] sm:$0xff] }
 0x6e0   : > { %5948 = vrot.lane.b32.xlu1 %v13440_v44, %s8714_s27  ;;  %16885 = vst [vmem:[#allocation467_spill] sm:$0xff] %v13634_v6 }
 0x6e1   : > { %v13452_v49 = vpop.permute.xlu0 %5692 }
 0x6e2   : > { %v13447_v9 = vpop.permute.xlu1 %5694  ;;  %16853 = vst [vmem:[#allocation435_spill] sm:$0xff] %v13452_v49 }
 0x6e3   : > { %16852 = vst [vmem:[#allocation434_spill] sm:$0xff] %v13447_v9  ;;  %6330 = vrot.lane.b32.xlu0 %v13138_v4, %s8717_s10  ;;  %v8289_v4 = vld [vmem:[%s9976_s14 + $0xcb] sm:$0xff] }
 0x6e4   : > { %5950 = vrot.lane.b32.xlu1 %v13450_v18, %s8714_s27  ;;  %v8262_v9 = vld [vmem:[%s9976_s14 + $0x10a] sm:$0xff] }
 0x6e5   : > { %v13462_v57 = vpop.permute.xlu0 %5696 }
 0x6e6   : > { %v13460_v22 = vpop.permute.xlu1 %5698  ;;  %16855 = vst [vmem:[#allocation437_spill] sm:$0xff] %v13462_v57 }
 0x6e7   : > { %16854 = vst [vmem:[#allocation436_spill] sm:$0xff] %v13460_v22  ;;  %6076 = vrot.lane.b32.xlu0 %v8256_v48, %s8715_s28  ;;  %v8195_v48 = vld [vmem:[%s9976_s14 + $0xe0] sm:$0xff] }
 0x6e8   : > { %6078 = vrot.lane.b32.xlu1 %v8257_v13, %s8715_s28 }
 0x6e9   : > { %v13470_v49 = vpop.permute.xlu0 %5700 }
 0x6ea   : > { %v13468_v27 = vpop.permute.xlu1 %5702  ;;  %16857 = vst [vmem:[#allocation439_spill] sm:$0xff] %v13470_v49  ;;  %v13486_v49 = vld [vmem:[%s9976_s14 + $0xd9] sm:$0xff] }
 0x6eb   : > { %16856 = vst [vmem:[#allocation438_spill] sm:$0xff] %v13468_v27  ;;  %6204 = vrot.lane.b32.xlu0 %v8288_v11, %s8716_s29 }
 0x6ec   : > { %5824 = vrot.lane.b32.xlu1 %v8194_v62, %s8713_s26 }
 0x6ed   : > { %v13477_v57 = vpop.permute.xlu0 %5704 }
 0x6ee   : > { %v13475_v22 = vpop.permute.xlu1 %5706  ;;  %16859 = vst [vmem:[#allocation441_spill] sm:$0xff] %v13477_v57  ;;  %v13496_v57 = vld [vmem:[%s9976_s14 + $0xe1] sm:$0xff] }
 0x6ef   : > { %16858 = vst [vmem:[#allocation440_spill] sm:$0xff] %v13475_v22  ;;  %6206 = vrot.lane.b32.xlu0 %v8289_v4, %s8716_s29  ;;  %v8259_v4 = vld [vmem:[%s9976_s14 + $0xe2] sm:$0xff] }
 0x6f0   : > { %6332 = vrot.lane.b32.xlu1 %v13155_v16, %s8717_s10 }
 0x6f1   : > { %v13488_v11 = vpop.permute.xlu0 %5708 }
 0x6f2   : > { %v13483_v13 = vpop.permute.xlu1 %5710  ;;  %16861 = vst [vmem:[#allocation443_spill] sm:$0xff] %v13488_v11  ;;  %v8258_v11 = vld [vmem:[%s9976_s14 + $0xda] sm:$0xff] }
 0x6f3   : > { %16860 = vst [vmem:[#allocation442_spill] sm:$0xff] %v13483_v13  ;;  %5826 = vrot.lane.b32.xlu0 %v8195_v48, %s8713_s26  ;;  %v8196_v48 = vld [vmem:[%s9976_s14 + $0xf0] sm:$0xff] }
 0x6f4   : > { %5952 = vrot.lane.b32.xlu1 %v13486_v49, %s8714_s27 }
 0x6f5   : > { %v13498_v16 = vpop.permute.xlu0 %5712 }
 0x6f6   : > { %v13493_v62 = vpop.permute.xlu1 %5714  ;;  %16863 = vst [vmem:[#allocation445_spill] sm:$0xff] %v13498_v16  ;;  %v8290_v16 = vld [vmem:[%s9976_s14 + $0xdb] sm:$0xff] }
 0x6f7   : > { %16862 = vst [vmem:[#allocation444_spill] sm:$0xff] %v13493_v62  ;;  %6334 = vrot.lane.b32.xlu0 %v13152_v38, %s8717_s10  ;;  %v8291_v38 = vld [vmem:[%s9976_s14 + $0xe3] sm:$0xff] }
 0x6f8   : > { %5954 = vrot.lane.b32.xlu1 %v13496_v57, %s8714_s27 }
 0x6f9   : > { %v13508_v22 = vpop.permute.xlu0 %5716 }
 0x6fa   : > { %v13506_v13 = vpop.permute.xlu1 %5718  ;;  %16865 = vst [vmem:[#allocation447_spill] sm:$0xff] %v13508_v22 }
 0x6fb   : > { %16864 = vst [vmem:[#allocation446_spill] sm:$0xff] %v13506_v13  ;;  %6080 = vrot.lane.b32.xlu0 %v8258_v11, %s8715_s28  ;;  %v8197_v11 = vld [vmem:[%s9976_s14 + $0xf8] sm:$0xff] }
 0x6fc   : > { %6082 = vrot.lane.b32.xlu1 %v8259_v4, %s8715_s28 }
 0x6fd   : > { %v13516_v27 = vpop.permute.xlu0 %5720 }
 0x6fe   : > { %v13514_v62 = vpop.permute.xlu1 %5722  ;;  %16867 = vst [vmem:[#allocation449_spill] sm:$0xff] %v13516_v27  ;;  %v13532_v27 = vld [vmem:[%s9976_s14 + $0xf1] sm:$0xff] }
 0x6ff   : > { %16866 = vst [vmem:[#allocation448_spill] sm:$0xff] %v13514_v62  ;;  %6208 = vrot.lane.b32.xlu0 %v8290_v16, %s8716_s29 }
 0x700   : > { %5828 = vrot.lane.b32.xlu1 %v8196_v48, %s8713_s26 }
 0x701   : > { %v13523_v22 = vpop.permute.xlu0 %5724 }
 0x702   : > { %v13521_v13 = vpop.permute.xlu1 %5726  ;;  %16869 = vst [vmem:[#allocation451_spill] sm:$0xff] %v13523_v22 }
 0x703   : > { %16868 = vst [vmem:[#allocation450_spill] sm:$0xff] %v13521_v13  ;;  %6210 = vrot.lane.b32.xlu0 %v8291_v38, %s8716_s29  ;;  %v13542_v13 = vld [vmem:[%s9976_s14 + $0xf9] sm:$0xff] }
 0x704   : > { %6336 = vrot.lane.b32.xlu1 %v13169_v42, %s8717_s10  ;;  %v8261_v38 = vld [vmem:[%s9976_s14 + $0xfa] sm:$0xff] }
 0x705   : > { %v13534_v16 = vpop.permute.xlu0 %5728 }
 0x706   : > { %v13529_v4 = vpop.permute.xlu1 %5730  ;;  %16871 = vst [vmem:[#allocation453_spill] sm:$0xff] %v13534_v16 }
 0x707   : > { %16870 = vst [vmem:[#allocation452_spill] sm:$0xff] %v13529_v4  ;;  %5830 = vrot.lane.b32.xlu0 %v8197_v11, %s8713_s26  ;;  %v8260_v4 = vld [vmem:[%s9976_s14 + $0xf2] sm:$0xff]  ;;  %v8198_v11 = vld [vmem:[%s9976_s14 + $0x108] sm:$0xff] }
 0x708   : > { %5956 = vrot.lane.b32.xlu1 %v13532_v27, %s8714_s27 }
 0x709   : > { %v13544_v42 = vpop.permute.xlu0 %5732 }
 0x70a   : > { %v13539_v48 = vpop.permute.xlu1 %5734  ;;  %16873 = vst [vmem:[#allocation455_spill] sm:$0xff] %v13544_v42 }
 0x70b   : > { %16872 = vst [vmem:[#allocation454_spill] sm:$0xff] %v13539_v48  ;;  %6338 = vrot.lane.b32.xlu0 %v13166_v59, %s8717_s10  ;;  %v8292_v48 = vld [vmem:[%s9976_s14 + $0xf3] sm:$0xff]  ;;  %v8293_v59 = vld [vmem:[%s9976_s14 + $0xfb] sm:$0xff] }
 0x70c   : > { %5958 = vrot.lane.b32.xlu1 %v13542_v13, %s8714_s27 }
 0x70d   : > { %v13554_v22 = vpop.permute.xlu0 %5736 }
 0x70e   : > { %v13552_v16 = vpop.permute.xlu1 %5738  ;;  %16875 = vst [vmem:[#allocation457_spill] sm:$0xff] %v13554_v22 }
 0x70f   : > { %16874 = vst [vmem:[#allocation456_spill] sm:$0xff] %v13552_v16  ;;  %6084 = vrot.lane.b32.xlu0 %v8260_v4, %s8715_s28  ;;  %v8199_v4 = vld [vmem:[%s9976_s14 + $0x110] sm:$0xff] }
 0x710   : > { %6086 = vrot.lane.b32.xlu1 %v8261_v38, %s8715_s28 }
 0x711   : > { %v13562_v62 = vpop.permute.xlu0 %5804 }
 0x712   : > { %v13560_v42 = vpop.permute.xlu1 %5806  ;;  %16877 = vst [vmem:[#allocation459_spill] sm:$0xff] %v13562_v62  ;;  %v13588_v62 = vld [vmem:[%s9976_s14 + $0x111] sm:$0xff] }
 0x713   : > { %16876 = vst [vmem:[#allocation458_spill] sm:$0xff] %v13560_v42  ;;  %6212 = vrot.lane.b32.xlu0 %v8292_v48, %s8716_s29  ;;  %v13578_v42 = vld [vmem:[%s9976_s14 + $0x109] sm:$0xff]  ;;  %16880 = vst [vmem:[#allocation462_spill] sm:$0xff] %v13588_v62 }
 0x714   : > { %5832 = vrot.lane.b32.xlu1 %v8198_v11, %s8713_s26  ;;  %16878 = vst [vmem:[#allocation460_spill] sm:$0xff] %v13578_v42 }
 0x715   : > { %v13569_v22 = vpop.permute.xlu0 %5808 }
 0x716   : > { %v13567_v16 = vpop.permute.xlu1 %5810 }
 0x717   : > { %6214 = vrot.lane.b32.xlu0 %v8293_v59, %s8716_s29  ;;  %v8263_v59 = vld [vmem:[%s9976_s14 + $0x112] sm:$0xff] }
 0x718   : > { %6340 = vrot.lane.b32.xlu1 %v13183_v58, %s8717_s10 }
 0x719   : > { %v13580_v48 = vpop.permute.xlu0 %5812 }
 0x71a   : > { %v13575_v38 = vpop.permute.xlu1 %5814 }
 0x71b   : > { %5834 = vrot.lane.b32.xlu0 %v8199_v4, %s8713_s26  ;;  %v8200_v4 = vld [vmem:[%s9976_s14 + $0x120] sm:$0xff] }
 0x71c   : > { %5960 = vrot.lane.b32.xlu1 %v13578_v42, %s8714_s27 }
 0x71d   : > { %v13590_v58 = vpop.permute.xlu0 %5816 }
 0x71e   : > { %v13585_v11 = vpop.permute.xlu1 %5818  ;;  %16881 = vst [vmem:[#allocation463_spill] sm:$0xff] %v13590_v58 }
 0x71f   : > { %16879 = vst [vmem:[#allocation461_spill] sm:$0xff] %v13585_v11  ;;  %6342 = vrot.lane.b32.xlu0 %v13180_v5, %s8717_s10  ;;  %v8295_v5 = vld [vmem:[%s9976_s14 + $0x113] sm:$0xff] }
 0x720   : > { %5962 = vrot.lane.b32.xlu1 %v13588_v62, %s8714_s27 }
 0x721   : > { %v13600_v42 = vpop.permute.xlu0 %5936 }
 0x722   : > { %v13598_v35 = vpop.permute.xlu1 %5938 }
 0x723   : > { %6088 = vrot.lane.b32.xlu0 %v8262_v9, %s8715_s28  ;;  %v8201_v9 = vld [vmem:[%s9976_s14 + $0x128] sm:$0xff] }
 0x724   : > { %6090 = vrot.lane.b32.xlu1 %v8263_v59, %s8715_s28 }
 0x725   : > { %v13608_v62 = vpop.permute.xlu0 %6064 }
 0x726   : > { %v13606_v36 = vpop.permute.xlu1 %6066 }
 0x727   : > { %6216 = vrot.lane.b32.xlu0 %v8294_v8, %s8716_s29 }
 0x728   : > { %5836 = vrot.lane.b32.xlu1 %v8200_v4, %s8713_s26 }
 0x729   : > { %v13615_v11 = vpop.permute.xlu0 %6192 }
 0x72a   : > { %v13613_v58 = vpop.permute.xlu1 %6194 }
 0x72b   : > { %6218 = vrot.lane.b32.xlu0 %v8295_v5, %s8716_s29  ;;  %v8265_v5 = vld [vmem:[%s9976_s14 + $0x12a] sm:$0xff] }
 0x72c   : > { %6344 = vrot.lane.b32.xlu1 %v13197_v61, %s8717_s10 }
 0x72d   : > { %v13626_v8 = vpop.permute.xlu0 %6320 }
 0x72e   : > { %v13621_v59 = vpop.permute.xlu1 %5940 }
 0x72f   : > { %16882 = vst [vmem:[#allocation464_spill] sm:$0xff] %v13621_v59  ;;  %5838 = vrot.lane.b32.xlu0 %v8201_v9, %s8713_s26  ;;  %v8202_v9 = vld [vmem:[%s9976_s14 + $0x138] sm:$0xff] }
 0x730   : > { %5964 = vrot.lane.b32.xlu1 %v13624_v14, %s8714_s27 }
 0x731   : > { %v13636_v61 = vpop.permute.xlu0 %6322 }
 0x732   : > { %v13631_v4 = vpop.permute.xlu1 %5942 }
 0x733   : > { %16884 = vst [vmem:[#allocation466_spill] sm:$0xff] %v13631_v4  ;;  %6346 = vrot.lane.b32.xlu0 %v13194_v3, %s8717_s10  ;;  %v8296_v4 = vld [vmem:[%s9976_s14 + $0x123] sm:$0xff]  ;;  %v8297_v3 = vld [vmem:[%s9976_s14 + $0x12b] sm:$0xff] }
 0x734   : > { %5966 = vrot.lane.b32.xlu1 %v13634_v6, %s8714_s27 }
 0x735   : > { %v13646_v14 = vpop.permute.xlu0 %6068 }
 0x736   : > { %v13644_v19 = vpop.permute.xlu1 %6070  ;;  %16887 = vst [vmem:[#allocation469_spill] sm:$0xff] %v13646_v14 }
 0x737   : > { %16886 = vst [vmem:[#allocation468_spill] sm:$0xff] %v13644_v19  ;;  %6092 = vrot.lane.b32.xlu0 %v8264_v46, %s8715_s28  ;;  %v8203_v46 = vld [vmem:[%s9976_s14 + $0x140] sm:$0xff] }
 0x738   : > { %6094 = vrot.lane.b32.xlu1 %v8265_v5, %s8715_s28 }
 0x739   : > { %v13654_v6 = vpop.permute.xlu0 %6196 }
 0x73a   : > { %v13652_v59 = vpop.permute.xlu1 %6198  ;;  %16888 = vst [vmem:[#allocation470_spill] sm:$0xff] %v13654_v6  ;;  %v13670_v6 = vld [vmem:[%s9976_s14 + $0x139] sm:$0xff] }
 0x73b   : > { %6220 = vrot.lane.b32.xlu0 %v8296_v4, %s8716_s29  ;;  %16891 = vst [vmem:[#allocation473_spill] sm:$0xff] %v13670_v6 }
 0x73c   : > { %5840 = vrot.lane.b32.xlu1 %v8202_v9, %s8713_s26 }
 0x73d   : > { %v13661_v14 = vpop.permute.xlu0 %6324 }
 0x73e   : > { %v13659_v19 = vpop.permute.xlu1 %5944 }
 0x73f   : > { %16889 = vst [vmem:[#allocation471_spill] sm:$0xff] %v13659_v19  ;;  %6222 = vrot.lane.b32.xlu0 %v8297_v3, %s8716_s29  ;;  %v13680_v19 = vld [vmem:[%s9976_s14 + $0x141] sm:$0xff] }
 0x740   : > { %6348 = vrot.lane.b32.xlu1 %v13211_v32, %s8717_s10  ;;  %16894 = vst [vmem:[#allocation476_spill] sm:$0xff] %v13680_v19  ;;  %v8267_v3 = vld [vmem:[%s9976_s14 + $0x142] sm:$0xff] }
 0x741   : > { %v13672_v4 = vpop.permute.xlu0 %6326 }
 0x742   : > { %v13667_v5 = vpop.permute.xlu1 %5946  ;;  %16892 = vst [vmem:[#allocation474_spill] sm:$0xff] %v13672_v4 }
 0x743   : > { %16890 = vst [vmem:[#allocation472_spill] sm:$0xff] %v13667_v5  ;;  %5842 = vrot.lane.b32.xlu0 %v8203_v46, %s8713_s26  ;;  %v8266_v5 = vld [vmem:[%s9976_s14 + $0x13a] sm:$0xff]  ;;  %v8204_v46 = vld [vmem:[%s9976_s14 + $0x150] sm:$0xff] }
 0x744   : > { %5968 = vrot.lane.b32.xlu1 %v13670_v6, %s8714_s27 }
 0x745   : > { %v13682_v32 = vpop.permute.xlu0 %6072 }
 0x746   : > { %v13677_v9 = vpop.permute.xlu1 %6074  ;;  %16895 = vst [vmem:[#allocation477_spill] sm:$0xff] %v13682_v32  ;;  %v8298_v32 = vld [vmem:[%s9976_s14 + $0x13b] sm:$0xff] }
 0x747   : > { %16893 = vst [vmem:[#allocation475_spill] sm:$0xff] %v13677_v9  ;;  %6350 = vrot.lane.b32.xlu0 %v13208_v34, %s8717_s10  ;;  %v8299_v34 = vld [vmem:[%s9976_s14 + $0x143] sm:$0xff] }
 0x748   : > { %5970 = vrot.lane.b32.xlu1 %v13680_v19, %s8714_s27 }
 0x749   : > { %v13692_v6 = vpop.permute.xlu0 %6200 }
 0x74a   : > { %v13690_v4 = vpop.permute.xlu1 %5820  ;;  %16897 = vst [vmem:[#allocation479_spill] sm:$0xff] %v13692_v6 }
 0x74b   : > { %16896 = vst [vmem:[#allocation478_spill] sm:$0xff] %v13690_v4  ;;  %6096 = vrot.lane.b32.xlu0 %v8266_v5, %s8715_s28  ;;  %v8205_v5 = vld [vmem:[%s9976_s14 + $0x158] sm:$0xff] }
 0x74c   : > { %6098 = vrot.lane.b32.xlu1 %v8267_v3, %s8715_s28 }
 0x74d   : > { %v13700_v19 = vpop.permute.xlu0 %6202 }
 0x74e   : > { %v13698_v9 = vpop.permute.xlu1 %6328 }
 0x74f   : > { %16898 = vst [vmem:[#allocation480_spill] sm:$0xff] %v13698_v9  ;;  %6224 = vrot.lane.b32.xlu0 %v8298_v32, %s8716_s29  ;;  %v13716_v9 = vld [vmem:[%s9976_s14 + $0x151] sm:$0xff] }
 0x750   : > { %5844 = vrot.lane.b32.xlu1 %v8204_v46, %s8713_s26  ;;  %16901 = vst [vmem:[#allocation483_spill] sm:$0xff] %v13716_v9 }
 0x751   : > { %v13707_v6 = vpop.permute.xlu0 %5822 }
 0x752   : > { %v13705_v4 = vpop.permute.xlu1 %5948 }
 0x753   : > { %16899 = vst [vmem:[#allocation481_spill] sm:$0xff] %v13705_v4  ;;  %6226 = vrot.lane.b32.xlu0 %v8299_v34, %s8716_s29  ;;  %v13726_v4 = vld [vmem:[%s9976_s14 + $0x159] sm:$0xff] }
 0x754   : > { %6352 = vrot.lane.b32.xlu1 %v13225_v15, %s8717_s10  ;;  %16904 = vst [vmem:[#allocation486_spill] sm:$0xff] %v13726_v4  ;;  %v8269_v34 = vld [vmem:[%s9976_s14 + $0x15a] sm:$0xff] }
 0x755   : > { %v13718_v32 = vpop.permute.xlu0 %6330 }
 0x756   : > { %v13713_v3 = vpop.permute.xlu1 %5950  ;;  %16902 = vst [vmem:[#allocation484_spill] sm:$0xff] %v13718_v32 }
 0x757   : > { %16900 = vst [vmem:[#allocation482_spill] sm:$0xff] %v13713_v3  ;;  %5846 = vrot.lane.b32.xlu0 %v8205_v5, %s8713_s26  ;;  %v8268_v3 = vld [vmem:[%s9976_s14 + $0x152] sm:$0xff]  ;;  %v8206_v5 = vld [vmem:[%s9976_s14 + $0x168] sm:$0xff] }
 0x758   : > { %5972 = vrot.lane.b32.xlu1 %v13716_v9, %s8714_s27 }
 0x759   : > { %v13728_v15 = vpop.permute.xlu0 %6076 }
 0x75a   : > { %v13723_v46 = vpop.permute.xlu1 %6078  ;;  %16905 = vst [vmem:[#allocation487_spill] sm:$0xff] %v13728_v15  ;;  %v8300_v15 = vld [vmem:[%s9976_s14 + $0x153] sm:$0xff] }
 0x75b   : > { %16903 = vst [vmem:[#allocation485_spill] sm:$0xff] %v13723_v46  ;;  %6354 = vrot.lane.b32.xlu0 %v13222_v55, %s8717_s10  ;;  %v8301_v55 = vld [vmem:[%s9976_s14 + $0x15b] sm:$0xff] }
 0x75c   : > { %5974 = vrot.lane.b32.xlu1 %v13726_v4, %s8714_s27 }
 0x75d   : > { %v13738_v9 = vpop.permute.xlu0 %6204 }
 0x75e   : > { %v13736_v32 = vpop.permute.xlu1 %5824  ;;  %16907 = vst [vmem:[#allocation489_spill] sm:$0xff] %v13738_v9 }
 0x75f   : > { %16906 = vst [vmem:[#allocation488_spill] sm:$0xff] %v13736_v32  ;;  %6100 = vrot.lane.b32.xlu0 %v8268_v3, %s8715_s28  ;;  %v8207_v3 = vld [vmem:[%s9976_s14 + $0x170] sm:$0xff] }
 0x760   : > { %6102 = vrot.lane.b32.xlu1 %v8269_v34, %s8715_s28 }
 0x761   : > { %v13746_v4 = vpop.permute.xlu0 %6206 }
 0x762   : > { %v13744_v46 = vpop.permute.xlu1 %6332 }
 0x763   : > { %16908 = vst [vmem:[#allocation490_spill] sm:$0xff] %v13744_v46  ;;  %6228 = vrot.lane.b32.xlu0 %v8300_v15, %s8716_s29  ;;  %v13762_v46 = vld [vmem:[%s9976_s14 + $0x169] sm:$0xff] }
 0x764   : > { %5848 = vrot.lane.b32.xlu1 %v8206_v5, %s8713_s26  ;;  %16911 = vst [vmem:[#allocation493_spill] sm:$0xff] %v13762_v46 }
 0x765   : > { %v13753_v9 = vpop.permute.xlu0 %5826 }
 0x766   : > { %v13751_v32 = vpop.permute.xlu1 %5952 }
 0x767   : > { %16909 = vst [vmem:[#allocation491_spill] sm:$0xff] %v13751_v32  ;;  %6230 = vrot.lane.b32.xlu0 %v8301_v55, %s8716_s29  ;;  %v13772_v32 = vld [vmem:[%s9976_s14 + $0x171] sm:$0xff] }
 0x768   : > { %6356 = vrot.lane.b32.xlu1 %v13239_v53, %s8717_s10  ;;  %16914 = vst [vmem:[#allocation496_spill] sm:$0xff] %v13772_v32  ;;  %v8271_v55 = vld [vmem:[%s9976_s14 + $0x172] sm:$0xff] }
 0x769   : > { %v13764_v15 = vpop.permute.xlu0 %6334 }
 0x76a   : > { %v13759_v34 = vpop.permute.xlu1 %5954  ;;  %16912 = vst [vmem:[#allocation494_spill] sm:$0xff] %v13764_v15 }
 0x76b   : > { %16910 = vst [vmem:[#allocation492_spill] sm:$0xff] %v13759_v34  ;;  %5850 = vrot.lane.b32.xlu0 %v8207_v3, %s8713_s26  ;;  %v8270_v34 = vld [vmem:[%s9976_s14 + $0x16a] sm:$0xff]  ;;  %v8208_v3 = vld [vmem:[%s9976_s14 + $0x180] sm:$0xff] }
 0x76c   : > { %5976 = vrot.lane.b32.xlu1 %v13762_v46, %s8714_s27 }
 0x76d   : > { %v13774_v53 = vpop.permute.xlu0 %6080 }
 0x76e   : > { %v13769_v5 = vpop.permute.xlu1 %6082  ;;  %16915 = vst [vmem:[#allocation497_spill] sm:$0xff] %v13774_v53  ;;  %v8302_v53 = vld [vmem:[%s9976_s14 + $0x16b] sm:$0xff] }
 0x76f   : > { %16913 = vst [vmem:[#allocation495_spill] sm:$0xff] %v13769_v5  ;;  %6358 = vrot.lane.b32.xlu0 %v13236_v12, %s8717_s10  ;;  %v8303_v12 = vld [vmem:[%s9976_s14 + $0x173] sm:$0xff] }
 0x770   : > { %5978 = vrot.lane.b32.xlu1 %v13772_v32, %s8714_s27 }
 0x771   : > { %v13784_v46 = vpop.permute.xlu0 %6208 }
 0x772   : > { %v13782_v15 = vpop.permute.xlu1 %5828  ;;  %16917 = vst [vmem:[#allocation499_spill] sm:$0xff] %v13784_v46 }
 0x773   : > { %16916 = vst [vmem:[#allocation498_spill] sm:$0xff] %v13782_v15  ;;  %6104 = vrot.lane.b32.xlu0 %v8270_v34, %s8715_s28  ;;  %v8209_v34 = vld [vmem:[%s9976_s14 + $0x188] sm:$0xff] }
 0x774   : > { %6106 = vrot.lane.b32.xlu1 %v8271_v55, %s8715_s28 }
 0x775   : > { %v13792_v32 = vpop.permute.xlu0 %6210 }
 0x776   : > { %v13790_v5 = vpop.permute.xlu1 %6336  ;;  %16919 = vst [vmem:[#allocation501_spill] sm:$0xff] %v13792_v32  ;;  %v6829_v32 = vld [vmem:[%s15831_s3] sm:$0xff] }
 0x777   : > { %16918 = vst [vmem:[#allocation500_spill] sm:$0xff] %v13790_v5  ;;  %6232 = vrot.lane.b32.xlu0 %v8302_v53, %s8716_s29  ;;  %v13808_v5 = vld [vmem:[%s9976_s14 + $0x181] sm:$0xff] }
 0x778   : > { %5852 = vrot.lane.b32.xlu1 %v8208_v3, %s8713_s26  ;;  %16923 = vst [vmem:[#allocation505_spill] sm:$0xff] %v13808_v5  ;;  %v8241_v3 = vld [vmem:[%s9976_s14 + $0x189] sm:$0xff] }
 0x779   : > { %v13799_v46 = vpop.permute.xlu0 %5830 }
 0x77a   : > { %v13797_v15 = vpop.permute.xlu1 %5956  ;;  %16921 = vst [vmem:[#allocation503_spill] sm:$0xff] %v13799_v46  ;;  %v8312_v46 = vld [vmem:[%s9976_s14 + $0x64] sm:$0xff] }
 0x77b   : > { %16920 = vst [vmem:[#allocation502_spill] sm:$0xff] %v13797_v15  ;;  %6234 = vrot.lane.b32.xlu0 %v8303_v12, %s8716_s29  ;;  %v8273_v12 = vld [vmem:[%s9976_s14 + $0x18a] sm:$0xff] }
 0x77c   : > { %6360 = vrot.lane.b32.xlu1 %v13253_v37, %s8717_s10 }
 0x77d   : > { %v13810_v53 = vpop.permute.xlu0 %6338 }
 0x77e   : > { %v13805_v55 = vpop.permute.xlu1 %5958  ;;  %16924 = vst [vmem:[#allocation506_spill] sm:$0xff] %v13810_v53 }
 0x77f   : > { %16922 = vst [vmem:[#allocation504_spill] sm:$0xff] %v13805_v55  ;;  %5854 = vrot.lane.b32.xlu0 %v8209_v34, %s8713_s26  ;;  %v8272_v55 = vld [vmem:[%s9976_s14 + $0x182] sm:$0xff]  ;;  %v8210_v34 = vld [vmem:[%s9976_s14 + $0x198] sm:$0xff] }
 0x780   : > { %5980 = vrot.lane.b32.xlu1 %v13808_v5, %s8714_s27 }
 0x781   : > { %v13818_v37 = vpop.permute.xlu0 %6084 }
 0x782   : > { %v13816_v15 = vpop.permute.xlu1 %6086  ;;  %16926 = vst [vmem:[#allocation508_spill] sm:$0xff] %v13818_v37 }
 0x783   : > { %16925 = vst [vmem:[#allocation507_spill] sm:$0xff] %v13816_v15  ;;  %6362 = vrot.lane.b32.xlu0 %v13250_v40, %s8717_s10  ;;  %v8304_v15 = vld [vmem:[%s9976_s14 + $0x183] sm:$0xff]  ;;  %v8305_v40 = vld [vmem:[%s9976_s14 + $0x18b] sm:$0xff] }
 0x784   : > { %5982 = vrot.lane.b32.xlu1 %v8241_v3, %s8714_s27 }
 0x785   : > { %v13827_v5 = vpop.permute.xlu0 %6212 }
 0x786   : > { %v13825_v53 = vpop.permute.xlu1 %5832  ;;  %16928 = vst [vmem:[#allocation510_spill] sm:$0xff] %v13827_v5 }
 0x787   : > { %16927 = vst [vmem:[#allocation509_spill] sm:$0xff] %v13825_v53  ;;  %6108 = vrot.lane.b32.xlu0 %v8272_v55, %s8715_s28  ;;  %v8242_v55 = vld [vmem:[%s9976_s14 + $0x199] sm:$0xff] }
 0x788   : > { %6110 = vrot.lane.b32.xlu1 %v8273_v12, %s8715_s28  ;;  %v8211_v12 = vld [vmem:[%s9976_s14 + $0x1a0] sm:$0xff] }
 0x789   : > { %v13835_v3 = vpop.permute.xlu0 %6214 }
 0x78a   : > { %v13833_v37 = vpop.permute.xlu1 %6340  ;;  %16930 = vst [vmem:[#allocation512_spill] sm:$0xff] %v13835_v3 }
 0x78b   : > { %16929 = vst [vmem:[#allocation511_spill] sm:$0xff] %v13833_v37  ;;  %6236 = vrot.lane.b32.xlu0 %v8304_v15, %s8716_s29  ;;  %v8243_v15 = vld [vmem:[%s9976_s14 + $0x1a1] sm:$0xff] }
 0x78c   : > { %5856 = vrot.lane.b32.xlu1 %v8210_v34, %s8713_s26 }
 0x78d   : > { %v13842_v5 = vpop.permute.xlu0 %5834 }
 0x78e   : > { %v13840_v53 = vpop.permute.xlu1 %5960  ;;  %16932 = vst [vmem:[#allocation514_spill] sm:$0xff] %v13842_v5 }
 0x78f   : > { %16931 = vst [vmem:[#allocation513_spill] sm:$0xff] %v13840_v53  ;;  %6238 = vrot.lane.b32.xlu0 %v8305_v40, %s8716_s29  ;;  %v8337_v53 = vld [vmem:[%s9976_s14 + $0x18c] sm:$0xff]  ;;  %v8275_v40 = vld [vmem:[%s9976_s14 + $0x1a2] sm:$0xff] }
 0x790   : > { %6364 = vrot.lane.b32.xlu1 %v13265_v2, %s8717_s10 }
 0x791   : > { %v13851_v34 = vpop.permute.xlu0 %6342 }
 0x792   : > { %v13849_v37 = vpop.permute.xlu1 %5962  ;;  %16934 = vst [vmem:[#allocation516_spill] sm:$0xff] %v13851_v34 }
 0x793   : > { %16933 = vst [vmem:[#allocation515_spill] sm:$0xff] %v13849_v37  ;;  %5858 = vrot.lane.b32.xlu0 %v8211_v12, %s8713_s26  ;;  %v8274_v37 = vld [vmem:[%s9976_s14 + $0x19a] sm:$0xff]  ;;  %v8212_v12 = vld [vmem:[%s9976_s14 + $0x1b0] sm:$0xff] }
 0x794   : > { %5984 = vrot.lane.b32.xlu1 %v8242_v55, %s8714_s27 }
 0x795   : > { %v13859_v2 = vpop.permute.xlu0 %6088 }
 0x796   : > { %v13857_v5 = vpop.permute.xlu1 %6090  ;;  %16936 = vst [vmem:[#allocation518_spill] sm:$0xff] %v13859_v2 }
 0x797   : > { %16935 = vst [vmem:[#allocation517_spill] sm:$0xff] %v13857_v5  ;;  %6366 = vrot.lane.b32.xlu0 %v8337_v53, %s8717_s10  ;;  %v8306_v5 = vld [vmem:[%s9976_s14 + $0x19b] sm:$0xff] }
 0x798   : > { %5986 = vrot.lane.b32.xlu1 %v8243_v15, %s8714_s27  ;;  %v8338_v53 = vld [vmem:[%s9976_s14 + $0x19c] sm:$0xff] }
 0x799   : > { %v13867_v55 = vpop.permute.xlu0 %6216 }
 0x79a   : > { %v13865_v34 = vpop.permute.xlu1 %5836  ;;  %16938 = vst [vmem:[#allocation520_spill] sm:$0xff] %v13867_v55 }
 0x79b   : > { %16937 = vst [vmem:[#allocation519_spill] sm:$0xff] %v13865_v34  ;;  %6112 = vrot.lane.b32.xlu0 %v8274_v37, %s8715_s28  ;;  %v8307_v34 = vld [vmem:[%s9976_s14 + $0x1a3] sm:$0xff]  ;;  %v8244_v37 = vld [vmem:[%s9976_s14 + $0x1b1] sm:$0xff] }
 0x79c   : > { %6114 = vrot.lane.b32.xlu1 %v8275_v40, %s8715_s28 }
 0x79d   : > { %v13875_v15 = vpop.permute.xlu0 %6218 }
 0x79e   : > { %v13873_v2 = vpop.permute.xlu1 %6344  ;;  %16940 = vst [vmem:[#allocation522_spill] sm:$0xff] %v13875_v15 }
 0x79f   : > { %16939 = vst [vmem:[#allocation521_spill] sm:$0xff] %v13873_v2  ;;  %6240 = vrot.lane.b32.xlu0 %v8306_v5, %s8716_s29  ;;  %v8213_v2 = vld [vmem:[%s9976_s14 + $0x1b8] sm:$0xff] }
 0x7a0   : > { %5860 = vrot.lane.b32.xlu1 %v8212_v12, %s8713_s26  ;;  %v8245_v5 = vld [vmem:[%s9976_s14 + $0x1b9] sm:$0xff] }
 0x7a1   : > { %v13883_v40 = vpop.permute.xlu0 %5838 }
 0x7a2   : > { %v13881_v55 = vpop.permute.xlu1 %5964  ;;  %16942 = vst [vmem:[#allocation524_spill] sm:$0xff] %v13883_v40 }
 0x7a3   : > { %16941 = vst [vmem:[#allocation523_spill] sm:$0xff] %v13881_v55  ;;  %6242 = vrot.lane.b32.xlu0 %v8307_v34, %s8716_s29  ;;  %v8339_v55 = vld [vmem:[%s9976_s14 + $0x1a4] sm:$0xff]  ;;  %v8277_v34 = vld [vmem:[%s9976_s14 + $0x1ba] sm:$0xff] }
 0x7a4   : > { %6368 = vrot.lane.b32.xlu1 %v8338_v53, %s8717_s10 }
 0x7a5   : > { %v13891_v12 = vpop.permute.xlu0 %6346 }
 0x7a6   : > { %v13889_v15 = vpop.permute.xlu1 %5966  ;;  %16944 = vst [vmem:[#allocation526_spill] sm:$0xff] %v13891_v12 }
 0x7a7   : > { %16943 = vst [vmem:[#allocation525_spill] sm:$0xff] %v13889_v15  ;;  %5862 = vrot.lane.b32.xlu0 %v8213_v2, %s8713_s26  ;;  %v8276_v15 = vld [vmem:[%s9976_s14 + $0x1b2] sm:$0xff]  ;;  %v8214_v2 = vld [vmem:[%s9976_s14 + $0x1c8] sm:$0xff] }
 0x7a8   : > { %5988 = vrot.lane.b32.xlu1 %v8244_v37, %s8714_s27 }
 0x7a9   : > { %v13899_v53 = vpop.permute.xlu0 %6092 }
 0x7aa   : > { %v13897_v40 = vpop.permute.xlu1 %6094  ;;  %16946 = vst [vmem:[#allocation528_spill] sm:$0xff] %v13899_v53 }
 0x7ab   : > { %16945 = vst [vmem:[#allocation527_spill] sm:$0xff] %v13897_v40  ;;  %6370 = vrot.lane.b32.xlu0 %v8339_v55, %s8717_s10  ;;  %v8308_v40 = vld [vmem:[%s9976_s14 + $0x1b3] sm:$0xff] }
 0x7ac   : > { %5990 = vrot.lane.b32.xlu1 %v8245_v5, %s8714_s27  ;;  %v8340_v55 = vld [vmem:[%s9976_s14 + $0x1b4] sm:$0xff] }
 0x7ad   : > { %v13907_v37 = vpop.permute.xlu0 %6220 }
 0x7ae   : > { %v13905_v12 = vpop.permute.xlu1 %5840  ;;  %16948 = vst [vmem:[#allocation530_spill] sm:$0xff] %v13907_v37 }
 0x7af   : > { %16947 = vst [vmem:[#allocation529_spill] sm:$0xff] %v13905_v12  ;;  %6116 = vrot.lane.b32.xlu0 %v8276_v15, %s8715_s28  ;;  %v8309_v12 = vld [vmem:[%s9976_s14 + $0x1bb] sm:$0xff] }
 0x7b0   : > { %6118 = vrot.lane.b32.xlu1 %v8277_v34, %s8715_s28  ;;  %v8216_v15 = vld [vmem:[%s9976_s14 + $0x61] sm:$0xff] }
 0x7b1   : > { %v13915_v5 = vpop.permute.xlu0 %6222 }
 0x7b2   : > { %v13913_v53 = vpop.permute.xlu1 %6348  ;;  %16950 = vst [vmem:[#allocation532_spill] sm:$0xff] %v13915_v5 }
 0x7b3   : > { %16949 = vst [vmem:[#allocation531_spill] sm:$0xff] %v13913_v53  ;;  %6244 = vrot.lane.b32.xlu0 %v8308_v40, %s8716_s29  ;;  %v8215_v53 = vld [vmem:[%s9976_s14 + $0x1d0] sm:$0xff]  ;;  %v8341_v40 = vld [vmem:[%s9976_s14 + $0x1bc] sm:$0xff] }
 0x7b4   : > { %5864 = vrot.lane.b32.xlu1 %v8214_v2, %s8713_s26 }
 0x7b5   : > { %v13923_v34 = vpop.permute.xlu0 %5842 }
 0x7b6   : > { %v13921_v37 = vpop.permute.xlu1 %5968  ;;  %16952 = vst [vmem:[#allocation534_spill] sm:$0xff] %v13923_v34 }
 0x7b7   : > { %16951 = vst [vmem:[#allocation533_spill] sm:$0xff] %v13921_v37  ;;  %6246 = vrot.lane.b32.xlu0 %v8309_v12, %s8716_s29  ;;  %v8246_v37 = vld [vmem:[%s9976_s14 + $0x1c9] sm:$0xff]  ;;  %v8247_v12 = vld [vmem:[%s9976_s14 + $0x1d1] sm:$0xff] }
 0x7b8   : > { %6372 = vrot.lane.b32.xlu1 %v8340_v55, %s8717_s10  ;;  %v8217_v55 = vld [vmem:[%s9976_s14 + $0x69] sm:$0xff] }
 0x7b9   : > { %v13931_v2 = vpop.permute.xlu0 %6350 }
 0x7ba   : > { %v13929_v5 = vpop.permute.xlu1 %5970  ;;  %16954 = vst [vmem:[#allocation536_spill] sm:$0xff] %v13931_v2 }
 0x7bb   : > { %16953 = vst [vmem:[#allocation535_spill] sm:$0xff] %v13929_v5  ;;  %5866 = vrot.lane.b32.xlu0 %v8215_v53, %s8713_s26  ;;  %v8278_v53 = vld [vmem:[%s9976_s14 + $0x1ca] sm:$0xff] }
 0x7bc   : > { %5932 = vrot.lane.b32.xlu1 %v8216_v15, %s8714_s27  ;;  %v8248_v15 = vld [vmem:[%s9976_s14 + $0x62] sm:$0xff] }
 0x7bd   : > { %v13939_v3 = vpop.permute.xlu0 %6096 }
 0x7be   : > { %v13937_v34 = vpop.permute.xlu1 %6098  ;;  %16956 = vst [vmem:[#allocation538_spill] sm:$0xff] %v13939_v3 }
 0x7bf   : > { %16955 = vst [vmem:[#allocation537_spill] sm:$0xff] %v13937_v34  ;;  %5992 = vrot.lane.b32.xlu0 %v8246_v37, %s8714_s27  ;;  %v6835_v37 = vld [vmem:[%s15831_s3 + $0x30] sm:$0x3] }
 0x7c0   : > { %6374 = vrot.lane.b32.xlu1 %v8341_v40, %s8717_s10  ;;  %v6834_v40 = vld [vmem:[%s15831_s3 + $0x28] sm:$0xff]  ;;  %8570 = vmatprep.subr.msk.mxu1 %vm1949_vm0, %v6835_v37 }
 0x7c1   : > { %v13947_v2 = vpop.permute.xlu0 %6224  ;;  %8508 = vmatprep.subr.msk.mxu0 %vm1949_vm0, %v6835_v37  ;;  %8577 = vmatpush3.msk.msra.mxu1 %vm1949_vm0, %v6835_v37 }
 0x7c2   : > { %v13945_v5 = vpop.permute.xlu1 %5844  ;;  %16958 = vst [vmem:[#allocation540_spill] sm:$0xff] %v13947_v2  ;;  %8509 = vmatpush3.msk.msra.mxu0 %vm1949_vm0, %v6835_v37  ;;  %8571 = vmatprep.subr.mxu1 %v6834_v40  ;;  %v6832_v37 = vld [vmem:[%s15831_s3 + $0x18] sm:$0xff]  ;;  %vm6796_vm0 = vcmask 261120  }
 0x7c3   : > { %16957 = vst [vmem:[#allocation539_spill] sm:$0xff] %v13945_v5  ;;  %5934 = vrot.lane.b32.xlu0 %v8217_v55, %s8714_s27  ;;  %v8249_v55 = vld [vmem:[%s9976_s14 + $0x6a] sm:$0xff]  ;;  %8510 = vmatprep.subr.mxu0 %v6834_v40 }
 0x7c4   : > { %5994 = vrot.lane.b32.xlu1 %v8247_v12, %s8714_s27  ;;  %v8279_v12 = vld [vmem:[%s9976_s14 + $0x1d2] sm:$0xff]  ;;  %8578 = vmatpush3.msra.mxu1 %v6834_v40 }
 0x7c5   : > { %v13955_v3 = vpop.permute.xlu0 %6226  ;;  %v8310_v5 = vld [vmem:[%s9976_s14 + $0x1cb] sm:$0xff]  ;;  %8511 = vmatpush3.msra.mxu0 %v6834_v40 }
 0x7c6   : > { %v13953_v34 = vpop.permute.xlu1 %6352  ;;  %16960 = vst [vmem:[#allocation542_spill] sm:$0xff] %v13955_v3  ;;  %v6831_v40 = vld [vmem:[%s15831_s3 + $0x10] sm:$0xff] }
 0x7c7   : > { %16959 = vst [vmem:[#allocation541_spill] sm:$0xff] %v13953_v34  ;;  %6060 = vrot.lane.b32.xlu0 %v8248_v15, %s8715_s28  ;;  %v6833_v15 = vld [vmem:[%s15831_s3 + $0x20] sm:$0xff] }
 0x7c8   : > { %6120 = vrot.lane.b32.xlu1 %v8278_v53, %s8715_s28  ;;  %8572 = vmatprep.subr.mxu1 %v6833_v15 }
 0x7c9   : > { %v13973_v53 = vpop.permute.xlu0 %5846  ;;  %8512 = vmatprep.subr.mxu0 %v6833_v15  ;;  %8579 = vmatpush3.msra.mxu1 %v6833_v15 }
 0x7ca   : > { %v13969_v34 = vpop.permute.xlu1 %5972  ;;  %16962 = vst [vmem:[#allocation544_spill] sm:$0xff] %v13973_v53  ;;  %8513 = vmatpush3.msra.mxu0 %v6833_v15  ;;  %8573 = vmatprep.subr.mxu1 %v6832_v37  ;;  %v8058_v15 = vld [vmem:[%s9976_s14 + $0x61] sm:$0xff] }
 0x7cb   : > { %16961 = vst [vmem:[#allocation543_spill] sm:$0xff] %v13969_v34  ;;  %6062 = vrot.lane.b32.xlu0 %v8249_v55, %s8715_s28  ;;  %v8280_v34 = vld [vmem:[%s9976_s14 + $0x63] sm:$0xff]  ;;  %v8281_v55 = vld [vmem:[%s9976_s14 + $0x6b] sm:$0xff]  ;;  %8514 = vmatprep.subr.mxu0 %v6832_v37 }
 0x7cc   : > { %6122 = vrot.lane.b32.xlu1 %v8279_v12, %s8715_s28  ;;  %v8311_v12 = vld [vmem:[%s9976_s14 + $0x1d3] sm:$0xff]  ;;  %8580 = vmatpush3.msra.mxu1 %v6832_v37 }
 0x7cd   : > { %v13987_v53 = vpop.permute.xlu0 %6354  ;;  %8515 = vmatpush3.msra.mxu0 %v6832_v37  ;;  %8574 = vmatprep.subr.mxu1 %v6831_v40 }
 0x7ce   : > { %v13982_v3 = vpop.permute.xlu1 %5974  ;;  %16964 = vst [vmem:[#allocation546_spill] sm:$0xff] %v13987_v53  ;;  %v8059_v53 = vld [vmem:[%s9976_s14 + $0x69] sm:$0xff]  ;;  %8516 = vmatprep.subr.mxu0 %v6831_v40  ;;  %8581 = vmatpush3.msra.mxu1 %v6831_v40 }
 0x7cf   : > { %16963 = vst [vmem:[#allocation545_spill] sm:$0xff] %v13982_v3  ;;  %6188 = vrot.lane.b32.xlu0 %v8280_v34, %s8716_s29  ;;  %v8342_v34 = vld [vmem:[%s9976_s14 + $0x1cc] sm:$0xff]  ;;  %8517 = vmatpush3.msra.mxu0 %v6831_v40  ;;  %v6415_v37 = vsel %vm1585_vm1, %v8059_v53, %v13079_v56  ;;  %v6417_v40 = vsel %vm1585_vm1, %v13325_v26, %v13087_v39 }
 0x7d0   : > { %6248 = vrot.lane.b32.xlu1 %v8310_v5, %s8716_s29  ;;  %v6830_v5 = vld [vmem:[%s15831_s3 + $0x8] sm:$0xff]  ;;  %v6416_v56 = vsel %vm1585_vm1, %v13328_v51, %v13089_v25  ;;  %v14035_v26 = vsel %vm1585_vm1, %v13404_v20, %v13103_v33  ;;  %v14040_v51 = vsel %vm1585_vm1, %v13393_v41, %v13105_v45  ;;  %v14047_v39 = vsel %vm1585_vm1, %v13450_v18, %v13115_v29 }
 0x7d1   : > { %v14000_v2 = vpop.permute.xlu0 %6100  ;;  %8575 = vmatprep.subr.mxu1 %v6830_v5  ;;  %8518 = vmatprep.subr.mxu0 %v6830_v5  ;;  %v6447_v25 = vsel %vm1618_vm2, %v6415_v37, %v13276_v63  ;;  %v14058_v45 = vsel %vm1585_vm1, %v13440_v44, %v13117_v31  ;;  %v14074_v63 = vsel %vm1585_vm1, %v13486_v49, %v13131_v47  ;;  %v16975_v37 = vld [vmem:[#allocation470_spill] sm:$0xff] }
 0x7d2   : > { %v13996_v3 = vpop.permute.xlu1 %6102  ;;  %16966 = vst [vmem:[#allocation548_spill] sm:$0xff] %v14000_v2  ;;  %v6414_v2 = vsel %vm1585_vm1, %v8058_v15, %v13081_v21  ;;  %v6419_v21 = vsel %vm1585_vm1, %v13366_v23, %v13095_v10  ;;  %8582 = vmatpush3.msra.mxu1 %v6830_v5  ;;  %8519 = vmatpush3.msra.mxu0 %v6830_v5  ;;  %v8343_v10 = vld [vmem:[%s9976_s14 + $0x1d4] sm:$0xff] }
 0x7d3   : > { %16965 = vst [vmem:[#allocation547_spill] sm:$0xff] %v13996_v3  ;;  %6190 = vrot.lane.b32.xlu0 %v8281_v55, %s8716_s29  ;;  %v6446_v33 = vsel %vm1618_vm2, %v6414_v2, %v13278_v7  ;;  %8576 = vmatprep.subr.mxu1 %v6829_v32  ;;  %v6479_v23 = vsel %vm1651_vm3, %v6447_v25, %v13422_v0  ;;  %v16973_v2 = vld [vmem:[#allocation432_spill] sm:$0xff]  ;;  %v16974_v15 = vld [vmem:[#allocation433_spill] sm:$0xff]  ;;  %v16977_v25 = vld [vmem:[#allocation463_spill] sm:$0xff] }
 0x7d4   : > { %6250 = vrot.lane.b32.xlu1 %v8311_v12, %s8716_s29  ;;  %v6418_v12 = vsel %vm1585_vm1, %v13355_v28, %v13097_v30  ;;  %v8313_v30 = vld [vmem:[%s9976_s14 + $0x6c] sm:$0xff]  ;;  %8520 = vmatprep.subr.mxu0 %v6829_v32  ;;  %v6478_v29 = vsel %vm1651_vm3, %v6446_v33, %v13424_v52  ;;  %v14069_v7 = vsel %vm1585_vm1, %v13496_v57, %v13129_v54  ;;  %s8725_s29 = smov 32  }
 0x7d5   : > { %v14027_v53 = vpop.permute.xlu0 %6228  ;;  %8583 = vmatpush3.msra.mxu1 %v6829_v32  ;;  %8521 = vmatpush3.msra.mxu0 %v6829_v32  ;;  %v6511_v44 = vsel %vm1684_vm4, %v6479_v23, %v13567_v16  ;;  %v6510_v52 = vsel %vm1684_vm4, %v6478_v29, %v13569_v22  ;;  %v14085_v41 = vsel %vm1585_vm1, %v13542_v13, %v13143_v43  ;;  %v16967_v16 = vld [vmem:[#allocation464_spill] sm:$0xff] }
 0x7d6   : > { %v14013_v3 = vpop.permute.xlu1 %5848  ;;  %v6543_v54 = vsel %vm1717_vm5, %v6511_v44, %v13598_v35  ;;  %v6542_v47 = vsel %vm1717_vm5, %v6510_v52, %v13600_v42  ;;  %v6449_v22 = vsel %vm1618_vm2, %v6417_v40, %v13284_v1  ;;  %v6448_v57 = vsel %vm1618_vm2, %v6416_v56, %v13286_v17  ;;  %v16971_v32 = vld [vmem:[#allocation468_spill] sm:$0xff]  ;;  %v16980_v44 = vld [vmem:[#allocation462_spill] sm:$0xff] }
 0x7d7   : > { %6316 = vrot.lane.b32.xlu0 %v8312_v46, %s8717_s10  ;;  %v6575_v43 = vsel %vm1750_vm6, %v6543_v54, %v13606_v36  ;;  %v6574_v28 = vsel %vm1750_vm6, %v6542_v47, %v13608_v62  ;;  %v6481_v35 = vsel %vm1651_vm3, %v6449_v22, %v13429_v24  ;;  %v6480_v20 = vsel %vm1651_vm3, %v6448_v57, %v13431_v50  ;;  %v16981_v54 = vld [vmem:[#allocation471_spill] sm:$0xff]  ;;  %v16982_v22 = vld [vmem:[#allocation472_spill] sm:$0xff] }
 0x7d8   : > { %6376 = vrot.lane.b32.xlu1 %v8342_v34, %s8717_s10  ;;  %v6607_v0 = vsel %vm15903_vm7, %v6575_v43, %v13613_v58  ;;  %v6606_v1 = vsel %vm15903_vm7, %v6574_v28, %v13615_v11  ;;  %v6513_v36 = vsel %vm1684_vm4, %v6481_v35, %v13575_v38  ;;  %v6512_v17 = vsel %vm1684_vm4, %v6480_v20, %v13580_v48  ;;  %v16968_v38 = vld [vmem:[#allocation466_spill] sm:$0xff]  ;;  %v16969_v48 = vld [vmem:[#allocation404_spill] sm:$0xff]  ;;  %v16984_v28 = vld [vmem:[#allocation407_spill] sm:$0xff] }
 0x7d9   : > { %v14080_v31 = vpop.permute.xlu0 %6230  ;;  %v6638_v24 = vsel %vm1816_vm8, %v6606_v1, %v13626_v8  ;;  %v6639_v50 = vsel %vm1816_vm8, %v6607_v0, %v13636_v61  ;;  %v14124_v62 = vsel %vm1585_vm1, %v13532_v27, %v13145_v60  ;;  %v6544_v42 = vsel %vm1717_vm5, %v6512_v17, %v16967_v16  ;;  %v16970_v8 = vld [vmem:[#allocation405_spill] sm:$0xff]  ;;  %v16985_v20 = vld [vmem:[#allocation475_spill] sm:$0xff]  ;;  %v16987_v17 = vld [vmem:[#allocation434_spill] sm:$0xff] }
 0x7da   : > { %v14064_v18 = vpop.permute.xlu1 %6356  ;;  %v6545_v11 = vsel %vm1717_vm5, %v6513_v36, %v16968_v38  ;;  %v6451_v58 = vsel %vm1618_vm2, %v6419_v21, %v16969_v48  ;;  %v6450_v61 = vsel %vm1618_vm2, %v6418_v12, %v16970_v8  ;;  %v16972_v60 = vld [vmem:[#allocation469_spill] sm:$0xff]  ;;  %v6452_v35 = vsel %vm1618_vm2, %v14040_v51, %v16984_v28  ;;  %v16990_v51 = vld [vmem:[#allocation478_spill] sm:$0xff] }
 0x7db   : > { %6318 = vrot.lane.b32.xlu0 %v8313_v30, %s8717_s10  ;;  %v6577_v27 = vsel %vm1750_vm6, %v6545_v11, %v16971_v32  ;;  %v6576_v46 = vsel %vm1750_vm6, %v6544_v42, %v16972_v60  ;;  %v6483_v55 = vsel %vm1651_vm3, %v6451_v58, %v16973_v2  ;;  %v6482_v5 = vsel %vm1651_vm3, %v6450_v61, %v16974_v15  ;;  %v16976_v21 = vld [vmem:[#allocation461_spill] sm:$0xff]  ;;  %v16978_v30 = vld [vmem:[#allocation474_spill] sm:$0xff]  ;;  %v16989_v42 = vld [vmem:[#allocation479_spill] sm:$0xff] }
 0x7dc   : > { %6378 = vrot.lane.b32.xlu1 %v8343_v10, %s8717_s10  ;;  %v6609_v34 = vsel %vm15903_vm7, %v6577_v27, %v13652_v59  ;;  %v6608_v40 = vsel %vm15903_vm7, %v6576_v46, %v16975_v37  ;;  %v6515_v12 = vsel %vm1684_vm4, %v6483_v55, %v16976_v21  ;;  %v6514_v33 = vsel %vm1684_vm4, %v6482_v5, %v16977_v25  ;;  %v16979_v59 = vld [vmem:[#allocation386_spill] sm:$0xff]  ;;  %v16986_v1 = vld [vmem:[#allocation477_spill] sm:$0xff]  ;;  %v16991_v58 = vld [vmem:[#allocation480_spill] sm:$0xff]  ;;  %s8379_s10 = sshll.u32 %s17520_s15, 8 }
 0x7dd   : > { %v14119_v13 = vpop.permute.xlu0 %5850  ;;  %v6640_v10 = vsel %vm1816_vm8, %v6608_v40, %v13661_v14  ;;  %v6641_v23 = vsel %vm1816_vm8, %v6609_v34, %v16978_v30  ;;  %v14163_v52 = vsel %vm1585_vm1, %v16980_v44, %v16979_v59  ;;  %v6546_v47 = vsel %vm1717_vm5, %v6514_v33, %v16981_v54  ;;  %v16983_v14 = vld [vmem:[#allocation406_spill] sm:$0xff]  ;;  %v16992_v32 = vld [vmem:[#allocation484_spill] sm:$0xff]  ;;  %v16993_v46 = vld [vmem:[#allocation387_spill] sm:$0xff]  ;;  %s15689_s30 = scalar_lea.vmem %s15832_s4, %s8379_s10 }
 0x7de   : > { %v14109_v49 = vpop.permute.xlu1 %5976  ;;  %v6547_v57 = vsel %vm1717_vm5, %v6515_v12, %v16982_v22  ;;  %v6453_v43 = vsel %vm1618_vm2, %v14035_v26, %v16983_v14  ;;  %v6578_v36 = vsel %vm1750_vm6, %v6546_v47, %v16986_v1  ;;  %v16994_v2 = vld [vmem:[#allocation460_spill] sm:$0xff]  ;;  %v16995_v55 = vld [vmem:[#allocation481_spill] sm:$0xff]  ;;  %v16996_v5 = vld [vmem:[#allocation482_spill] sm:$0xff] }
 0x7df   : > { %6704 = vrot.lane.b32.xlu0 %v6638_v24, %s8725_s29  ;;  %v6579_v0 = vsel %vm1750_vm6, %v6547_v57, %v16985_v20  ;;  %v6485_v24 = vsel %vm1651_vm3, %v6453_v43, %v16987_v17  ;;  %v6610_v38 = vsel %vm15903_vm7, %v6578_v36, %v16989_v42  ;;  %v16998_v40 = vld [vmem:[#allocation409_spill] sm:$0xff]  ;;  %v17000_v33 = vld [vmem:[#allocation487_spill] sm:$0xff]  ;;  %v17001_v30 = vld [vmem:[#allocation436_spill] sm:$0xff] }
 0x7e0   : > { %6706 = vrot.lane.b32.xlu1 %v6639_v50, %s8725_s29  ;;  %v16988_v50 = vld [vmem:[#allocation435_spill] sm:$0xff]  ;;  %v6611_v26 = vsel %vm15903_vm7, %v6579_v0, %v13700_v19  ;;  %v6642_v8 = vsel %vm1816_vm8, %v6610_v38, %v16991_v58  ;;  %v6517_v61 = vsel %vm1684_vm4, %v6485_v24, %v13707_v6  ;;  %v14204_v19 = vsel %vm1585_vm1, %v16994_v2, %v16993_v46  ;;  %v16997_v6 = vld [vmem:[#allocation408_spill] sm:$0xff]  ;;  %v16999_v12 = vld [vmem:[#allocation485_spill] sm:$0xff] }
 0x7e1   : > { %v14158_v29 = vpop.permute.xlu0 %6358  ;;  %v6484_v16 = vsel %vm1651_vm3, %v6452_v35, %v16988_v50  ;;  %v6643_v27 = vsel %vm1816_vm8, %v6611_v26, %v16992_v32  ;;  %v6549_v34 = vsel %vm1717_vm5, %v6517_v61, %v16996_v5  ;;  %v6455_v37 = vsel %vm1618_vm2, %v14047_v39, %v16997_v6  ;;  %v17002_v59 = vld [vmem:[#allocation437_spill] sm:$0xff]  ;;  %v17005_v14 = vld [vmem:[#allocation490_spill] sm:$0xff]  ;;  %v17007_v1 = vld [vmem:[#allocation388_spill] sm:$0xff] }
 0x7e2   : > { %v14148_v56 = vpop.permute.xlu1 %5978  ;;  %v6516_v48 = vsel %vm1684_vm4, %v6484_v16, %v16990_v51  ;;  %v6454_v21 = vsel %vm1618_vm2, %v14058_v45, %v16998_v40  ;;  %v6581_v25 = vsel %vm1750_vm6, %v6549_v34, %v16999_v12  ;;  %v17003_v54 = vld [vmem:[#allocation489_spill] sm:$0xff]  ;;  %v17004_v45 = vld [vmem:[#allocation488_spill] sm:$0xff]  ;;  %v17006_v35 = vld [vmem:[#allocation494_spill] sm:$0xff] }
 0x7e3   : > { %6708 = vrot.lane.b32.xlu0 %v6640_v10, %s8725_s29  ;;  %v6548_v15 = vsel %vm1717_vm5, %v6516_v48, %v16995_v55  ;;  %v6486_v44 = vsel %vm1651_vm3, %v6454_v21, %v17002_v59  ;;  %v6613_v39 = vsel %vm15903_vm7, %v6581_v25, %v13746_v4  ;;  %v17008_v36 = vld [vmem:[#allocation467_spill] sm:$0xff]  ;;  %v17010_v50 = vld [vmem:[#allocation492_spill] sm:$0xff]  ;;  %v17014_v58 = vld [vmem:[#allocation497_spill] sm:$0xff] }
 0x7e4   : > { %6710 = vrot.lane.b32.xlu1 %v6641_v23, %s8725_s29  ;;  %v6580_v10 = vsel %vm1750_vm6, %v6548_v15, %v17000_v33  ;;  %v6487_v23 = vsel %vm1651_vm3, %v6455_v37, %v17001_v30  ;;  %v6518_v57 = vsel %vm1684_vm4, %v6486_v44, %v17004_v45  ;;  %v6645_v20 = vsel %vm1816_vm8, %v6613_v39, %v17006_v35  ;;  %v17009_v17 = vld [vmem:[#allocation491_spill] sm:$0xff]  ;;  %v17015_v61 = vld [vmem:[#allocation438_spill] sm:$0xff]  ;;  %v17020_v6 = vld [vmem:[#allocation500_spill] sm:$0xff] }
 0x7e5   : > { %v14199_v60 = vpop.permute.xlu0 %6104  ;;  %v6612_v47 = vsel %vm15903_vm7, %v6580_v10, %v17003_v54  ;;  %v6519_v28 = vsel %vm1684_vm4, %v6487_v23, %v13753_v9  ;;  %v14245_v4 = vsel %vm1585_vm1, %v17008_v36, %v17007_v1  ;;  %v6550_v24 = vsel %vm1717_vm5, %v6518_v57, %v17009_v17  ;;  %v17011_v9 = vld [vmem:[#allocation410_spill] sm:$0xff]  ;;  %v17012_v38 = vld [vmem:[#allocation411_spill] sm:$0xff]  ;;  %v17023_v10 = vld [vmem:[#allocation389_spill] sm:$0xff] }
 0x7e6   : > { %v14189_v11 = vpop.permute.xlu1 %6106  ;;  %v6644_v43 = vsel %vm1816_vm8, %v6612_v47, %v17005_v14  ;;  %v6551_v16 = vsel %vm1717_vm5, %v6519_v28, %v17010_v50  ;;  %v6457_v42 = vsel %vm1618_vm2, %v14069_v7, %v17011_v9  ;;  %v6456_v26 = vsel %vm1618_vm2, %v14074_v63, %v17012_v38  ;;  %v17013_v51 = vld [vmem:[#allocation495_spill] sm:$0xff]  ;;  %v17018_v7 = vld [vmem:[#allocation501_spill] sm:$0xff]  ;;  %v17019_v63 = vld [vmem:[#allocation498_spill] sm:$0xff] }
 0x7e7   : > { %6712 = vrot.lane.b32.xlu0 %v6642_v8, %s8725_s29  ;;  %v6583_v48 = vsel %vm1750_vm6, %v6551_v16, %v17013_v51  ;;  %v6582_v8 = vsel %vm1750_vm6, %v6550_v24, %v17014_v58  ;;  %v6489_v32 = vsel %vm1651_vm3, %v6457_v42, %v17015_v61  ;;  %v17017_v2 = vld [vmem:[#allocation499_spill] sm:$0xff]  ;;  %v17022_v12 = vld [vmem:[#allocation506_spill] sm:$0xff]  ;;  %v17024_v30 = vld [vmem:[#allocation465_spill] sm:$0xff] }
 0x7e8   : > { %6714 = vrot.lane.b32.xlu1 %v6643_v27, %s8725_s29  ;;  %v17016_v27 = vld [vmem:[#allocation439_spill] sm:$0xff]  ;;  %v6614_v55 = vsel %vm15903_vm7, %v6582_v8, %v17017_v2  ;;  %v6615_v15 = vsel %vm15903_vm7, %v6583_v48, %v17018_v7  ;;  %v6430_v23 = vsel %vm1585_vm1, %v17024_v30, %v17023_v10  ;;  %v17025_v59 = vld [vmem:[#allocation502_spill] sm:$0xff]  ;;  %v17026_v54 = vld [vmem:[#allocation504_spill] sm:$0xff] }
 0x7e9   : > { %v14240_v0 = vpop.permute.xlu0 %6232  ;;  %v6488_v46 = vsel %vm1651_vm3, %v6456_v26, %v17016_v27  ;;  %v6646_v37 = vsel %vm1816_vm8, %v6614_v55, %v17020_v6  ;;  %v17021_v40 = vld [vmem:[#allocation503_spill] sm:$0xff]  ;;  %v6647_v25 = vsel %vm1816_vm8, %v6615_v15, %v17022_v12  ;;  %v17027_v39 = vld [vmem:[#allocation412_spill] sm:$0xff]  ;;  %v17028_v57 = vld [vmem:[#allocation413_spill] sm:$0xff] }
 0x7ea   : > { %v14230_v22 = vpop.permute.xlu1 %5852  ;;  %v6520_v34 = vsel %vm1684_vm4, %v6488_v46, %v17019_v63  ;;  %v6521_v21 = vsel %vm1684_vm4, %v6489_v32, %v17021_v40  ;;  %v6459_v45 = vsel %vm1618_vm2, %v14085_v41, %v17027_v39  ;;  %v6458_v14 = vsel %vm1618_vm2, %v14124_v62, %v17028_v57  ;;  %v17030_v35 = vld [vmem:[#allocation508_spill] sm:$0xff]  ;;  %v17032_v17 = vld [vmem:[#allocation441_spill] sm:$0xff]  ;;  %v17033_v50 = vld [vmem:[#allocation510_spill] sm:$0xff] }
 0x7eb   : > { %6716 = vrot.lane.b32.xlu0 %v6644_v43, %s8725_s29  ;;  %v6552_v44 = vsel %vm1717_vm5, %v6520_v34, %v17025_v59  ;;  %v6553_v47 = vsel %vm1717_vm5, %v6521_v21, %v17026_v54  ;;  %v17029_v43 = vld [vmem:[#allocation507_spill] sm:$0xff]  ;;  %v17031_v1 = vld [vmem:[#allocation440_spill] sm:$0xff]  ;;  %v6490_v24 = vsel %vm1651_vm3, %v6458_v14, %v17032_v17  ;;  %v17035_v62 = vld [vmem:[#allocation509_spill] sm:$0xff] }
 0x7ec   : > { %6718 = vrot.lane.b32.xlu1 %v6645_v20, %s8725_s29  ;;  %v6585_v28 = vsel %vm1750_vm6, %v6553_v47, %v17029_v43  ;;  %v6584_v20 = vsel %vm1750_vm6, %v6552_v44, %v17030_v35  ;;  %v6491_v36 = vsel %vm1651_vm3, %v6459_v45, %v17031_v1  ;;  %v17034_v41 = vld [vmem:[#allocation512_spill] sm:$0xff]  ;;  %v6522_v38 = vsel %vm1684_vm4, %v6490_v24, %v17035_v62  ;;  %v17036_v26 = vld [vmem:[#allocation511_spill] sm:$0xff]  ;;  %v17037_v48 = vld [vmem:[#allocation514_spill] sm:$0xff] }
 0x7ed   : > { %v14281_v33 = vpop.permute.xlu0 %6234  ;;  %v6616_v16 = vsel %vm15903_vm7, %v6584_v20, %v17033_v50  ;;  %v6617_v9 = vsel %vm15903_vm7, %v6585_v28, %v17034_v41  ;;  %v6523_v58 = vsel %vm1684_vm4, %v6491_v36, %v17037_v48  ;;  %v17038_v8 = vld [vmem:[#allocation516_spill] sm:$0xff]  ;;  %v17039_v27 = vld [vmem:[#allocation390_spill] sm:$0xff]  ;;  %v17041_v55 = vld [vmem:[#allocation513_spill] sm:$0xff] }
 0x7ee   : > { %v14271_v5 = vpop.permute.xlu1 %6360  ;;  %v6648_v51 = vsel %vm1816_vm8, %v6616_v16, %v17036_v26  ;;  %v6649_v61 = vsel %vm1816_vm8, %v6617_v9, %v17038_v8  ;;  %v17040_v46 = vld [vmem:[#allocation476_spill] sm:$0xff]  ;;  %v6554_v7 = vsel %vm1717_vm5, %v6522_v38, %v17041_v55  ;;  %v17042_v15 = vld [vmem:[#allocation515_spill] sm:$0xff]  ;;  %v17043_v34 = vld [vmem:[#allocation414_spill] sm:$0xff] }
 0x7ef   : > { %6720 = vrot.lane.b32.xlu0 %v6646_v37, %s8725_s29  ;;  %v6433_v2 = vsel %vm1585_vm1, %v17040_v46, %v17039_v27  ;;  %v6555_v63 = vsel %vm1717_vm5, %v6523_v58, %v17042_v15  ;;  %v6461_v6 = vsel %vm1618_vm2, %v14163_v52, %v17043_v34  ;;  %v17044_v37 = vld [vmem:[#allocation415_spill] sm:$0xff]  ;;  %v17045_v21 = vld [vmem:[#allocation517_spill] sm:$0xff]  ;;  %v17047_v30 = vld [vmem:[#allocation442_spill] sm:$0xff] }
 0x7f0   : > { %6722 = vrot.lane.b32.xlu1 %v6647_v25, %s8725_s29  ;;  %v6460_v40 = vsel %vm1618_vm2, %v14204_v19, %v17044_v37  ;;  %v6587_v12 = vsel %vm1750_vm6, %v6555_v63, %v17045_v21  ;;  %v17046_v25 = vld [vmem:[#allocation518_spill] sm:$0xff]  ;;  %v6493_v59 = vsel %vm1651_vm3, %v6461_v6, %v17047_v30  ;;  %v17048_v44 = vld [vmem:[#allocation443_spill] sm:$0xff]  ;;  %v17049_v47 = vld [vmem:[#allocation520_spill] sm:$0xff] }
 0x7f1   : > { %v14320_v32 = vpop.permute.xlu0 %5854  ;;  %v6586_v10 = vsel %vm1750_vm6, %v6554_v7, %v17046_v25  ;;  %v6492_v54 = vsel %vm1651_vm3, %v6460_v40, %v17048_v44  ;;  %v17050_v52 = vld [vmem:[#allocation522_spill] sm:$0xff]  ;;  %v17051_v19 = vld [vmem:[#allocation519_spill] sm:$0xff]  ;;  %v17052_v43 = vld [vmem:[#allocation521_spill] sm:$0xff] }
 0x7f2   : > { %v14310_v42 = vpop.permute.xlu1 %5980  ;;  %v6618_v39 = vsel %vm15903_vm7, %v6586_v10, %v17049_v47  ;;  %v6619_v45 = vsel %vm15903_vm7, %v6587_v12, %v17050_v52  ;;  %v6524_v14 = vsel %vm1684_vm4, %v6492_v54, %v17051_v19  ;;  %v17053_v35 = vld [vmem:[#allocation524_spill] sm:$0xff]  ;;  %v17054_v1 = vld [vmem:[#allocation526_spill] sm:$0xff]  ;;  %v17055_v24 = vld [vmem:[#allocation391_spill] sm:$0xff] }
 0x7f3   : > { %6724 = vrot.lane.b32.xlu0 %v6648_v51, %s8725_s29  ;;  %v6650_v28 = vsel %vm1816_vm8, %v6618_v39, %v17052_v43  ;;  %v6525_v20 = vsel %vm1684_vm4, %v6493_v59, %v17053_v35  ;;  %v6651_v36 = vsel %vm1816_vm8, %v6619_v45, %v17054_v1  ;;  %v17056_v50 = vld [vmem:[#allocation473_spill] sm:$0xff]  ;;  %v17057_v41 = vld [vmem:[#allocation523_spill] sm:$0xff]  ;;  %v17059_v26 = vld [vmem:[#allocation416_spill] sm:$0xff] }
 0x7f4   : > { %6726 = vrot.lane.b32.xlu1 %v6649_v61, %s8725_s29  ;;  %v6432_v16 = vsel %vm1585_vm1, %v17056_v50, %v17055_v24  ;;  %v6556_v9 = vsel %vm1717_vm5, %v6524_v14, %v17057_v41  ;;  %v17058_v62 = vld [vmem:[#allocation525_spill] sm:$0xff]  ;;  %v6463_v51 = vsel %vm1618_vm2, %v14245_v4, %v17059_v26  ;;  %v17061_v8 = vld [vmem:[#allocation527_spill] sm:$0xff]  ;;  %v17062_v27 = vld [vmem:[#allocation528_spill] sm:$0xff] }
 0x7f5   : > { %v14359_v17 = vpop.permute.xlu0 %6362  ;;  %v6557_v38 = vsel %vm1717_vm5, %v6525_v20, %v17058_v62  ;;  %v17060_v48 = vld [vmem:[#allocation417_spill] sm:$0xff]  ;;  %v6588_v46 = vsel %vm1750_vm6, %v6556_v9, %v17062_v27  ;;  %v17063_v55 = vld [vmem:[#allocation444_spill] sm:$0xff]  ;;  %v17065_v34 = vld [vmem:[#allocation530_spill] sm:$0xff] }
 0x7f6   : > { %v14349_v57 = vpop.permute.xlu1 %5982  ;;  %v6462_v58 = vsel %vm1618_vm2, %v6430_v23, %v17060_v48  ;;  %v6589_v61 = vsel %vm1750_vm6, %v6557_v38, %v17061_v8  ;;  %v6495_v7 = vsel %vm1651_vm3, %v6463_v51, %v17063_v55  ;;  %v17064_v15 = vld [vmem:[#allocation445_spill] sm:$0xff]  ;;  %v6620_v6 = vsel %vm15903_vm7, %v6588_v46, %v17065_v34  ;;  %v17066_v37 = vld [vmem:[#allocation532_spill] sm:$0xff]  ;;  %v17068_v12 = vld [vmem:[#allocation531_spill] sm:$0xff] }
 0x7f7   : > { %6728 = vrot.lane.b32.xlu0 %v6650_v28, %s8725_s29  ;;  %v6494_v63 = vsel %vm1651_vm3, %v6462_v58, %v17064_v15  ;;  %v6621_v4 = vsel %vm15903_vm7, %v6589_v61, %v17066_v37  ;;  %v17067_v23 = vld [vmem:[#allocation529_spill] sm:$0xff]  ;;  %v6652_v25 = vsel %vm1816_vm8, %v6620_v6, %v17068_v12  ;;  %v17069_v10 = vld [vmem:[#allocation534_spill] sm:$0xff]  ;;  %v17070_v59 = vld [vmem:[#allocation536_spill] sm:$0xff] }
 0x7f8   : > { %6730 = vrot.lane.b32.xlu1 %v6651_v36, %s8725_s29  ;;  %v6526_v21 = vsel %vm1684_vm4, %v6494_v63, %v17067_v23  ;;  %v6527_v30 = vsel %vm1684_vm4, %v6495_v7, %v17069_v10  ;;  %v6653_v44 = vsel %vm1816_vm8, %v6621_v4, %v17070_v59  ;;  %v17071_v47 = vld [vmem:[#allocation392_spill] sm:$0xff]  ;;  %v17072_v39 = vld [vmem:[#allocation486_spill] sm:$0xff]  ;;  %v17073_v45 = vld [vmem:[#allocation533_spill] sm:$0xff] }
 0x7f9   : > { %v14397_v54 = vpop.permute.xlu0 %6108  ;;  %v6435_v52 = vsel %vm1585_vm1, %v17072_v39, %v17071_v47  ;;  %v6558_v19 = vsel %vm1717_vm5, %v6526_v21, %v17073_v45  ;;  %v17074_v14 = vld [vmem:[#allocation535_spill] sm:$0xff]  ;;  %v17075_v28 = vld [vmem:[#allocation418_spill] sm:$0xff]  ;;  %v17077_v36 = vld [vmem:[#allocation537_spill] sm:$0xff] }
 0x7fa   : > { %v14387_v40 = vpop.permute.xlu1 %6110  ;;  %v6559_v43 = vsel %vm1717_vm5, %v6527_v30, %v17074_v14  ;;  %v6465_v35 = vsel %vm1618_vm2, %v6433_v2, %v17075_v28  ;;  %v17076_v20 = vld [vmem:[#allocation419_spill] sm:$0xff]  ;;  %v17078_v50 = vld [vmem:[#allocation538_spill] sm:$0xff]  ;;  %v17081_v51 = vld [vmem:[#allocation540_spill] sm:$0xff] }
 0x7fb   : > { %6732 = vrot.lane.b32.xlu0 %v6652_v25, %s8725_s29  ;;  %v6464_v1 = vsel %vm1618_vm2, %v6432_v16, %v17076_v20  ;;  %v6591_v24 = vsel %vm1750_vm6, %v6559_v43, %v17077_v36  ;;  %v6590_v41 = vsel %vm1750_vm6, %v6558_v19, %v17078_v50  ;;  %v17079_v9 = vld [vmem:[#allocation446_spill] sm:$0xff]  ;;  %v17080_v38 = vld [vmem:[#allocation447_spill] sm:$0xff]  ;;  %v17084_v27 = vld [vmem:[#allocation541_spill] sm:$0xff] }
 0x7fc   : > { %6734 = vrot.lane.b32.xlu1 %v6653_v44, %s8725_s29  ;;  %v6497_v62 = vsel %vm1651_vm3, %v6465_v35, %v17079_v9  ;;  %v6496_v26 = vsel %vm1651_vm3, %v6464_v1, %v17080_v38  ;;  %v6622_v48 = vsel %vm15903_vm7, %v6590_v41, %v17081_v51  ;;  %v17082_v58 = vld [vmem:[#allocation542_spill] sm:$0xff]  ;;  %v17083_v16 = vld [vmem:[#allocation539_spill] sm:$0xff]  ;;  %v17085_v55 = vld [vmem:[#allocation544_spill] sm:$0xff] }
 0x7fd   : > { %v6623_v2 = vsel %vm15903_vm7, %v6591_v24, %v17082_v58  ;;  %v6528_v61 = vsel %vm1684_vm4, %v6496_v26, %v17083_v16  ;;  %v6654_v46 = vsel %vm1816_vm8, %v6622_v48, %v17084_v27  ;;  %v6529_v7 = vsel %vm1684_vm4, %v6497_v62, %v17085_v55  ;;  %v17086_v15 = vld [vmem:[#allocation546_spill] sm:$0xff]  ;;  %v6237_v34 = vpop.permute.xlu0 %6236  ;;  %v17087_v6 = vld [vmem:[#allocation393_spill] sm:$0xff]  ;;  %v17088_v37 = vld [vmem:[#allocation483_spill] sm:$0xff] }
 0x7fe   : > { %v14424_v8 = vpop.permute.xlu1 %5856  ;;  %v6655_v63 = vsel %vm1816_vm8, %v6623_v2, %v17086_v15  ;;  %v6434_v4 = vsel %vm1585_vm1, %v17088_v37, %v17087_v6  ;;  %v17089_v23 = vld [vmem:[#allocation543_spill] sm:$0xff]  ;;  %v17090_v12 = vld [vmem:[#allocation545_spill] sm:$0xff]  ;;  %v17091_v10 = vld [vmem:[#allocation420_spill] sm:$0xff] }
 0x7ff   : > { %v6560_v21 = vsel %vm1717_vm5, %v6528_v61, %v17089_v23  ;;  %v6561_v25 = vsel %vm1717_vm5, %v6529_v7, %v17090_v12  ;;  %6736 = vrot.lane.b32.xlu0 %v6654_v46, %s8725_s29  ;;  %v6467_v30 = vsel %vm1618_vm2, %v6435_v52, %v17091_v10  ;;  %v17092_v59 = vld [vmem:[#allocation421_spill] sm:$0xff]  ;;  %v17093_v47 = vld [vmem:[#allocation547_spill] sm:$0xff]  ;;  %v17094_v45 = vld [vmem:[#allocation548_spill] sm:$0xff] }
 0x800   : > { %6738 = vrot.lane.b32.xlu1 %v6655_v63, %s8725_s29  ;;  %v6466_v44 = vsel %vm1618_vm2, %v6434_v4, %v17092_v59  ;;  %v6593_v39 = vsel %vm1750_vm6, %v6561_v25, %v17093_v47  ;;  %v6592_v19 = vsel %vm1750_vm6, %v6560_v21, %v17094_v45  ;;  %v17095_v14 = vld [vmem:[#allocation448_spill] sm:$0xff]  ;;  %v17096_v28 = vld [vmem:[#allocation449_spill] sm:$0xff]  ;;  %v17097_v62 = vld [vmem:[#allocation395_spill] sm:$0xff] }
 0x801   : > { %v6499_v43 = vsel %vm1651_vm3, %v6467_v30, %v17095_v14  ;;  %v6498_v35 = vsel %vm1651_vm3, %v6466_v44, %v17096_v28  ;;  %v6624_v20 = vsel %vm15903_vm7, %v6592_v19, %v14027_v53  ;;  %v6625_v52 = vsel %vm15903_vm7, %v6593_v39, %v14080_v31  ;;  %v6239_v9 = vpop.permute.xlu0 %6238  ;;  %v17098_v38 = vld [vmem:[#allocation493_spill] sm:$0xff]  ;;  %v17102_v58 = vld [vmem:[#allocation422_spill] sm:$0xff]  ;;  %v17103_v2 = vld [vmem:[#allocation451_spill] sm:$0xff] }
 0x802   : > { %v6365_v1 = vpop.permute.xlu1 %6364  ;;  %v6530_v36 = vsel %vm1684_vm4, %v6498_v35, %v14013_v3  ;;  %v6656_v24 = vsel %vm1816_vm8, %v6624_v20, %v14064_v18  ;;  %v6531_v50 = vsel %vm1684_vm4, %v6499_v43, %v14119_v13  ;;  %v6657_v41 = vsel %vm1816_vm8, %v6625_v52, %v14158_v29  ;;  %v17099_v18 = vld [vmem:[#allocation394_spill] sm:$0xff]  ;;  %v17100_v13 = vld [vmem:[#allocation496_spill] sm:$0xff]  ;;  %v17101_v29 = vld [vmem:[#allocation423_spill] sm:$0xff] }
 0x803   : > { %v6436_v53 = vsel %vm1585_vm1, %v17098_v38, %v17097_v62  ;;  %v6562_v31 = vsel %vm1717_vm5, %v6530_v36, %v14109_v49  ;;  %v6563_v3 = vsel %vm1717_vm5, %v6531_v50, %v14148_v56  ;;  %6740 = vrot.lane.b32.xlu0 %v6656_v24, %s8725_s29  ;;  %v6437_v26 = vsel %vm1585_vm1, %v17100_v13, %v17099_v18  ;;  %v17104_v55 = vld [vmem:[#allocation450_spill] sm:$0xff]  ;;  %v8662_v23 = vld [vmem:[%s9976_s14 + $0x18] sm:$0xff]  ;;  %v17107_v10 = vld [vmem:[#allocation15_spill] sm:$0xff] }
 0x804   : > { %6742 = vrot.lane.b32.xlu1 %v6657_v41, %s8725_s29  ;;  %v6468_v51 = vsel %vm1618_vm2, %v6436_v53, %v17101_v29  ;;  %v6595_v48 = vsel %vm1750_vm6, %v6563_v3, %v14189_v11  ;;  %v6594_v49 = vsel %vm1750_vm6, %v6562_v31, %v14199_v60  ;;  %v6469_v56 = vsel %vm1618_vm2, %v6437_v26, %v17102_v58  ;;  %v17106_v21 = vld [vmem:[#allocation13_spill] sm:$0xff]  ;;  %v8664_v44 = vld [vmem:[%s9976_s14 + $0x30] sm:$0xff]  ;;  %v17109_v19 = vld [vmem:[#allocation19_spill] sm:$0xff] }
 0x805   : > { %v6500_v16 = vsel %vm1651_vm3, %v6468_v51, %v17103_v2  ;;  %v6626_v61 = vsel %vm15903_vm7, %v6594_v49, %v14240_v0  ;;  %v6627_v27 = vsel %vm15903_vm7, %v6595_v48, %v14281_v33  ;;  %v6501_v11 = vsel %vm1651_vm3, %v6469_v56, %v17104_v55  ;;  %v14503_v63 = vpop.permute.xlu0 %5858  ;;  %v8663_v25 = vld [vmem:[%s9976_s14 + $0x38] sm:$0xff]  ;;  %v17108_v47 = vld [vmem:[#allocation16_spill] sm:$0xff]  ;;  %v8666_v43 = vld [vmem:[%s9976_s14 + $0x48] sm:$0xff] }
 0x806   : > { %v14493_v46 = vpop.permute.xlu1 %5984  ;;  %v6532_v60 = vsel %vm1684_vm4, %v6500_v16, %v14230_v22  ;;  %v6658_v7 = vsel %vm1816_vm8, %v6626_v61, %v14271_v5  ;;  %v6659_v15 = vsel %vm1816_vm8, %v6627_v27, %v14359_v17  ;;  %v6533_v33 = vsel %vm1684_vm4, %v6501_v11, %v14320_v32  ;;  %v8665_v45 = vld [vmem:[%s9976_s14 + $0x50] sm:$0xff]  ;;  %v8667_v20 = vld [vmem:[%s9976_s14 + $0x68] sm:$0xff]  ;;  %v8668_v24 = vld [vmem:[%s9976_s14 + $0x60] sm:$0xff] }
 0x807   : > { %v6564_v0 = vsel %vm1717_vm5, %v6532_v60, %v14310_v42  ;;  %6744 = vrot.lane.b32.xlu0 %v6658_v7, %s8725_s29  ;;  %v6565_v22 = vsel %vm1717_vm5, %v6533_v33, %v14349_v57  ;;  %v4904_v12 = vsel %vm1585_vm1, %v8662_v23, %v17106_v21  ;;  %v4907_v30 = vsel %vm1585_vm1, %v8663_v25, %v17107_v10  ;;  %v17110_v28 = vld [vmem:[#allocation20_spill] sm:$0xff]  ;;  %v17111_v52 = vld [vmem:[#allocation23_spill] sm:$0xff]  ;;  %v8670_v53 = vld [vmem:[%s9976_s14 + $0x78] sm:$0xff] }
 0x808   : > { %6746 = vrot.lane.b32.xlu1 %v6659_v15, %s8725_s29  ;;  %v6596_v5 = vsel %vm1750_vm6, %v6564_v0, %v14397_v54  ;;  %v6597_v17 = vsel %vm1750_vm6, %v6565_v22, %v14387_v40  ;;  %v8661_v40 = vld [vmem:[%s9976_s14 + $0x20] sm:$0xff]  ;;  %v17105_v54 = vld [vmem:[#allocation12_spill] sm:$0xff]  ;;  %v4906_v39 = vsel %vm1585_vm1, %v8664_v44, %v17108_v47  ;;  %v4909_v14 = vsel %vm1585_vm1, %v8665_v45, %v17109_v19  ;;  %v17113_v62 = vld [vmem:[#allocation27_spill] sm:$0xff] }
 0x809   : > { %v6628_v42 = vsel %vm15903_vm7, %v6596_v5, %v6237_v34  ;;  %v6629_v37 = vsel %vm15903_vm7, %v6597_v17, %v6239_v9  ;;  %v6367_v4 = vpop.permute.xlu0 %6366  ;;  %v4905_v34 = vsel %vm1585_vm1, %v8661_v40, %v17105_v54  ;;  %v4908_v35 = vsel %vm1585_vm1, %v8666_v43, %v17110_v28  ;;  %v17112_v50 = vld [vmem:[#allocation24_spill] sm:$0xff]  ;;  %v8669_v9 = vld [vmem:[%s9976_s14 + $0x80] sm:$0xff]  ;;  %v17115_v18 = vld [vmem:[#allocation397_spill] sm:$0xff] }
 0x80a   : > { %v14518_v6 = vpop.permute.xlu1 %5986  ;;  %v6660_v32 = vsel %vm1816_vm8, %v6628_v42, %v6365_v1  ;;  %v6661_v57 = vsel %vm1816_vm8, %v6629_v37, %v6367_v4  ;;  %v4911_v1 = vsel %vm1585_vm1, %v8667_v20, %v17111_v52  ;;  %v4910_v41 = vsel %vm1585_vm1, %v8668_v24, %v17112_v50  ;;  %v17114_v31 = vld [vmem:[#allocation28_spill] sm:$0xff]  ;;  %v17116_v13 = vld [vmem:[#allocation505_spill] sm:$0xff]  ;;  %v17117_v51 = vld [vmem:[#allocation63_spill] sm:$0xff] }
 0x80b   : > { %6748 = vrot.lane.b32.xlu0 %v6660_v32, %s8725_s29  ;;  %v4913_v38 = vsel %vm1585_vm1, %v8669_v9, %v17113_v62  ;;  %v4912_v3 = vsel %vm1585_vm1, %v8670_v53, %v17114_v31  ;;  %v6438_v26 = vsel %vm1585_vm1, %v17116_v13, %v17115_v18  ;;  %v8671_v29 = vld [vmem:[%s9976_s14 + $0x98] sm:$0xff]  ;;  %v8672_v49 = vld [vmem:[%s9976_s14 + $0x90] sm:$0xff]  ;;  %v17119_v16 = vld [vmem:[#allocation31_spill] sm:$0xff] }
 0x80c   : > { %6750 = vrot.lane.b32.xlu1 %v6661_v57, %s8725_s29  ;;  %v4915_v48 = vsel %vm1585_vm1, %v8671_v29, %v17117_v51  ;;  %v17118_v58 = vld [vmem:[#allocation64_spill] sm:$0xff]  ;;  %v17120_v27 = vld [vmem:[#allocation425_spill] sm:$0xff]  ;;  %v8674_v11 = vld [vmem:[%s9976_s14 + $0xa8] sm:$0xff] }
 0x80d   : > { %v6113_v36 = vpop.permute.xlu0 %6112  ;;  %v4914_v56 = vsel %vm1585_vm1, %v8672_v49, %v17118_v58  ;;  %v8673_v2 = vld [vmem:[%s9976_s14 + $0xb0] sm:$0xff]  ;;  %v6470_v55 = vsel %vm1618_vm2, %v6438_v26, %v17120_v27  ;;  %v8675_v15 = vld [vmem:[%s9976_s14 + $0xc8] sm:$0xff]  ;;  %v17122_v0 = vld [vmem:[#allocation66_spill] sm:$0xff] }
 0x80e   : > { %v14534_v59 = vpop.permute.xlu1 %6114  ;;  %v4917_v61 = vsel %vm1585_vm1, %v8673_v2, %v17119_v16  ;;  %v17121_v60 = vld [vmem:[#allocation32_spill] sm:$0xff]  ;;  %v4919_v33 = vsel %vm1585_vm1, %v8675_v15, %v17122_v0  ;;  %v8676_v22 = vld [vmem:[%s9976_s14 + $0xc0] sm:$0xff]  ;;  %v17123_v5 = vld [vmem:[#allocation67_spill] sm:$0xff] }
 0x80f   : > { %v4916_v7 = vsel %vm1585_vm1, %v8674_v11, %v17121_v60  ;;  %v4918_v17 = vsel %vm1585_vm1, %v8676_v22, %v17123_v5  ;;  %v17124_v42 = vld [vmem:[#allocation453_spill] sm:$0xff]  ;;  %v8677_v4 = vld [vmem:[%s9976_s14 + $0xe0] sm:$0xff]  ;;  %v17125_v57 = vld [vmem:[#allocation35_spill] sm:$0xff] }
 0x810   : > { %v6502_v32 = vsel %vm1651_vm3, %v6470_v55, %v17124_v42  ;;  %v4921_v40 = vsel %vm1585_vm1, %v8677_v4, %v17125_v57  ;;  %v8678_v54 = vld [vmem:[%s9976_s14 + $0xd8] sm:$0xff]  ;;  %v17126_v23 = vld [vmem:[#allocation68_spill] sm:$0xff]  ;;  %v17129_v52 = vld [vmem:[#allocation70_spill] sm:$0xff] }
 0x811   : > { %v4920_v21 = vsel %vm1585_vm1, %v8678_v54, %v17126_v23  ;;  %v8679_v25 = vld [vmem:[%s9976_s14 + $0xf8] sm:$0xff]  ;;  %v6534_v47 = vsel %vm1684_vm4, %v6502_v32, %v14424_v8  ;;  %v6241_v45 = vpop.permute.xlu0 %6240  ;;  %v8680_v19 = vld [vmem:[%s9976_s14 + $0xf0] sm:$0xff]  ;;  %v8682_v50 = vld [vmem:[%s9976_s14 + $0x108] sm:$0xff] }
 0x812   : > { %v14582_v37 = vpop.permute.xlu1 %5860  ;;  %v17127_v10 = vld [vmem:[#allocation69_spill] sm:$0xff]  ;;  %v17128_v43 = vld [vmem:[#allocation36_spill] sm:$0xff]  ;;  %v17130_v9 = vld [vmem:[#allocation71_spill] sm:$0xff]  ;;  %v6566_v53 = vsel %vm1717_vm5, %v6534_v47, %v14493_v46 }
 0x813   : > { %v4923_v44 = vsel %vm1585_vm1, %v8679_v25, %v17127_v10  ;;  %v4922_v28 = vsel %vm1585_vm1, %v8680_v19, %v17128_v43  ;;  %v8681_v20 = vld [vmem:[%s9976_s14 + $0x110] sm:$0xff]  ;;  %v4924_v62 = vsel %vm1585_vm1, %v8682_v50, %v17130_v9  ;;  %v8683_v31 = vld [vmem:[%s9976_s14 + $0x128] sm:$0xff]  ;;  %v8684_v13 = vld [vmem:[%s9976_s14 + $0x120] sm:$0xff]  ;;  %v6598_v58 = vsel %vm1750_vm6, %v6566_v53, %v6113_v36 }
 0x814   : > { %v4925_v24 = vsel %vm1585_vm1, %v8681_v20, %v17129_v52  ;;  %v17131_v18 = vld [vmem:[#allocation39_spill] sm:$0xff]  ;;  %v17132_v26 = vld [vmem:[#allocation94_spill] sm:$0xff]  ;;  %v17133_v51 = vld [vmem:[#allocation160_spill] sm:$0xff]  ;;  %v6630_v15 = vsel %vm15903_vm7, %v6598_v58, %v6241_v45 }
 0x815   : > { %v4927_v8 = vsel %vm1585_vm1, %v8683_v31, %v17131_v18  ;;  %v4926_v29 = vsel %vm1585_vm1, %v8684_v13, %v17132_v26  ;;  %v4937_v49 = vsel %vm1618_vm2, %v4905_v34, %v17133_v51  ;;  %v17134_v2 = vld [vmem:[#allocation161_spill] sm:$0xff]  ;;  %v17135_v27 = vld [vmem:[#allocation4_spill] sm:$0xff]  ;;  %v17138_v42 = vld [vmem:[#allocation54_spill] sm:$0xff]  ;;  %v6243_v4 = vpop.permute.xlu0 %6242 }
 0x816   : > { %v4936_v16 = vsel %vm1618_vm2, %v4904_v12, %v17134_v2  ;;  %v4939_v55 = vsel %vm1618_vm2, %v4907_v30, %v17135_v27  ;;  %v17136_v46 = vld [vmem:[#allocation5_spill] sm:$0xff]  ;;  %v8083_v60 = vld [vmem:[%s9976_s14 + $0x189] sm:$0xff]  ;;  %v6369_v0 = vpop.permute.xlu1 %6368  ;;  %v4940_v34 = vsel %vm1618_vm2, %v4908_v35, %v17138_v42  ;;  %v17148_v20 = vld [vmem:[#allocation162_spill] sm:$0xff] }
 0x817   : > { %v4938_v11 = vsel %vm1618_vm2, %v4906_v39, %v17136_v46  ;;  %v17137_v22 = vld [vmem:[#allocation40_spill] sm:$0xff]  ;;  %v17139_v36 = vld [vmem:[#allocation57_spill] sm:$0xff]  ;;  %v6662_v12 = vsel %vm1816_vm8, %v6630_v15, %v6369_v0  ;;  %v17141_v39 = vld [vmem:[#allocation6_spill] sm:$0xff] }
 0x818   : > { %v4941_v5 = vsel %vm1618_vm2, %v4909_v14, %v17137_v22  ;;  %v4943_v32 = vsel %vm1618_vm2, %v4911_v1, %v17139_v36  ;;  %v17140_v30 = vld [vmem:[#allocation72_spill] sm:$0xff]  ;;  %v4945_v54 = vsel %vm1618_vm2, %v4913_v38, %v17141_v39  ;;  %v17142_v23 = vld [vmem:[#allocation73_spill] sm:$0xff]  ;;  %6752 = vrot.lane.b32.xlu0 %v6662_v12, %s8725_s29  ;;  %v17149_v52 = vld [vmem:[#allocation163_spill] sm:$0xff] }
 0x819   : > { %v4942_v57 = vsel %vm1618_vm2, %v4910_v41, %v17140_v30  ;;  %v4944_v25 = vsel %vm1618_vm2, %v4912_v3, %v17142_v23  ;;  %v17143_v10 = vld [vmem:[#allocation136_spill] sm:$0xff]  ;;  %v17144_v35 = vld [vmem:[#allocation137_spill] sm:$0xff]  ;;  %v4951_v3 = vsel %vm1618_vm2, %v4919_v33, %v17148_v20  ;;  %v17153_v18 = vld [vmem:[#allocation43_spill] sm:$0xff]  ;;  %v14665_v58 = vpop.permute.xlu0 %5862 }
 0x81a   : > { %v4947_v14 = vsel %vm1618_vm2, %v4915_v48, %v17143_v10  ;;  %v4946_v1 = vsel %vm1618_vm2, %v4914_v56, %v17144_v35  ;;  %v17145_v47 = vld [vmem:[#allocation96_spill] sm:$0xff]  ;;  %v17146_v19 = vld [vmem:[#allocation97_spill] sm:$0xff]  ;;  %v4950_v48 = vsel %vm1618_vm2, %v4918_v17, %v17149_v52  ;;  %v14655_v31 = vpop.permute.xlu1 %5988  ;;  %v4955_v13 = vsel %vm1618_vm2, %v4923_v44, %v17153_v18  ;;  %v17154_v26 = vld [vmem:[#allocation58_spill] sm:$0xff] }
 0x81b   : > { %v4949_v45 = vsel %vm1618_vm2, %v4917_v61, %v17145_v47  ;;  %v4948_v41 = vsel %vm1618_vm2, %v4916_v7, %v17146_v19  ;;  %v17147_v43 = vld [vmem:[#allocation396_spill] sm:$0xff]  ;;  %v17152_v61 = vld [vmem:[#allocation9_spill] sm:$0xff]  ;;  %v4954_v33 = vsel %vm1618_vm2, %v4922_v28, %v17154_v26  ;;  %v17157_v27 = vld [vmem:[#allocation74_spill] sm:$0xff] }
 0x81c   : > { %v6439_v38 = vsel %vm1585_vm1, %v8083_v60, %v17147_v43  ;;  %v17150_v50 = vld [vmem:[#allocation8_spill] sm:$0xff]  ;;  %v4952_v7 = vsel %vm1618_vm2, %v4920_v21, %v17152_v61  ;;  %v4956_v46 = vsel %vm1618_vm2, %v4924_v62, %v17157_v27  ;;  %v17158_v60 = vld [vmem:[#allocation7_spill] sm:$0xff]  ;;  %v17160_v0 = vld [vmem:[#allocation138_spill] sm:$0xff] }
 0x81d   : > { %v4953_v9 = vsel %vm1618_vm2, %v4921_v40, %v17150_v50  ;;  %v17151_v53 = vld [vmem:[#allocation424_spill] sm:$0xff]  ;;  %v17156_v40 = vld [vmem:[#allocation61_spill] sm:$0xff]  ;;  %v4959_v21 = vsel %vm1618_vm2, %v4927_v8, %v17158_v60  ;;  %v17159_v15 = vld [vmem:[#allocation75_spill] sm:$0xff]  ;;  %v4969_v22 = vsel %vm1651_vm3, %v4937_v49, %v17160_v0  ;;  %v6371_v47 = vpop.permute.xlu0 %6370 }
 0x81e   : > { %v6471_v56 = vsel %vm1618_vm2, %v6439_v38, %v17151_v53  ;;  %v17155_v51 = vld [vmem:[#allocation452_spill] sm:$0xff]  ;;  %v4957_v2 = vsel %vm1618_vm2, %v4925_v24, %v17156_v40  ;;  %v4958_v28 = vsel %vm1618_vm2, %v4926_v29, %v17159_v15  ;;  %v17161_v42 = vld [vmem:[#allocation139_spill] sm:$0xff]  ;;  %v17162_v12 = vld [vmem:[#allocation98_spill] sm:$0xff]  ;;  %v14691_v49 = vpop.permute.xlu1 %5990 }
 0x81f   : > { %v6503_v17 = vsel %vm1651_vm3, %v6471_v56, %v17155_v51  ;;  %v4968_v36 = vsel %vm1651_vm3, %v4936_v16, %v17161_v42  ;;  %v4971_v62 = vsel %vm1651_vm3, %v4939_v55, %v17162_v12  ;;  %v17163_v30 = vld [vmem:[#allocation99_spill] sm:$0xff]  ;;  %v17164_v39 = vld [vmem:[#allocation164_spill] sm:$0xff]  ;;  %v17165_v23 = vld [vmem:[#allocation165_spill] sm:$0xff] }
 0x820   : > { %v6535_v44 = vsel %vm1684_vm4, %v6503_v17, %v14503_v63  ;;  %v4970_v8 = vsel %vm1651_vm3, %v4938_v11, %v17163_v30  ;;  %v4973_v63 = vsel %vm1651_vm3, %v4941_v5, %v17164_v39  ;;  %v4972_v16 = vsel %vm1651_vm3, %v4940_v34, %v17165_v23  ;;  %v17166_v10 = vld [vmem:[#allocation14_spill] sm:$0xff]  ;;  %v17167_v35 = vld [vmem:[#allocation17_spill] sm:$0xff]  ;;  %v17168_v19 = vld [vmem:[#allocation44_spill] sm:$0xff] }
 0x821   : > { %v6567_v24 = vsel %vm1717_vm5, %v6535_v44, %v14518_v6  ;;  %v4975_v6 = vsel %vm1651_vm3, %v4943_v32, %v17166_v10  ;;  %v4974_v55 = vsel %vm1651_vm3, %v4942_v57, %v17167_v35  ;;  %v4977_v5 = vsel %vm1651_vm3, %v4945_v54, %v17168_v19  ;;  %v17169_v43 = vld [vmem:[#allocation62_spill] sm:$0xff]  ;;  %v17170_v38 = vld [vmem:[#allocation65_spill] sm:$0xff]  ;;  %v17171_v52 = vld [vmem:[#allocation76_spill] sm:$0xff]  ;;  %v6117_v0 = vpop.permute.xlu0 %6116 }
 0x822   : > { %v6599_v29 = vsel %vm1750_vm6, %v6567_v24, %v14534_v59  ;;  %v4976_v59 = vsel %vm1651_vm3, %v4944_v25, %v17169_v43  ;;  %v4979_v20 = vsel %vm1651_vm3, %v4947_v14, %v17170_v38  ;;  %v4978_v32 = vsel %vm1651_vm3, %v4946_v1, %v17171_v52  ;;  %v17172_v50 = vld [vmem:[#allocation11_spill] sm:$0xff]  ;;  %v17173_v53 = vld [vmem:[#allocation77_spill] sm:$0xff]  ;;  %v17174_v56 = vld [vmem:[#allocation140_spill] sm:$0xff]  ;;  %v14725_v40 = vpop.permute.xlu1 %6118 }
 0x823   : > { %v6631_v11 = vsel %vm15903_vm7, %v6599_v29, %v6243_v4  ;;  %v4981_v57 = vsel %vm1651_vm3, %v4949_v45, %v17172_v50  ;;  %v4980_v4 = vsel %vm1651_vm3, %v4948_v41, %v17173_v53  ;;  %v4983_v54 = vsel %vm1651_vm3, %v4951_v3, %v17174_v56  ;;  %v8084_v61 = vld [vmem:[%s9976_s14 + $0x199] sm:$0xff]  ;;  %v17176_v18 = vld [vmem:[#allocation100_spill] sm:$0xff]  ;;  %v17179_v41 = vld [vmem:[#allocation167_spill] sm:$0xff] }
 0x824   : > { %v6663_v34 = vsel %vm1816_vm8, %v6631_v11, %v6371_v47  ;;  %v17175_v25 = vld [vmem:[#allocation141_spill] sm:$0xff]  ;;  %v4985_v26 = vsel %vm1651_vm3, %v4953_v9, %v17176_v18  ;;  %v17178_v17 = vld [vmem:[#allocation166_spill] sm:$0xff]  ;;  %v4986_v3 = vsel %vm1651_vm3, %v4954_v33, %v17179_v41  ;;  %v17182_v15 = vld [vmem:[#allocation47_spill] sm:$0xff] }
 0x825   : > { %6754 = vrot.lane.b32.xlu1 %v6663_v34, %s8725_s29  ;;  %v4982_v14 = vsel %vm1651_vm3, %v4950_v48, %v17175_v25  ;;  %v17177_v51 = vld [vmem:[#allocation101_spill] sm:$0xff]  ;;  %v4987_v45 = vsel %vm1651_vm3, %v4955_v13, %v17178_v17  ;;  %v17180_v27 = vld [vmem:[#allocation18_spill] sm:$0xff]  ;;  %v4991_v9 = vsel %vm1651_vm3, %v4959_v21, %v17182_v15  ;;  %v17185_v12 = vld [vmem:[#allocation79_spill] sm:$0xff]  ;;  %v6245_v56 = vpop.permute.xlu0 %6244 }
 0x826   : > { %v4984_v1 = vsel %vm1651_vm3, %v4952_v7, %v17177_v51  ;;  %v4989_v60 = vsel %vm1651_vm3, %v4957_v2, %v17180_v27  ;;  %v17181_v44 = vld [vmem:[#allocation21_spill] sm:$0xff]  ;;  %v17183_v42 = vld [vmem:[#allocation118_spill] sm:$0xff]  ;;  %v5000_v30 = vsel %vm1684_vm4, %v4968_v36, %v17185_v12  ;;  %v17186_v33 = vld [vmem:[#allocation399_spill] sm:$0xff] }
 0x827   : > { %v4988_v48 = vsel %vm1651_vm3, %v4956_v46, %v17181_v44  ;;  %v4990_v7 = vsel %vm1651_vm3, %v4958_v28, %v17183_v42  ;;  %v17184_v24 = vld [vmem:[#allocation78_spill] sm:$0xff]  ;;  %v6440_v39 = vsel %vm1585_vm1, %v8084_v61, %v17186_v33  ;;  %v17188_v46 = vld [vmem:[#allocation143_spill] sm:$0xff]  ;;  %v17192_v47 = vld [vmem:[#allocation168_spill] sm:$0xff] }
 0x828   : > { %v5001_v13 = vsel %vm1684_vm4, %v4969_v22, %v17184_v24  ;;  %v17187_v2 = vld [vmem:[#allocation142_spill] sm:$0xff]  ;;  %v5002_v23 = vsel %vm1684_vm4, %v4970_v8, %v17188_v46  ;;  %v17190_v35 = vld [vmem:[#allocation427_spill] sm:$0xff]  ;;  %v5007_v36 = vsel %vm1684_vm4, %v4975_v6, %v17192_v47  ;;  %v17193_v19 = vld [vmem:[#allocation169_spill] sm:$0xff]  ;;  %v14759_v8 = vpop.permute.xlu1 %5864 }
 0x829   : > { %v5003_v29 = vsel %vm1684_vm4, %v4971_v62, %v17187_v2  ;;  %v17189_v21 = vld [vmem:[#allocation102_spill] sm:$0xff]  ;;  %v6472_v28 = vsel %vm1618_vm2, %v6440_v39, %v17190_v35  ;;  %v17191_v11 = vld [vmem:[#allocation103_spill] sm:$0xff]  ;;  %v5006_v43 = vsel %vm1684_vm4, %v4974_v55, %v17193_v19  ;;  %v17196_v52 = vld [vmem:[#allocation25_spill] sm:$0xff] }
 0x82a   : > { %v5005_v10 = vsel %vm1684_vm4, %v4973_v63, %v17189_v21  ;;  %v5004_v22 = vsel %vm1684_vm4, %v4972_v16, %v17191_v11  ;;  %v17194_v62 = vld [vmem:[#allocation455_spill] sm:$0xff]  ;;  %v17195_v34 = vld [vmem:[#allocation22_spill] sm:$0xff]  ;;  %v5008_v50 = vsel %vm1684_vm4, %v4976_v59, %v17196_v52  ;;  %v17197_v53 = vld [vmem:[#allocation48_spill] sm:$0xff]  ;;  %v6247_v21 = vpop.permute.xlu0 %6246 }
 0x82b   : > { %v6504_v38 = vsel %vm1651_vm3, %v6472_v28, %v17194_v62  ;;  %v5009_v63 = vsel %vm1684_vm4, %v4977_v5, %v17195_v34  ;;  %v5011_v16 = vsel %vm1684_vm4, %v4979_v20, %v17197_v53  ;;  %v17198_v61 = vld [vmem:[#allocation120_spill] sm:$0xff]  ;;  %v17199_v25 = vld [vmem:[#allocation121_spill] sm:$0xff]  ;;  %v8085_v15 = vld [vmem:[%s9976_s14 + $0x1a1] sm:$0xff] }
 0x82c   : > { %v6536_v6 = vsel %vm1684_vm4, %v6504_v38, %v14582_v37  ;;  %v5010_v55 = vsel %vm1684_vm4, %v4978_v32, %v17198_v61  ;;  %v5013_v18 = vsel %vm1684_vm4, %v4981_v57, %v17199_v25  ;;  %v17200_v51 = vld [vmem:[#allocation80_spill] sm:$0xff]  ;;  %v17201_v59 = vld [vmem:[#allocation81_spill] sm:$0xff]  ;;  %v17206_v12 = vld [vmem:[#allocation170_spill] sm:$0xff]  ;;  %v6373_v33 = vpop.permute.xlu1 %6372 }
 0x82d   : > { %v5012_v17 = vsel %vm1684_vm4, %v4980_v4, %v17200_v51  ;;  %v6568_v5 = vsel %vm1717_vm5, %v6536_v6, %v14655_v31  ;;  %v5015_v41 = vsel %vm1684_vm4, %v4983_v54, %v17201_v59  ;;  %v17202_v20 = vld [vmem:[#allocation144_spill] sm:$0xff]  ;;  %v17203_v37 = vld [vmem:[#allocation145_spill] sm:$0xff]  ;;  %v5018_v31 = vsel %vm1684_vm4, %v4986_v3, %v17206_v12  ;;  %v17207_v39 = vld [vmem:[#allocation171_spill] sm:$0xff] }
 0x82e   : > { %v5014_v27 = vsel %vm1684_vm4, %v4982_v14, %v17202_v20  ;;  %v5017_v44 = vsel %vm1684_vm4, %v4985_v26, %v17203_v37  ;;  %v6600_v32 = vsel %vm1750_vm6, %v6568_v5, %v6117_v0  ;;  %v17204_v42 = vld [vmem:[#allocation104_spill] sm:$0xff]  ;;  %v17205_v24 = vld [vmem:[#allocation105_spill] sm:$0xff]  ;;  %v5021_v14 = vsel %vm1684_vm4, %v4989_v60, %v17207_v39  ;;  %v17208_v2 = vld [vmem:[#allocation26_spill] sm:$0xff] }
 0x82f   : > { %v5016_v57 = vsel %vm1684_vm4, %v4984_v1, %v17204_v42  ;;  %v5019_v4 = vsel %vm1684_vm4, %v4987_v45, %v17205_v24  ;;  %v6632_v54 = vsel %vm15903_vm7, %v6600_v32, %v6245_v56  ;;  %v5020_v26 = vsel %vm1684_vm4, %v4988_v48, %v17208_v2  ;;  %v17209_v46 = vld [vmem:[#allocation29_spill] sm:$0xff]  ;;  %v17210_v35 = vld [vmem:[#allocation51_spill] sm:$0xff]  ;;  %v17212_v11 = vld [vmem:[#allocation82_spill] sm:$0xff] }
 0x830   : > { %v5023_v0 = vsel %vm1684_vm4, %v4991_v9, %v17209_v46  ;;  %v6664_v1 = vsel %vm1816_vm8, %v6632_v54, %v6373_v33  ;;  %v5022_v45 = vsel %vm1684_vm4, %v4990_v7, %v17210_v35  ;;  %v17211_v28 = vld [vmem:[#allocation123_spill] sm:$0xff]  ;;  %v5032_v47 = vsel %vm1717_vm5, %v5000_v30, %v17212_v11  ;;  %v17213_v19 = vld [vmem:[#allocation398_spill] sm:$0xff]  ;;  %v17220_v61 = vld [vmem:[#allocation172_spill] sm:$0xff]  ;;  %v14824_v5 = vpop.permute.xlu1 %5932 }
 0x831   : > { %v5033_v3 = vsel %vm1717_vm5, %v5001_v13, %v17211_v28  ;;  %v6441_v60 = vsel %vm1585_vm1, %v8085_v15, %v17213_v19  ;;  %6756 = vrot.lane.b32.xlu0 %v6664_v1, %s8725_s29  ;;  %v17214_v48 = vld [vmem:[#allocation83_spill] sm:$0xff]  ;;  %v17215_v62 = vld [vmem:[#allocation146_spill] sm:$0xff]  ;;  %v5038_v25 = vsel %vm1717_vm5, %v5006_v43, %v17220_v61  ;;  %v17224_v37 = vld [vmem:[#allocation33_spill] sm:$0xff]  ;;  %v14834_v15 = vpop.permute.xlu0 %5866 }
 0x832   : > { %v5035_v9 = vsel %vm1717_vm5, %v5003_v29, %v17214_v48  ;;  %v5034_v38 = vsel %vm1717_vm5, %v5002_v23, %v17215_v62  ;;  %v17216_v34 = vld [vmem:[#allocation147_spill] sm:$0xff]  ;;  %v17217_v52 = vld [vmem:[#allocation426_spill] sm:$0xff]  ;;  %v17222_v23 = vld [vmem:[#allocation173_spill] sm:$0xff] }
 0x833   : > { %v5037_v7 = vsel %vm1717_vm5, %v5005_v10, %v17216_v34  ;;  %v6473_v13 = vsel %vm1618_vm2, %v6441_v60, %v17217_v52  ;;  %v17218_v53 = vld [vmem:[#allocation106_spill] sm:$0xff]  ;;  %v17219_v6 = vld [vmem:[#allocation107_spill] sm:$0xff]  ;;  %v5041_v10 = vsel %vm1717_vm5, %v5009_v63, %v17222_v23  ;;  %v17225_v43 = vld [vmem:[#allocation52_spill] sm:$0xff] }
 0x834   : > { %v5036_v30 = vsel %vm1717_vm5, %v5004_v22, %v17218_v53  ;;  %v5039_v56 = vsel %vm1717_vm5, %v5007_v36, %v17219_v6  ;;  %v17221_v51 = vld [vmem:[#allocation454_spill] sm:$0xff]  ;;  %v5043_v22 = vsel %vm1717_vm5, %v5011_v16, %v17224_v37  ;;  %v5042_v32 = vsel %vm1717_vm5, %v5010_v55, %v17225_v43  ;;  %v17226_v42 = vld [vmem:[#allocation124_spill] sm:$0xff]  ;;  %v17227_v12 = vld [vmem:[#allocation125_spill] sm:$0xff]  ;;  %v6375_v28 = vpop.permute.xlu1 %6374 }
 0x835   : > { %v6505_v29 = vsel %vm1651_vm3, %v6473_v13, %v17221_v51  ;;  %v17223_v59 = vld [vmem:[#allocation30_spill] sm:$0xff]  ;;  %v5045_v24 = vsel %vm1717_vm5, %v5013_v18, %v17226_v42  ;;  %v5044_v63 = vsel %vm1717_vm5, %v5012_v17, %v17227_v12  ;;  %v17228_v54 = vld [vmem:[#allocation84_spill] sm:$0xff]  ;;  %v17229_v33 = vld [vmem:[#allocation85_spill] sm:$0xff]  ;;  %v14866_v48 = vpop.permute.xlu0 %5992 }
 0x836   : > { %v5040_v20 = vsel %vm1717_vm5, %v5008_v50, %v17223_v59  ;;  %v6537_v36 = vsel %vm1684_vm4, %v6505_v29, %v14665_v58  ;;  %v5047_v16 = vsel %vm1717_vm5, %v5015_v41, %v17228_v54  ;;  %v5046_v58 = vsel %vm1717_vm5, %v5014_v27, %v17229_v33  ;;  %v17230_v39 = vld [vmem:[#allocation148_spill] sm:$0xff]  ;;  %v17231_v46 = vld [vmem:[#allocation149_spill] sm:$0xff]  ;;  %v17234_v11 = vld [vmem:[#allocation174_spill] sm:$0xff] }
 0x837   : > { %v6569_v50 = vsel %vm1717_vm5, %v6537_v36, %v14691_v49  ;;  %v5049_v2 = vsel %vm1717_vm5, %v5017_v44, %v17230_v39  ;;  %v5048_v18 = vsel %vm1717_vm5, %v5016_v57, %v17231_v46  ;;  %v17232_v1 = vld [vmem:[#allocation108_spill] sm:$0xff]  ;;  %v17233_v35 = vld [vmem:[#allocation109_spill] sm:$0xff]  ;;  %v5053_v27 = vsel %vm1717_vm5, %v5021_v14, %v17234_v11  ;;  %v17235_v19 = vld [vmem:[#allocation175_spill] sm:$0xff] }
 0x838   : > { %v6601_v55 = vsel %vm1750_vm6, %v6569_v50, %v14725_v40  ;;  %v5051_v17 = vsel %vm1717_vm5, %v5019_v4, %v17232_v1  ;;  %v5050_v49 = vsel %vm1717_vm5, %v5018_v31, %v17233_v35  ;;  %v5052_v44 = vsel %vm1717_vm5, %v5020_v26, %v17235_v19  ;;  %v17236_v60 = vld [vmem:[#allocation34_spill] sm:$0xff]  ;;  %v17237_v4 = vld [vmem:[#allocation37_spill] sm:$0xff]  ;;  %v17239_v34 = vld [vmem:[#allocation87_spill] sm:$0xff]  ;;  %v14893_v43 = vpop.permute.xlu1 %5994 }
 0x839   : > { %v6633_v41 = vsel %vm15903_vm7, %v6601_v55, %v6247_v21  ;;  %v5055_v40 = vsel %vm1717_vm5, %v5023_v0, %v17236_v60  ;;  %v5054_v62 = vsel %vm1717_vm5, %v5022_v45, %v17237_v4  ;;  %v17238_v31 = vld [vmem:[#allocation86_spill] sm:$0xff]  ;;  %v5064_v52 = vsel %vm1750_vm6, %v5032_v47, %v17239_v34  ;;  %v17241_v26 = vld [vmem:[#allocation151_spill] sm:$0xff]  ;;  %v17244_v51 = vld [vmem:[#allocation176_spill] sm:$0xff]  ;;  %v14903_v54 = vpop.permute.xlu0 %5934 }
 0x83a   : > { %v6665_v57 = vsel %vm1816_vm8, %v6633_v41, %v6375_v28  ;;  %v5065_v21 = vsel %vm1750_vm6, %v5033_v3, %v17238_v31  ;;  %v17240_v14 = vld [vmem:[#allocation150_spill] sm:$0xff]  ;;  %v5066_v0 = vsel %vm1750_vm6, %v5034_v38, %v17241_v26  ;;  %v17243_v61 = vld [vmem:[#allocation111_spill] sm:$0xff]  ;;  %v5071_v3 = vsel %vm1750_vm6, %v5039_v56, %v17244_v51  ;;  %v17245_v29 = vld [vmem:[#allocation177_spill] sm:$0xff] }
 0x83b   : > { %v5067_v13 = vsel %vm1750_vm6, %v5035_v9, %v17240_v14  ;;  %6758 = vrot.lane.b32.xlu1 %v6665_v57, %s8725_s29  ;;  %v17242_v53 = vld [vmem:[#allocation110_spill] sm:$0xff]  ;;  %v5068_v45 = vsel %vm1750_vm6, %v5036_v30, %v17243_v61  ;;  %v5070_v47 = vsel %vm1750_vm6, %v5038_v25, %v17245_v29  ;;  %v17247_v59 = vld [vmem:[#allocation41_spill] sm:$0xff]  ;;  %v17248_v36 = vld [vmem:[#allocation56_spill] sm:$0xff] }
 0x83c   : > { %v5069_v6 = vsel %vm1750_vm6, %v5037_v7, %v17242_v53  ;;  %v17246_v23 = vld [vmem:[#allocation38_spill] sm:$0xff]  ;;  %v5072_v37 = vsel %vm1750_vm6, %v5040_v20, %v17247_v59  ;;  %v5075_v38 = vsel %vm1750_vm6, %v5043_v22, %v17248_v36  ;;  %v17249_v7 = vld [vmem:[#allocation128_spill] sm:$0xff]  ;;  %v17250_v42 = vld [vmem:[#allocation129_spill] sm:$0xff]  ;;  %v14929_v31 = vpop.permute.xlu1 %6120 }
 0x83d   : > { %v5073_v9 = vsel %vm1750_vm6, %v5041_v10, %v17246_v23  ;;  %v5074_v30 = vsel %vm1750_vm6, %v5042_v32, %v17249_v7  ;;  %v5077_v56 = vsel %vm1750_vm6, %v5045_v24, %v17250_v42  ;;  %v17251_v12 = vld [vmem:[#allocation88_spill] sm:$0xff]  ;;  %v17252_v50 = vld [vmem:[#allocation89_spill] sm:$0xff]  ;;  %v17257_v1 = vld [vmem:[#allocation178_spill] sm:$0xff]  ;;  %v14939_v53 = vpop.permute.xlu0 %6060 }
 0x83e   : > { %v5076_v25 = vsel %vm1750_vm6, %v5044_v63, %v17251_v12  ;;  %v5079_v10 = vsel %vm1750_vm6, %v5047_v16, %v17252_v50  ;;  %v17253_v20 = vld [vmem:[#allocation152_spill] sm:$0xff]  ;;  %v17254_v22 = vld [vmem:[#allocation153_spill] sm:$0xff]  ;;  %v5082_v63 = vsel %vm1750_vm6, %v5050_v49, %v17257_v1  ;;  %v17258_v35 = vld [vmem:[#allocation179_spill] sm:$0xff] }
 0x83f   : > { %v5078_v33 = vsel %vm1750_vm6, %v5046_v58, %v17253_v20  ;;  %v5081_v39 = vsel %vm1750_vm6, %v5049_v2, %v17254_v22  ;;  %v17255_v55 = vld [vmem:[#allocation112_spill] sm:$0xff]  ;;  %v17256_v46 = vld [vmem:[#allocation113_spill] sm:$0xff]  ;;  %v5085_v16 = vsel %vm1750_vm6, %v5053_v27, %v17258_v35  ;;  %v17259_v41 = vld [vmem:[#allocation42_spill] sm:$0xff] }
 0x840   : > { %v5080_v32 = vsel %vm1750_vm6, %v5048_v18, %v17255_v55  ;;  %v5083_v24 = vsel %vm1750_vm6, %v5051_v17, %v17256_v46  ;;  %v5084_v28 = vsel %vm1750_vm6, %v5052_v44, %v17259_v41  ;;  %v17260_v11 = vld [vmem:[#allocation45_spill] sm:$0xff]  ;;  %v17261_v19 = vld [vmem:[#allocation59_spill] sm:$0xff]  ;;  %v17263_v57 = vld [vmem:[#allocation154_spill] sm:$0xff] }
 0x841   : > { %v5087_v58 = vsel %vm1750_vm6, %v5055_v40, %v17260_v11  ;;  %v5086_v2 = vsel %vm1750_vm6, %v5054_v62, %v17261_v19  ;;  %v17262_v60 = vld [vmem:[#allocation91_spill] sm:$0xff]  ;;  %v5096_v17 = vsel %vm15903_vm7, %v5064_v52, %v17263_v57  ;;  %v17265_v27 = vld [vmem:[#allocation114_spill] sm:$0xff]  ;;  %v17267_v14 = vld [vmem:[#allocation180_spill] sm:$0xff] }
 0x842   : > { %v5097_v18 = vsel %vm15903_vm7, %v5065_v21, %v17262_v60  ;;  %v17264_v4 = vld [vmem:[#allocation155_spill] sm:$0xff]  ;;  %v5098_v44 = vsel %vm15903_vm7, %v5066_v0, %v17265_v27  ;;  %v5100_v62 = vsel %vm15903_vm7, %v5068_v45, %v17267_v14  ;;  %v17268_v26 = vld [vmem:[#allocation181_spill] sm:$0xff]  ;;  %v17269_v52 = vld [vmem:[#allocation46_spill] sm:$0xff] }
 0x843   : > { %v5099_v49 = vsel %vm15903_vm7, %v5067_v13, %v17264_v4  ;;  %v17266_v34 = vld [vmem:[#allocation115_spill] sm:$0xff]  ;;  %v5103_v21 = vsel %vm15903_vm7, %v5071_v3, %v17268_v26  ;;  %v5102_v61 = vsel %vm15903_vm7, %v5070_v47, %v17269_v52  ;;  %v17270_v13 = vld [vmem:[#allocation49_spill] sm:$0xff]  ;;  %v17271_v29 = vld [vmem:[#allocation60_spill] sm:$0xff] }
 0x844   : > { %v5101_v40 = vsel %vm15903_vm7, %v5069_v6, %v17266_v34  ;;  %v5105_v51 = vsel %vm15903_vm7, %v5073_v9, %v17270_v13  ;;  %v5104_v0 = vsel %vm15903_vm7, %v5072_v37, %v17271_v29  ;;  %v17272_v23 = vld [vmem:[#allocation132_spill] sm:$0xff]  ;;  %v17273_v59 = vld [vmem:[#allocation133_spill] sm:$0xff]  ;;  %v17280_v55 = vld [vmem:[#allocation2_spill] sm:$0xff] }
 0x845   : > { %v5107_v6 = vsel %vm15903_vm7, %v5075_v38, %v17272_v23  ;;  %v5106_v45 = vsel %vm15903_vm7, %v5074_v30, %v17273_v59  ;;  %v17274_v36 = vld [vmem:[#allocation92_spill] sm:$0xff]  ;;  %v17275_v7 = vld [vmem:[#allocation93_spill] sm:$0xff]  ;;  %v5115_v30 = vsel %vm15903_vm7, %v5083_v24, %v17280_v55  ;;  %v17281_v46 = vld [vmem:[#allocation3_spill] sm:$0xff] }
 0x846   : > { %v5109_v3 = vsel %vm15903_vm7, %v5077_v56, %v17274_v36  ;;  %v5108_v42 = vsel %vm15903_vm7, %v5076_v25, %v17275_v7  ;;  %v17276_v12 = vld [vmem:[#allocation156_spill] sm:$0xff]  ;;  %v17277_v50 = vld [vmem:[#allocation157_spill] sm:$0xff]  ;;  %v14965_v56 = vpop.permute.xlu1 %6122  ;;  %v5114_v25 = vsel %vm15903_vm7, %v5082_v63, %v17281_v46  ;;  %v17282_v1 = vld [vmem:[#allocation50_spill] sm:$0xff] }
 0x847   : > { %v5111_v47 = vsel %vm15903_vm7, %v5079_v10, %v17276_v12  ;;  %v5110_v9 = vsel %vm15903_vm7, %v5078_v33, %v17277_v50  ;;  %v17278_v20 = vld [vmem:[#allocation116_spill] sm:$0xff]  ;;  %v17279_v22 = vld [vmem:[#allocation117_spill] sm:$0xff]  ;;  %v5117_v10 = vsel %vm15903_vm7, %v5085_v16, %v17282_v1  ;;  %v17284_v41 = vld [vmem:[#allocation134_spill] sm:$0xff] }
 0x848   : > { %v5113_v37 = vsel %vm15903_vm7, %v5081_v39, %v17278_v20  ;;  %v5112_v38 = vsel %vm15903_vm7, %v5080_v32, %v17279_v22  ;;  %v17283_v35 = vld [vmem:[#allocation53_spill] sm:$0xff]  ;;  %v5119_v39 = vsel %vm15903_vm7, %v5087_v58, %v17284_v41  ;;  %v14975_v32 = vpop.permute.xlu0 %6062  ;;  %v17285_v11 = vld [vmem:[#allocation135_spill] sm:$0xff]  ;;  %v17287_v63 = vld [vmem:[#allocation184_spill] sm:$0xff] }
 0x849   : > { %v5116_v33 = vsel %vm15903_vm7, %v5084_v28, %v17283_v35  ;;  %v14979_v24 = vsel %vm15903_vm7, %v5086_v2, %v17285_v11  ;;  %v17286_v19 = vld [vmem:[#allocation183_spill] sm:$0xff]  ;;  %v5128_v57 = vsel %vm1816_vm8, %v5096_v17, %v17287_v63  ;;  %v17288_v16 = vld [vmem:[#allocation185_spill] sm:$0xff]  ;;  %v17289_v28 = vld [vmem:[#allocation186_spill] sm:$0xff] }
 0x84a   : > { %v5129_v60 = vsel %vm1816_vm8, %v5097_v18, %v17286_v19  ;;  %v5131_v4 = vsel %vm1816_vm8, %v5099_v49, %v17288_v16  ;;  %v5130_v27 = vsel %vm1816_vm8, %v5098_v44, %v17289_v28  ;;  %v17290_v34 = vld [vmem:[#allocation187_spill] sm:$0xff]  ;;  %v17291_v14 = vld [vmem:[#allocation188_spill] sm:$0xff]  ;;  %v17292_v26 = vld [vmem:[#allocation189_spill] sm:$0xff]  ;;  %v6249_v59 = vpop.permute.xlu1 %6248 }
 0x84b   : > { %v14991_v58 = vsel %vm1816_vm8, %v5101_v40, %v17290_v34  ;;  %v14995_v2 = vsel %vm1816_vm8, %v5100_v62, %v17291_v14  ;;  %v14999_v18 = vsel %vm1816_vm8, %v5103_v21, %v17292_v26  ;;  %v8086_v52 = vld [vmem:[%s9976_s14 + $0x1b1] sm:$0xff]  ;;  %v17293_v17 = vld [vmem:[#allocation190_spill] sm:$0xff]  ;;  %v17294_v49 = vld [vmem:[#allocation191_spill] sm:$0xff] }
 0x84c   : > { %v15004_v13 = vsel %vm1816_vm8, %v5102_v61, %v17293_v17  ;;  %v15008_v44 = vsel %vm1816_vm8, %v5105_v51, %v17294_v49  ;;  %v17295_v29 = vld [vmem:[#allocation192_spill] sm:$0xff]  ;;  %v17296_v23 = vld [vmem:[#allocation193_spill] sm:$0xff]  ;;  %v17297_v36 = vld [vmem:[#allocation194_spill] sm:$0xff] }
 0x84d   : > { %v15012_v40 = vsel %vm1816_vm8, %v5104_v0, %v17295_v29  ;;  %v15016_v62 = vsel %vm1816_vm8, %v5107_v6, %v17296_v23  ;;  %v8056_v21 = vld [vmem:[%s9976_s14 + $0x49] sm:$0xff]  ;;  %v15021_v7 = vsel %vm1816_vm8, %v5106_v45, %v17297_v36  ;;  %v17300_v50 = vld [vmem:[#allocation197_spill] sm:$0xff]  ;;  %v6189_v6 = vpop.permute.xlu0 %6188  ;;  %v17301_v22 = vld [vmem:[#allocation198_spill] sm:$0xff] }
 0x84e   : > { %v17298_v61 = vld [vmem:[#allocation195_spill] sm:$0xff]  ;;  %v17299_v12 = vld [vmem:[#allocation196_spill] sm:$0xff]  ;;  %v15033_v20 = vsel %vm1816_vm8, %v5111_v47, %v17300_v50  ;;  %v15037_v55 = vsel %vm1816_vm8, %v5110_v9, %v17301_v22  ;;  %v17304_v35 = vld [vmem:[#allocation401_spill] sm:$0xff]  ;;  %v6251_v29 = vpop.permute.xlu1 %6250 }
 0x84f   : > { %v15025_v51 = vsel %vm1816_vm8, %v5109_v3, %v17298_v61  ;;  %v15029_v0 = vsel %vm1816_vm8, %v5108_v42, %v17299_v12  ;;  %v17302_v45 = vld [vmem:[#allocation199_spill] sm:$0xff]  ;;  %v17303_v1 = vld [vmem:[#allocation200_spill] sm:$0xff]  ;;  %v6442_v42 = vsel %vm1585_vm1, %v8086_v52, %v17304_v35  ;;  %v17305_v41 = vld [vmem:[#allocation201_spill] sm:$0xff] }
 0x850   : > { %v15041_v46 = vsel %vm1816_vm8, %v5113_v37, %v17302_v45  ;;  %v15045_v3 = vsel %vm1816_vm8, %v5112_v38, %v17303_v1  ;;  %v15051_v47 = vsel %vm1816_vm8, %v5115_v30, %v17305_v41  ;;  %v17306_v11 = vld [vmem:[#allocation202_spill] sm:$0xff]  ;;  %v17307_v9 = vld [vmem:[#allocation385_spill] sm:$0xff]  ;;  %v17309_v38 = vld [vmem:[#allocation203_spill] sm:$0xff] }
 0x851   : > { %v15055_v19 = vsel %vm1816_vm8, %v5114_v25, %v17306_v11  ;;  %v6412_v63 = vsel %vm1585_vm1, %v8056_v21, %v17307_v9  ;;  %v8087_v37 = vld [vmem:[%s9976_s14 + $0x1b9] sm:$0xff]  ;;  %v15064_v34 = vsel %vm1816_vm8, %v5117_v10, %v17309_v38  ;;  %v17310_v14 = vld [vmem:[#allocation204_spill] sm:$0xff]  ;;  %v17311_v52 = vld [vmem:[#allocation403_spill] sm:$0xff]  ;;  %v6191_v50 = vpop.permute.xlu0 %6190 }
 0x852   : > { %v17308_v16 = vld [vmem:[#allocation429_spill] sm:$0xff]  ;;  %v15068_v26 = vsel %vm1816_vm8, %v5116_v33, %v17310_v14  ;;  %v6444_v25 = vsel %vm1618_vm2, %v6412_v63, %v17311_v52  ;;  %v17314_v36 = vld [vmem:[#allocation211_spill] sm:$0xff]  ;;  %v17316_v22 = vld [vmem:[#allocation212_spill] sm:$0xff] }
 0x853   : > { %v6474_v28 = vsel %vm1618_vm2, %v6442_v42, %v17308_v16  ;;  %v8057_v30 = vld [vmem:[%s9976_s14 + $0x51] sm:$0xff]  ;;  %v5161_v10 = vsel %vm1852_vm9, %v5129_v60, %v17314_v36  ;;  %v17315_v61 = vld [vmem:[#allocation431_spill] sm:$0xff]  ;;  %v5160_v45 = vsel %vm1852_vm9, %v5128_v57, %v17316_v22  ;;  %v17321_v16 = vld [vmem:[#allocation402_spill] sm:$0xff] }
 0x854   : > { %v17312_v17 = vld [vmem:[#allocation457_spill] sm:$0xff]  ;;  %v6476_v12 = vsel %vm1651_vm3, %v6444_v25, %v17315_v61  ;;  %v17317_v1 = vld [vmem:[#allocation400_spill] sm:$0xff]  ;;  %v17318_v42 = vld [vmem:[#allocation459_spill] sm:$0xff] }
 0x855   : > { %v6506_v49 = vsel %vm1651_vm3, %v6474_v28, %v17312_v17  ;;  %v17313_v23 = vld [vmem:[#allocation205_spill] sm:$0xff]  ;;  %v6443_v35 = vsel %vm1585_vm1, %v8087_v37, %v17317_v1  ;;  %v17319_v60 = vld [vmem:[#allocation384_spill] sm:$0xff]  ;;  %v17323_v52 = vld [vmem:[#allocation430_spill] sm:$0xff] }
 0x856   : > { %v15077_v21 = vsel %vm1816_vm8, %v5119_v39, %v17313_v23  ;;  %v6538_v33 = vsel %vm1684_vm4, %v6506_v49, %v14759_v8  ;;  %v6508_v39 = vsel %vm1684_vm4, %v6476_v12, %v17318_v42  ;;  %v6413_v11 = vsel %vm1585_vm1, %v8057_v30, %v17319_v60  ;;  %v17320_v9 = vld [vmem:[#allocation428_spill] sm:$0xff]  ;;  %v6377_v30 = vpop.permute.xlu1 %6376  ;;  %v6317_v49 = vpop.permute.xlu0 %6316  ;;  %v17324_v23 = vld [vmem:[#allocation213_spill] sm:$0xff]  ;;  %v17325_v61 = vld [vmem:[#allocation458_spill] sm:$0xff] }
 0x857   : > { %v6570_v41 = vsel %vm1717_vm5, %v6538_v33, %v14866_v48  ;;  %v6475_v63 = vsel %vm1618_vm2, %v6443_v35, %v17320_v9  ;;  %v6540_v8 = vsel %vm1717_vm5, %v6508_v39, %v14824_v5  ;;  %v6445_v37 = vsel %vm1618_vm2, %v6413_v11, %v17321_v16  ;;  %v17322_v28 = vld [vmem:[#allocation456_spill] sm:$0xff]  ;;  %v17326_v33 = vld [vmem:[#allocation214_spill] sm:$0xff]  ;;  %v17328_v35 = vld [vmem:[#allocation241_spill] sm:$0xff] }
 0x858   : > { %v6602_v57 = vsel %vm1750_vm6, %v6570_v41, %v14929_v31  ;;  %v6507_v38 = vsel %vm1651_vm3, %v6475_v63, %v17322_v28  ;;  %v6572_v48 = vsel %vm1750_vm6, %v6540_v8, %v14939_v53  ;;  %v6477_v25 = vsel %vm1651_vm3, %v6445_v37, %v17323_v52  ;;  %v17329_v42 = vld [vmem:[#allocation285_spill] sm:$0xff]  ;;  %v17330_v60 = vld [vmem:[#allocation286_spill] sm:$0xff]  ;;  %v17332_v8 = vld [vmem:[#allocation208_spill] sm:$0xff] }
 0x859   : > { %v6634_v14 = vsel %vm15903_vm7, %v6602_v57, %v6249_v59  ;;  %v6539_v5 = vsel %vm1684_vm4, %v6507_v38, %v14834_v15  ;;  %v6604_v31 = vsel %vm15903_vm7, %v6572_v48, %v6189_v6  ;;  %v5163_v36 = vsel %vm1852_vm9, %v5131_v4, %v17324_v23  ;;  %v17327_v6 = vld [vmem:[#allocation240_spill] sm:$0xff]  ;;  %v17331_v11 = vld [vmem:[#allocation126_spill] sm:$0xff]  ;;  %v17333_v16 = vld [vmem:[#allocation331_spill] sm:$0xff] }
 0x85a   : > { %v6666_v17 = vsel %vm1816_vm8, %v6634_v14, %v6377_v30  ;;  %v6509_v53 = vsel %vm1684_vm4, %v6477_v25, %v17325_v61  ;;  %v6571_v59 = vsel %vm1717_vm5, %v6539_v5, %v14893_v43  ;;  %v6636_v12 = vsel %vm1816_vm8, %v6604_v31, %v6317_v49  ;;  %v17334_v37 = vld [vmem:[#allocation242_spill] sm:$0xff]  ;;  %v17335_v38 = vld [vmem:[#allocation243_spill] sm:$0xff]  ;;  %v17336_v48 = vld [vmem:[#allocation332_spill] sm:$0xff] }
 0x85b   : > { %6760 = vrot.lane.b32.xlu1 %v6666_v17, %s8725_s29  ;;  %v5162_v15 = vsel %vm1852_vm9, %v5130_v27, %v17326_v33  ;;  %v5194_v22 = vsel %vm5190_vm10, %v5161_v10, %v17327_v6  ;;  %v6541_v1 = vsel %vm1717_vm5, %v6509_v53, %v14903_v54  ;;  %v6603_v4 = vsel %vm1750_vm6, %v6571_v59, %v14965_v56  ;;  %v6379_v10 = vpop.permute.xlu1 %6378  ;;  %v17337_v30 = vld [vmem:[#allocation356_spill] sm:$0xff]  ;;  %v17338_v25 = vld [vmem:[#allocation287_spill] sm:$0xff]  ;;  %v17339_v31 = vld [vmem:[#allocation357_spill] sm:$0xff] }
 0x85c   : > { %6700 = vrot.lane.b32.xlu0 %v6636_v12, %s8725_s29  ;;  %v5193_v43 = vsel %vm5190_vm10, %v5160_v45, %v17328_v35  ;;  %v5227_v39 = vsel %vm5223_vm11, %v5194_v22, %v17329_v42  ;;  %v6573_v27 = vsel %vm1750_vm6, %v6541_v1, %v14975_v32  ;;  %v6635_v41 = vsel %vm15903_vm7, %v6603_v4, %v6251_v29  ;;  %v6319_v45 = vpop.permute.xlu0 %6318  ;;  %v17340_v49 = vld [vmem:[#allocation363_spill] sm:$0xff]  ;;  %v17341_v61 = vld [vmem:[#allocation288_spill] sm:$0xff]  ;;  %v17346_v42 = vld [vmem:[#allocation333_spill] sm:$0xff] }
 0x85d   : > { %v5226_v54 = vsel %vm5223_vm11, %v5193_v43, %v17330_v60  ;;  %v5260_v56 = vsel %vm5256_vm12, %v5227_v39, %v17331_v11  ;;  %v6605_v9 = vsel %vm15903_vm7, %v6573_v27, %v6191_v50  ;;  %v6667_v63 = vsel %vm1816_vm8, %v6635_v41, %v6379_v10  ;;  %v17342_v59 = vld [vmem:[#allocation236_spill] sm:$0xff]  ;;  %v17344_v1 = vld [vmem:[#allocation215_spill] sm:$0xff]  ;;  %v17349_v11 = vld [vmem:[#allocation334_spill] sm:$0xff] }
 0x85e   : > { %v5259_v57 = vsel %vm5256_vm12, %v5226_v54, %v17332_v8  ;;  %v5293_v32 = vsel %vm5289_vm13, %v5260_v56, %v17333_v16  ;;  %v6637_v29 = vsel %vm1816_vm8, %v6605_v9, %v6319_v45  ;;  %v5196_v28 = vsel %vm5190_vm10, %v5163_v36, %v17334_v37  ;;  %v17343_v33 = vld [vmem:[#allocation364_spill] sm:$0xff]  ;;  %v17345_v35 = vld [vmem:[#allocation127_spill] sm:$0xff]  ;;  %v17350_v9 = vld [vmem:[#allocation358_spill] sm:$0xff] }
 0x85f   : > { %6762 = vrot.lane.b32.xlu1 %v6667_v63, %s8725_s29  ;;  %v5195_v50 = vsel %vm5190_vm10, %v5162_v15, %v17335_v38  ;;  %v5292_v14 = vsel %vm5289_vm13, %v5259_v57, %v17336_v48  ;;  %v5326_v52 = vsel %vm5322_vm14, %v5293_v32, %v17337_v30  ;;  %v5229_v5 = vsel %vm5223_vm11, %v5196_v28, %v17338_v25  ;;  %v6707_v36 = vpop.permute.xlu1 %6706  ;;  %v17347_v41 = vld [vmem:[#allocation216_spill] sm:$0xff]  ;;  %v17351_v63 = vld [vmem:[#allocation245_spill] sm:$0xff]  ;;  %v17353_v16 = vld [vmem:[#allocation359_spill] sm:$0xff] }
 0x860   : > { %6702 = vrot.lane.b32.xlu0 %v6637_v29, %s8725_s29  ;;  %v5325_v17 = vsel %vm5322_vm14, %v5292_v14, %v17339_v31  ;;  %v5359_v23 = vsel %vm5355_vm15, %v5326_v52, %v17340_v49  ;;  %vm6836_vm7 = vcmask 408576   ;;  %v5228_v53 = vsel %vm5223_vm11, %v5195_v50, %v17341_v61  ;;  %v6705_v22 = vpop.permute.xlu0 %6704  ;;  %v17348_v60 = vld [vmem:[#allocation244_spill] sm:$0xff]  ;;  %v17352_v8 = vld [vmem:[#allocation289_spill] sm:$0xff]  ;;  %v17355_v28 = vld [vmem:[#allocation290_spill] sm:$0xff] }
 0x861   : > { %v5262_v12 = vsel %vm5256_vm12, %v5229_v5, %v17342_v59  ;;  %v5358_v15 = vsel %vm5355_vm15, %v5325_v17, %v17343_v33  ;;  %v6800_v6 = vsel %vm6796_vm0, %v5359_v23, %v6707_v36  ;;  %v5165_v4 = vsel %vm1852_vm9, %v14991_v58, %v17344_v1  ;;  %v17354_v32 = vld [vmem:[#allocation365_spill] sm:$0xff]  ;;  %v17356_v50 = vld [vmem:[#allocation131_spill] sm:$0xff]  ;;  %v17357_v14 = vld [vmem:[#allocation366_spill] sm:$0xff] }
 0x862   : > { %v5261_v43 = vsel %vm5256_vm12, %v5228_v53, %v17345_v35  ;;  %v5295_v39 = vsel %vm5289_vm13, %v5262_v12, %v17346_v42  ;;  %v6799_v27 = vsel %vm6796_vm0, %v5358_v15, %v6705_v22  ;;  %v5164_v10 = vsel %vm1852_vm9, %v14995_v2, %v17347_v41  ;;  %v17358_v5 = vld [vmem:[#allocation217_spill] sm:$0xff]  ;;  %v17360_v23 = vld [vmem:[#allocation335_spill] sm:$0xff]  ;;  %v17361_v53 = vld [vmem:[#allocation218_spill] sm:$0xff] }
 0x863   : > { %v5198_v54 = vsel %vm5190_vm10, %v5165_v4, %v17348_v60  ;;  %v5294_v56 = vsel %vm5289_vm13, %v5261_v43, %v17349_v11  ;;  %v5328_v58 = vsel %vm5322_vm14, %v5295_v39, %v17350_v9  ;;  %8525 = vmatprep.mubr.msk.f32.mxu1 %vm6836_vm7, %v6799_v27  ;;  %v5197_v45 = vsel %vm5190_vm10, %v5164_v10, %v17351_v63  ;;  %v6711_v37 = vpop.permute.xlu1 %6710  ;;  %v17359_v17 = vld [vmem:[#allocation237_spill] sm:$0xff]  ;;  %v17362_v12 = vld [vmem:[#allocation248_spill] sm:$0xff]  ;;  %v17366_v35 = vld [vmem:[#allocation291_spill] sm:$0xff] }
 0x864   : > { %v5231_v57 = vsel %vm5223_vm11, %v5198_v54, %v17352_v8  ;;  %v5327_v2 = vsel %vm5322_vm14, %v5294_v56, %v17353_v16  ;;  %v5361_v29 = vsel %vm5355_vm15, %v5328_v58, %v17354_v32  ;;  %8526 = vmatmul.mubr.msk.f32.vlgmr.msra.gmra.mxu1 %vm6836_vm7, %v6800_v6  ;;  %v5230_v38 = vsel %vm5223_vm11, %v5197_v45, %v17355_v28  ;;  %v6709_v25 = vpop.permute.xlu0 %6708  ;;  %v17363_v15 = vld [vmem:[#allocation336_spill] sm:$0xff]  ;;  %v17365_v1 = vld [vmem:[#allocation249_spill] sm:$0xff]  ;;  %v17368_v39 = vld [vmem:[#allocation367_spill] sm:$0xff] }
 0x865   : > { %v5264_v48 = vsel %vm5256_vm12, %v5231_v57, %v17356_v50  ;;  %v5360_v30 = vsel %vm5355_vm15, %v5327_v2, %v17357_v14  ;;  %v6802_v52 = vsel %vm6796_vm0, %v5361_v29, %v6711_v37  ;;  %v5167_v31 = vsel %vm1852_vm9, %v14999_v18, %v17358_v5  ;;  %v17364_v22 = vld [vmem:[#allocation360_spill] sm:$0xff]  ;;  %v17367_v42 = vld [vmem:[#allocation361_spill] sm:$0xff]  ;;  %v17370_v54 = vld [vmem:[#allocation90_spill] sm:$0xff] }
 0x866   : > { %v5263_v49 = vsel %vm5256_vm12, %v5230_v38, %v17359_v17  ;;  %v5297_v36 = vsel %vm5289_vm13, %v5264_v48, %v17360_v23  ;;  %v6801_v61 = vsel %vm6796_vm0, %v5360_v30, %v6709_v25  ;;  %v5166_v59 = vsel %vm1852_vm9, %v15004_v13, %v17361_v53  ;;  %v17369_v10 = vld [vmem:[#allocation292_spill] sm:$0xff]  ;;  %v17372_v45 = vld [vmem:[#allocation219_spill] sm:$0xff]  ;;  %v17374_v2 = vld [vmem:[#allocation337_spill] sm:$0xff] }
 0x867   : > { %v5200_v33 = vsel %vm5190_vm10, %v5167_v31, %v17362_v12  ;;  %v5296_v6 = vsel %vm5289_vm13, %v5263_v49, %v17363_v15  ;;  %v5330_v18 = vsel %vm5322_vm14, %v5297_v36, %v17364_v22  ;;  %8528 = vmatprep.mubr.msk.f32.mxu1 %vm6836_vm7, %v6801_v61  ;;  %v5199_v4 = vsel %vm5190_vm10, %v5166_v59, %v17365_v1  ;;  %v6715_v41 = vpop.permute.xlu1 %6714  ;;  %v17371_v56 = vld [vmem:[#allocation368_spill] sm:$0xff]  ;;  %v17373_v57 = vld [vmem:[#allocation159_spill] sm:$0xff]  ;;  %v17377_v48 = vld [vmem:[#allocation338_spill] sm:$0xff] }
 0x868   : > { %v5233_v43 = vsel %vm5223_vm11, %v5200_v33, %v17366_v35  ;;  %v5329_v13 = vsel %vm5322_vm14, %v5296_v6, %v17367_v42  ;;  %v5363_v27 = vsel %vm5355_vm15, %v5330_v18, %v17368_v39  ;;  %8529 = vmatmul.mubr.msk.f32.gmra.mxu1 %vm6836_vm7, %v6802_v52  ;;  %v5232_v60 = vsel %vm5223_vm11, %v5199_v4, %v17369_v10  ;;  %v6713_v63 = vpop.permute.xlu0 %6712  ;;  %v17375_v37 = vld [vmem:[#allocation220_spill] sm:$0xff]  ;;  %v17378_v30 = vld [vmem:[#allocation246_spill] sm:$0xff]  ;;  %v17379_v52 = vld [vmem:[#allocation253_spill] sm:$0xff] }
 0x869   : > { %v5266_v11 = vsel %vm5256_vm12, %v5233_v43, %v17370_v54  ;;  %v5362_v9 = vsel %vm5355_vm15, %v5329_v13, %v17371_v56  ;;  %v6804_v58 = vsel %vm6796_vm0, %v5363_v27, %v6715_v41  ;;  %v5169_v8 = vsel %vm1852_vm9, %v15008_v44, %v17372_v45  ;;  %v17376_v38 = vld [vmem:[#allocation252_spill] sm:$0xff]  ;;  %v17380_v5 = vld [vmem:[#allocation293_spill] sm:$0xff]  ;;  %v17381_v17 = vld [vmem:[#allocation247_spill] sm:$0xff] }
 0x86a   : > { %v5265_v16 = vsel %vm5256_vm12, %v5232_v60, %v17373_v57  ;;  %v5299_v32 = vsel %vm5289_vm13, %v5266_v11, %v17374_v2  ;;  %v6803_v29 = vsel %vm6796_vm0, %v5362_v9, %v6713_v63  ;;  %v5168_v28 = vsel %vm1852_vm9, %v15012_v40, %v17375_v37  ;;  %v17382_v49 = vld [vmem:[#allocation369_spill] sm:$0xff]  ;;  %v17383_v61 = vld [vmem:[#allocation294_spill] sm:$0xff]  ;;  %v17388_v43 = vld [vmem:[#allocation339_spill] sm:$0xff] }
 0x86b   : > { %v5202_v50 = vsel %vm5190_vm10, %v5169_v8, %v17376_v38  ;;  %v5298_v14 = vsel %vm5289_vm13, %v5265_v16, %v17377_v48  ;;  %v5332_v44 = vsel %vm5322_vm14, %v5299_v32, %v17378_v30  ;;  %8531 = vmatprep.mubr.msk.f32.mxu1 %vm6836_vm7, %v6803_v29  ;;  %v5201_v25 = vsel %vm5190_vm10, %v5168_v28, %v17379_v52  ;;  %v6719_v36 = vpop.permute.xlu1 %6718  ;;  %v17384_v59 = vld [vmem:[#allocation182_spill] sm:$0xff]  ;;  %v17386_v18 = vld [vmem:[#allocation221_spill] sm:$0xff]  ;;  %v17390_v41 = vld [vmem:[#allocation256_spill] sm:$0xff] }
 0x86c   : > { %v5235_v31 = vsel %vm5223_vm11, %v5202_v50, %v17380_v5  ;;  %v5331_v40 = vsel %vm5322_vm14, %v5298_v14, %v17381_v17  ;;  %v5365_v23 = vsel %vm5355_vm15, %v5332_v44, %v17382_v49  ;;  %8532 = vmatmul.mubr.msk.f32.gmra.mxu1 %vm6836_vm7, %v6804_v58  ;;  %v5234_v53 = vsel %vm5223_vm11, %v5201_v25, %v17383_v61  ;;  %v17385_v33 = vld [vmem:[#allocation370_spill] sm:$0xff]  ;;  %v6717_v22 = vpop.permute.xlu0 %6716  ;;  %v17387_v4 = vld [vmem:[#allocation209_spill] sm:$0xff]  ;;  %v17391_v60 = vld [vmem:[#allocation340_spill] sm:$0xff] }
 0x86d   : > { %v5268_v12 = vsel %vm5256_vm12, %v5235_v31, %v17384_v59  ;;  %v5364_v15 = vsel %vm5355_vm15, %v5331_v40, %v17385_v33  ;;  %v6806_v6 = vsel %vm6796_vm0, %v5365_v23, %v6719_v36  ;;  %v5171_v1 = vsel %vm1852_vm9, %v15016_v62, %v17386_v18  ;;  %v17389_v39 = vld [vmem:[#allocation222_spill] sm:$0xff]  ;;  %v17393_v56 = vld [vmem:[#allocation257_spill] sm:$0xff]  ;;  %v17394_v58 = vld [vmem:[#allocation295_spill] sm:$0xff] }
 0x86e   : > { %v5267_v35 = vsel %vm5256_vm12, %v5234_v53, %v17387_v4  ;;  %v5301_v42 = vsel %vm5289_vm13, %v5268_v12, %v17388_v43  ;;  %v6805_v13 = vsel %vm6796_vm0, %v5364_v15, %v6717_v22  ;;  %v5170_v27 = vsel %vm1852_vm9, %v15021_v7, %v17389_v39  ;;  %v17392_v11 = vld [vmem:[#allocation250_spill] sm:$0xff]  ;;  %v17395_v45 = vld [vmem:[#allocation251_spill] sm:$0xff]  ;;  %v17397_v2 = vld [vmem:[#allocation296_spill] sm:$0xff] }
 0x86f   : > { %v5204_v10 = vsel %vm5190_vm10, %v5171_v1, %v17390_v41  ;;  %v5300_v54 = vsel %vm5289_vm13, %v5267_v35, %v17391_v60  ;;  %v5334_v62 = vsel %vm5322_vm14, %v5301_v42, %v17392_v11  ;;  %8534 = vmatprep.mubr.msk.f32.mxu1 %vm6836_vm7, %v6805_v13  ;;  %v5203_v9 = vsel %vm5190_vm10, %v5170_v27, %v17393_v56  ;;  %v17396_v8 = vld [vmem:[#allocation371_spill] sm:$0xff]  ;;  %v6723_v16 = vpop.permute.xlu1 %6722  ;;  %v17398_v29 = vld [vmem:[#allocation210_spill] sm:$0xff]  ;;  %v17399_v28 = vld [vmem:[#allocation372_spill] sm:$0xff] }
 0x870   : > { %v5237_v63 = vsel %vm5223_vm11, %v5204_v10, %v17394_v58  ;;  %v5333_v7 = vsel %vm5322_vm14, %v5300_v54, %v17395_v45  ;;  %v5367_v57 = vsel %vm5355_vm15, %v5334_v62, %v17396_v8  ;;  %8535 = vmatmul.mubr.msk.f32.gmra.mxu1 %vm6836_vm7, %v6806_v6  ;;  %v5236_v32 = vsel %vm5223_vm11, %v5203_v9, %v17397_v2  ;;  %v6721_v48 = vpop.permute.xlu0 %6720  ;;  %v17400_v14 = vld [vmem:[#allocation223_spill] sm:$0xff]  ;;  %v17401_v44 = vld [vmem:[#allocation238_spill] sm:$0xff]  ;;  %v17402_v25 = vld [vmem:[#allocation341_spill] sm:$0xff] }
 0x871   : > { %v5270_v37 = vsel %vm5256_vm12, %v5237_v63, %v17398_v29  ;;  %v5366_v38 = vsel %vm5355_vm15, %v5333_v7, %v17399_v28  ;;  %v6808_v50 = vsel %vm6796_vm0, %v5367_v57, %v6723_v16  ;;  %v5173_v30 = vsel %vm1852_vm9, %v15025_v51, %v17400_v14  ;;  %v17403_v17 = vld [vmem:[#allocation224_spill] sm:$0xff]  ;;  %v17405_v36 = vld [vmem:[#allocation342_spill] sm:$0xff]  ;;  %v17407_v59 = vld [vmem:[#allocation261_spill] sm:$0xff] }
 0x872   : > { %v5269_v52 = vsel %vm5256_vm12, %v5236_v32, %v17401_v44  ;;  %v5303_v5 = vsel %vm5289_vm13, %v5270_v37, %v17402_v25  ;;  %v6807_v31 = vsel %vm6796_vm0, %v5366_v38, %v6721_v48  ;;  %v5172_v40 = vsel %vm1852_vm9, %v15029_v0, %v17403_v17  ;;  %v17404_v49 = vld [vmem:[#allocation260_spill] sm:$0xff]  ;;  %v17406_v53 = vld [vmem:[#allocation254_spill] sm:$0xff]  ;;  %v17409_v6 = vld [vmem:[#allocation255_spill] sm:$0xff] }
 0x873   : > { %v5206_v23 = vsel %vm5190_vm10, %v5173_v30, %v17404_v49  ;;  %v5302_v61 = vsel %vm5289_vm13, %v5269_v52, %v17405_v36  ;;  %v5336_v51 = vsel %vm5322_vm14, %v5303_v5, %v17406_v53  ;;  %8537 = vmatprep.mubr.msk.f32.mxu1 %vm6836_vm7, %v6807_v31  ;;  %v5205_v12 = vsel %vm5190_vm10, %v5172_v40, %v17407_v59  ;;  %v17408_v33 = vld [vmem:[#allocation298_spill] sm:$0xff]  ;;  %v17410_v22 = vld [vmem:[#allocation373_spill] sm:$0xff]  ;;  %v6727_v1 = vpop.permute.xlu1 %6726  ;;  %v17411_v4 = vld [vmem:[#allocation299_spill] sm:$0xff] }
 0x874   : > { %v5239_v15 = vsel %vm5223_vm11, %v5206_v23, %v17408_v33  ;;  %v5335_v0 = vsel %vm5322_vm14, %v5302_v61, %v17409_v6  ;;  %v5369_v18 = vsel %vm5355_vm15, %v5336_v51, %v17410_v22  ;;  %8538 = vmatmul.mubr.msk.f32.gmra.mxu1 %vm6836_vm7, %v6808_v50  ;;  %v5238_v35 = vsel %vm5223_vm11, %v5205_v12, %v17411_v4  ;;  %v17412_v43 = vld [vmem:[#allocation239_spill] sm:$0xff]  ;;  %v17413_v13 = vld [vmem:[#allocation374_spill] sm:$0xff]  ;;  %v6725_v41 = vpop.permute.xlu0 %6724  ;;  %v17414_v10 = vld [vmem:[#allocation225_spill] sm:$0xff] }
 0x875   : > { %v5272_v42 = vsel %vm5256_vm12, %v5239_v15, %v17412_v43  ;;  %v5368_v39 = vsel %vm5355_vm15, %v5335_v0, %v17413_v13  ;;  %v6810_v27 = vsel %vm6796_vm0, %v5369_v18, %v6727_v1  ;;  %v5175_v60 = vsel %vm1852_vm9, %v15033_v20, %v17414_v10  ;;  %v17415_v54 = vld [vmem:[#allocation319_spill] sm:$0xff]  ;;  %v17417_v58 = vld [vmem:[#allocation226_spill] sm:$0xff]  ;;  %v17418_v45 = vld [vmem:[#allocation264_spill] sm:$0xff] }
 0x876   : > { %v5271_v11 = vsel %vm5256_vm12, %v5238_v35, %v17415_v54  ;;  %v17416_v62 = vld [vmem:[#allocation343_spill] sm:$0xff]  ;;  %v6809_v9 = vsel %vm6796_vm0, %v5368_v39, %v6725_v41  ;;  %v5174_v63 = vsel %vm1852_vm9, %v15037_v55, %v17417_v58  ;;  %v5208_v7 = vsel %vm5190_vm10, %v5175_v60, %v17418_v45  ;;  %v17419_v8 = vld [vmem:[#allocation344_spill] sm:$0xff]  ;;  %v17420_v16 = vld [vmem:[#allocation258_spill] sm:$0xff] }
 0x877   : > { %v5305_v56 = vsel %vm5289_vm13, %v5272_v42, %v17416_v62  ;;  %v5304_v57 = vsel %vm5289_vm13, %v5271_v11, %v17419_v8  ;;  %8540 = vmatprep.mubr.msk.f32.mxu1 %vm6836_vm7, %v6809_v9  ;;  %v17421_v2 = vld [vmem:[#allocation265_spill] sm:$0xff]  ;;  %v17422_v29 = vld [vmem:[#allocation302_spill] sm:$0xff]  ;;  %v17423_v28 = vld [vmem:[#allocation259_spill] sm:$0xff]  ;;  %v6731_v48 = vpop.permute.xlu1 %6730 }
 0x878   : > { %v5338_v20 = vsel %vm5322_vm14, %v5305_v56, %v17420_v16  ;;  %v5207_v32 = vsel %vm5190_vm10, %v5174_v63, %v17421_v2  ;;  %v5241_v37 = vsel %vm5223_vm11, %v5208_v7, %v17422_v29  ;;  %v5337_v55 = vsel %vm5322_vm14, %v5304_v57, %v17423_v28  ;;  %v17424_v38 = vld [vmem:[#allocation297_spill] sm:$0xff]  ;;  %8541 = vmatmul.mubr.msk.f32.gmra.mxu1 %vm6836_vm7, %v6810_v27  ;;  %v17425_v14 = vld [vmem:[#allocation303_spill] sm:$0xff]  ;;  %v17426_v44 = vld [vmem:[#allocation320_spill] sm:$0xff]  ;;  %v6729_v17 = vpop.permute.xlu0 %6728 }
 0x879   : > { %v5371_v50 = vsel %vm5355_vm15, %v5338_v20, %v17424_v38  ;;  %v5240_v30 = vsel %vm5223_vm11, %v5207_v32, %v17425_v14  ;;  %v5274_v52 = vsel %vm5256_vm12, %v5241_v37, %v17426_v44  ;;  %v17427_v25 = vld [vmem:[#allocation375_spill] sm:$0xff]  ;;  %v17429_v23 = vld [vmem:[#allocation321_spill] sm:$0xff]  ;;  %v17431_v59 = vld [vmem:[#allocation228_spill] sm:$0xff] }
 0x87a   : > { %v5370_v5 = vsel %vm5355_vm15, %v5337_v55, %v17427_v25  ;;  %v6812_v31 = vsel %vm6796_vm0, %v5371_v50, %v6731_v48  ;;  %v17428_v40 = vld [vmem:[#allocation227_spill] sm:$0xff]  ;;  %v5273_v36 = vsel %vm5256_vm12, %v5240_v30, %v17429_v23  ;;  %v17430_v61 = vld [vmem:[#allocation345_spill] sm:$0xff]  ;;  %v5176_v12 = vsel %vm1852_vm9, %v15045_v3, %v17431_v59  ;;  %v17432_v33 = vld [vmem:[#allocation268_spill] sm:$0xff] }
 0x87b   : > { %v5177_v49 = vsel %vm1852_vm9, %v15041_v46, %v17428_v40  ;;  %v5307_v53 = vsel %vm5289_vm13, %v5274_v52, %v17430_v61  ;;  %v6811_v51 = vsel %vm6796_vm0, %v5370_v5, %v6729_v17  ;;  %v17433_v6 = vld [vmem:[#allocation346_spill] sm:$0xff]  ;;  %v17435_v18 = vld [vmem:[#allocation269_spill] sm:$0xff]  ;;  %v17437_v43 = vld [vmem:[#allocation263_spill] sm:$0xff]  ;;  %v6735_v39 = vpop.permute.xlu1 %6734 }
 0x87c   : > { %v5210_v15 = vsel %vm5190_vm10, %v5177_v49, %v17432_v33  ;;  %v5306_v0 = vsel %vm5289_vm13, %v5273_v36, %v17433_v6  ;;  %v17434_v22 = vld [vmem:[#allocation262_spill] sm:$0xff]  ;;  %8543 = vmatprep.mubr.msk.f32.mxu1 %vm6836_vm7, %v6811_v51  ;;  %v5209_v1 = vsel %vm5190_vm10, %v5176_v12, %v17435_v18  ;;  %v17438_v42 = vld [vmem:[#allocation300_spill] sm:$0xff]  ;;  %v17439_v27 = vld [vmem:[#allocation307_spill] sm:$0xff]  ;;  %v6733_v56 = vpop.permute.xlu0 %6732 }
 0x87d   : > { %v5340_v46 = vsel %vm5322_vm14, %v5307_v53, %v17434_v22  ;;  %v17436_v4 = vld [vmem:[#allocation306_spill] sm:$0xff]  ;;  %v5339_v3 = vsel %vm5322_vm14, %v5306_v0, %v17437_v43  ;;  %8544 = vmatmul.mubr.msk.f32.gmra.mxu1 %vm6836_vm7, %v6812_v31  ;;  %v5242_v41 = vsel %vm5223_vm11, %v5209_v1, %v17439_v27  ;;  %v17441_v54 = vld [vmem:[#allocation301_spill] sm:$0xff]  ;;  %v17443_v63 = vld [vmem:[#allocation323_spill] sm:$0xff] }
 0x87e   : > { %v5243_v35 = vsel %vm5223_vm11, %v5210_v15, %v17436_v4  ;;  %v5373_v13 = vsel %vm5355_vm15, %v5340_v46, %v17438_v42  ;;  %v17440_v10 = vld [vmem:[#allocation322_spill] sm:$0xff]  ;;  %v5372_v11 = vsel %vm5355_vm15, %v5339_v3, %v17441_v54  ;;  %v17442_v9 = vld [vmem:[#allocation229_spill] sm:$0xff]  ;;  %v5275_v45 = vsel %vm5256_vm12, %v5242_v41, %v17443_v63  ;;  %v17444_v7 = vld [vmem:[#allocation347_spill] sm:$0xff] }
 0x87f   : > { %v5276_v60 = vsel %vm5256_vm12, %v5243_v35, %v17440_v10  ;;  %v6814_v62 = vsel %vm6796_vm0, %v5373_v13, %v6735_v39  ;;  %v5179_v58 = vsel %vm1852_vm9, %v15051_v47, %v17442_v9  ;;  %v6813_v57 = vsel %vm6796_vm0, %v5372_v11, %v6733_v56  ;;  %v17445_v16 = vld [vmem:[#allocation230_spill] sm:$0xff]  ;;  %v17446_v2 = vld [vmem:[#allocation272_spill] sm:$0xff]  ;;  %v17449_v55 = vld [vmem:[#allocation273_spill] sm:$0xff]  ;;  %v6739_v52 = vpop.permute.xlu1 %6738 }
 0x880   : > { %v5309_v8 = vsel %vm5289_vm13, %v5276_v60, %v17444_v7  ;;  %v5178_v20 = vsel %vm1852_vm9, %v15055_v19, %v17445_v16  ;;  %v5212_v32 = vsel %vm5190_vm10, %v5179_v58, %v17446_v2  ;;  %v17447_v29 = vld [vmem:[#allocation348_spill] sm:$0xff]  ;;  %v17448_v28 = vld [vmem:[#allocation266_spill] sm:$0xff]  ;;  %8546 = vmatprep.mubr.msk.f32.mxu1 %vm6836_vm7, %v6813_v57  ;;  %v17451_v14 = vld [vmem:[#allocation267_spill] sm:$0xff]  ;;  %v6737_v36 = vpop.permute.xlu0 %6736 }
 0x881   : > { %v5308_v37 = vsel %vm5289_vm13, %v5275_v45, %v17447_v29  ;;  %v5342_v47 = vsel %vm5322_vm14, %v5309_v8, %v17448_v28  ;;  %v5211_v38 = vsel %vm5190_vm10, %v5178_v20, %v17449_v55  ;;  %v17450_v50 = vld [vmem:[#allocation310_spill] sm:$0xff]  ;;  %v17452_v30 = vld [vmem:[#allocation304_spill] sm:$0xff]  ;;  %8547 = vmatmul.mubr.msk.f32.gmra.mxu1 %vm6836_vm7, %v6814_v62  ;;  %v17453_v25 = vld [vmem:[#allocation311_spill] sm:$0xff] }
 0x882   : > { %v5245_v48 = vsel %vm5223_vm11, %v5212_v32, %v17450_v50  ;;  %v5341_v19 = vsel %vm5322_vm14, %v5308_v37, %v17451_v14  ;;  %v5375_v44 = vsel %vm5355_vm15, %v5342_v47, %v17452_v30  ;;  %v5244_v5 = vsel %vm5223_vm11, %v5211_v38, %v17453_v25  ;;  %v17454_v31 = vld [vmem:[#allocation324_spill] sm:$0xff]  ;;  %v17455_v40 = vld [vmem:[#allocation305_spill] sm:$0xff]  ;;  %v17456_v61 = vld [vmem:[#allocation231_spill] sm:$0xff] }
 0x883   : > { %v5278_v17 = vsel %vm5256_vm12, %v5245_v48, %v17454_v31  ;;  %v5374_v49 = vsel %vm5355_vm15, %v5341_v19, %v17455_v40  ;;  %v6816_v23 = vsel %vm6796_vm0, %v5375_v44, %v6739_v52  ;;  %v5181_v53 = vsel %vm1852_vm9, %v15064_v34, %v17456_v61  ;;  %v17457_v51 = vld [vmem:[#allocation325_spill] sm:$0xff]  ;;  %v17459_v6 = vld [vmem:[#allocation232_spill] sm:$0xff]  ;;  %v17461_v18 = vld [vmem:[#allocation350_spill] sm:$0xff]  ;;  %v6743_v41 = vpop.permute.xlu1 %6742 }
 0x884   : > { %v5277_v59 = vsel %vm5256_vm12, %v5244_v5, %v17457_v51  ;;  %v17458_v12 = vld [vmem:[#allocation349_spill] sm:$0xff]  ;;  %v6815_v15 = vsel %vm6796_vm0, %v5374_v49, %v6737_v36  ;;  %v5180_v0 = vsel %vm1852_vm9, %v15068_v26, %v17459_v6  ;;  %v17460_v22 = vld [vmem:[#allocation276_spill] sm:$0xff]  ;;  %v17462_v4 = vld [vmem:[#allocation270_spill] sm:$0xff]  ;;  %v6741_v58 = vpop.permute.xlu0 %6740 }
 0x885   : > { %v5311_v33 = vsel %vm5289_vm13, %v5278_v17, %v17458_v12  ;;  %v5214_v46 = vsel %vm5190_vm10, %v5181_v53, %v17460_v22  ;;  %v5310_v1 = vsel %vm5289_vm13, %v5277_v59, %v17461_v18  ;;  %8549 = vmatprep.mubr.msk.f32.mxu1 %vm6836_vm7, %v6815_v15  ;;  %v17463_v35 = vld [vmem:[#allocation277_spill] sm:$0xff]  ;;  %v17464_v3 = vld [vmem:[#allocation314_spill] sm:$0xff]  ;;  %v17465_v13 = vld [vmem:[#allocation271_spill] sm:$0xff] }
 0x886   : > { %v5344_v34 = vsel %vm5322_vm14, %v5311_v33, %v17462_v4  ;;  %v5213_v43 = vsel %vm5190_vm10, %v5180_v0, %v17463_v35  ;;  %v5247_v42 = vsel %vm5223_vm11, %v5214_v46, %v17464_v3  ;;  %v5343_v26 = vsel %vm5322_vm14, %v5310_v1, %v17465_v13  ;;  %v17466_v39 = vld [vmem:[#allocation308_spill] sm:$0xff]  ;;  %8550 = vmatmul.mubr.msk.f32.gmra.mxu1 %vm6836_vm7, %v6816_v23  ;;  %v17467_v10 = vld [vmem:[#allocation315_spill] sm:$0xff]  ;;  %v17468_v54 = vld [vmem:[#allocation326_spill] sm:$0xff] }
 0x887   : > { %v5377_v27 = vsel %vm5355_vm15, %v5344_v34, %v17466_v39  ;;  %v5246_v60 = vsel %vm5223_vm11, %v5213_v43, %v17467_v10  ;;  %v5280_v11 = vsel %vm5256_vm12, %v5247_v42, %v17468_v54  ;;  %v17469_v62 = vld [vmem:[#allocation309_spill] sm:$0xff]  ;;  %v17470_v63 = vld [vmem:[#allocation206_spill] sm:$0xff]  ;;  %v17471_v7 = vld [vmem:[#allocation327_spill] sm:$0xff]  ;;  %v6747_v52 = vpop.permute.xlu1 %6746 }
 0x888   : > { %v5376_v56 = vsel %vm5355_vm15, %v5343_v26, %v17469_v62  ;;  %v6818_v9 = vsel %vm6796_vm0, %v5377_v27, %v6743_v41  ;;  %v5150_v45 = vsel %vm1816_vm8, %v14979_v24, %v17470_v63  ;;  %v5279_v8 = vsel %vm5256_vm12, %v5246_v60, %v17471_v7  ;;  %v17472_v57 = vld [vmem:[#allocation351_spill] sm:$0xff]  ;;  %v17473_v2 = vld [vmem:[#allocation233_spill] sm:$0xff]  ;;  %v17474_v29 = vld [vmem:[#allocation234_spill] sm:$0xff]  ;;  %v6745_v36 = vpop.permute.xlu0 %6744 }
 0x889   : > { %v5313_v16 = vsel %vm5289_vm13, %v5280_v11, %v17472_v57  ;;  %v6817_v20 = vsel %vm6796_vm0, %v5376_v56, %v6741_v58  ;;  %v5183_v32 = vsel %vm1852_vm9, %v15077_v21, %v17473_v2  ;;  %v5182_v37 = vsel %vm1852_vm9, %v5150_v45, %v17474_v29  ;;  %v17475_v28 = vld [vmem:[#allocation352_spill] sm:$0xff]  ;;  %v17476_v24 = vld [vmem:[#allocation274_spill] sm:$0xff]  ;;  %v17478_v48 = vld [vmem:[#allocation281_spill] sm:$0xff] }
 0x88a   : > { %v5312_v47 = vsel %vm5289_vm13, %v5279_v8, %v17475_v28  ;;  %v5346_v55 = vsel %vm5322_vm14, %v5313_v16, %v17476_v24  ;;  %8552 = vmatprep.mubr.msk.f32.mxu1 %vm6836_vm7, %v6817_v20  ;;  %v17477_v38 = vld [vmem:[#allocation280_spill] sm:$0xff]  ;;  %v5215_v14 = vsel %vm5190_vm10, %v5182_v37, %v17478_v48  ;;  %v17479_v19 = vld [vmem:[#allocation275_spill] sm:$0xff]  ;;  %v17482_v31 = vld [vmem:[#allocation317_spill] sm:$0xff] }
 0x88b   : > { %v5216_v50 = vsel %vm5190_vm10, %v5183_v32, %v17477_v38  ;;  %v5345_v21 = vsel %vm5322_vm14, %v5312_v47, %v17479_v19  ;;  %v17480_v30 = vld [vmem:[#allocation312_spill] sm:$0xff]  ;;  %8553 = vmatmul.mubr.msk.f32.gmra.mxu1 %vm6836_vm7, %v6818_v9  ;;  %v5248_v17 = vsel %vm5223_vm11, %v5215_v14, %v17482_v31  ;;  %v17483_v40 = vld [vmem:[#allocation313_spill] sm:$0xff]  ;;  %v17484_v53 = vld [vmem:[#allocation95_spill] sm:$0xff]  ;;  %v6751_v54 = vpop.permute.xlu1 %6750 }
 0x88c   : > { %v5379_v44 = vsel %vm5355_vm15, %v5346_v55, %v17480_v30  ;;  %v17481_v25 = vld [vmem:[#allocation316_spill] sm:$0xff]  ;;  %v5378_v49 = vsel %vm5355_vm15, %v5345_v21, %v17483_v40  ;;  %v8685_v61 = vld [vmem:[%s9976_s14 + $0x138] sm:$0xff]  ;;  %v17487_v0 = vld [vmem:[#allocation10_spill] sm:$0xff]  ;;  %v6749_v11 = vpop.permute.xlu0 %6748 }
 0x88d   : > { %v5249_v5 = vsel %vm5223_vm11, %v5216_v50, %v17481_v25  ;;  %v6820_v23 = vsel %vm6796_vm0, %v5379_v44, %v6747_v52  ;;  %v4928_v51 = vsel %vm1585_vm1, %v8685_v61, %v17484_v53  ;;  %v17485_v59 = vld [vmem:[#allocation328_spill] sm:$0xff]  ;;  %v17486_v33 = vld [vmem:[#allocation329_spill] sm:$0xff]  ;;  %v6819_v6 = vsel %vm6796_vm0, %v5378_v49, %v6745_v36  ;;  %v17489_v1 = vld [vmem:[#allocation354_spill] sm:$0xff] }
 0x88e   : > { %v5282_v12 = vsel %vm5256_vm12, %v5249_v5, %v17485_v59  ;;  %v5281_v15 = vsel %vm5256_vm12, %v5248_v17, %v17486_v33  ;;  %v4960_v22 = vsel %vm1618_vm2, %v4928_v51, %v17487_v0  ;;  %v17488_v46 = vld [vmem:[#allocation353_spill] sm:$0xff]  ;;  %8555 = vmatprep.mubr.msk.f32.mxu1 %vm6836_vm7, %v6819_v6  ;;  %v17490_v34 = vld [vmem:[#allocation119_spill] sm:$0xff]  ;;  %v17491_v43 = vld [vmem:[#allocation278_spill] sm:$0xff]  ;;  %vm17499_vm1 = vcmask 113664  }
 0x88f   : > { %v5315_v18 = vsel %vm5289_vm13, %v5282_v12, %v17488_v46  ;;  %v5314_v4 = vsel %vm5289_vm13, %v5281_v15, %v17489_v1  ;;  %v4992_v35 = vsel %vm1651_vm3, %v4960_v22, %v17490_v34  ;;  %v17492_v42 = vld [vmem:[#allocation279_spill] sm:$0xff]  ;;  %8556 = vmatmul.mubr.msk.f32.gmra.mxu1 %vm6836_vm7, %v6820_v23  ;;  %v17493_v26 = vld [vmem:[#allocation122_spill] sm:$0xff]  ;;  %v17494_v27 = vld [vmem:[#allocation376_spill] sm:$0xff] }
 0x890   : > { %v5348_v3 = vsel %vm5322_vm14, %v5315_v18, %v17491_v43  ;;  %v5347_v13 = vsel %vm5322_vm14, %v5314_v4, %v17492_v42  ;;  %v5024_v39 = vsel %vm1684_vm4, %v4992_v35, %v17493_v26  ;;  %v17495_v10 = vld [vmem:[#allocation377_spill] sm:$0xff]  ;;  %v17496_v62 = vld [vmem:[#allocation55_spill] sm:$0xff]  ;;  %v17497_v63 = vld [vmem:[#allocation130_spill] sm:$0xff]  ;;  %v6753_v21 = vpop.permute.xlu0 %6752  ;;  %v15589_v18 = vpop.f32.mrf.mxu0 }
 0x891   : > { %v5381_v41 = vsel %vm5355_vm15, %v5348_v3, %v17494_v27  ;;  %v5380_v60 = vsel %vm5355_vm15, %v5347_v13, %v17495_v10  ;;  %v5056_v56 = vsel %vm1717_vm5, %v5024_v39, %v17496_v62  ;;  %v17498_v7 = vld [vmem:[#allocation158_spill] sm:$0xff]  ;;  %v17500_v57 = vld [vmem:[#allocation207_spill] sm:$0xff]  ;;  %v17502_v32 = vld [vmem:[#allocation284_spill] sm:$0xff] }
 0x892   : > { %v6822_v9 = vsel %vm6796_vm0, %v5381_v41, %v6751_v54  ;;  %v6821_v58 = vsel %vm6796_vm0, %v5380_v60, %v6749_v11  ;;  %v5088_v45 = vsel %vm1750_vm6, %v5056_v56, %v17497_v63  ;;  %v17501_v20 = vld [vmem:[#allocation235_spill] sm:$0xff]  ;;  %v17503_v37 = vld [vmem:[#allocation318_spill] sm:$0xff]  ;;  %v17509_v31 = vld [vmem:[#allocation381_spill] sm:$0xff]  ;;  %v15591_v1 = vpop.f32.mrf.mxu0 }
 0x893   : > { %8558 = vmatprep.mubr.msk.f32.mxu1 %vm6836_vm7, %v6821_v58  ;;  %v5120_v8 = vsel %vm17499_vm1, %v5088_v45, %v17498_v7  ;;  %v17504_v47 = vld [vmem:[#allocation330_spill] sm:$0xff]  ;;  %v17505_v55 = vld [vmem:[#allocation355_spill] sm:$0xff]  ;;  %v17510_v49 = vld [vmem:[#allocation380_spill] sm:$0xff] }
 0x894   : > { %8559 = vmatmul.mubr.msk.f32.gmra.mxu1 %vm6836_vm7, %v6822_v9  ;;  %v5152_v16 = vsel %vm1816_vm8, %v5120_v8, %v17500_v57  ;;  %v17506_v50 = vld [vmem:[#allocation282_spill] sm:$0xff]  ;;  %v17507_v14 = vld [vmem:[#allocation379_spill] sm:$0xff]  ;;  %v15593_v4 = vpop.f32.mrf.mxu0 }
 0x895   : > { %v5184_v2 = vsel %vm1852_vm9, %v5152_v16, %v17501_v20  ;;  %v17508_v52 = vld [vmem:[#allocation378_spill] sm:$0xff]  ;;  %v17511_v61 = vld [vmem:[#allocation383_spill] sm:$0xff] }
 0x896   : > { %v5217_v29 = vsel %vm5190_vm10, %v5184_v2, %v17502_v32  ;;  %v17512_v59 = vld [vmem:[#allocation362_spill] sm:$0xff]  ;;  %v17514_v22 = vld [vmem:[#allocation283_spill] sm:$0xff]  ;;  %v15595_v34 = vpop.f32.mrf.mxu0 }
 0x897   : > { %v5250_v28 = vsel %vm5223_vm11, %v5217_v29, %v17503_v37  ;;  %v6755_v44 = vpop.permute.xlu1 %6754  ;;  %v17513_v15 = vld [vmem:[#allocation382_spill] sm:$0xff] }
 0x898   : > { %v5283_v24 = vsel %vm5256_vm12, %v5250_v28, %v17504_v47  ;;  %v6824_v25 = vsel %vm6796_vm0, %v17508_v52, %v6755_v44  ;;  %v15597_v35 = vpop.f32.mrf.mxu0 }
 0x899   : > { %v5316_v38 = vsel %vm5289_vm13, %v5283_v24, %v17505_v55 }
 0x89a   : > { %v5349_v48 = vsel %vm5322_vm14, %v5316_v38, %v17506_v50  ;;  %v15599_v43 = vpop.f32.mrf.mxu0 }
 0x89b   : > { %v5382_v19 = vsel %vm5355_vm15, %v5349_v48, %v17507_v14 }
 0x89c   : > { %v6823_v30 = vsel %vm6796_vm0, %v5382_v19, %v6753_v21  ;;  %v15601_v3 = vpop.f32.mrf.mxu0 }
 0x89d   : > { %8561 = vmatprep.mubr.msk.f32.mxu1 %vm6836_vm7, %v6823_v30 }
 0x89e   : > { %8562 = vmatmul.mubr.msk.f32.gmra.mxu1 %vm6836_vm7, %v6824_v25  ;;  %v15603_v42 = vpop.f32.mrf.mxu0 }
 0x8a0   : > { %v15605_v13 = vpop.f32.mrf.mxu0 }
 0x8a2   : > { %v15607_v26 = vpop.f32.mrf.mxu0 }
 0x8a3   : > { %v6757_v5 = vpop.permute.xlu0 %6756 }
 0x8a4   : > { %v6825_v17 = vsel %vm6796_vm0, %v17509_v31, %v6757_v5  ;;  %v15609_v39 = vpop.f32.mrf.mxu0 }
 0x8a5   : > { %8564 = vmatprep.mubr.msk.f32.mxu1 %vm6836_vm7, %v6825_v17 }
 0x8a6   : > { %v15611_v27 = vpop.f32.mrf.mxu0 }
 0x8a8   : > { %v15613_v41 = vpop.f32.mrf.mxu0 }
 0x8aa   : > { %v15615_v10 = vpop.f32.mrf.mxu0 }
 0x8ac   : > { %v15617_v60 = vpop.f32.mrf.mxu0 }
 0x8ad   : > { %v6759_v40 = vpop.permute.xlu1 %6758 }
 0x8ae   : > { %v6826_v23 = vsel %vm6796_vm0, %v17510_v49, %v6759_v40  ;;  %v15619_v54 = vpop.f32.mrf.mxu0 }
 0x8af   : > { %8565 = vmatmul.mubr.msk.f32.gmra.mxu1 %vm6836_vm7, %v6826_v23 }
 0x8b0   : > { %v15621_v11 = vpop.f32.mrf.mxu0 }
 0x8b2   : > { %v15623_v62 = vpop.f32.mrf.mxu0 }
 0x8b4   : > { %v15625_v56 = vpop.f32.mrf.mxu0 }
 0x8b6   : > { %v15627_v9 = vpop.f32.mrf.mxu0 }
 0x8b8   : > { %v15629_v63 = vpop.f32.mrf.mxu0 }
 0x8ba   : > { %v15631_v7 = vpop.f32.mrf.mxu0 }
 0x8bc   : > { %v15633_v57 = vpop.f32.mrf.mxu0 }
 0x8be   : > { %v15635_v20 = vpop.f32.mrf.mxu0 }
 0x8c0   : > { %v15637_v32 = vpop.f32.mrf.mxu0 }
 0x8c2   : > { %v15639_v37 = vpop.f32.mrf.mxu0 }
 0x8c4   : > { %v15641_v47 = vpop.f32.mrf.mxu0 }
 0x8c6   : > { %v15643_v55 = vpop.f32.mrf.mxu0 }
 0x8c8   : > { %v15645_v50 = vpop.f32.mrf.mxu0 }
 0x8ca   : > { %v15647_v14 = vpop.f32.mrf.mxu0 }
 0x8cc   : > { %v15649_v21 = vpop.f32.mrf.mxu0 }
 0x8cd   : > { %v6761_v36 = vpop.permute.xlu1 %6760 }
 0x8ce   : > { %v6827_v53 = vsel %vm6796_vm0, %v17511_v61, %v6761_v36  ;;  %v6701_v51 = vpop.permute.xlu0 %6700  ;;  %v15651_v44 = vpop.f32.mrf.mxu0 }
 0x8cf   : > { %v6797_v12 = vsel %vm6796_vm0, %v17512_v59, %v6701_v51  ;;  %8567 = vmatprep.mubr.msk.f32.mxu1 %vm6836_vm7, %v6827_v53 }
 0x8d0   : > { %8522 = vmatprep.mubr.msk.f32.mxu0 %vm6836_vm7, %v6797_v12 }
 0x8d1   : > { %v6763_v33 = vpop.permute.xlu1 %6762 }
 0x8d2   : > { %v6828_v6 = vsel %vm6796_vm0, %v17513_v15, %v6763_v33  ;;  %v6703_v0 = vpop.permute.xlu0 %6702 }
 0x8d3   : > { %v6798_v46 = vsel %vm6796_vm0, %v17514_v22, %v6703_v0  ;;  %8568 = vmatmul.mubr.msk.f32.gmra.mxu1 %vm6836_vm7, %v6828_v6 }
 0x8d4   : > { %8523 = vmatmul.mubr.msk.f32.vlgmr.msra.gmra.mxu0 %vm6836_vm7, %v6798_v46 }
 0x924   : > { %v8527_v58 = vpop.f32.mrf.mxu1 }
 0x926   : > { %v7012_v45 = vpop.f32.mrf.mxu1 }
 0x928   : > { %v8530_v8 = vpop.f32.mrf.mxu1 }
 0x92a   : > { %v7022_v16 = vpop.f32.mrf.mxu1 }
 0x92c   : > { %v8533_v2 = vpop.f32.mrf.mxu1 }
 0x92e   : > { %v7032_v29 = vpop.f32.mrf.mxu1 }
 0x930   : > { %v8536_v28 = vpop.f32.mrf.mxu1 }
 0x932   : > { %v7042_v24 = vpop.f32.mrf.mxu1 }
 0x934   : > { %v8539_v38 = vpop.f32.mrf.mxu1 }
 0x936   : > { %v7052_v48 = vpop.f32.mrf.mxu1 }
 0x938   : > { %v8542_v19 = vpop.f32.mrf.mxu1 }
 0x93a   : > { %v7062_v30 = vpop.f32.mrf.mxu1 }
 0x93d   : > { %v8545_v52 = vpop.f32.mrf.mxu1 }
 0x93f   : > { %v7072_v31 = vpop.f32.mrf.mxu1 }
 0x941   : > { %v8548_v17 = vpop.f32.mrf.mxu1 }
 0x943   : > { %v7082_v40 = vpop.f32.mrf.mxu1 }
 0x946   : > { %v8551_v49 = vpop.f32.mrf.mxu1 }
 0x948   : > { %v7092_v23 = vpop.f32.mrf.mxu1 }
 0x94b   : > { %v8554_v36 = vpop.f32.mrf.mxu1 }
 0x94d   : > { %v7102_v61 = vpop.f32.mrf.mxu1 }
 0x94f   : > { %v8557_v53 = vpop.f32.mrf.mxu1 }
 0x951   : > { %v7112_v51 = vpop.f32.mrf.mxu1 }
 0x954   : > { %v8560_v59 = vpop.f32.mrf.mxu1 }
 0x956   : > { %v7122_v12 = vpop.f32.mrf.mxu1 }
 0x95e   : > { %v8563_v33 = vpop.f32.mrf.mxu1 }
 0x960   : > { %v7132_v15 = vpop.f32.mrf.mxu1 }
 0x96f   : > { %v8566_v6 = vpop.f32.mrf.mxu1 }
 0x971   : > { %v7142_v0 = vpop.f32.mrf.mxu1 }
 0x993   : > { %v8569_v22 = vpop.f32.mrf.mxu1 }
 0x994   : > { %v8524_v25 = vpop.f32.mrf.mxu0 }
 0x995   : > { %7195 = vrot.lane.b32.xlu1 %v8524_v25, %s8711_s24  ;;  %v7152_v46 = vpop.f32.mrf.mxu1 }
 0x996   : > { %v7002_v5 = vpop.f32.mrf.mxu0 }
 0x997   : > { %7193 = vrot.lane.b32.xlu0 %v7002_v5, %s8711_s24 }
 0x999   : > { %7199 = vrot.lane.b32.xlu1 %v8527_v58, %s8711_s24 }
 0x99b   : > { %7197 = vrot.lane.b32.xlu0 %v7012_v45, %s8711_s24 }
 0x99d   : > { %7203 = vrot.lane.b32.xlu1 %v8530_v8, %s8711_s24 }
 0x99f   : > { %7201 = vrot.lane.b32.xlu0 %v7022_v16, %s8711_s24 }
 0x9a1   : > { %7207 = vrot.lane.b32.xlu1 %v8533_v2, %s8711_s24 }
 0x9a3   : > { %7205 = vrot.lane.b32.xlu0 %v7032_v29, %s8711_s24 }
 0x9a5   : > { %7211 = vrot.lane.b32.xlu1 %v8536_v28, %s8711_s24 }
 0x9a7   : > { %7209 = vrot.lane.b32.xlu0 %v7042_v24, %s8711_s24 }
 0x9a9   : > { %7215 = vrot.lane.b32.xlu1 %v8539_v38, %s8711_s24 }
 0x9ab   : > { %7213 = vrot.lane.b32.xlu0 %v7052_v48, %s8711_s24 }
 0x9ad   : > { %7219 = vrot.lane.b32.xlu1 %v8542_v19, %s8711_s24 }
 0x9af   : > { %7217 = vrot.lane.b32.xlu0 %v7062_v30, %s8711_s24 }
 0x9b1   : > { %7223 = vrot.lane.b32.xlu1 %v8545_v52, %s8711_s24 }
 0x9b3   : > { %7221 = vrot.lane.b32.xlu0 %v7072_v31, %s8711_s24 }
 0x9b5   : > { %7227 = vrot.lane.b32.xlu1 %v8548_v17, %s8711_s24 }
 0x9b7   : > { %7225 = vrot.lane.b32.xlu0 %v7082_v40, %s8711_s24 }
 0x9b9   : > { %7231 = vrot.lane.b32.xlu1 %v8551_v49, %s8711_s24 }
 0x9bb   : > { %7229 = vrot.lane.b32.xlu0 %v7092_v23, %s8711_s24 }
 0x9bd   : > { %7235 = vrot.lane.b32.xlu1 %v8554_v36, %s8711_s24 }
 0x9bf   : > { %7233 = vrot.lane.b32.xlu0 %v7102_v61, %s8711_s24 }
 0x9c1   : > { %7239 = vrot.lane.b32.xlu1 %v8557_v53, %s8711_s24 }
 0x9c3   : > { %7237 = vrot.lane.b32.xlu0 %v7112_v51, %s8711_s24 }
 0x9c5   : > { %7243 = vrot.lane.b32.xlu1 %v8560_v59, %s8711_s24 }
 0x9c7   : > { %7241 = vrot.lane.b32.xlu0 %v7122_v12, %s8711_s24 }
 0x9c9   : > { %7247 = vrot.lane.b32.xlu1 %v8563_v33, %s8711_s24 }
 0x9cb   : > { %7245 = vrot.lane.b32.xlu0 %v7132_v15, %s8711_s24 }
 0x9cd   : > { %7251 = vrot.lane.b32.xlu1 %v8566_v6, %s8711_s24 }
 0x9cf   : > { %7249 = vrot.lane.b32.xlu0 %v7142_v0, %s8711_s24 }
 0x9d1   : > { %7255 = vrot.lane.b32.xlu1 %v8569_v22, %s8711_s24 }
 0x9d3   : > { %7253 = vrot.lane.b32.xlu0 %v7152_v46, %s8711_s24 }
 0xa07   : > { %v7196_v58 = vpop.permute.xlu1 %7195 }
 0xa08   : > { %v7290_v45 = vsel %vm1618_vm2, %v15589_v18, %v7196_v58 }
 0xa09   : > { %7322 = vst.msk [vmem:[%s15689_s30 + $0x8] sm:$0xff] %vm1684_vm4, %v7290_v45  ;;  %v7194_v8 = vpop.permute.xlu0 %7193 }
 0xa0a   : > { %v7289_v16 = vsel %vm1618_vm2, %v15591_v1, %v7194_v8 }
 0xa0b   : > { %7321 = vst.msk [vmem:[%s15689_s30] sm:$0xff] %vm1684_vm4, %v7289_v16  ;;  %v7200_v2 = vpop.permute.xlu1 %7199 }
 0xa0c   : > { %v7292_v29 = vsel %vm1618_vm2, %v15593_v4, %v7200_v2 }
 0xa0d   : > { %7324 = vst.msk [vmem:[%s15689_s30 + $0x18] sm:$0xff] %vm1684_vm4, %v7292_v29  ;;  %v7198_v28 = vpop.permute.xlu0 %7197 }
 0xa0e   : > { %v7291_v18 = vsel %vm1618_vm2, %v15595_v34, %v7198_v28 }
 0xa0f   : > { %7323 = vst.msk [vmem:[%s15689_s30 + $0x10] sm:$0xff] %vm1684_vm4, %v7291_v18  ;;  %v7204_v24 = vpop.permute.xlu1 %7203 }
 0xa10   : > { %v7294_v1 = vsel %vm1618_vm2, %v15597_v35, %v7204_v24 }
 0xa11   : > { %7326 = vst.msk [vmem:[%s15689_s30 + $0x28] sm:$0xff] %vm1684_vm4, %v7294_v1  ;;  %v7202_v38 = vpop.permute.xlu0 %7201 }
 0xa12   : > { %v7293_v4 = vsel %vm1618_vm2, %v15599_v43, %v7202_v38 }
 0xa13   : > { %7325 = vst.msk [vmem:[%s15689_s30 + $0x20] sm:$0xff] %vm1684_vm4, %v7293_v4  ;;  %v7208_v48 = vpop.permute.xlu1 %7207 }
 0xa14   : > { %v7296_v34 = vsel %vm1618_vm2, %v15601_v3, %v7208_v48 }
 0xa15   : > { %7328 = vst.msk [vmem:[%s15689_s30 + $0x38] sm:$0xff] %vm1684_vm4, %v7296_v34  ;;  %v7206_v19 = vpop.permute.xlu0 %7205 }
 0xa16   : > { %v7295_v35 = vsel %vm1618_vm2, %v15603_v42, %v7206_v19 }
 0xa17   : > { %7327 = vst.msk [vmem:[%s15689_s30 + $0x30] sm:$0xff] %vm1684_vm4, %v7295_v35  ;;  %v7212_v30 = vpop.permute.xlu1 %7211 }
 0xa18   : > { %v7298_v43 = vsel %vm1618_vm2, %v15605_v13, %v7212_v30 }
 0xa19   : > { %7330 = vst.msk [vmem:[%s15689_s30 + $0x48] sm:$0xff] %vm1684_vm4, %v7298_v43  ;;  %v7210_v52 = vpop.permute.xlu0 %7209 }
 0xa1a   : > { %v7297_v3 = vsel %vm1618_vm2, %v15607_v26, %v7210_v52 }
 0xa1b   : > { %7329 = vst.msk [vmem:[%s15689_s30 + $0x40] sm:$0xff] %vm1684_vm4, %v7297_v3  ;;  %v7216_v25 = vpop.permute.xlu1 %7215 }
 0xa1c   : > { %v7300_v42 = vsel %vm1618_vm2, %v15609_v39, %v7216_v25 }
 0xa1d   : > { %7332 = vst.msk [vmem:[%s15689_s30 + $0x58] sm:$0xff] %vm1684_vm4, %v7300_v42  ;;  %v7214_v5 = vpop.permute.xlu0 %7213 }
 0xa1e   : > { %v7299_v13 = vsel %vm1618_vm2, %v15611_v27, %v7214_v5 }
 0xa1f   : > { %7331 = vst.msk [vmem:[%s15689_s30 + $0x50] sm:$0xff] %vm1684_vm4, %v7299_v13  ;;  %v7220_v31 = vpop.permute.xlu1 %7219 }
 0xa20   : > { %v7302_v26 = vsel %vm1618_vm2, %v15613_v41, %v7220_v31 }
 0xa21   : > { %7334 = vst.msk [vmem:[%s15689_s30 + $0x68] sm:$0xff] %vm1684_vm4, %v7302_v26  ;;  %v7218_v17 = vpop.permute.xlu0 %7217 }
 0xa22   : > { %v7301_v39 = vsel %vm1618_vm2, %v15615_v10, %v7218_v17 }
 0xa23   : > { %7333 = vst.msk [vmem:[%s15689_s30 + $0x60] sm:$0xff] %vm1684_vm4, %v7301_v39  ;;  %v7224_v40 = vpop.permute.xlu1 %7223 }
 0xa24   : > { %v7304_v27 = vsel %vm1618_vm2, %v15617_v60, %v7224_v40 }
 0xa25   : > { %7336 = vst.msk [vmem:[%s15689_s30 + $0x78] sm:$0xff] %vm1684_vm4, %v7304_v27  ;;  %v7222_v49 = vpop.permute.xlu0 %7221 }
 0xa26   : > { %v7303_v41 = vsel %vm1618_vm2, %v15619_v54, %v7222_v49 }
 0xa27   : > { %7335 = vst.msk [vmem:[%s15689_s30 + $0x70] sm:$0xff] %vm1684_vm4, %v7303_v41  ;;  %v7228_v23 = vpop.permute.xlu1 %7227 }
 0xa28   : > { %v7306_v10 = vsel %vm1618_vm2, %v15621_v11, %v7228_v23 }
 0xa29   : > { %7338 = vst.msk [vmem:[%s15689_s30 + $0x88] sm:$0xff] %vm1684_vm4, %v7306_v10  ;;  %v7226_v36 = vpop.permute.xlu0 %7225 }
 0xa2a   : > { %v7305_v60 = vsel %vm1618_vm2, %v15623_v62, %v7226_v36 }
 0xa2b   : > { %7337 = vst.msk [vmem:[%s15689_s30 + $0x80] sm:$0xff] %vm1684_vm4, %v7305_v60  ;;  %v7232_v61 = vpop.permute.xlu1 %7231 }
 0xa2c   : > { %v7308_v54 = vsel %vm1618_vm2, %v15625_v56, %v7232_v61 }
 0xa2d   : > { %7340 = vst.msk [vmem:[%s15689_s30 + $0x98] sm:$0xff] %vm1684_vm4, %v7308_v54  ;;  %v7230_v53 = vpop.permute.xlu0 %7229 }
 0xa2e   : > { %v7307_v11 = vsel %vm1618_vm2, %v15627_v9, %v7230_v53 }
 0xa2f   : > { %7339 = vst.msk [vmem:[%s15689_s30 + $0x90] sm:$0xff] %vm1684_vm4, %v7307_v11  ;;  %v7236_v51 = vpop.permute.xlu1 %7235 }
 0xa30   : > { %v7310_v62 = vsel %vm1618_vm2, %v15629_v63, %v7236_v51 }
 0xa31   : > { %7342 = vst.msk [vmem:[%s15689_s30 + $0xa8] sm:$0xff] %vm1684_vm4, %v7310_v62  ;;  %v7234_v59 = vpop.permute.xlu0 %7233 }
 0xa32   : > { %v7309_v56 = vsel %vm1618_vm2, %v15631_v7, %v7234_v59 }
 0xa33   : > { %7341 = vst.msk [vmem:[%s15689_s30 + $0xa0] sm:$0xff] %vm1684_vm4, %v7309_v56  ;;  %v7240_v12 = vpop.permute.xlu1 %7239 }
 0xa34   : > { %v7312_v9 = vsel %vm1618_vm2, %v15633_v57, %v7240_v12 }
 0xa35   : > { %7344 = vst.msk [vmem:[%s15689_s30 + $0xb8] sm:$0xff] %vm1684_vm4, %v7312_v9  ;;  %v7238_v33 = vpop.permute.xlu0 %7237 }
 0xa36   : > { %v7311_v63 = vsel %vm1618_vm2, %v15635_v20, %v7238_v33 }
 0xa37   : > { %7343 = vst.msk [vmem:[%s15689_s30 + $0xb0] sm:$0xff] %vm1684_vm4, %v7311_v63  ;;  %v7244_v15 = vpop.permute.xlu1 %7243 }
 0xa38   : > { %v7314_v7 = vsel %vm1618_vm2, %v15637_v32, %v7244_v15 }
 0xa39   : > { %7346 = vst.msk [vmem:[%s15689_s30 + $0xc8] sm:$0xff] %vm1684_vm4, %v7314_v7  ;;  %v7242_v6 = vpop.permute.xlu0 %7241 }
 0xa3a   : > { %v7313_v57 = vsel %vm1618_vm2, %v15639_v37, %v7242_v6 }
 0xa3b   : > { %7345 = vst.msk [vmem:[%s15689_s30 + $0xc0] sm:$0xff] %vm1684_vm4, %v7313_v57  ;;  %v7248_v0 = vpop.permute.xlu1 %7247 }
 0xa3c   : > { %v7316_v20 = vsel %vm1618_vm2, %v15641_v47, %v7248_v0 }
 0xa3d   : > { %7348 = vst.msk [vmem:[%s15689_s30 + $0xd8] sm:$0xff] %vm1684_vm4, %v7316_v20  ;;  %v7246_v22 = vpop.permute.xlu0 %7245 }
 0xa3e   : > { %v7315_v32 = vsel %vm1618_vm2, %v15643_v55, %v7246_v22 }
 0xa3f   : > { %7347 = vst.msk [vmem:[%s15689_s30 + $0xd0] sm:$0xff] %vm1684_vm4, %v7315_v32  ;;  %v7252_v46 = vpop.permute.xlu1 %7251 }
 0xa40   : > { %v7318_v37 = vsel %vm1618_vm2, %v15645_v50, %v7252_v46 }
 0xa41   : > { %7350 = vst.msk [vmem:[%s15689_s30 + $0xe8] sm:$0xff] %vm1684_vm4, %v7318_v37  ;;  %v7250_v58 = vpop.permute.xlu0 %7249 }
 0xa42   : > { %v7317_v45 = vsel %vm1618_vm2, %v15647_v14, %v7250_v58 }
 0xa43   : > { %7349 = vst.msk [vmem:[%s15689_s30 + $0xe0] sm:$0xff] %vm1684_vm4, %v7317_v45  ;;  %v7256_v47 = vpop.permute.xlu1 %7255 }
 0xa44   : > { %v7320_v8 = vsel %vm1618_vm2, %v15649_v21, %v7256_v47 }
 0xa45   : > { %7352 = vst.msk [vmem:[%s15689_s30 + $0xf8] sm:$0xff] %vm1684_vm4, %v7320_v8  ;;  %v7254_v55 = vpop.permute.xlu0 %7253 }
 0xa46   : > { %v7319_v16 = vsel %vm1618_vm2, %v15651_v44, %v7254_v55 }
 0xa47   : > { %7351 = vst.msk [vmem:[%s15689_s30 + $0xf0] sm:$0xff] %vm1684_vm4, %v7319_v16 }
 0xa48 PF: > { %s14_s17 = sadd.s32 1, %s8708_s17   ;;  %s17515_s15 = smov %s8704_s16 }
 0xa49   : > { %p11_p5 = scmp.ge.s32.totalorder %s14_s17, 4   ;;  %s17516_s16 = smov %s17518_s18 }
 0xa4b   :  { %13 = sbr.rel (!%p11_p5) target bundleno = 2 (0x2), region = 75 }

</bundles_post_ra>
